<compile_context>
chip_gen: v6e
topology: v6e:2x2x1
jax: 0.10.0
libtpu: 0.0.40
codegen_flags: <defaults>
</compile_context>

<pallas_src>
import functools

import jax
import jax.numpy as jnp
from jax.experimental import pallas as pl
from jax.experimental.pallas import tpu as pltpu

BN_EPS = 1e-5
BASIS_DIM = 2
TEMPERATURE = 0.1


def _round_up(n, m):
    return ((n + m - 1) // m) * m


# ----------------------------- Pallas kernels -----------------------------

def conv_bn_relu_pool_kernel(planes_ref, w_ref, bn_ref, pw_ref, o_ref, rhs_ref,
                             *, cout, cin_pad, wh, la_pad):
    """Fused 3x3 conv (pad=1) + eval-BN + ReLU + 2x2 BasisPooling; one image per grid step.

    planes_ref: (1, 4, Cin_pad, LP) bf16 phase-split padded input; phase = 2*pi + pj,
                plane lanes = a*wh + b (a, b = halved padded spatial coords).
    w_ref     : (4*Cout, 16*Cin_pad) bf16 packed conv weight; rows = output-phase q=2i+j x Cout,
                cols = lane-offset d=2dh+dw x source-phase sp x Cin_pad.
    bn_ref    : (2, 4*Cout, 1) f32; [0] = gamma/sqrt(var+eps) tiled over phases, [1] = shift.
    pw_ref    : (2,) f32 in SMEM; BasisPooling projection weight, pre-divided by temperature.
                (The projection bias cancels in the softmax and is dropped.)
    o_ref     : (1, 2, Cout, la_pad) f32 pooled output; lanes = oh*wh + ow (ow == wh-1 and
                lanes >= oh*wh are junk, dropped / zero-weighted by the consumer).
    rhs_ref   : (16*Cin_pad, la_pad) bf16 VMEM scratch -- the stacked im2col RHS.
    """
    # 1) Build the stacked RHS once: block (d, sp) = source plane `sp` shifted by lane offset
    #    off(d) = dh*wh + dw.  16 sublane-aligned copies; the im2col never exists in HBM.
    for d in range(4):
        off = (d // 2) * wh + (d % 2)
        for sp in range(4):
            r0 = (d * 4 + sp) * cin_pad
            rhs_ref[r0:r0 + cin_pad, :] = planes_ref[0, sp, :, off:off + la_pad]

    # 2) One MXU matmul covers all 9 taps x all 4 output phases (K = 16*Cin_pad, N = la_pad).
    acc = jnp.dot(w_ref[...], rhs_ref[...], preferred_element_type=jnp.float32)

    # 3) Fused eval-mode BN + ReLU (f32 epilogue).
    y = jnp.maximum(acc * bn_ref[0] + bn_ref[1], 0.0)           # (4*Cout, la_pad)
    ys = [y[p * cout:(p + 1) * cout, :] for p in range(4)]       # per-phase sublane views

    # 4) BasisPooling: temperature softmax over the 4 window phases, streamed (max pass, then
    #    accumulate num/den; scores recomputed -> 4 extra vmuls, ~half the live vregs).
    for k in range(BASIS_DIM):
        pwk = pw_ref[k]
        m = ys[0] * pwk
        for yp in ys[1:]:
            m = jnp.maximum(m, yp * pwk)
        num = jnp.zeros_like(m)
        den = jnp.zeros_like(m)
        for yp in ys:
            e = jnp.exp(yp * pwk - m)
            num = num + yp * e
            den = den + e
        o_ref[0, k] = num * pl.reciprocal(den, approx=True)


def fc_kernel(x_ref, w_ref, b_ref, o_ref):
    o_ref[...] = (jnp.dot(x_ref[...].astype(jnp.bfloat16), w_ref[...],
                          preferred_element_type=jnp.float32) + b_ref[...])


# ------------------------------- wrappers ---------------------------------

def _space_to_depth_planes(x_nchw, cin_pad, lane_pad):
    """(B, C, H, W) -> (B, 4, Cin_pad, lane_pad): pad spatially by 1, split into the four
    (row-parity, col-parity) phases with lanes flattened as a*wh + b; zero-pad channels/lanes."""
    B, C, H, W = x_nchw.shape
    hh, wh = H // 2 + 1, W // 2 + 1
    xp = jnp.pad(x_nchw, ((0, 0), (0, 0), (1, 1), (1, 1)))
    planes = xp.reshape(B, C, hh, 2, wh, 2).transpose(0, 3, 5, 1, 2, 4)
    planes = planes.reshape(B, 4, C, hh * wh)
    return jnp.pad(planes, ((0, 0), (0, 0), (0, cin_pad - C), (0, lane_pad - hh * wh)))


def _pack_conv_weight(wconv, cin_pad):
    """(Cout, Cin, 3, 3) -> (4*Cout, 16*Cin_pad).  Rows = output phase q=2i+j (major) x Cout;
    cols = offset d=2dh+dw (major) x source phase sp=2pi+pj x Cin_pad.  Block (q, d, sp) holds
    tap (kh, kw) with kh = 2dh+pi-i, kw = 2dw+pj-j when it exists (9 of 16 blocks per phase)."""
    cout, cin = wconv.shape[0], wconv.shape[1]
    w4 = jnp.zeros((4 * cout, 16 * cin_pad), wconv.dtype)
    for i in range(2):
        for j in range(2):
            q = 2 * i + j
            for dh in range(2):
                for dw in range(2):
                    for pi in range(2):
                        for pj in range(2):
                            kh, kw = 2 * dh + pi - i, 2 * dw + pj - j
                            if 0 <= kh < 3 and 0 <= kw < 3:
                                c0 = ((2 * dh + dw) * 4 + 2 * pi + pj) * cin_pad
                                w4 = w4.at[q * cout:(q + 1) * cout,
                                           c0:c0 + cin].set(wconv[:, :, kh, kw])
    return w4


def conv_bn_relu_pool(x_nchw, wconv, scale, shift, proj_w):
    """Fused conv3x3(pad=1) + eval-BN + ReLU + BasisPool(2x2, K=2).  x: (B, Cin, H, W) NCHW.
    Returns (B, 2, Cout, la_pad) f32; lanes = oh*(W//2+1) + ow (ow == W//2 and lanes >=
    (H//2)*(W//2+1) are junk)."""
    B, cin, H, W = x_nchw.shape
    cout = wconv.shape[0]
    oh, wh, hh = H // 2, W // 2 + 1, H // 2 + 1
    la_pad = _round_up(oh * wh, 128)
    cin_pad = _round_up(cin, 16)                        # bf16 sublane tile = 16
    # the (dh,dw)=(1,1) offset reads plane lanes [wh+1, wh+1+la_pad) -> pad past it
    lane_pad = _round_up(max(hh * wh, wh + 1 + la_pad), 128)

    planes = _space_to_depth_planes(x_nchw, cin_pad, lane_pad).astype(jnp.bfloat16)
    w4 = _pack_conv_weight(wconv, cin_pad).astype(jnp.bfloat16)
    bn = jnp.stack([jnp.tile(scale, 4).reshape(4 * cout, 1),
                    jnp.tile(shift, 4).reshape(4 * cout, 1)]).astype(jnp.float32)
    pw = (proj_w / TEMPERATURE).astype(jnp.float32).reshape(BASIS_DIM)

    kernel = functools.partial(conv_bn_relu_pool_kernel,
                               cout=cout, cin_pad=cin_pad, wh=wh, la_pad=la_pad)
    # NOTE: one image per grid step keeps >= 2 "parallel" blocks at batch 2 (both v7x TCs busy);
    # for large B, fold a batch block into the lane/N dim instead of growing the grid.
    return pl.pallas_call(
        kernel,
        out_shape=jax.ShapeDtypeStruct((B, 2, cout, la_pad), jnp.float32),
        grid=(B,),
        in_specs=[
            pl.BlockSpec((1, 4, cin_pad, lane_pad), lambda b: (b, 0, 0, 0)),
            pl.BlockSpec((4 * cout, 16 * cin_pad), lambda b: (0, 0)),
            pl.BlockSpec((2, 4 * cout, 1), lambda b: (0, 0, 0)),
            pl.BlockSpec(memory_space=pltpu.MemorySpace.SMEM),
        ],
        out_specs=pl.BlockSpec((1, 2, cout, la_pad), lambda b: (b, 0, 0, 0)),
        scratch_shapes=[pltpu.VMEM((16 * cin_pad, la_pad), jnp.bfloat16)],
        compiler_params=pltpu.CompilerParams(dimension_semantics=("parallel",)),
    )(planes, w4, bn, pw)


def linear(x, w, b):
    """x: (B, F) @ w: (F, N) + b.  Whole-array VMEM blocks (operands are tiny).
    TODO(synk): could be fused into the stage-2 kernel epilogue to drop one launch + one small
    HBM round trip; kept separate because the flatten crosses the sublane/lane layout."""
    B, N = x.shape[0], w.shape[1]
    return pl.pallas_call(
        fc_kernel,
        out_shape=jax.ShapeDtypeStruct((B, N), jnp.float32),
        in_specs=[pl.BlockSpec(memory_space=pltpu.MemorySpace.VMEM)] * 3,
        out_specs=pl.BlockSpec(memory_space=pltpu.MemorySpace.VMEM),
    )(x, w.astype(jnp.bfloat16), b.reshape(1, N).astype(jnp.float32))


def simple_cnn_forward(x_nchw, p):
    B = x_nchw.shape[0]

    # ---- stage 1: conv1(3->16) + bn1 + relu1 + pool1 ----
    s1 = p["bn1_gamma"] / jnp.sqrt(p["bn1_var"] + BN_EPS)
    sh1 = (p["conv1_b"] - p["bn1_mean"]) * s1 + p["bn1_beta"]
    o1 = conv_bn_relu_pool(x_nchw, p["conv1_w"], s1, sh1, p["proj1_w"])   # (B, 2, 16, 384)

    # Pooled features back to NCHW with channel order k*16 + c (basis-major); conv2 / fc weights
    # below are permuted to this order, preserving the PyTorch (c*2 + k) channel semantics.
    # TODO(synk): this inter-stage relayout is XLA glue (one small HBM round trip at batch 2);
    # it could be folded into the kernels by emitting stage-1 output in stage-2's phase layout.
    f1 = o1[..., :16 * 17].reshape(B, 2, 16, 16, 17)[..., :16].reshape(B, 32, 16, 16)

    # ---- stage 2: conv2(32->32) + bn2 + relu2 + pool2 ----
    w2 = p["conv2_w"].reshape(32, 16, 2, 3, 3).transpose(0, 2, 1, 3, 4).reshape(32, 32, 3, 3)
    s2 = p["bn2_gamma"] / jnp.sqrt(p["bn2_var"] + BN_EPS)
    sh2 = (p["conv2_b"] - p["bn2_mean"]) * s2 + p["bn2_beta"]
    o2 = conv_bn_relu_pool(f1, w2, s2, sh2, p["proj2_w"])                 # (B, 2, 32, 128)

    # ---- fc: fold the PyTorch NCHW flatten + junk/pad lanes into the weight ----
    wf = p["fc_w"].reshape(10, 32, 2, 8, 8).transpose(2, 1, 3, 4, 0)      # (k, c, h, w, n)
    wf = jnp.pad(wf, ((0, 0), (0, 0), (0, 0), (0, 1), (0, 0)))            # w: 8 -> 9 (junk col)
    wf = wf.reshape(2, 32, 72, 10)
    wf = jnp.pad(wf, ((0, 0), (0, 0), (0, 128 - 72), (0, 0)))             # lanes: 72 -> 128
    wf = wf.reshape(2 * 32 * 128, 10)
    return linear(o2.reshape(B, 2 * 32 * 128), wf, p["fc_b"])             # (B, 10)


# ----------------------------- parameter init ------------------------------

def init_params(key):
    ks = jax.random.split(key, 14)

    def u(k, shape, scale):
        return jax.random.uniform(k, shape, jnp.float32, -scale, scale)

    return {
        "conv1_w": u(ks[0], (16, 3, 3, 3), 0.2),
        "conv1_b": u(ks[1], (16,), 0.2),
        "bn1_gamma": 1.0 + 0.1 * jax.random.normal(ks[2], (16,), jnp.float32),
        "bn1_beta": 0.1 * jax.random.normal(ks[3], (16,), jnp.float32),
        "bn1_mean": jnp.zeros((16,), jnp.float32),
        "bn1_var": jnp.ones((16,), jnp.float32),
        "proj1_w": u(ks[4], (2,), 1.0),   # Conv2d(1, 2, 1x1) weight (2 scalars)
        "proj1_b": u(ks[5], (2,), 1.0),   # bias cancels in the pooling softmax (unused in-kernel)
        "conv2_w": u(ks[6], (32, 32, 3, 3), 0.06),
        "conv2_b": u(ks[7], (32,), 0.06),
        "bn2_gamma": 1.0 + 0.1 * jax.random.normal(ks[8], (32,), jnp.float32),
        "bn2_beta": 0.1 * jax.random.normal(ks[9], (32,), jnp.float32),
        "bn2_mean": jnp.zeros((32,), jnp.float32),
        "bn2_var": jnp.ones((32,), jnp.float32),
        "proj2_w": u(ks[10], (2,), 1.0),
        "proj2_b": u(ks[11], (2,), 1.0),  # bias cancels in the pooling softmax (unused in-kernel)
        "fc_w": u(ks[12], (10, 32 * 2 * 8 * 8), 0.015),  # PyTorch Linear (out, in)
        "fc_b": u(ks[13], (10,), 0.015),
    }


if __name__ == "__main__":
    key = jax.random.PRNGKey(0)
    pkey, xkey = jax.random.split(key)
    params = init_params(pkey)
    # fc = Linear(32*2*8*8, 10) implies 32x32 spatial input with 3 channels
    x = jax.random.normal(xkey, (2, 3, 32, 32), jnp.float32)

    out = jax.jit(simple_cnn_forward)(x, params)
    out = jax.block_until_ready(out)
    assert out.shape == (2, 10) and out.dtype == jnp.float32
    assert bool(jnp.all(jnp.isfinite(out)))
    print("KERNEL_OK")
</pallas_src>

<mosaic_0001>
module attributes {stable_mosaic.version = 11 : i64} {
  func.func @conv_bn_relu_pool_kernel(%arg0: i32, %arg1: memref<1x4x16x512xbf16, #tpu.memory_space<vmem>>, %arg2: memref<64x256xbf16, #tpu.memory_space<vmem>>, %arg3: memref<2x64x1xf32, #tpu.memory_space<vmem>>, %arg4: memref<2xf32, #tpu.memory_space<smem>>, %arg5: memref<1x2x16x384xf32, #tpu.memory_space<vmem>>, %arg6: memref<256x384xbf16, #tpu.memory_space<vmem>>) attributes {dimension_semantics = [#tpu.dimension_semantics<parallel>], iteration_bounds = array<i64: 2>, scalar_prefetch = 0 : i64, scratch_operands = 1 : i64, tpu.core_type = #tpu.core_type<tc>, window_params = [{transform_indices = @transform_0, window_bounds = array<i64: 1, 4, 16, 512>}, {pipeline_mode = #tpu.pipeline_mode<synchronous>, transform_indices = @transform_1, window_bounds = array<i64: 64, 256>}, {pipeline_mode = #tpu.pipeline_mode<synchronous>, transform_indices = @transform_2, window_bounds = array<i64: 2, 64, 1>}, {transform_indices = @transform_3, window_bounds = array<i64: 2>}, {transform_indices = @transform_4, window_bounds = array<i64: 1, 2, 16, 384>}]} {
    %c0 = arith.constant 0 : index
    %c0_0 = arith.constant 0 : index
    %c0_1 = arith.constant 0 : index
    %c0_2 = arith.constant 0 : index
    %0 = vector.load %arg1[%c0, %c0_0, %c0_1, %c0_2] : memref<1x4x16x512xbf16, #tpu.memory_space<vmem>>, vector<1x1x16x384xbf16>
    %1 = vector.shape_cast %0 : vector<1x1x16x384xbf16> to vector<16x384xbf16>
    %c0_3 = arith.constant 0 : index
    %c0_4 = arith.constant 0 : index
    %2 = vector.load %arg6[%c0_3, %c0_4] : memref<256x384xbf16, #tpu.memory_space<vmem>>, vector<16x384xbf16>
    tpu.vector_store %arg6[%c0_3, %c0_4], %1 {strides = array<i32>} : memref<256x384xbf16, #tpu.memory_space<vmem>>, vector<16x384xbf16>,
    %c0_5 = arith.constant 0 : index
    %c1 = arith.constant 1 : index
    %c0_6 = arith.constant 0 : index
    %c0_7 = arith.constant 0 : index
    %3 = vector.load %arg1[%c0_5, %c1, %c0_6, %c0_7] : memref<1x4x16x512xbf16, #tpu.memory_space<vmem>>, vector<1x1x16x384xbf16>
    %4 = vector.shape_cast %3 : vector<1x1x16x384xbf16> to vector<16x384xbf16>
    %c16 = arith.constant 16 : index
    %c0_8 = arith.constant 0 : index
    %5 = vector.load %arg6[%c16, %c0_8] : memref<256x384xbf16, #tpu.memory_space<vmem>>, vector<16x384xbf16>
    tpu.vector_store %arg6[%c16, %c0_8], %4 {strides = array<i32>} : memref<256x384xbf16, #tpu.memory_space<vmem>>, vector<16x384xbf16>,
    %c0_9 = arith.constant 0 : index
    %c2 = arith.constant 2 : index
    %c0_10 = arith.constant 0 : index
    %c0_11 = arith.constant 0 : index
    %6 = vector.load %arg1[%c0_9, %c2, %c0_10, %c0_11] : memref<1x4x16x512xbf16, #tpu.memory_space<vmem>>, vector<1x1x16x384xbf16>
    %7 = vector.shape_cast %6 : vector<1x1x16x384xbf16> to vector<16x384xbf16>
    %c32 = arith.constant 32 : index
    %c0_12 = arith.constant 0 : index
    %8 = vector.load %arg6[%c32, %c0_12] : memref<256x384xbf16, #tpu.memory_space<vmem>>, vector<16x384xbf16>
    tpu.vector_store %arg6[%c32, %c0_12], %7 {strides = array<i32>} : memref<256x384xbf16, #tpu.memory_space<vmem>>, vector<16x384xbf16>,
    %c0_13 = arith.constant 0 : index
    %c3 = arith.constant 3 : index
    %c0_14 = arith.constant 0 : index
    %c0_15 = arith.constant 0 : index
    %9 = vector.load %arg1[%c0_13, %c3, %c0_14, %c0_15] : memref<1x4x16x512xbf16, #tpu.memory_space<vmem>>, vector<1x1x16x384xbf16>
    %10 = vector.shape_cast %9 : vector<1x1x16x384xbf16> to vector<16x384xbf16>
    %c48 = arith.constant 48 : index
    %c0_16 = arith.constant 0 : index
    %11 = vector.load %arg6[%c48, %c0_16] : memref<256x384xbf16, #tpu.memory_space<vmem>>, vector<16x384xbf16>
    tpu.vector_store %arg6[%c48, %c0_16], %10 {strides = array<i32>} : memref<256x384xbf16, #tpu.memory_space<vmem>>, vector<16x384xbf16>,
    %c0_17 = arith.constant 0 : index
    %c0_18 = arith.constant 0 : index
    %c0_19 = arith.constant 0 : index
    %c1_20 = arith.constant 1 : index
    %12 = vector.load %arg1[%c0_17, %c0_18, %c0_19, %c1_20] : memref<1x4x16x512xbf16, #tpu.memory_space<vmem>>, vector<1x1x16x384xbf16>
    %13 = vector.shape_cast %12 : vector<1x1x16x384xbf16> to vector<16x384xbf16>
    %c64 = arith.constant 64 : index
    %c0_21 = arith.constant 0 : index
    %14 = vector.load %arg6[%c64, %c0_21] : memref<256x384xbf16, #tpu.memory_space<vmem>>, vector<16x384xbf16>
    tpu.vector_store %arg6[%c64, %c0_21], %13 {strides = array<i32>} : memref<256x384xbf16, #tpu.memory_space<vmem>>, vector<16x384xbf16>,
    %c0_22 = arith.constant 0 : index
    %c1_23 = arith.constant 1 : index
    %c0_24 = arith.constant 0 : index
    %c1_25 = arith.constant 1 : index
    %15 = vector.load %arg1[%c0_22, %c1_23, %c0_24, %c1_25] : memref<1x4x16x512xbf16, #tpu.memory_space<vmem>>, vector<1x1x16x384xbf16>
    %16 = vector.shape_cast %15 : vector<1x1x16x384xbf16> to vector<16x384xbf16>
    %c80 = arith.constant 80 : index
    %c0_26 = arith.constant 0 : index
    %17 = vector.load %arg6[%c80, %c0_26] : memref<256x384xbf16, #tpu.memory_space<vmem>>, vector<16x384xbf16>
    tpu.vector_store %arg6[%c80, %c0_26], %16 {strides = array<i32>} : memref<256x384xbf16, #tpu.memory_space<vmem>>, vector<16x384xbf16>,
    %c0_27 = arith.constant 0 : index
    %c2_28 = arith.constant 2 : index
    %c0_29 = arith.constant 0 : index
    %c1_30 = arith.constant 1 : index
    %18 = vector.load %arg1[%c0_27, %c2_28, %c0_29, %c1_30] : memref<1x4x16x512xbf16, #tpu.memory_space<vmem>>, vector<1x1x16x384xbf16>
    %19 = vector.shape_cast %18 : vector<1x1x16x384xbf16> to vector<16x384xbf16>
    %c96 = arith.constant 96 : index
    %c0_31 = arith.constant 0 : index
    %20 = vector.load %arg6[%c96, %c0_31] : memref<256x384xbf16, #tpu.memory_space<vmem>>, vector<16x384xbf16>
    tpu.vector_store %arg6[%c96, %c0_31], %19 {strides = array<i32>} : memref<256x384xbf16, #tpu.memory_space<vmem>>, vector<16x384xbf16>,
    %c0_32 = arith.constant 0 : index
    %c3_33 = arith.constant 3 : index
    %c0_34 = arith.constant 0 : index
    %c1_35 = arith.constant 1 : index
    %21 = vector.load %arg1[%c0_32, %c3_33, %c0_34, %c1_35] : memref<1x4x16x512xbf16, #tpu.memory_space<vmem>>, vector<1x1x16x384xbf16>
    %22 = vector.shape_cast %21 : vector<1x1x16x384xbf16> to vector<16x384xbf16>
    %c112 = arith.constant 112 : index
    %c0_36 = arith.constant 0 : index
    %23 = vector.load %arg6[%c112, %c0_36] : memref<256x384xbf16, #tpu.memory_space<vmem>>, vector<16x384xbf16>
    tpu.vector_store %arg6[%c112, %c0_36], %22 {strides = array<i32>} : memref<256x384xbf16, #tpu.memory_space<vmem>>, vector<16x384xbf16>,
    %c0_37 = arith.constant 0 : index
    %c0_38 = arith.constant 0 : index
    %c0_39 = arith.constant 0 : index
    %c17 = arith.constant 17 : index
    %24 = vector.load %arg1[%c0_37, %c0_38, %c0_39, %c17] : memref<1x4x16x512xbf16, #tpu.memory_space<vmem>>, vector<1x1x16x384xbf16>
    %25 = vector.shape_cast %24 : vector<1x1x16x384xbf16> to vector<16x384xbf16>
    %c128 = arith.constant 128 : index
    %c0_40 = arith.constant 0 : index
    %26 = vector.load %arg6[%c128, %c0_40] : memref<256x384xbf16, #tpu.memory_space<vmem>>, vector<16x384xbf16>
    tpu.vector_store %arg6[%c128, %c0_40], %25 {strides = array<i32>} : memref<256x384xbf16, #tpu.memory_space<vmem>>, vector<16x384xbf16>,
    %c0_41 = arith.constant 0 : index
    %c1_42 = arith.constant 1 : index
    %c0_43 = arith.constant 0 : index
    %c17_44 = arith.constant 17 : index
    %27 = vector.load %arg1[%c0_41, %c1_42, %c0_43, %c17_44] : memref<1x4x16x512xbf16, #tpu.memory_space<vmem>>, vector<1x1x16x384xbf16>
    %28 = vector.shape_cast %27 : vector<1x1x16x384xbf16> to vector<16x384xbf16>
    %c144 = arith.constant 144 : index
    %c0_45 = arith.constant 0 : index
    %29 = vector.load %arg6[%c144, %c0_45] : memref<256x384xbf16, #tpu.memory_space<vmem>>, vector<16x384xbf16>
    tpu.vector_store %arg6[%c144, %c0_45], %28 {strides = array<i32>} : memref<256x384xbf16, #tpu.memory_space<vmem>>, vector<16x384xbf16>,
    %c0_46 = arith.constant 0 : index
    %c2_47 = arith.constant 2 : index
    %c0_48 = arith.constant 0 : index
    %c17_49 = arith.constant 17 : index
    %30 = vector.load %arg1[%c0_46, %c2_47, %c0_48, %c17_49] : memref<1x4x16x512xbf16, #tpu.memory_space<vmem>>, vector<1x1x16x384xbf16>
    %31 = vector.shape_cast %30 : vector<1x1x16x384xbf16> to vector<16x384xbf16>
    %c160 = arith.constant 160 : index
    %c0_50 = arith.constant 0 : index
    %32 = vector.load %arg6[%c160, %c0_50] : memref<256x384xbf16, #tpu.memory_space<vmem>>, vector<16x384xbf16>
    tpu.vector_store %arg6[%c160, %c0_50], %31 {strides = array<i32>} : memref<256x384xbf16, #tpu.memory_space<vmem>>, vector<16x384xbf16>,
    %c0_51 = arith.constant 0 : index
    %c3_52 = arith.constant 3 : index
    %c0_53 = arith.constant 0 : index
    %c17_54 = arith.constant 17 : index
    %33 = vector.load %arg1[%c0_51, %c3_52, %c0_53, %c17_54] : memref<1x4x16x512xbf16, #tpu.memory_space<vmem>>, vector<1x1x16x384xbf16>
    %34 = vector.shape_cast %33 : vector<1x1x16x384xbf16> to vector<16x384xbf16>
    %c176 = arith.constant 176 : index
    %c0_55 = arith.constant 0 : index
    %35 = vector.load %arg6[%c176, %c0_55] : memref<256x384xbf16, #tpu.memory_space<vmem>>, vector<16x384xbf16>
    tpu.vector_store %arg6[%c176, %c0_55], %34 {strides = array<i32>} : memref<256x384xbf16, #tpu.memory_space<vmem>>, vector<16x384xbf16>,
    %c0_56 = arith.constant 0 : index
    %c0_57 = arith.constant 0 : index
    %c0_58 = arith.constant 0 : index
    %c18 = arith.constant 18 : index
    %36 = vector.load %arg1[%c0_56, %c0_57, %c0_58, %c18] : memref<1x4x16x512xbf16, #tpu.memory_space<vmem>>, vector<1x1x16x384xbf16>
    %37 = vector.shape_cast %36 : vector<1x1x16x384xbf16> to vector<16x384xbf16>
    %c192 = arith.constant 192 : index
    %c0_59 = arith.constant 0 : index
    %38 = vector.load %arg6[%c192, %c0_59] : memref<256x384xbf16, #tpu.memory_space<vmem>>, vector<16x384xbf16>
    tpu.vector_store %arg6[%c192, %c0_59], %37 {strides = array<i32>} : memref<256x384xbf16, #tpu.memory_space<vmem>>, vector<16x384xbf16>,
    %c0_60 = arith.constant 0 : index
    %c1_61 = arith.constant 1 : index
    %c0_62 = arith.constant 0 : index
    %c18_63 = arith.constant 18 : index
    %39 = vector.load %arg1[%c0_60, %c1_61, %c0_62, %c18_63] : memref<1x4x16x512xbf16, #tpu.memory_space<vmem>>, vector<1x1x16x384xbf16>
    %40 = vector.shape_cast %39 : vector<1x1x16x384xbf16> to vector<16x384xbf16>
    %c208 = arith.constant 208 : index
    %c0_64 = arith.constant 0 : index
    %41 = vector.load %arg6[%c208, %c0_64] : memref<256x384xbf16, #tpu.memory_space<vmem>>, vector<16x384xbf16>
    tpu.vector_store %arg6[%c208, %c0_64], %40 {strides = array<i32>} : memref<256x384xbf16, #tpu.memory_space<vmem>>, vector<16x384xbf16>,
    %c0_65 = arith.constant 0 : index
    %c2_66 = arith.constant 2 : index
    %c0_67 = arith.constant 0 : index
    %c18_68 = arith.constant 18 : index
    %42 = vector.load %arg1[%c0_65, %c2_66, %c0_67, %c18_68] : memref<1x4x16x512xbf16, #tpu.memory_space<vmem>>, vector<1x1x16x384xbf16>
    %43 = vector.shape_cast %42 : vector<1x1x16x384xbf16> to vector<16x384xbf16>
    %c224 = arith.constant 224 : index
    %c0_69 = arith.constant 0 : index
    %44 = vector.load %arg6[%c224, %c0_69] : memref<256x384xbf16, #tpu.memory_space<vmem>>, vector<16x384xbf16>
    tpu.vector_store %arg6[%c224, %c0_69], %43 {strides = array<i32>} : memref<256x384xbf16, #tpu.memory_space<vmem>>, vector<16x384xbf16>,
    %c0_70 = arith.constant 0 : index
    %c3_71 = arith.constant 3 : index
    %c0_72 = arith.constant 0 : index
    %c18_73 = arith.constant 18 : index
    %45 = vector.load %arg1[%c0_70, %c3_71, %c0_72, %c18_73] : memref<1x4x16x512xbf16, #tpu.memory_space<vmem>>, vector<1x1x16x384xbf16>
    %46 = vector.shape_cast %45 : vector<1x1x16x384xbf16> to vector<16x384xbf16>
    %c240 = arith.constant 240 : index
    %c0_74 = arith.constant 0 : index
    %47 = vector.load %arg6[%c240, %c0_74] : memref<256x384xbf16, #tpu.memory_space<vmem>>, vector<16x384xbf16>
    tpu.vector_store %arg6[%c240, %c0_74], %46 {strides = array<i32>} : memref<256x384xbf16, #tpu.memory_space<vmem>>, vector<16x384xbf16>,
    %c0_75 = arith.constant 0 : index
    %c0_76 = arith.constant 0 : index
    %48 = vector.load %arg2[%c0_75, %c0_76] : memref<64x256xbf16, #tpu.memory_space<vmem>>, vector<64x256xbf16>
    %c0_77 = arith.constant 0 : index
    %c0_78 = arith.constant 0 : index
    %49 = vector.load %arg6[%c0_77, %c0_78] : memref<256x384xbf16, #tpu.memory_space<vmem>>, vector<256x384xbf16>
    %cst = arith.constant dense<0.000000e+00> : vector<64x384xf32>
    %50 = tpu.matmul %48, %49, %cst {dimension_numbers = #tpu.dot_dimension_numbers<[1], [0], [0], [1], [0, 0, 1, 1], [], []>} : vector<64x256xbf16>, vector<256x384xbf16>, vector<64x384xf32> -> vector<64x384xf32>
    %c0_79 = arith.constant 0 : index
    %c0_80 = arith.constant 0 : index
    %c0_81 = arith.constant 0 : index
    %51 = vector.load %arg3[%c0_79, %c0_80, %c0_81] : memref<2x64x1xf32, #tpu.memory_space<vmem>>, vector<1x64x1xf32>
    %52 = vector.shape_cast %51 : vector<1x64x1xf32> to vector<64x1xf32>
    %53 = vector.broadcast %52 : vector<64x1xf32> to vector<64x384xf32>
    %54 = arith.mulf %50, %53 : vector<64x384xf32>
    %c1_82 = arith.constant 1 : index
    %c0_83 = arith.constant 0 : index
    %c0_84 = arith.constant 0 : index
    %55 = vector.load %arg3[%c1_82, %c0_83, %c0_84] : memref<2x64x1xf32, #tpu.memory_space<vmem>>, vector<1x64x1xf32>
    %56 = vector.shape_cast %55 : vector<1x64x1xf32> to vector<64x1xf32>
    %57 = vector.broadcast %56 : vector<64x1xf32> to vector<64x384xf32>
    %58 = arith.addf %54, %57 : vector<64x384xf32>
    %cst_85 = arith.constant 0.000000e+00 : f32
    %59 = vector.broadcast %cst_85 : f32 to vector<64x384xf32>
    %60 = arith.maximumf %58, %59 : vector<64x384xf32>
    %61 = vector.extract_strided_slice %60 {offsets = [0, 0], sizes = [16, 384], strides = [1, 1]} : vector<64x384xf32> to vector<16x384xf32>
    %62 = vector.extract_strided_slice %60 {offsets = [16, 0], sizes = [16, 384], strides = [1, 1]} : vector<64x384xf32> to vector<16x384xf32>
    %63 = vector.extract_strided_slice %60 {offsets = [32, 0], sizes = [16, 384], strides = [1, 1]} : vector<64x384xf32> to vector<16x384xf32>
    %64 = vector.extract_strided_slice %60 {offsets = [48, 0], sizes = [16, 384], strides = [1, 1]} : vector<64x384xf32> to vector<16x384xf32>
    %c0_86 = arith.constant 0 : index
    %65 = memref.load %arg4[%c0_86] : memref<2xf32, #tpu.memory_space<smem>>
    %66 = vector.broadcast %65 : f32 to vector<16x384xf32>
    %67 = arith.mulf %61, %66 : vector<16x384xf32>
    %68 = vector.broadcast %65 : f32 to vector<16x384xf32>
    %69 = arith.mulf %62, %68 : vector<16x384xf32>
    %70 = arith.maximumf %67, %69 : vector<16x384xf32>
    %71 = vector.broadcast %65 : f32 to vector<16x384xf32>
    %72 = arith.mulf %63, %71 : vector<16x384xf32>
    %73 = arith.maximumf %70, %72 : vector<16x384xf32>
    %74 = vector.broadcast %65 : f32 to vector<16x384xf32>
    %75 = arith.mulf %64, %74 : vector<16x384xf32>
    %76 = arith.maximumf %73, %75 : vector<16x384xf32>
    %cst_87 = arith.constant 0.000000e+00 : f32
    %77 = vector.broadcast %cst_87 : f32 to vector<16x384xf32>
    %cst_88 = arith.constant 0.000000e+00 : f32
    %78 = vector.broadcast %cst_88 : f32 to vector<16x384xf32>
    %79 = vector.broadcast %65 : f32 to vector<16x384xf32>
    %80 = arith.mulf %61, %79 : vector<16x384xf32>
    %81 = arith.subf %80, %76 : vector<16x384xf32>
    %82 = math.exp %81 : vector<16x384xf32>
    %83 = arith.mulf %61, %82 : vector<16x384xf32>
    %84 = arith.addf %77, %83 : vector<16x384xf32>
    %85 = arith.addf %78, %82 : vector<16x384xf32>
    %86 = vector.broadcast %65 : f32 to vector<16x384xf32>
    %87 = arith.mulf %62, %86 : vector<16x384xf32>
    %88 = arith.subf %87, %76 : vector<16x384xf32>
    %89 = math.exp %88 : vector<16x384xf32>
    %90 = arith.mulf %62, %89 : vector<16x384xf32>
    %91 = arith.addf %84, %90 : vector<16x384xf32>
    %92 = arith.addf %85, %89 : vector<16x384xf32>
    %93 = vector.broadcast %65 : f32 to vector<16x384xf32>
    %94 = arith.mulf %63, %93 : vector<16x384xf32>
    %95 = arith.subf %94, %76 : vector<16x384xf32>
    %96 = math.exp %95 : vector<16x384xf32>
    %97 = arith.mulf %63, %96 : vector<16x384xf32>
    %98 = arith.addf %91, %97 : vector<16x384xf32>
    %99 = arith.addf %92, %96 : vector<16x384xf32>
    %100 = vector.broadcast %65 : f32 to vector<16x384xf32>
    %101 = arith.mulf %64, %100 : vector<16x384xf32>
    %102 = arith.subf %101, %76 : vector<16x384xf32>
    %103 = math.exp %102 : vector<16x384xf32>
    %104 = arith.mulf %64, %103 : vector<16x384xf32>
    %105 = arith.addf %98, %104 : vector<16x384xf32>
    %106 = arith.addf %99, %103 : vector<16x384xf32>
    %107 = tpu.reciprocal %106 {approx = true} : vector<16x384xf32> -> vector<16x384xf32>
    %108 = arith.mulf %105, %107 : vector<16x384xf32>
    %c0_89 = arith.constant 0 : index
    %c0_90 = arith.constant 0 : index
    %c0_91 = arith.constant 0 : index
    %c0_92 = arith.constant 0 : index
    %109 = vector.load %arg5[%c0_89, %c0_90, %c0_91, %c0_92] : memref<1x2x16x384xf32, #tpu.memory_space<vmem>>, vector<1x1x16x384xf32>
    %110 = vector.shape_cast %109 : vector<1x1x16x384xf32> to vector<16x384xf32>
    %111 = vector.shape_cast %108 : vector<16x384xf32> to vector<1x1x16x384xf32>
    tpu.vector_store %arg5[%c0_89, %c0_90, %c0_91, %c0_92], %111 {strides = array<i32>} : memref<1x2x16x384xf32, #tpu.memory_space<vmem>>, vector<1x1x16x384xf32>,
    %c1_93 = arith.constant 1 : index
    %112 = memref.load %arg4[%c1_93] : memref<2xf32, #tpu.memory_space<smem>>
    %113 = vector.broadcast %112 : f32 to vector<16x384xf32>
    %114 = arith.mulf %61, %113 : vector<16x384xf32>
    %115 = vector.broadcast %112 : f32 to vector<16x384xf32>
    %116 = arith.mulf %62, %115 : vector<16x384xf32>
    %117 = arith.maximumf %114, %116 : vector<16x384xf32>
    %118 = vector.broadcast %112 : f32 to vector<16x384xf32>
    %119 = arith.mulf %63, %118 : vector<16x384xf32>
    %120 = arith.maximumf %117, %119 : vector<16x384xf32>
    %121 = vector.broadcast %112 : f32 to vector<16x384xf32>
    %122 = arith.mulf %64, %121 : vector<16x384xf32>
    %123 = arith.maximumf %120, %122 : vector<16x384xf32>
    %cst_94 = arith.constant 0.000000e+00 : f32
    %124 = vector.broadcast %cst_94 : f32 to vector<16x384xf32>
    %cst_95 = arith.constant 0.000000e+00 : f32
    %125 = vector.broadcast %cst_95 : f32 to vector<16x384xf32>
    %126 = vector.broadcast %112 : f32 to vector<16x384xf32>
    %127 = arith.mulf %61, %126 : vector<16x384xf32>
    %128 = arith.subf %127, %123 : vector<16x384xf32>
    %129 = math.exp %128 : vector<16x384xf32>
    %130 = arith.mulf %61, %129 : vector<16x384xf32>
    %131 = arith.addf %124, %130 : vector<16x384xf32>
    %132 = arith.addf %125, %129 : vector<16x384xf32>
    %133 = vector.broadcast %112 : f32 to vector<16x384xf32>
    %134 = arith.mulf %62, %133 : vector<16x384xf32>
    %135 = arith.subf %134, %123 : vector<16x384xf32>
    %136 = math.exp %135 : vector<16x384xf32>
    %137 = arith.mulf %62, %136 : vector<16x384xf32>
    %138 = arith.addf %131, %137 : vector<16x384xf32>
    %139 = arith.addf %132, %136 : vector<16x384xf32>
    %140 = vector.broadcast %112 : f32 to vector<16x384xf32>
    %141 = arith.mulf %63, %140 : vector<16x384xf32>
    %142 = arith.subf %141, %123 : vector<16x384xf32>
    %143 = math.exp %142 : vector<16x384xf32>
    %144 = arith.mulf %63, %143 : vector<16x384xf32>
    %145 = arith.addf %138, %144 : vector<16x384xf32>
    %146 = arith.addf %139, %143 : vector<16x384xf32>
    %147 = vector.broadcast %112 : f32 to vector<16x384xf32>
    %148 = arith.mulf %64, %147 : vector<16x384xf32>
    %149 = arith.subf %148, %123 : vector<16x384xf32>
    %150 = math.exp %149 : vector<16x384xf32>
    %151 = arith.mulf %64, %150 : vector<16x384xf32>
    %152 = arith.addf %145, %151 : vector<16x384xf32>
    %153 = arith.addf %146, %150 : vector<16x384xf32>
    %154 = tpu.reciprocal %153 {approx = true} : vector<16x384xf32> -> vector<16x384xf32>
    %155 = arith.mulf %152, %154 : vector<16x384xf32>
    %c0_96 = arith.constant 0 : index
    %c1_97 = arith.constant 1 : index
    %c0_98 = arith.constant 0 : index
    %c0_99 = arith.constant 0 : index
    %156 = vector.load %arg5[%c0_96, %c1_97, %c0_98, %c0_99] : memref<1x2x16x384xf32, #tpu.memory_space<vmem>>, vector<1x1x16x384xf32>
    %157 = vector.shape_cast %156 : vector<1x1x16x384xf32> to vector<16x384xf32>
    %158 = vector.shape_cast %155 : vector<16x384xf32> to vector<1x1x16x384xf32>
    tpu.vector_store %arg5[%c0_96, %c1_97, %c0_98, %c0_99], %158 {strides = array<i32>} : memref<1x2x16x384xf32, #tpu.memory_space<vmem>>, vector<1x1x16x384xf32>,
    return
  }
  func.func @transform_0(%arg0: i32) -> (i32, i32, i32, i32) {
    %c0_i32 = arith.constant 0 : i32
    %c0_i32_0 = arith.constant 0 : i32
    %c0_i32_1 = arith.constant 0 : i32
    %c0_i32_2 = arith.constant 0 : i32
    return %arg0, %c0_i32, %c0_i32_0, %c0_i32_1 : i32, i32, i32, i32
  }
  func.func @transform_1(%arg0: i32) -> (i32, i32) {
    %c0_i32 = arith.constant 0 : i32
    %c0_i32_0 = arith.constant 0 : i32
    %c0_i32_1 = arith.constant 0 : i32
    return %c0_i32, %c0_i32_0 : i32, i32
  }
  func.func @transform_2(%arg0: i32) -> (i32, i32, i32) {
    %c0_i32 = arith.constant 0 : i32
    %c0_i32_0 = arith.constant 0 : i32
    %c0_i32_1 = arith.constant 0 : i32
    %c0_i32_2 = arith.constant 0 : i32
    return %c0_i32, %c0_i32_0, %c0_i32_1 : i32, i32, i32
  }
  func.func @transform_3(%arg0: i32) -> i32 {
    %c0_i32 = arith.constant 0 : i32
    %c0_i32_0 = arith.constant 0 : i32
    return %c0_i32 : i32
  }
  func.func @transform_4(%arg0: i32) -> (i32, i32, i32, i32) {
    %c0_i32 = arith.constant 0 : i32
    %c0_i32_0 = arith.constant 0 : i32
    %c0_i32_1 = arith.constant 0 : i32
    %c0_i32_2 = arith.constant 0 : i32
    return %arg0, %c0_i32, %c0_i32_0, %c0_i32_1 : i32, i32, i32, i32
  }
}

module attributes {stable_mosaic.version = 11 : i64} {
  func.func @conv_bn_relu_pool_kernel(%arg0: i32, %arg1: memref<1x4x32x256xbf16, #tpu.memory_space<vmem>>, %arg2: memref<128x512xbf16, #tpu.memory_space<vmem>>, %arg3: memref<2x128x1xf32, #tpu.memory_space<vmem>>, %arg4: memref<2xf32, #tpu.memory_space<smem>>, %arg5: memref<1x2x32x128xf32, #tpu.memory_space<vmem>>, %arg6: memref<512x128xbf16, #tpu.memory_space<vmem>>) attributes {dimension_semantics = [#tpu.dimension_semantics<parallel>], iteration_bounds = array<i64: 2>, scalar_prefetch = 0 : i64, scratch_operands = 1 : i64, tpu.core_type = #tpu.core_type<tc>, window_params = [{transform_indices = @transform_0, window_bounds = array<i64: 1, 4, 32, 256>}, {pipeline_mode = #tpu.pipeline_mode<synchronous>, transform_indices = @transform_1, window_bounds = array<i64: 128, 512>}, {pipeline_mode = #tpu.pipeline_mode<synchronous>, transform_indices = @transform_2, window_bounds = array<i64: 2, 128, 1>}, {transform_indices = @transform_3, window_bounds = array<i64: 2>}, {transform_indices = @transform_4, window_bounds = array<i64: 1, 2, 32, 128>}]} {
    %c0 = arith.constant 0 : index
    %c0_0 = arith.constant 0 : index
    %c0_1 = arith.constant 0 : index
    %c0_2 = arith.constant 0 : index
    %0 = vector.load %arg1[%c0, %c0_0, %c0_1, %c0_2] : memref<1x4x32x256xbf16, #tpu.memory_space<vmem>>, vector<1x1x32x128xbf16>
    %1 = vector.shape_cast %0 : vector<1x1x32x128xbf16> to vector<32x128xbf16>
    %c0_3 = arith.constant 0 : index
    %c0_4 = arith.constant 0 : index
    %2 = vector.load %arg6[%c0_3, %c0_4] : memref<512x128xbf16, #tpu.memory_space<vmem>>, vector<32x128xbf16>
    tpu.vector_store %arg6[%c0_3, %c0_4], %1 {strides = array<i32>} : memref<512x128xbf16, #tpu.memory_space<vmem>>, vector<32x128xbf16>,
    %c0_5 = arith.constant 0 : index
    %c1 = arith.constant 1 : index
    %c0_6 = arith.constant 0 : index
    %c0_7 = arith.constant 0 : index
    %3 = vector.load %arg1[%c0_5, %c1, %c0_6, %c0_7] : memref<1x4x32x256xbf16, #tpu.memory_space<vmem>>, vector<1x1x32x128xbf16>
    %4 = vector.shape_cast %3 : vector<1x1x32x128xbf16> to vector<32x128xbf16>
    %c32 = arith.constant 32 : index
    %c0_8 = arith.constant 0 : index
    %5 = vector.load %arg6[%c32, %c0_8] : memref<512x128xbf16, #tpu.memory_space<vmem>>, vector<32x128xbf16>
    tpu.vector_store %arg6[%c32, %c0_8], %4 {strides = array<i32>} : memref<512x128xbf16, #tpu.memory_space<vmem>>, vector<32x128xbf16>,
    %c0_9 = arith.constant 0 : index
    %c2 = arith.constant 2 : index
    %c0_10 = arith.constant 0 : index
    %c0_11 = arith.constant 0 : index
    %6 = vector.load %arg1[%c0_9, %c2, %c0_10, %c0_11] : memref<1x4x32x256xbf16, #tpu.memory_space<vmem>>, vector<1x1x32x128xbf16>
    %7 = vector.shape_cast %6 : vector<1x1x32x128xbf16> to vector<32x128xbf16>
    %c64 = arith.constant 64 : index
    %c0_12 = arith.constant 0 : index
    %8 = vector.load %arg6[%c64, %c0_12] : memref<512x128xbf16, #tpu.memory_space<vmem>>, vector<32x128xbf16>
    tpu.vector_store %arg6[%c64, %c0_12], %7 {strides = array<i32>} : memref<512x128xbf16, #tpu.memory_space<vmem>>, vector<32x128xbf16>,
    %c0_13 = arith.constant 0 : index
    %c3 = arith.constant 3 : index
    %c0_14 = arith.constant 0 : index
    %c0_15 = arith.constant 0 : index
    %9 = vector.load %arg1[%c0_13, %c3, %c0_14, %c0_15] : memref<1x4x32x256xbf16, #tpu.memory_space<vmem>>, vector<1x1x32x128xbf16>
    %10 = vector.shape_cast %9 : vector<1x1x32x128xbf16> to vector<32x128xbf16>
    %c96 = arith.constant 96 : index
    %c0_16 = arith.constant 0 : index
    %11 = vector.load %arg6[%c96, %c0_16] : memref<512x128xbf16, #tpu.memory_space<vmem>>, vector<32x128xbf16>
    tpu.vector_store %arg6[%c96, %c0_16], %10 {strides = array<i32>} : memref<512x128xbf16, #tpu.memory_space<vmem>>, vector<32x128xbf16>,
    %c0_17 = arith.constant 0 : index
    %c0_18 = arith.constant 0 : index
    %c0_19 = arith.constant 0 : index
    %c1_20 = arith.constant 1 : index
    %12 = vector.load %arg1[%c0_17, %c0_18, %c0_19, %c1_20] : memref<1x4x32x256xbf16, #tpu.memory_space<vmem>>, vector<1x1x32x128xbf16>
    %13 = vector.shape_cast %12 : vector<1x1x32x128xbf16> to vector<32x128xbf16>
    %c128 = arith.constant 128 : index
    %c0_21 = arith.constant 0 : index
    %14 = vector.load %arg6[%c128, %c0_21] : memref<512x128xbf16, #tpu.memory_space<vmem>>, vector<32x128xbf16>
    tpu.vector_store %arg6[%c128, %c0_21], %13 {strides = array<i32>} : memref<512x128xbf16, #tpu.memory_space<vmem>>, vector<32x128xbf16>,
    %c0_22 = arith.constant 0 : index
    %c1_23 = arith.constant 1 : index
    %c0_24 = arith.constant 0 : index
    %c1_25 = arith.constant 1 : index
    %15 = vector.load %arg1[%c0_22, %c1_23, %c0_24, %c1_25] : memref<1x4x32x256xbf16, #tpu.memory_space<vmem>>, vector<1x1x32x128xbf16>
    %16 = vector.shape_cast %15 : vector<1x1x32x128xbf16> to vector<32x128xbf16>
    %c160 = arith.constant 160 : index
    %c0_26 = arith.constant 0 : index
    %17 = vector.load %arg6[%c160, %c0_26] : memref<512x128xbf16, #tpu.memory_space<vmem>>, vector<32x128xbf16>
    tpu.vector_store %arg6[%c160, %c0_26], %16 {strides = array<i32>} : memref<512x128xbf16, #tpu.memory_space<vmem>>, vector<32x128xbf16>,
    %c0_27 = arith.constant 0 : index
    %c2_28 = arith.constant 2 : index
    %c0_29 = arith.constant 0 : index
    %c1_30 = arith.constant 1 : index
    %18 = vector.load %arg1[%c0_27, %c2_28, %c0_29, %c1_30] : memref<1x4x32x256xbf16, #tpu.memory_space<vmem>>, vector<1x1x32x128xbf16>
    %19 = vector.shape_cast %18 : vector<1x1x32x128xbf16> to vector<32x128xbf16>
    %c192 = arith.constant 192 : index
    %c0_31 = arith.constant 0 : index
    %20 = vector.load %arg6[%c192, %c0_31] : memref<512x128xbf16, #tpu.memory_space<vmem>>, vector<32x128xbf16>
    tpu.vector_store %arg6[%c192, %c0_31], %19 {strides = array<i32>} : memref<512x128xbf16, #tpu.memory_space<vmem>>, vector<32x128xbf16>,
    %c0_32 = arith.constant 0 : index
    %c3_33 = arith.constant 3 : index
    %c0_34 = arith.constant 0 : index
    %c1_35 = arith.constant 1 : index
    %21 = vector.load %arg1[%c0_32, %c3_33, %c0_34, %c1_35] : memref<1x4x32x256xbf16, #tpu.memory_space<vmem>>, vector<1x1x32x128xbf16>
    %22 = vector.shape_cast %21 : vector<1x1x32x128xbf16> to vector<32x128xbf16>
    %c224 = arith.constant 224 : index
    %c0_36 = arith.constant 0 : index
    %23 = vector.load %arg6[%c224, %c0_36] : memref<512x128xbf16, #tpu.memory_space<vmem>>, vector<32x128xbf16>
    tpu.vector_store %arg6[%c224, %c0_36], %22 {strides = array<i32>} : memref<512x128xbf16, #tpu.memory_space<vmem>>, vector<32x128xbf16>,
    %c0_37 = arith.constant 0 : index
    %c0_38 = arith.constant 0 : index
    %c0_39 = arith.constant 0 : index
    %c9 = arith.constant 9 : index
    %24 = vector.load %arg1[%c0_37, %c0_38, %c0_39, %c9] : memref<1x4x32x256xbf16, #tpu.memory_space<vmem>>, vector<1x1x32x128xbf16>
    %25 = vector.shape_cast %24 : vector<1x1x32x128xbf16> to vector<32x128xbf16>
    %c256 = arith.constant 256 : index
    %c0_40 = arith.constant 0 : index
    %26 = vector.load %arg6[%c256, %c0_40] : memref<512x128xbf16, #tpu.memory_space<vmem>>, vector<32x128xbf16>
    tpu.vector_store %arg6[%c256, %c0_40], %25 {strides = array<i32>} : memref<512x128xbf16, #tpu.memory_space<vmem>>, vector<32x128xbf16>,
    %c0_41 = arith.constant 0 : index
    %c1_42 = arith.constant 1 : index
    %c0_43 = arith.constant 0 : index
    %c9_44 = arith.constant 9 : index
    %27 = vector.load %arg1[%c0_41, %c1_42, %c0_43, %c9_44] : memref<1x4x32x256xbf16, #tpu.memory_space<vmem>>, vector<1x1x32x128xbf16>
    %28 = vector.shape_cast %27 : vector<1x1x32x128xbf16> to vector<32x128xbf16>
    %c288 = arith.constant 288 : index
    %c0_45 = arith.constant 0 : index
    %29 = vector.load %arg6[%c288, %c0_45] : memref<512x128xbf16, #tpu.memory_space<vmem>>, vector<32x128xbf16>
    tpu.vector_store %arg6[%c288, %c0_45], %28 {strides = array<i32>} : memref<512x128xbf16, #tpu.memory_space<vmem>>, vector<32x128xbf16>,
    %c0_46 = arith.constant 0 : index
    %c2_47 = arith.constant 2 : index
    %c0_48 = arith.constant 0 : index
    %c9_49 = arith.constant 9 : index
    %30 = vector.load %arg1[%c0_46, %c2_47, %c0_48, %c9_49] : memref<1x4x32x256xbf16, #tpu.memory_space<vmem>>, vector<1x1x32x128xbf16>
    %31 = vector.shape_cast %30 : vector<1x1x32x128xbf16> to vector<32x128xbf16>
    %c320 = arith.constant 320 : index
    %c0_50 = arith.constant 0 : index
    %32 = vector.load %arg6[%c320, %c0_50] : memref<512x128xbf16, #tpu.memory_space<vmem>>, vector<32x128xbf16>
    tpu.vector_store %arg6[%c320, %c0_50], %31 {strides = array<i32>} : memref<512x128xbf16, #tpu.memory_space<vmem>>, vector<32x128xbf16>,
    %c0_51 = arith.constant 0 : index
    %c3_52 = arith.constant 3 : index
    %c0_53 = arith.constant 0 : index
    %c9_54 = arith.constant 9 : index
    %33 = vector.load %arg1[%c0_51, %c3_52, %c0_53, %c9_54] : memref<1x4x32x256xbf16, #tpu.memory_space<vmem>>, vector<1x1x32x128xbf16>
    %34 = vector.shape_cast %33 : vector<1x1x32x128xbf16> to vector<32x128xbf16>
    %c352 = arith.constant 352 : index
    %c0_55 = arith.constant 0 : index
    %35 = vector.load %arg6[%c352, %c0_55] : memref<512x128xbf16, #tpu.memory_space<vmem>>, vector<32x128xbf16>
    tpu.vector_store %arg6[%c352, %c0_55], %34 {strides = array<i32>} : memref<512x128xbf16, #tpu.memory_space<vmem>>, vector<32x128xbf16>,
    %c0_56 = arith.constant 0 : index
    %c0_57 = arith.constant 0 : index
    %c0_58 = arith.constant 0 : index
    %c10 = arith.constant 10 : index
    %36 = vector.load %arg1[%c0_56, %c0_57, %c0_58, %c10] : memref<1x4x32x256xbf16, #tpu.memory_space<vmem>>, vector<1x1x32x128xbf16>
    %37 = vector.shape_cast %36 : vector<1x1x32x128xbf16> to vector<32x128xbf16>
    %c384 = arith.constant 384 : index
    %c0_59 = arith.constant 0 : index
    %38 = vector.load %arg6[%c384, %c0_59] : memref<512x128xbf16, #tpu.memory_space<vmem>>, vector<32x128xbf16>
    tpu.vector_store %arg6[%c384, %c0_59], %37 {strides = array<i32>} : memref<512x128xbf16, #tpu.memory_space<vmem>>, vector<32x128xbf16>,
    %c0_60 = arith.constant 0 : index
    %c1_61 = arith.constant 1 : index
    %c0_62 = arith.constant 0 : index
    %c10_63 = arith.constant 10 : index
    %39 = vector.load %arg1[%c0_60, %c1_61, %c0_62, %c10_63] : memref<1x4x32x256xbf16, #tpu.memory_space<vmem>>, vector<1x1x32x128xbf16>
    %40 = vector.shape_cast %39 : vector<1x1x32x128xbf16> to vector<32x128xbf16>
    %c416 = arith.constant 416 : index
    %c0_64 = arith.constant 0 : index
    %41 = vector.load %arg6[%c416, %c0_64] : memref<512x128xbf16, #tpu.memory_space<vmem>>, vector<32x128xbf16>
    tpu.vector_store %arg6[%c416, %c0_64], %40 {strides = array<i32>} : memref<512x128xbf16, #tpu.memory_space<vmem>>, vector<32x128xbf16>,
    %c0_65 = arith.constant 0 : index
    %c2_66 = arith.constant 2 : index
    %c0_67 = arith.constant 0 : index
    %c10_68 = arith.constant 10 : index
    %42 = vector.load %arg1[%c0_65, %c2_66, %c0_67, %c10_68] : memref<1x4x32x256xbf16, #tpu.memory_space<vmem>>, vector<1x1x32x128xbf16>
    %43 = vector.shape_cast %42 : vector<1x1x32x128xbf16> to vector<32x128xbf16>
    %c448 = arith.constant 448 : index
    %c0_69 = arith.constant 0 : index
    %44 = vector.load %arg6[%c448, %c0_69] : memref<512x128xbf16, #tpu.memory_space<vmem>>, vector<32x128xbf16>
    tpu.vector_store %arg6[%c448, %c0_69], %43 {strides = array<i32>} : memref<512x128xbf16, #tpu.memory_space<vmem>>, vector<32x128xbf16>,
    %c0_70 = arith.constant 0 : index
    %c3_71 = arith.constant 3 : index
    %c0_72 = arith.constant 0 : index
    %c10_73 = arith.constant 10 : index
    %45 = vector.load %arg1[%c0_70, %c3_71, %c0_72, %c10_73] : memref<1x4x32x256xbf16, #tpu.memory_space<vmem>>, vector<1x1x32x128xbf16>
    %46 = vector.shape_cast %45 : vector<1x1x32x128xbf16> to vector<32x128xbf16>
    %c480 = arith.constant 480 : index
    %c0_74 = arith.constant 0 : index
    %47 = vector.load %arg6[%c480, %c0_74] : memref<512x128xbf16, #tpu.memory_space<vmem>>, vector<32x128xbf16>
    tpu.vector_store %arg6[%c480, %c0_74], %46 {strides = array<i32>} : memref<512x128xbf16, #tpu.memory_space<vmem>>, vector<32x128xbf16>,
    %c0_75 = arith.constant 0 : index
    %c0_76 = arith.constant 0 : index
    %48 = vector.load %arg2[%c0_75, %c0_76] : memref<128x512xbf16, #tpu.memory_space<vmem>>, vector<128x512xbf16>
    %c0_77 = arith.constant 0 : index
    %c0_78 = arith.constant 0 : index
    %49 = vector.load %arg6[%c0_77, %c0_78] : memref<512x128xbf16, #tpu.memory_space<vmem>>, vector<512x128xbf16>
    %cst = arith.constant dense<0.000000e+00> : vector<128x128xf32>
    %50 = tpu.matmul %48, %49, %cst {dimension_numbers = #tpu.dot_dimension_numbers<[1], [0], [0], [1], [0, 0, 1, 1], [], []>} : vector<128x512xbf16>, vector<512x128xbf16>, vector<128x128xf32> -> vector<128x128xf32>
    %c0_79 = arith.constant 0 : index
    %c0_80 = arith.constant 0 : index
    %c0_81 = arith.constant 0 : index
    %51 = vector.load %arg3[%c0_79, %c0_80, %c0_81] : memref<2x128x1xf32, #tpu.memory_space<vmem>>, vector<1x128x1xf32>
    %52 = vector.shape_cast %51 : vector<1x128x1xf32> to vector<128x1xf32>
    %53 = vector.broadcast %52 : vector<128x1xf32> to vector<128x128xf32>
    %54 = arith.mulf %50, %53 : vector<128x128xf32>
    %c1_82 = arith.constant 1 : index
    %c0_83 = arith.constant 0 : index
    %c0_84 = arith.constant 0 : index
    %55 = vector.load %arg3[%c1_82, %c0_83, %c0_84] : memref<2x128x1xf32, #tpu.memory_space<vmem>>, vector<1x128x1xf32>
    %56 = vector.shape_cast %55 : vector<1x128x1xf32> to vector<128x1xf32>
    %57 = vector.broadcast %56 : vector<128x1xf32> to vector<128x128xf32>
    %58 = arith.addf %54, %57 : vector<128x128xf32>
    %cst_85 = arith.constant 0.000000e+00 : f32
    %59 = vector.broadcast %cst_85 : f32 to vector<128x128xf32>
    %60 = arith.maximumf %58, %59 : vector<128x128xf32>
    %61 = vector.extract_strided_slice %60 {offsets = [0, 0], sizes = [32, 128], strides = [1, 1]} : vector<128x128xf32> to vector<32x128xf32>
    %62 = vector.extract_strided_slice %60 {offsets = [32, 0], sizes = [32, 128], strides = [1, 1]} : vector<128x128xf32> to vector<32x128xf32>
    %63 = vector.extract_strided_slice %60 {offsets = [64, 0], sizes = [32, 128], strides = [1, 1]} : vector<128x128xf32> to vector<32x128xf32>
    %64 = vector.extract_strided_slice %60 {offsets = [96, 0], sizes = [32, 128], strides = [1, 1]} : vector<128x128xf32> to vector<32x128xf32>
    %c0_86 = arith.constant 0 : index
    %65 = memref.load %arg4[%c0_86] : memref<2xf32, #tpu.memory_space<smem>>
    %66 = vector.broadcast %65 : f32 to vector<32x128xf32>
    %67 = arith.mulf %61, %66 : vector<32x128xf32>
    %68 = vector.broadcast %65 : f32 to vector<32x128xf32>
    %69 = arith.mulf %62, %68 : vector<32x128xf32>
    %70 = arith.maximumf %67, %69 : vector<32x128xf32>
    %71 = vector.broadcast %65 : f32 to vector<32x128xf32>
    %72 = arith.mulf %63, %71 : vector<32x128xf32>
    %73 = arith.maximumf %70, %72 : vector<32x128xf32>
    %74 = vector.broadcast %65 : f32 to vector<32x128xf32>
    %75 = arith.mulf %64, %74 : vector<32x128xf32>
    %76 = arith.maximumf %73, %75 : vector<32x128xf32>
    %cst_87 = arith.constant 0.000000e+00 : f32
    %77 = vector.broadcast %cst_87 : f32 to vector<32x128xf32>
    %cst_88 = arith.constant 0.000000e+00 : f32
    %78 = vector.broadcast %cst_88 : f32 to vector<32x128xf32>
    %79 = vector.broadcast %65 : f32 to vector<32x128xf32>
    %80 = arith.mulf %61, %79 : vector<32x128xf32>
    %81 = arith.subf %80, %76 : vector<32x128xf32>
    %82 = math.exp %81 : vector<32x128xf32>
    %83 = arith.mulf %61, %82 : vector<32x128xf32>
    %84 = arith.addf %77, %83 : vector<32x128xf32>
    %85 = arith.addf %78, %82 : vector<32x128xf32>
    %86 = vector.broadcast %65 : f32 to vector<32x128xf32>
    %87 = arith.mulf %62, %86 : vector<32x128xf32>
    %88 = arith.subf %87, %76 : vector<32x128xf32>
    %89 = math.exp %88 : vector<32x128xf32>
    %90 = arith.mulf %62, %89 : vector<32x128xf32>
    %91 = arith.addf %84, %90 : vector<32x128xf32>
    %92 = arith.addf %85, %89 : vector<32x128xf32>
    %93 = vector.broadcast %65 : f32 to vector<32x128xf32>
    %94 = arith.mulf %63, %93 : vector<32x128xf32>
    %95 = arith.subf %94, %76 : vector<32x128xf32>
    %96 = math.exp %95 : vector<32x128xf32>
    %97 = arith.mulf %63, %96 : vector<32x128xf32>
    %98 = arith.addf %91, %97 : vector<32x128xf32>
    %99 = arith.addf %92, %96 : vector<32x128xf32>
    %100 = vector.broadcast %65 : f32 to vector<32x128xf32>
    %101 = arith.mulf %64, %100 : vector<32x128xf32>
    %102 = arith.subf %101, %76 : vector<32x128xf32>
    %103 = math.exp %102 : vector<32x128xf32>
    %104 = arith.mulf %64, %103 : vector<32x128xf32>
    %105 = arith.addf %98, %104 : vector<32x128xf32>
    %106 = arith.addf %99, %103 : vector<32x128xf32>
    %107 = tpu.reciprocal %106 {approx = true} : vector<32x128xf32> -> vector<32x128xf32>
    %108 = arith.mulf %105, %107 : vector<32x128xf32>
    %c0_89 = arith.constant 0 : index
    %c0_90 = arith.constant 0 : index
    %c0_91 = arith.constant 0 : index
    %c0_92 = arith.constant 0 : index
    %109 = vector.load %arg5[%c0_89, %c0_90, %c0_91, %c0_92] : memref<1x2x32x128xf32, #tpu.memory_space<vmem>>, vector<1x1x32x128xf32>
    %110 = vector.shape_cast %109 : vector<1x1x32x128xf32> to vector<32x128xf32>
    %111 = vector.shape_cast %108 : vector<32x128xf32> to vector<1x1x32x128xf32>
    tpu.vector_store %arg5[%c0_89, %c0_90, %c0_91, %c0_92], %111 {strides = array<i32>} : memref<1x2x32x128xf32, #tpu.memory_space<vmem>>, vector<1x1x32x128xf32>,
    %c1_93 = arith.constant 1 : index
    %112 = memref.load %arg4[%c1_93] : memref<2xf32, #tpu.memory_space<smem>>
    %113 = vector.broadcast %112 : f32 to vector<32x128xf32>
    %114 = arith.mulf %61, %113 : vector<32x128xf32>
    %115 = vector.broadcast %112 : f32 to vector<32x128xf32>
    %116 = arith.mulf %62, %115 : vector<32x128xf32>
    %117 = arith.maximumf %114, %116 : vector<32x128xf32>
    %118 = vector.broadcast %112 : f32 to vector<32x128xf32>
    %119 = arith.mulf %63, %118 : vector<32x128xf32>
    %120 = arith.maximumf %117, %119 : vector<32x128xf32>
    %121 = vector.broadcast %112 : f32 to vector<32x128xf32>
    %122 = arith.mulf %64, %121 : vector<32x128xf32>
    %123 = arith.maximumf %120, %122 : vector<32x128xf32>
    %cst_94 = arith.constant 0.000000e+00 : f32
    %124 = vector.broadcast %cst_94 : f32 to vector<32x128xf32>
    %cst_95 = arith.constant 0.000000e+00 : f32
    %125 = vector.broadcast %cst_95 : f32 to vector<32x128xf32>
    %126 = vector.broadcast %112 : f32 to vector<32x128xf32>
    %127 = arith.mulf %61, %126 : vector<32x128xf32>
    %128 = arith.subf %127, %123 : vector<32x128xf32>
    %129 = math.exp %128 : vector<32x128xf32>
    %130 = arith.mulf %61, %129 : vector<32x128xf32>
    %131 = arith.addf %124, %130 : vector<32x128xf32>
    %132 = arith.addf %125, %129 : vector<32x128xf32>
    %133 = vector.broadcast %112 : f32 to vector<32x128xf32>
    %134 = arith.mulf %62, %133 : vector<32x128xf32>
    %135 = arith.subf %134, %123 : vector<32x128xf32>
    %136 = math.exp %135 : vector<32x128xf32>
    %137 = arith.mulf %62, %136 : vector<32x128xf32>
    %138 = arith.addf %131, %137 : vector<32x128xf32>
    %139 = arith.addf %132, %136 : vector<32x128xf32>
    %140 = vector.broadcast %112 : f32 to vector<32x128xf32>
    %141 = arith.mulf %63, %140 : vector<32x128xf32>
    %142 = arith.subf %141, %123 : vector<32x128xf32>
    %143 = math.exp %142 : vector<32x128xf32>
    %144 = arith.mulf %63, %143 : vector<32x128xf32>
    %145 = arith.addf %138, %144 : vector<32x128xf32>
    %146 = arith.addf %139, %143 : vector<32x128xf32>
    %147 = vector.broadcast %112 : f32 to vector<32x128xf32>
    %148 = arith.mulf %64, %147 : vector<32x128xf32>
    %149 = arith.subf %148, %123 : vector<32x128xf32>
    %150 = math.exp %149 : vector<32x128xf32>
    %151 = arith.mulf %64, %150 : vector<32x128xf32>
    %152 = arith.addf %145, %151 : vector<32x128xf32>
    %153 = arith.addf %146, %150 : vector<32x128xf32>
    %154 = tpu.reciprocal %153 {approx = true} : vector<32x128xf32> -> vector<32x128xf32>
    %155 = arith.mulf %152, %154 : vector<32x128xf32>
    %c0_96 = arith.constant 0 : index
    %c1_97 = arith.constant 1 : index
    %c0_98 = arith.constant 0 : index
    %c0_99 = arith.constant 0 : index
    %156 = vector.load %arg5[%c0_96, %c1_97, %c0_98, %c0_99] : memref<1x2x32x128xf32, #tpu.memory_space<vmem>>, vector<1x1x32x128xf32>
    %157 = vector.shape_cast %156 : vector<1x1x32x128xf32> to vector<32x128xf32>
    %158 = vector.shape_cast %155 : vector<32x128xf32> to vector<1x1x32x128xf32>
    tpu.vector_store %arg5[%c0_96, %c1_97, %c0_98, %c0_99], %158 {strides = array<i32>} : memref<1x2x32x128xf32, #tpu.memory_space<vmem>>, vector<1x1x32x128xf32>,
    return
  }
  func.func @transform_0(%arg0: i32) -> (i32, i32, i32, i32) {
    %c0_i32 = arith.constant 0 : i32
    %c0_i32_0 = arith.constant 0 : i32
    %c0_i32_1 = arith.constant 0 : i32
    %c0_i32_2 = arith.constant 0 : i32
    return %arg0, %c0_i32, %c0_i32_0, %c0_i32_1 : i32, i32, i32, i32
  }
  func.func @transform_1(%arg0: i32) -> (i32, i32) {
    %c0_i32 = arith.constant 0 : i32
    %c0_i32_0 = arith.constant 0 : i32
    %c0_i32_1 = arith.constant 0 : i32
    return %c0_i32, %c0_i32_0 : i32, i32
  }
  func.func @transform_2(%arg0: i32) -> (i32, i32, i32) {
    %c0_i32 = arith.constant 0 : i32
    %c0_i32_0 = arith.constant 0 : i32
    %c0_i32_1 = arith.constant 0 : i32
    %c0_i32_2 = arith.constant 0 : i32
    return %c0_i32, %c0_i32_0, %c0_i32_1 : i32, i32, i32
  }
  func.func @transform_3(%arg0: i32) -> i32 {
    %c0_i32 = arith.constant 0 : i32
    %c0_i32_0 = arith.constant 0 : i32
    return %c0_i32 : i32
  }
  func.func @transform_4(%arg0: i32) -> (i32, i32, i32, i32) {
    %c0_i32 = arith.constant 0 : i32
    %c0_i32_0 = arith.constant 0 : i32
    %c0_i32_1 = arith.constant 0 : i32
    %c0_i32_2 = arith.constant 0 : i32
    return %arg0, %c0_i32, %c0_i32_0, %c0_i32_1 : i32, i32, i32, i32
  }
}

module attributes {stable_mosaic.version = 11 : i64} {
  func.func @fc_kernel(%arg0: memref<2x8192xf32, #tpu.memory_space<vmem>>, %arg1: memref<8192x10xbf16, #tpu.memory_space<vmem>>, %arg2: memref<1x10xf32, #tpu.memory_space<vmem>>, %arg3: memref<2x10xf32, #tpu.memory_space<vmem>>) attributes {dimension_semantics = [], scalar_prefetch = 0 : i64, scratch_operands = 0 : i64, tpu.core_type = #tpu.core_type<tc>} {
    %c0 = arith.constant 0 : index
    %c0_0 = arith.constant 0 : index
    %0 = vector.load %arg0[%c0, %c0_0] : memref<2x8192xf32, #tpu.memory_space<vmem>>, vector<2x8192xf32>
    %1 = arith.truncf %0 : vector<2x8192xf32> to vector<2x8192xbf16>
    %c0_1 = arith.constant 0 : index
    %c0_2 = arith.constant 0 : index
    %2 = vector.load %arg1[%c0_1, %c0_2] : memref<8192x10xbf16, #tpu.memory_space<vmem>>, vector<8192x10xbf16>
    %cst = arith.constant dense<0.000000e+00> : vector<2x10xf32>
    %3 = tpu.matmul %1, %2, %cst {dimension_numbers = #tpu.dot_dimension_numbers<[1], [0], [0], [1], [0, 0, 1, 1], [], []>} : vector<2x8192xbf16>, vector<8192x10xbf16>, vector<2x10xf32> -> vector<2x10xf32>
    %c0_3 = arith.constant 0 : index
    %c0_4 = arith.constant 0 : index
    %4 = vector.load %arg2[%c0_3, %c0_4] : memref<1x10xf32, #tpu.memory_space<vmem>>, vector<1x10xf32>
    %5 = vector.broadcast %4 : vector<1x10xf32> to vector<2x10xf32>
    %6 = arith.addf %3, %5 : vector<2x10xf32>
    %c0_5 = arith.constant 0 : index
    %c0_6 = arith.constant 0 : index
    %7 = vector.load %arg3[%c0_5, %c0_6] : memref<2x10xf32, #tpu.memory_space<vmem>>, vector<2x10xf32>
    tpu.vector_store %arg3[%c0_5, %c0_6], %6 {strides = array<i32>} : memref<2x10xf32, #tpu.memory_space<vmem>>, vector<2x10xf32>,
    return
  }
}

</mosaic_0001>

<bundles_post_ra>
// kernel: tile.27
= control target key start
LH: loop header
LB: loop body
LE: loop exit
PB: predicated region body
PF: predicated region fallthrough
CT: control target
= control target key end

     0   :  { %s22_s0 = inlined_call_operand.vmem [shape: f32[16], index: 0, kind: input, shape index: {}]   ;;  %s23_s1 = inlined_call_operand.vmem [shape: f32[4,16], index: 1, kind: output, shape index: {}]  }
   0x1   :  { %v4_v0 = vld [vmem:[%s22_s0] ss:$0 sm:$0xff] }
   0x2   :  { %5 = vst [vmem:[%s23_s1] sm:$0xf] %v4_v0 }

// kernel: tile.37
= control target key start
LH: loop header
LB: loop body
LE: loop exit
PB: predicated region body
PF: predicated region fallthrough
CT: control target
= control target key end

     0   :  { %s22_s0 = inlined_call_operand.vmem [shape: f32[32], index: 0, kind: input, shape index: {}]   ;;  %s23_s1 = inlined_call_operand.vmem [shape: f32[4,32], index: 1, kind: output, shape index: {}]  }
   0x1   :  { %v4_v0 = vld [vmem:[%s22_s0] ss:$0 sm:$0xff] }
   0x2   :  { %5 = vst [vmem:[%s23_s1] sm:$0xf] %v4_v0 }

// kernel: tile.0
= control target key start
LH: loop header
LB: loop body
LE: loop exit
PB: predicated region body
PF: predicated region fallthrough
CT: control target
= control target key end

     0   :  { %s177_s8 = smov 125   ;;  %s178_s9 = smov 126   ;;  %vm8_vm0 = vcmask 7168   ;;  %s332_s0 = inlined_call_operand.vmem [shape: f32[4,16], index: 0, kind: input, shape index: {}]   ;;  %s333_s1 = inlined_call_operand.vmem [shape: f32[1,64,1], index: 1, kind: output, shape index: {}]  }
   0x1   :  { %v5_v0 = vld [vmem:[%s332_s0] sm:$0xf]  ;;  %s176_s0 = smov 127   ;;  %s179_s10 = smov 124  }
   0x2   :  { %6 = vst [vmem:[#allocation0] sm:$0xf] %v5_v0  ;;  %s180_s11 = smov 123   ;;  %s181_s12 = smov 122  }
   0x3   :  { %s182_s13 = smov 121   ;;  %s183_s14 = smov 120  }
   0x4   :  { %s184_s19 = smov 119   ;;  %s185_s20 = smov 118  }
   0x5   :  { %s186_s21 = smov 117   ;;  %s187_s22 = smov 116  }
   0x6   :  { %s188_s23 = smov 115   ;;  %s189_s24 = smov 114  }
   0x7   :  { %s190_s25 = smov 113  }
   0x9   :  { %v11_v1 = vld [vmem:[#allocation0] sm:$0xf]  }
   0xa   :  { %v27_v2 = vld [vmem:[#allocation0] sm:$0xf]   ;;  %12 = vrot.lane.b32.xlu0 %v11_v1, %s176_s0 }
   0xb   :  { %28 = vrot.lane.b32.xlu1 %v27_v2, %s177_s8  ;;  %v19_v3 = vld [vmem:[#allocation0] sm:$0xf]  }
   0xc   :  { %v35_v4 = vld [vmem:[#allocation0] sm:$0xf]  }
   0xd   :  { %v43_v5 = vld [vmem:[#allocation0] sm:$0xf]  }
   0xe   :  { %20 = vrot.lane.b32.xlu0 %v19_v3, %s178_s9  ;;  %v51_v6 = vld [vmem:[#allocation0] sm:$0xf]  }
   0xf   :  { %36 = vrot.lane.b32.xlu1 %v35_v4, %s179_s10  ;;  %v59_v7 = vld [vmem:[#allocation0] sm:$0xf]  }
  0x10   :  { %v67_v8 = vld [vmem:[#allocation0] sm:$0xf]  }
  0x11   :  { %v75_v9 = vld [vmem:[#allocation0] sm:$0xf]  }
  0x12   :  { %44 = vrot.lane.b32.xlu0 %v43_v5, %s180_s11  ;;  %v83_v10 = vld [vmem:[#allocation0] sm:$0xf]  }
  0x13   :  { %52 = vrot.lane.b32.xlu1 %v51_v6, %s181_s12  ;;  %v7_v11 = vld [vmem:[#allocation0] sm:$0xf]  }
  0x14   :  { %9 = vst.msk [vmem:[%s333_s1] ss:$16 sm:$0x3] %vm8_vm0, %v7_v11   ;;  %10 = vst.msk [vmem:[%s333_s1] ss:$16 sm:$0xc] %vm8_vm0, %v7_v11  }
  0x15   :  { %v91_v12 = vld [vmem:[#allocation0] sm:$0xf]  }
  0x16   :  { %60 = vrot.lane.b32.xlu0 %v59_v7, %s182_s13  ;;  %v99_v13 = vld [vmem:[#allocation0] sm:$0xf]  }
  0x17   :  { %68 = vrot.lane.b32.xlu1 %v67_v8, %s183_s14  ;;  %v107_v14 = vld [vmem:[#allocation0] sm:$0xf]  }
  0x18   :  { %v115_v15 = vld [vmem:[#allocation0] sm:$0xf]  }
  0x19   :  { %v123_v16 = vld [vmem:[#allocation0] sm:$0xf]  }
  0x1a   :  { %76 = vrot.lane.b32.xlu0 %v75_v9, %s184_s19 }
  0x1b   :  { %84 = vrot.lane.b32.xlu1 %v83_v10, %s185_s20 }
  0x1e   :  { %92 = vrot.lane.b32.xlu0 %v91_v12, %s186_s21 }
  0x1f   :  { %100 = vrot.lane.b32.xlu1 %v99_v13, %s187_s22 }
  0x22   :  { %108 = vrot.lane.b32.xlu0 %v107_v14, %s188_s23 }
  0x23   :  { %116 = vrot.lane.b32.xlu1 %v115_v15, %s189_s24 }
  0x26   :  { %124 = vrot.lane.b32.xlu0 %v123_v16, %s190_s25 }
  0x7c   :  { %v13_v17 = vpop.permute.xlu0 %12  }
  0x7d   :  { %v29_v18 = vpop.permute.xlu1 %28   ;;  %131 = vst.msk [vmem:[%s333_s1 + $0x1] ss:$16 sm:$0x3] %vm8_vm0, %v13_v17   ;;  %132 = vst.msk [vmem:[%s333_s1 + $0x1] ss:$16 sm:$0xc] %vm8_vm0, %v13_v17  }
  0x7e   :  { %135 = vst.msk [vmem:[%s333_s1 + $0x3] ss:$16 sm:$0x3] %vm8_vm0, %v29_v18   ;;  %136 = vst.msk [vmem:[%s333_s1 + $0x3] ss:$16 sm:$0xc] %vm8_vm0, %v29_v18  }
  0x80   :  { %v21_v19 = vpop.permute.xlu0 %20  }
  0x81   :  { %v37_v20 = vpop.permute.xlu1 %36   ;;  %133 = vst.msk [vmem:[%s333_s1 + $0x2] ss:$16 sm:$0x3] %vm8_vm0, %v21_v19   ;;  %134 = vst.msk [vmem:[%s333_s1 + $0x2] ss:$16 sm:$0xc] %vm8_vm0, %v21_v19  }
  0x82   :  { %137 = vst.msk [vmem:[%s333_s1 + $0x4] ss:$16 sm:$0x3] %vm8_vm0, %v37_v20   ;;  %138 = vst.msk [vmem:[%s333_s1 + $0x4] ss:$16 sm:$0xc] %vm8_vm0, %v37_v20  }
  0x84   :  { %v45_v21 = vpop.permute.xlu0 %44  }
  0x85   :  { %v53_v22 = vpop.permute.xlu1 %52   ;;  %139 = vst.msk [vmem:[%s333_s1 + $0x5] ss:$16 sm:$0x3] %vm8_vm0, %v45_v21   ;;  %140 = vst.msk [vmem:[%s333_s1 + $0x5] ss:$16 sm:$0xc] %vm8_vm0, %v45_v21  }
  0x86   :  { %141 = vst.msk [vmem:[%s333_s1 + $0x6] ss:$16 sm:$0x3] %vm8_vm0, %v53_v22   ;;  %142 = vst.msk [vmem:[%s333_s1 + $0x6] ss:$16 sm:$0xc] %vm8_vm0, %v53_v22  }
  0x88   :  { %v61_v23 = vpop.permute.xlu0 %60  }
  0x89   :  { %v69_v24 = vpop.permute.xlu1 %68   ;;  %143 = vst.msk [vmem:[%s333_s1 + $0x7] ss:$16 sm:$0x3] %vm8_vm0, %v61_v23   ;;  %144 = vst.msk [vmem:[%s333_s1 + $0x7] ss:$16 sm:$0xc] %vm8_vm0, %v61_v23  }
  0x8a   :  { %145 = vst.msk [vmem:[%s333_s1 + $0x8] ss:$16 sm:$0x3] %vm8_vm0, %v69_v24   ;;  %146 = vst.msk [vmem:[%s333_s1 + $0x8] ss:$16 sm:$0xc] %vm8_vm0, %v69_v24  }
  0x8c   :  { %v77_v25 = vpop.permute.xlu0 %76  }
  0x8d   :  { %v85_v26 = vpop.permute.xlu1 %84   ;;  %147 = vst.msk [vmem:[%s333_s1 + $0x9] ss:$16 sm:$0x3] %vm8_vm0, %v77_v25   ;;  %148 = vst.msk [vmem:[%s333_s1 + $0x9] ss:$16 sm:$0xc] %vm8_vm0, %v77_v25  }
  0x8e   :  { %149 = vst.msk [vmem:[%s333_s1 + $0xa] ss:$16 sm:$0x3] %vm8_vm0, %v85_v26   ;;  %150 = vst.msk [vmem:[%s333_s1 + $0xa] ss:$16 sm:$0xc] %vm8_vm0, %v85_v26  }
  0x90   :  { %v93_v27 = vpop.permute.xlu0 %92  }
  0x91   :  { %v101_v28 = vpop.permute.xlu1 %100   ;;  %151 = vst.msk [vmem:[%s333_s1 + $0xb] ss:$16 sm:$0x3] %vm8_vm0, %v93_v27   ;;  %152 = vst.msk [vmem:[%s333_s1 + $0xb] ss:$16 sm:$0xc] %vm8_vm0, %v93_v27  }
  0x92   :  { %153 = vst.msk [vmem:[%s333_s1 + $0xc] ss:$16 sm:$0x3] %vm8_vm0, %v101_v28   ;;  %154 = vst.msk [vmem:[%s333_s1 + $0xc] ss:$16 sm:$0xc] %vm8_vm0, %v101_v28  }
  0x94   :  { %v109_v29 = vpop.permute.xlu0 %108  }
  0x95   :  { %v117_v30 = vpop.permute.xlu1 %116   ;;  %155 = vst.msk [vmem:[%s333_s1 + $0xd] ss:$16 sm:$0x3] %vm8_vm0, %v109_v29   ;;  %156 = vst.msk [vmem:[%s333_s1 + $0xd] ss:$16 sm:$0xc] %vm8_vm0, %v109_v29  }
  0x96   :  { %157 = vst.msk [vmem:[%s333_s1 + $0xe] ss:$16 sm:$0x3] %vm8_vm0, %v117_v30   ;;  %158 = vst.msk [vmem:[%s333_s1 + $0xe] ss:$16 sm:$0xc] %vm8_vm0, %v117_v30  }
  0x98   :  { %v125_v31 = vpop.permute.xlu0 %124  }
  0x99   :  { %159 = vst.msk [vmem:[%s333_s1 + $0xf] ss:$16 sm:$0x3] %vm8_vm0, %v125_v31   ;;  %160 = vst.msk [vmem:[%s333_s1 + $0xf] ss:$16 sm:$0xc] %vm8_vm0, %v125_v31  }

// kernel: tile.2
= control target key start
LH: loop header
LB: loop body
LE: loop exit
PB: predicated region body
PF: predicated region fallthrough
CT: control target
= control target key end

     0   :  { %s547_s8 = smov 125   ;;  %s548_s9 = smov 126   ;;  %vm8_vm0 = vcmask 7168   ;;  %s1102_s0 = inlined_call_operand.vmem [shape: f32[4,32], index: 0, kind: input, shape index: {}]   ;;  %s1103_s1 = inlined_call_operand.vmem [shape: f32[1,128,1], index: 1, kind: output, shape index: {}]  }
   0x1   :  { %v5_v0 = vld [vmem:[%s1102_s0] sm:$0xf]  ;;  %s546_s0 = smov 127   ;;  %s549_s10 = smov 124  }
   0x2   :  { %6 = vst [vmem:[#allocation0] sm:$0xf] %v5_v0  ;;  %s550_s11 = smov 123   ;;  %s551_s12 = smov 122  }
   0x3   :  { %s552_s13 = smov 121   ;;  %s553_s14 = smov 120  }
   0x4   :  { %s554_s15 = smov 119   ;;  %s555_s16 = smov 118  }
   0x5   :  { %s556_s17 = smov 117   ;;  %s557_s18 = smov 116  }
   0x6   :  { %s558_s19 = smov 115   ;;  %s559_s20 = smov 114  }
   0x7   :  { %s560_s21 = smov 113   ;;  %s561_s22 = smov 112  }
   0x8   :  { %s562_s23 = smov 111   ;;  %s563_s24 = smov 110  }
   0x9   :  { %v16_v1 = vld [vmem:[#allocation0] sm:$0xf]   ;;  %s564_s25 = smov 109   ;;  %s565_s26 = smov 108  }
   0xa   :  { %v40_v2 = vld [vmem:[#allocation0] sm:$0xf]   ;;  %17 = vrot.lane.b32.xlu0 %v16_v1, %s546_s0  ;;  %s566_s27 = smov 107   ;;  %s567_s28 = smov 106  }
   0xb   :  { %41 = vrot.lane.b32.xlu1 %v40_v2, %s547_s8  ;;  %v28_v3 = vld [vmem:[#allocation0] sm:$0xf]   ;;  %s568_s29 = smov 105   ;;  %s569_s30 = smov 104  }
   0xc   :  { %v52_v4 = vld [vmem:[#allocation0] sm:$0xf]  }
   0xd   :  { %v64_v5 = vld [vmem:[#allocation0] sm:$0xf]  }
   0xe   :  { %29 = vrot.lane.b32.xlu0 %v28_v3, %s548_s9  ;;  %v76_v6 = vld [vmem:[#allocation0] sm:$0xf]   ;;  %s570_s9 = smov 103  }
   0xf   :  { %53 = vrot.lane.b32.xlu1 %v52_v4, %s549_s10  ;;  %v88_v7 = vld [vmem:[#allocation0] sm:$0xf]   ;;  %s571_s10 = smov 102  }
  0x10   :  { %v100_v8 = vld [vmem:[#allocation0] sm:$0xf]  }
  0x11   :  { %v112_v9 = vld [vmem:[#allocation0] sm:$0xf]  }
  0x12   :  { %65 = vrot.lane.b32.xlu0 %v64_v5, %s550_s11  ;;  %v124_v10 = vld [vmem:[#allocation0] sm:$0xf]   ;;  %s572_s11 = smov 101  }
  0x13   :  { %77 = vrot.lane.b32.xlu1 %v76_v6, %s551_s12  ;;  %v136_v11 = vld [vmem:[#allocation0] sm:$0xf]   ;;  %s573_s12 = smov 100  }
  0x14   :  { %v148_v12 = vld [vmem:[#allocation0] sm:$0xf]  }
  0x15   :  { %v160_v13 = vld [vmem:[#allocation0] sm:$0xf]  }
  0x16   :  { %89 = vrot.lane.b32.xlu0 %v88_v7, %s552_s13  ;;  %v172_v14 = vld [vmem:[#allocation0] sm:$0xf]   ;;  %s574_s13 = smov 99  }
  0x17   :  { %101 = vrot.lane.b32.xlu1 %v100_v8, %s553_s14  ;;  %v184_v15 = vld [vmem:[#allocation0] sm:$0xf]   ;;  %s575_s14 = smov 98  }
  0x18   :  { %v196_v16 = vld [vmem:[#allocation0] sm:$0xf]  }
  0x19   :  { %v208_v17 = vld [vmem:[#allocation0] sm:$0xf]  }
  0x1a   :  { %113 = vrot.lane.b32.xlu0 %v112_v9, %s554_s15  ;;  %v220_v18 = vld [vmem:[#allocation0] sm:$0xf]   ;;  %s576_s15 = smov 97  }
  0x1b   :  { %125 = vrot.lane.b32.xlu1 %v124_v10, %s555_s16  ;;  %v232_v19 = vld [vmem:[#allocation0] sm:$0xf]  }
  0x1c   :  { %v244_v20 = vld [vmem:[#allocation0] sm:$0xf]  }
  0x1d   :  { %v256_v21 = vld [vmem:[#allocation0] sm:$0xf]  }
  0x1e   :  { %137 = vrot.lane.b32.xlu0 %v136_v11, %s556_s17  ;;  %v268_v22 = vld [vmem:[#allocation0] sm:$0xf]  }
  0x1f   :  { %149 = vrot.lane.b32.xlu1 %v148_v12, %s557_s18  ;;  %v280_v23 = vld [vmem:[#allocation0] sm:$0xf]  }
  0x20   :  { %v292_v24 = vld [vmem:[#allocation0] sm:$0xf]  }
  0x21   :  { %v304_v25 = vld [vmem:[#allocation0] sm:$0xf]  }
  0x22   :  { %161 = vrot.lane.b32.xlu0 %v160_v13, %s558_s19  ;;  %v316_v26 = vld [vmem:[#allocation0] sm:$0xf]  }
  0x23   :  { %173 = vrot.lane.b32.xlu1 %v172_v14, %s559_s20  ;;  %v7_v27 = vld [vmem:[#allocation0] sm:$0xf]  }
  0x24   :  { %9 = vst.msk [vmem:[%s1103_s1] sm:$0x1] %vm8_vm0, %v7_v27   ;;  %388 = vst.msk [vmem:[%s1103_s1 + $0x1f] sm:$0x2] %vm8_vm0, %v7_v27   ;;  %v328_v28 = vld [vmem:[#allocation0] sm:$0xf]  }
  0x25   :  { %389 = vst.msk [vmem:[%s1103_s1 + $0x3e] sm:$0x4] %vm8_vm0, %v7_v27   ;;  %390 = vst.msk [vmem:[%s1103_s1 + $0x5d] sm:$0x8] %vm8_vm0, %v7_v27   ;;  %v340_v29 = vld [vmem:[#allocation0] sm:$0xf]  }
  0x26   :  { %185 = vrot.lane.b32.xlu0 %v184_v15, %s560_s21  ;;  %v352_v30 = vld [vmem:[#allocation0] sm:$0xf]  }
  0x27   :  { %197 = vrot.lane.b32.xlu1 %v196_v16, %s561_s22  ;;  %v364_v31 = vld [vmem:[#allocation0] sm:$0xf]  }
  0x28   :  { %v376_v32 = vld [vmem:[#allocation0] sm:$0xf]  }
  0x2a   :  { %209 = vrot.lane.b32.xlu0 %v208_v17, %s562_s23 }
  0x2b   :  { %221 = vrot.lane.b32.xlu1 %v220_v18, %s563_s24 }
  0x2e   :  { %233 = vrot.lane.b32.xlu0 %v232_v19, %s564_s25 }
  0x2f   :  { %245 = vrot.lane.b32.xlu1 %v244_v20, %s565_s26 }
  0x32   :  { %257 = vrot.lane.b32.xlu0 %v256_v21, %s566_s27 }
  0x33   :  { %269 = vrot.lane.b32.xlu1 %v268_v22, %s567_s28 }
  0x36   :  { %281 = vrot.lane.b32.xlu0 %v280_v23, %s568_s29 }
  0x37   :  { %293 = vrot.lane.b32.xlu1 %v292_v24, %s569_s30 }
  0x3a   :  { %305 = vrot.lane.b32.xlu0 %v304_v25, %s570_s9 }
  0x3b   :  { %317 = vrot.lane.b32.xlu1 %v316_v26, %s571_s10 }
  0x3e   :  { %329 = vrot.lane.b32.xlu0 %v328_v28, %s572_s11 }
  0x3f   :  { %341 = vrot.lane.b32.xlu1 %v340_v29, %s573_s12 }
  0x42   :  { %353 = vrot.lane.b32.xlu0 %v352_v30, %s574_s13 }
  0x43   :  { %365 = vrot.lane.b32.xlu1 %v364_v31, %s575_s14 }
  0x46   :  { %377 = vrot.lane.b32.xlu0 %v376_v32, %s576_s15 }
  0x7c   :  { %v18_v33 = vpop.permute.xlu0 %17  }
  0x7d   :  { %v42_v34 = vpop.permute.xlu1 %41   ;;  %391 = vst.msk [vmem:[%s1103_s1 + $0x1] sm:$0x1] %vm8_vm0, %v18_v33   ;;  %392 = vst.msk [vmem:[%s1103_s1 + $0x20] sm:$0x2] %vm8_vm0, %v18_v33  }
  0x7e   :  { %393 = vst.msk [vmem:[%s1103_s1 + $0x3f] sm:$0x4] %vm8_vm0, %v18_v33   ;;  %394 = vst.msk [vmem:[%s1103_s1 + $0x5e] sm:$0x8] %vm8_vm0, %v18_v33  }
  0x7f   :  { %399 = vst.msk [vmem:[%s1103_s1 + $0x3] sm:$0x1] %vm8_vm0, %v42_v34   ;;  %400 = vst.msk [vmem:[%s1103_s1 + $0x22] sm:$0x2] %vm8_vm0, %v42_v34  }
  0x80   :  { %401 = vst.msk [vmem:[%s1103_s1 + $0x41] sm:$0x4] %vm8_vm0, %v42_v34   ;;  %402 = vst.msk [vmem:[%s1103_s1 + $0x60] sm:$0x8] %vm8_vm0, %v42_v34   ;;  %v30_v35 = vpop.permute.xlu0 %29  }
  0x81   :  { %v54_v36 = vpop.permute.xlu1 %53   ;;  %395 = vst.msk [vmem:[%s1103_s1 + $0x2] sm:$0x1] %vm8_vm0, %v30_v35   ;;  %396 = vst.msk [vmem:[%s1103_s1 + $0x21] sm:$0x2] %vm8_vm0, %v30_v35  }
  0x82   :  { %397 = vst.msk [vmem:[%s1103_s1 + $0x40] sm:$0x4] %vm8_vm0, %v30_v35   ;;  %398 = vst.msk [vmem:[%s1103_s1 + $0x5f] sm:$0x8] %vm8_vm0, %v30_v35  }
  0x83   :  { %403 = vst.msk [vmem:[%s1103_s1 + $0x4] sm:$0x1] %vm8_vm0, %v54_v36   ;;  %404 = vst.msk [vmem:[%s1103_s1 + $0x23] sm:$0x2] %vm8_vm0, %v54_v36  }
  0x84   :  { %405 = vst.msk [vmem:[%s1103_s1 + $0x42] sm:$0x4] %vm8_vm0, %v54_v36   ;;  %406 = vst.msk [vmem:[%s1103_s1 + $0x61] sm:$0x8] %vm8_vm0, %v54_v36   ;;  %v66_v37 = vpop.permute.xlu0 %65  }
  0x85   :  { %v78_v38 = vpop.permute.xlu1 %77   ;;  %407 = vst.msk [vmem:[%s1103_s1 + $0x5] sm:$0x1] %vm8_vm0, %v66_v37   ;;  %408 = vst.msk [vmem:[%s1103_s1 + $0x24] sm:$0x2] %vm8_vm0, %v66_v37  }
  0x86   :  { %409 = vst.msk [vmem:[%s1103_s1 + $0x43] sm:$0x4] %vm8_vm0, %v66_v37   ;;  %410 = vst.msk [vmem:[%s1103_s1 + $0x62] sm:$0x8] %vm8_vm0, %v66_v37  }
  0x87   :  { %411 = vst.msk [vmem:[%s1103_s1 + $0x6] sm:$0x1] %vm8_vm0, %v78_v38   ;;  %412 = vst.msk [vmem:[%s1103_s1 + $0x25] sm:$0x2] %vm8_vm0, %v78_v38  }
  0x88   :  { %413 = vst.msk [vmem:[%s1103_s1 + $0x44] sm:$0x4] %vm8_vm0, %v78_v38   ;;  %414 = vst.msk [vmem:[%s1103_s1 + $0x63] sm:$0x8] %vm8_vm0, %v78_v38   ;;  %v90_v39 = vpop.permute.xlu0 %89  }
  0x89   :  { %v102_v40 = vpop.permute.xlu1 %101   ;;  %415 = vst.msk [vmem:[%s1103_s1 + $0x7] sm:$0x1] %vm8_vm0, %v90_v39   ;;  %416 = vst.msk [vmem:[%s1103_s1 + $0x26] sm:$0x2] %vm8_vm0, %v90_v39  }
  0x8a   :  { %417 = vst.msk [vmem:[%s1103_s1 + $0x45] sm:$0x4] %vm8_vm0, %v90_v39   ;;  %418 = vst.msk [vmem:[%s1103_s1 + $0x64] sm:$0x8] %vm8_vm0, %v90_v39  }
  0x8b   :  { %419 = vst.msk [vmem:[%s1103_s1 + $0x8] sm:$0x1] %vm8_vm0, %v102_v40   ;;  %420 = vst.msk [vmem:[%s1103_s1 + $0x27] sm:$0x2] %vm8_vm0, %v102_v40  }
  0x8c   :  { %421 = vst.msk [vmem:[%s1103_s1 + $0x46] sm:$0x4] %vm8_vm0, %v102_v40   ;;  %422 = vst.msk [vmem:[%s1103_s1 + $0x65] sm:$0x8] %vm8_vm0, %v102_v40   ;;  %v114_v41 = vpop.permute.xlu0 %113  }
  0x8d   :  { %v126_v42 = vpop.permute.xlu1 %125   ;;  %423 = vst.msk [vmem:[%s1103_s1 + $0x9] sm:$0x1] %vm8_vm0, %v114_v41   ;;  %424 = vst.msk [vmem:[%s1103_s1 + $0x28] sm:$0x2] %vm8_vm0, %v114_v41  }
  0x8e   :  { %425 = vst.msk [vmem:[%s1103_s1 + $0x47] sm:$0x4] %vm8_vm0, %v114_v41   ;;  %426 = vst.msk [vmem:[%s1103_s1 + $0x66] sm:$0x8] %vm8_vm0, %v114_v41  }
  0x8f   :  { %427 = vst.msk [vmem:[%s1103_s1 + $0xa] sm:$0x1] %vm8_vm0, %v126_v42   ;;  %428 = vst.msk [vmem:[%s1103_s1 + $0x29] sm:$0x2] %vm8_vm0, %v126_v42  }
  0x90   :  { %429 = vst.msk [vmem:[%s1103_s1 + $0x48] sm:$0x4] %vm8_vm0, %v126_v42   ;;  %430 = vst.msk [vmem:[%s1103_s1 + $0x67] sm:$0x8] %vm8_vm0, %v126_v42   ;;  %v138_v43 = vpop.permute.xlu0 %137  }
  0x91   :  { %v150_v44 = vpop.permute.xlu1 %149   ;;  %431 = vst.msk [vmem:[%s1103_s1 + $0xb] sm:$0x1] %vm8_vm0, %v138_v43   ;;  %432 = vst.msk [vmem:[%s1103_s1 + $0x2a] sm:$0x2] %vm8_vm0, %v138_v43  }
  0x92   :  { %433 = vst.msk [vmem:[%s1103_s1 + $0x49] sm:$0x4] %vm8_vm0, %v138_v43   ;;  %434 = vst.msk [vmem:[%s1103_s1 + $0x68] sm:$0x8] %vm8_vm0, %v138_v43  }
  0x93   :  { %435 = vst.msk [vmem:[%s1103_s1 + $0xc] sm:$0x1] %vm8_vm0, %v150_v44   ;;  %436 = vst.msk [vmem:[%s1103_s1 + $0x2b] sm:$0x2] %vm8_vm0, %v150_v44  }
  0x94   :  { %437 = vst.msk [vmem:[%s1103_s1 + $0x4a] sm:$0x4] %vm8_vm0, %v150_v44   ;;  %438 = vst.msk [vmem:[%s1103_s1 + $0x69] sm:$0x8] %vm8_vm0, %v150_v44   ;;  %v162_v45 = vpop.permute.xlu0 %161  }
  0x95   :  { %v174_v46 = vpop.permute.xlu1 %173   ;;  %439 = vst.msk [vmem:[%s1103_s1 + $0xd] sm:$0x1] %vm8_vm0, %v162_v45   ;;  %440 = vst.msk [vmem:[%s1103_s1 + $0x2c] sm:$0x2] %vm8_vm0, %v162_v45  }
  0x96   :  { %441 = vst.msk [vmem:[%s1103_s1 + $0x4b] sm:$0x4] %vm8_vm0, %v162_v45   ;;  %442 = vst.msk [vmem:[%s1103_s1 + $0x6a] sm:$0x8] %vm8_vm0, %v162_v45  }
  0x97   :  { %443 = vst.msk [vmem:[%s1103_s1 + $0xe] sm:$0x1] %vm8_vm0, %v174_v46   ;;  %444 = vst.msk [vmem:[%s1103_s1 + $0x2d] sm:$0x2] %vm8_vm0, %v174_v46  }
  0x98   :  { %445 = vst.msk [vmem:[%s1103_s1 + $0x4c] sm:$0x4] %vm8_vm0, %v174_v46   ;;  %446 = vst.msk [vmem:[%s1103_s1 + $0x6b] sm:$0x8] %vm8_vm0, %v174_v46   ;;  %v186_v47 = vpop.permute.xlu0 %185  }
  0x99   :  { %v198_v48 = vpop.permute.xlu1 %197   ;;  %447 = vst.msk [vmem:[%s1103_s1 + $0xf] sm:$0x1] %vm8_vm0, %v186_v47   ;;  %448 = vst.msk [vmem:[%s1103_s1 + $0x2e] sm:$0x2] %vm8_vm0, %v186_v47  }
  0x9a   :  { %449 = vst.msk [vmem:[%s1103_s1 + $0x4d] sm:$0x4] %vm8_vm0, %v186_v47   ;;  %450 = vst.msk [vmem:[%s1103_s1 + $0x6c] sm:$0x8] %vm8_vm0, %v186_v47  }
  0x9b   :  { %451 = vst.msk [vmem:[%s1103_s1 + $0x10] sm:$0x1] %vm8_vm0, %v198_v48   ;;  %452 = vst.msk [vmem:[%s1103_s1 + $0x2f] sm:$0x2] %vm8_vm0, %v198_v48  }
  0x9c   :  { %453 = vst.msk [vmem:[%s1103_s1 + $0x4e] sm:$0x4] %vm8_vm0, %v198_v48   ;;  %454 = vst.msk [vmem:[%s1103_s1 + $0x6d] sm:$0x8] %vm8_vm0, %v198_v48   ;;  %v210_v49 = vpop.permute.xlu0 %209  }
  0x9d   :  { %v222_v50 = vpop.permute.xlu1 %221   ;;  %455 = vst.msk [vmem:[%s1103_s1 + $0x11] sm:$0x1] %vm8_vm0, %v210_v49   ;;  %456 = vst.msk [vmem:[%s1103_s1 + $0x30] sm:$0x2] %vm8_vm0, %v210_v49  }
  0x9e   :  { %457 = vst.msk [vmem:[%s1103_s1 + $0x4f] sm:$0x4] %vm8_vm0, %v210_v49   ;;  %458 = vst.msk [vmem:[%s1103_s1 + $0x6e] sm:$0x8] %vm8_vm0, %v210_v49  }
  0x9f   :  { %459 = vst.msk [vmem:[%s1103_s1 + $0x12] sm:$0x1] %vm8_vm0, %v222_v50   ;;  %460 = vst.msk [vmem:[%s1103_s1 + $0x31] sm:$0x2] %vm8_vm0, %v222_v50  }
  0xa0   :  { %461 = vst.msk [vmem:[%s1103_s1 + $0x50] sm:$0x4] %vm8_vm0, %v222_v50   ;;  %462 = vst.msk [vmem:[%s1103_s1 + $0x6f] sm:$0x8] %vm8_vm0, %v222_v50   ;;  %v234_v51 = vpop.permute.xlu0 %233  }
  0xa1   :  { %v246_v52 = vpop.permute.xlu1 %245   ;;  %463 = vst.msk [vmem:[%s1103_s1 + $0x13] sm:$0x1] %vm8_vm0, %v234_v51   ;;  %464 = vst.msk [vmem:[%s1103_s1 + $0x32] sm:$0x2] %vm8_vm0, %v234_v51  }
  0xa2   :  { %465 = vst.msk [vmem:[%s1103_s1 + $0x51] sm:$0x4] %vm8_vm0, %v234_v51   ;;  %466 = vst.msk [vmem:[%s1103_s1 + $0x70] sm:$0x8] %vm8_vm0, %v234_v51  }
  0xa3   :  { %467 = vst.msk [vmem:[%s1103_s1 + $0x14] sm:$0x1] %vm8_vm0, %v246_v52   ;;  %468 = vst.msk [vmem:[%s1103_s1 + $0x33] sm:$0x2] %vm8_vm0, %v246_v52  }
  0xa4   :  { %469 = vst.msk [vmem:[%s1103_s1 + $0x52] sm:$0x4] %vm8_vm0, %v246_v52   ;;  %470 = vst.msk [vmem:[%s1103_s1 + $0x71] sm:$0x8] %vm8_vm0, %v246_v52   ;;  %v258_v53 = vpop.permute.xlu0 %257  }
  0xa5   :  { %v270_v54 = vpop.permute.xlu1 %269   ;;  %471 = vst.msk [vmem:[%s1103_s1 + $0x15] sm:$0x1] %vm8_vm0, %v258_v53   ;;  %472 = vst.msk [vmem:[%s1103_s1 + $0x34] sm:$0x2] %vm8_vm0, %v258_v53  }
  0xa6   :  { %473 = vst.msk [vmem:[%s1103_s1 + $0x53] sm:$0x4] %vm8_vm0, %v258_v53   ;;  %474 = vst.msk [vmem:[%s1103_s1 + $0x72] sm:$0x8] %vm8_vm0, %v258_v53  }
  0xa7   :  { %475 = vst.msk [vmem:[%s1103_s1 + $0x16] sm:$0x1] %vm8_vm0, %v270_v54   ;;  %476 = vst.msk [vmem:[%s1103_s1 + $0x35] sm:$0x2] %vm8_vm0, %v270_v54  }
  0xa8   :  { %477 = vst.msk [vmem:[%s1103_s1 + $0x54] sm:$0x4] %vm8_vm0, %v270_v54   ;;  %478 = vst.msk [vmem:[%s1103_s1 + $0x73] sm:$0x8] %vm8_vm0, %v270_v54   ;;  %v282_v55 = vpop.permute.xlu0 %281  }
  0xa9   :  { %v294_v56 = vpop.permute.xlu1 %293   ;;  %479 = vst.msk [vmem:[%s1103_s1 + $0x17] sm:$0x1] %vm8_vm0, %v282_v55   ;;  %480 = vst.msk [vmem:[%s1103_s1 + $0x36] sm:$0x2] %vm8_vm0, %v282_v55  }
  0xaa   :  { %481 = vst.msk [vmem:[%s1103_s1 + $0x55] sm:$0x4] %vm8_vm0, %v282_v55   ;;  %482 = vst.msk [vmem:[%s1103_s1 + $0x74] sm:$0x8] %vm8_vm0, %v282_v55  }
  0xab   :  { %483 = vst.msk [vmem:[%s1103_s1 + $0x18] sm:$0x1] %vm8_vm0, %v294_v56   ;;  %484 = vst.msk [vmem:[%s1103_s1 + $0x37] sm:$0x2] %vm8_vm0, %v294_v56  }
  0xac   :  { %485 = vst.msk [vmem:[%s1103_s1 + $0x56] sm:$0x4] %vm8_vm0, %v294_v56   ;;  %486 = vst.msk [vmem:[%s1103_s1 + $0x75] sm:$0x8] %vm8_vm0, %v294_v56   ;;  %v306_v57 = vpop.permute.xlu0 %305  }
  0xad   :  { %v318_v58 = vpop.permute.xlu1 %317   ;;  %487 = vst.msk [vmem:[%s1103_s1 + $0x19] sm:$0x1] %vm8_vm0, %v306_v57   ;;  %488 = vst.msk [vmem:[%s1103_s1 + $0x38] sm:$0x2] %vm8_vm0, %v306_v57  }
  0xae   :  { %489 = vst.msk [vmem:[%s1103_s1 + $0x57] sm:$0x4] %vm8_vm0, %v306_v57   ;;  %490 = vst.msk [vmem:[%s1103_s1 + $0x76] sm:$0x8] %vm8_vm0, %v306_v57  }
  0xaf   :  { %491 = vst.msk [vmem:[%s1103_s1 + $0x1a] sm:$0x1] %vm8_vm0, %v318_v58   ;;  %492 = vst.msk [vmem:[%s1103_s1 + $0x39] sm:$0x2] %vm8_vm0, %v318_v58  }
  0xb0   :  { %493 = vst.msk [vmem:[%s1103_s1 + $0x58] sm:$0x4] %vm8_vm0, %v318_v58   ;;  %494 = vst.msk [vmem:[%s1103_s1 + $0x77] sm:$0x8] %vm8_vm0, %v318_v58   ;;  %v330_v59 = vpop.permute.xlu0 %329  }
  0xb1   :  { %v342_v60 = vpop.permute.xlu1 %341   ;;  %495 = vst.msk [vmem:[%s1103_s1 + $0x1b] sm:$0x1] %vm8_vm0, %v330_v59   ;;  %496 = vst.msk [vmem:[%s1103_s1 + $0x3a] sm:$0x2] %vm8_vm0, %v330_v59  }
  0xb2   :  { %497 = vst.msk [vmem:[%s1103_s1 + $0x59] sm:$0x4] %vm8_vm0, %v330_v59   ;;  %498 = vst.msk [vmem:[%s1103_s1 + $0x78] sm:$0x8] %vm8_vm0, %v330_v59  }
  0xb3   :  { %499 = vst.msk [vmem:[%s1103_s1 + $0x1c] sm:$0x1] %vm8_vm0, %v342_v60   ;;  %500 = vst.msk [vmem:[%s1103_s1 + $0x3b] sm:$0x2] %vm8_vm0, %v342_v60  }
  0xb4   :  { %501 = vst.msk [vmem:[%s1103_s1 + $0x5a] sm:$0x4] %vm8_vm0, %v342_v60   ;;  %502 = vst.msk [vmem:[%s1103_s1 + $0x79] sm:$0x8] %vm8_vm0, %v342_v60   ;;  %v354_v61 = vpop.permute.xlu0 %353  }
  0xb5   :  { %v366_v62 = vpop.permute.xlu1 %365   ;;  %503 = vst.msk [vmem:[%s1103_s1 + $0x1d] sm:$0x1] %vm8_vm0, %v354_v61   ;;  %504 = vst.msk [vmem:[%s1103_s1 + $0x3c] sm:$0x2] %vm8_vm0, %v354_v61  }
  0xb6   :  { %505 = vst.msk [vmem:[%s1103_s1 + $0x5b] sm:$0x4] %vm8_vm0, %v354_v61   ;;  %506 = vst.msk [vmem:[%s1103_s1 + $0x7a] sm:$0x8] %vm8_vm0, %v354_v61  }
  0xb7   :  { %507 = vst.msk [vmem:[%s1103_s1 + $0x1e] sm:$0x1] %vm8_vm0, %v366_v62   ;;  %508 = vst.msk [vmem:[%s1103_s1 + $0x3d] sm:$0x2] %vm8_vm0, %v366_v62  }
  0xb8   :  { %509 = vst.msk [vmem:[%s1103_s1 + $0x5c] sm:$0x4] %vm8_vm0, %v366_v62   ;;  %510 = vst.msk [vmem:[%s1103_s1 + $0x7b] sm:$0x8] %vm8_vm0, %v366_v62   ;;  %v378_v63 = vpop.permute.xlu0 %377  }
  0xb9   :  { %511 = vst.msk [vmem:[%s1103_s1 + $0x1f] sm:$0x1] %vm8_vm0, %v378_v63   ;;  %512 = vst.msk [vmem:[%s1103_s1 + $0x3e] sm:$0x2] %vm8_vm0, %v378_v63  }
  0xba   :  { %513 = vst.msk [vmem:[%s1103_s1 + $0x5d] sm:$0x4] %vm8_vm0, %v378_v63   ;;  %514 = vst.msk [vmem:[%s1103_s1 + $0x7c] sm:$0x8] %vm8_vm0, %v378_v63  }

// kernel: simple_cnn_forward.3
= control target key start
LH: loop header
LB: loop body
LE: loop exit
PB: predicated region body
PF: predicated region fallthrough
CT: control target
= control target key end

     0   :  { %9 = vsyncpa [#allocation4], 0  ;;  %s2226_s15 = smov 0   ;;  %s2940_s0 = inlined_call_operand.vmem [shape: bf16[2,4,16,512], index: 0, kind: input, shape index: {}]   ;;  %s2941_s1 = inlined_call_operand.vmem [shape: bf16[64,256], index: 1, kind: input, shape index: {}]   ;;  %s2942_s2 = inlined_call_operand.vmem [shape: f32[2,64,1], index: 2, kind: input, shape index: {}]   ;;  %s2943_s3 = inlined_call_operand.vmem [shape: f32[2], index: 3, kind: input, shape index: {}]   ;;  %s2944_s4 = inlined_call_operand.vmem [shape: f32[2,2,16,384], index: 4, kind: output, shape index: {}]  }
   0x1 LB: > { %s1815_s16 = sadd.s32 4294967295, %s2194_s15   ;;  %p1817_p0 = scmp.ge.s32.totalorder %s2194_s15, 1  ;;  %s2194_s15 = sphi %s2226_s15, %s15_s15  }
   0x2   : > { %p135_p1 = scmp.lt.s32.totalorder %s2194_s15, 3  ;;  %s154_s19 = sshll.u32 %s2943_s3, 4  ;;  %s155_s19 = int_to_ptr.vmem [resolvable:$true] %s154_s19 }
   0x3   : > { %p1996_p3 = scmp.eq.s32.totalorder %s1815_s16, 0  ;;  %s2169_s21 = scalar_lea.vmem %s155_s19, 16 }
   0x4   : > { %p2237_p2 = pnand %p1817_p0, %p135_p1  ;;  %p2170_p6 = scmp.ne.s32.totalorder %s155_s19, %s2169_s21 }
   0x5   : > { %p2177_p10 = scmp.lt.s32.totalorder %s155_s19, %s155_s19  ;;  %p2178_p11 = scmp.lt.s32.totalorder %s2169_s21, %s2169_s21 }
   0x6   : > { %p1992_p4 = pneg %p2237_p2 }
   0x7   : > { %p2179_p12 = por %p2178_p11, %p2177_p10 }
   0x8   : > { %p1993_p5 = pnand %p1996_p3, %p1992_p4 }
   0xa   : > { %p2171_p7 = pneg %p1993_p5 }
   0xc   : > { %p2172_p8 = pnand %p2171_p7, %p2170_p6 }
   0xe   : > { %p2173_p9 = pneg %p2172_p8 }
  0x10   : > { %p2180_p13 = pnand %p2179_p12, %p2173_p9 }
  0x12   : > { %2183 = shalt.err (!%p2180_p13)
}
  0x13   : > { %s2196_s22 = smov [#allocation3]   ;;  %175 = sbr.rel (%p2237_p2) target bundleno = 591 (0x24f), region = 36 }
  0x14   : > { %1995 = dma.vmem_to_smem (!%p1993_p5), %s155_s19, 16, %s2196_s22, [#allocation4]  }
  0x18   : > { %2189 = dma.done.wait (%p1996_p3), [#allocation4], 16  }
  0x19   : > { %2191 = vsyncadd (%p1996_p3), [#allocation4], 4294967280 }
  0x1a   : > { %181 = sfence }
  0x1b   : > { %p202_p0 = scmp.lt.s32.totalorder %s1815_s16, 1  ;;  %s2197_s27 = smov 127   ;;  %v2039_v24 = vld [vmem:[%s2941_s1 + $0x4] ss:$8 sps:$4 sm:$0xff]   ;;  %v2200_v29 = vmov 0   ;;  %vm268_vm0 = vcmask 1043456  }
  0x1c   : > { %s2198_s28 = smov 110   ;;  %s2199_s29 = smov 111   ;;  %1133 = vmatprep.mubr.bf16.mxu1 %v2039_v24  ;;  %1060 = vmatprep.mubr.bf16.mxu0 %v2039_v24  ;;  %v1167_v27 = vld [vmem:[%s2942_s2 + $0x8] sm:$0xff]  ;;  %v1166_v28 = vld [vmem:[%s2942_s2] sm:$0xff]  ;;  %vm270_vm1 = vcmask 1039360   ;;  %v1168_v32 = vld [vmem:[%s2942_s2 + $0x10] sm:$0xff] }
  0x1d   : > { %s3024_s16 = smov (!%p202_p0, %s1815_s16), 1  ;;  %2012 = vset.pattern.permute.xlu1 %v2200_v29  ;;  %2011 = vset.pattern.permute.xlu0 %v2200_v29  ;;  %v1169_v37 = vld [vmem:[%s2942_s2 + $0x18] sm:$0xff]  ;;  %v1170_v46 = vld [vmem:[%s2942_s2 + $0x20] sm:$0xff]  ;;  %v1171_v51 = vld [vmem:[%s2942_s2 + $0x28] sm:$0xff]  ;;  %vm544_vm2 = vcmask 900096   ;;  %vm407_vm3 = vcmask 908288  }
  0x1e   : > { %s1946_s23 = sshll.u32 %s3024_s16, 7  ;;  %v1929_v57 = vld [vmem:[%s2942_s2 + $0x40] sm:$0xff]  ;;  %v1930_v60 = vld [vmem:[%s2942_s2 + $0x48] sm:$0xff]  ;;  %v1173_v24 = vld [vmem:[%s2942_s2 + $0x38] sm:$0xff]  ;;  %s1335_s30 = sld [smem:[#allocation3]] }
  0x1f   : > { %s2254_s26 = scalar_lea.vmem %s2940_s0, %s1946_s23  ;;  %s1937_s5 = sld [smem:[#allocation3 + $0x1]] }
  0x20   : > { %v2257_v0 = vld [vmem:[%s2254_s26 + $0x70] sm:$0xff]  ;;  %v2260_v1 = vld [vmem:[%s2254_s26 + $0x60] sm:$0xff]  ;;  %v1848_v2 = vld [vmem:[%s2254_s26 + $0x78] sm:$0xff]  ;;  %s1987_s6 = smul.u32 96, %s3024_s16 }
  0x21   : > { %364 = vrot.lane.b32.xlu1 %v2257_v0, %s2197_s27  ;;  %360 = vrot.lane.b32.xlu0 %v2260_v1, %s2197_s27  ;;  %v1846_v3 = vld [vmem:[%s2254_s26 + $0x68] sm:$0xff]  ;;  %v2267_v4 = vld [vmem:[%s2254_s26 + $0x40] sm:$0xff] }
  0x22   : > { %v2270_v5 = vld [vmem:[%s2254_s26 + $0x50] sm:$0xff]  ;;  %v2273_v6 = vld [vmem:[%s2254_s26 + $0x20] sm:$0xff]  ;;  %v1842_v10 = vld [vmem:[%s2254_s26 + $0x48] sm:$0xff]  ;;  %s2842_s8 = scalar_lea.vmem %s2944_s4, %s1987_s6 }
  0x23   : > { %v2276_v7 = vld [vmem:[%s2254_s26 + $0x30] sm:$0xff]  ;;  %v2279_v8 = vld [vmem:[%s2254_s26] sm:$0xff]  ;;  %v1844_v11 = vld [vmem:[%s2254_s26 + $0x58] sm:$0xff] }
  0x24   : > { %v2282_v9 = vld [vmem:[%s2254_s26 + $0x10] sm:$0xff]  ;;  %v1838_v12 = vld [vmem:[%s2254_s26 + $0x28] sm:$0xff]  ;;  %v1840_v13 = vld [vmem:[%s2254_s26 + $0x38] sm:$0xff] }
  0x25   : > { %366 = vrot.lane.b32.xlu1 %v1848_v2, %s2197_s27  ;;  %362 = vrot.lane.b32.xlu0 %v1846_v3, %s2197_s27  ;;  %v249_v14 = vld [vmem:[%s2254_s26 + $0x8] sm:$0xff]  ;;  %v251_v15 = vld [vmem:[%s2254_s26 + $0x18] sm:$0xff] }
  0x26   : > { %v1834_v16 = vld [vmem:[%s2254_s26 + $0x68] sm:$0xf]  ;;  %v1836_v17 = vld [vmem:[%s2254_s26 + $0x78] sm:$0xf] }
  0x27   : > { %245 = vst [vmem:[#allocation2 + $0x50] sm:$0xf] %v1834_v16  ;;  %247 = vst [vmem:[#allocation2 + $0x5c] sm:$0xf] %v1836_v17  ;;  %v1830_v18 = vld [vmem:[%s2254_s26 + $0x48] sm:$0xf] }
  0x28   : > { %v1832_v19 = vld [vmem:[%s2254_s26 + $0x58] sm:$0xf]  ;;  %236 = vst [vmem:[#allocation2 + $0x38] sm:$0xf] %v1830_v18  ;;  %v1826_v20 = vld [vmem:[%s2254_s26 + $0x28] sm:$0xf] }
  0x29   : > { %328 = vrot.lane.b32.xlu1 %v1842_v10, %s2197_s27  ;;  %326 = vrot.lane.b32.xlu0 %v2267_v4, %s2197_s27  ;;  %238 = vst [vmem:[#allocation2 + $0x44] sm:$0xf] %v1832_v19  ;;  %v1828_v21 = vld [vmem:[%s2254_s26 + $0x38] sm:$0xf]  ;;  %227 = vst [vmem:[#allocation2 + $0x20] sm:$0xf] %v1826_v20 }
  0x2a   : > { %229 = vst [vmem:[#allocation2 + $0x2c] sm:$0xf] %v1828_v21  ;;  %v214_v22 = vld [vmem:[%s2254_s26 + $0x8] sm:$0xf]  ;;  %v216_v23 = vld [vmem:[%s2254_s26 + $0x18] sm:$0xf] }
  0x2b   : > { %218 = vst [vmem:[#allocation2 + $0x8] sm:$0xf] %v214_v22  ;;  %220 = vst [vmem:[#allocation2 + $0x14] sm:$0xf] %v216_v23  ;;  %v1172_v21 = vld [vmem:[%s2942_s2 + $0x30] sm:$0xff] }
  0x2d   : > { %332 = vrot.lane.b32.xlu1 %v1844_v11, %s2197_s27  ;;  %330 = vrot.lane.b32.xlu0 %v2270_v5, %s2197_s27 }
  0x31   : > { %294 = vrot.lane.b32.xlu1 %v1838_v12, %s2197_s27  ;;  %292 = vrot.lane.b32.xlu0 %v2273_v6, %s2197_s27 }
  0x35   : > { %298 = vrot.lane.b32.xlu1 %v1840_v13, %s2197_s27  ;;  %296 = vrot.lane.b32.xlu0 %v2276_v7, %s2197_s27 }
  0x39   : > { %258 = vrot.lane.b32.xlu1 %v249_v14, %s2197_s27  ;;  %256 = vrot.lane.b32.xlu0 %v2279_v8, %s2197_s27 }
  0x3d   : > { %262 = vrot.lane.b32.xlu1 %v251_v15, %s2197_s27  ;;  %260 = vrot.lane.b32.xlu0 %v2282_v9, %s2197_s27 }
  0x41   : > { %640 = vrot.lane.b32.xlu1 %v1848_v2, %s2198_s28  ;;  %636 = vrot.lane.b32.xlu0 %v1846_v3, %s2198_s28 }
  0x45   : > { %638 = vrot.lane.b32.xlu1 %v2257_v0, %s2198_s28  ;;  %634 = vrot.lane.b32.xlu0 %v2260_v1, %s2198_s28 }
  0x49   : > { %606 = vrot.lane.b32.xlu1 %v1844_v11, %s2198_s28  ;;  %602 = vrot.lane.b32.xlu0 %v1842_v10, %s2198_s28 }
  0x4d   : > { %604 = vrot.lane.b32.xlu1 %v2270_v5, %s2198_s28  ;;  %600 = vrot.lane.b32.xlu0 %v2267_v4, %s2198_s28 }
  0x51   : > { %572 = vrot.lane.b32.xlu1 %v1840_v13, %s2198_s28  ;;  %568 = vrot.lane.b32.xlu0 %v1838_v12, %s2198_s28 }
  0x55   : > { %570 = vrot.lane.b32.xlu1 %v2276_v7, %s2198_s28  ;;  %566 = vrot.lane.b32.xlu0 %v2273_v6, %s2198_s28 }
  0x59   : > { %537 = vrot.lane.b32.xlu1 %v251_v15, %s2198_s28  ;;  %533 = vrot.lane.b32.xlu0 %v249_v14, %s2198_s28 }
  0x5d   : > { %535 = vrot.lane.b32.xlu1 %v2282_v9, %s2198_s28  ;;  %531 = vrot.lane.b32.xlu0 %v2279_v8, %s2198_s28 }
  0x61   : > { %503 = vrot.lane.b32.xlu1 %v1848_v2, %s2199_s29  ;;  %499 = vrot.lane.b32.xlu0 %v1846_v3, %s2199_s29 }
  0x65   : > { %501 = vrot.lane.b32.xlu1 %v2257_v0, %s2199_s29  ;;  %497 = vrot.lane.b32.xlu0 %v2260_v1, %s2199_s29 }
  0x69   : > { %469 = vrot.lane.b32.xlu1 %v1844_v11, %s2199_s29  ;;  %465 = vrot.lane.b32.xlu0 %v1842_v10, %s2199_s29  ;;  %v1931_v10 = vld [vmem:[%s2942_s2 + $0x50] sm:$0xff] }
  0x6d   : > { %467 = vrot.lane.b32.xlu1 %v2270_v5, %s2199_s29  ;;  %463 = vrot.lane.b32.xlu0 %v2267_v4, %s2199_s29 }
  0x71   : > { %435 = vrot.lane.b32.xlu1 %v1840_v13, %s2199_s29  ;;  %431 = vrot.lane.b32.xlu0 %v1838_v12, %s2199_s29 }
  0x75   : > { %433 = vrot.lane.b32.xlu1 %v2276_v7, %s2199_s29  ;;  %429 = vrot.lane.b32.xlu0 %v2273_v6, %s2199_s29 }
  0x79   : > { %400 = vrot.lane.b32.xlu1 %v251_v15, %s2199_s29  ;;  %396 = vrot.lane.b32.xlu0 %v249_v14, %s2199_s29  ;;  %v1932_v15 = vld [vmem:[%s2942_s2 + $0x58] sm:$0xff] }
  0x7d   : > { %398 = vrot.lane.b32.xlu1 %v2282_v9, %s2199_s29  ;;  %394 = vrot.lane.b32.xlu0 %v2279_v8, %s2199_s29 }
  0x81   : > { %1181 = vperm.xlu1 %2012, %v1167_v27   ;;  %1176 = vperm.xlu0 %2011, %v1166_v28  }
  0x85   : > { %1186 = vperm.xlu1 %2012, %v1168_v32   ;;  %1191 = vperm.xlu0 %2011, %v1169_v37  }
  0x89   : > { %1196 = vperm.xlu1 %2012, %v1170_v46   ;;  %1201 = vperm.xlu0 %2011, %v1171_v51  }
  0x8d   : > { %1249 = vperm.xlu1 %2012, %v1929_v57   ;;  %1254 = vperm.xlu0 %2011, %v1930_v60  }
  0x91   : > { %1259 = vperm.xlu1 %2012, %v1931_v10   ;;  %1264 = vperm.xlu0 %2011, %v1932_v15  }
  0x93   : > { %v365_v25 = vpop.permute.xlu1 %364  ;;  %v361_v26 = vpop.permute.xlu0 %360 }
  0x94   : > { %v370_v33 = vrot.slane %v365_v25, 4  ;;  %v368_v34 = vrot.slane %v361_v26, 4 }
  0x95   : > { %1206 = vperm.xlu1 %2012, %v1172_v21   ;;  %1211 = vperm.xlu0 %2011, %v1173_v24  }
  0x97   : > { %v367_v30 = vpop.permute.xlu1 %366  ;;  %v363_v31 = vpop.permute.xlu0 %362 }
  0x98   : > { %v371_v35 = vrot.slane %v367_v30, 4  ;;  %v369_v36 = vrot.slane %v363_v31, 4 }
  0x9a   : > { %v375_v38 = vsel %vm268_vm0, %v370_v33, %v371_v35  ;;  %v377_v39 = vsel %vm270_vm1, %v367_v30, %v371_v35  ;;  %v372_v40 = vsel %vm268_vm0, %v368_v34, %v369_v36  ;;  %v374_v41 = vsel %vm270_vm1, %v363_v31, %v369_v36  ;;  %v1933_v30 = vld [vmem:[%s2942_s2 + $0x60] sm:$0xff]  ;;  %v1934_v35 = vld [vmem:[%s2942_s2 + $0x68] sm:$0xff] }
  0x9b   : > { %v376_v42 = vsel %vm270_vm1, %v365_v25, %v375_v38  ;;  %385 = vst [vmem:[#allocation2 + $0xbc] sm:$0xf] %v377_v39  ;;  %v373_v43 = vsel %vm270_vm1, %v361_v26, %v372_v40  ;;  %383 = vst [vmem:[#allocation2 + $0xb0] sm:$0xf] %v374_v41  ;;  %v329_v44 = vpop.permute.xlu1 %328  ;;  %v327_v45 = vpop.permute.xlu0 %326  ;;  %1269 = vperm.xlu1 %2012, %v1933_v30   ;;  %1274 = vperm.xlu0 %2011, %v1934_v35   ;;  %v1935_v41 = vld [vmem:[%s2942_s2 + $0x70] sm:$0xff] }
  0x9c   : > { %v335_v47 = vrot.slane %v329_v44, 4  ;;  %v334_v48 = vrot.slane %v327_v45, 4  ;;  %v1903_v49 = vcombine.high %v373_v43, %v376_v42  ;;  %v1902_v50 = vcombine.low %v373_v43, %v376_v42 }
  0x9e   : > { %v340_v52 = vsel %vm270_vm1, %v329_v44, %v335_v47  ;;  %v338_v53 = vsel %vm268_vm0, %v334_v48, %v335_v47  ;;  %1028 = vmatprep.subr.bf16.mxu0 %v1903_v49  ;;  %v1936_v44 = vld [vmem:[%s2942_s2 + $0x78] sm:$0xff] }
  0x9f   : > { %349 = vst [vmem:[#allocation2 + $0x98] sm:$0xf] %v340_v52  ;;  %v339_v54 = vsel %vm270_vm1, %v327_v45, %v338_v53  ;;  %v333_v55 = vpop.permute.xlu1 %332  ;;  %v331_v56 = vpop.permute.xlu0 %330  ;;  %1029 = vmatpush1.bf16.msra.mxu0 %v1902_v50  ;;  %1279 = vperm.xlu1 %2012, %v1935_v41   ;;  %v1891_v50 = vcombine.high %v2260_v1, %v2257_v0 }
  0xa0   : > { %v337_v58 = vrot.slane %v333_v55, 4  ;;  %v336_v59 = vrot.slane %v331_v56, 4  ;;  %1284 = vperm.xlu0 %2011, %v1936_v44  }
  0xa2   : > { %v343_v61 = vsel %vm270_vm1, %v333_v55, %v337_v58  ;;  %v341_v62 = vsel %vm268_vm0, %v336_v59, %v337_v58  ;;  %v1890_v59 = vcombine.low %v2260_v1, %v2257_v0  ;;  %v1887_v0 = vcombine.low %v2267_v4, %v2270_v5 }
  0xa3   : > { %351 = vst [vmem:[#allocation2 + $0xa4] sm:$0xf] %v343_v61  ;;  %v342_v63 = vsel %vm270_vm1, %v331_v56, %v341_v62  ;;  %v295_v2 = vpop.permute.xlu1 %294  ;;  %v293_v3 = vpop.permute.xlu0 %292  ;;  %v1888_v62 = vcombine.high %v2267_v4, %v2270_v5  ;;  %v1884_v4 = vcombine.low %v2273_v6, %v2276_v7 }
  0xa4   : > { %v301_v11 = vrot.slane %v295_v2, 4  ;;  %v300_v12 = vrot.slane %v293_v3, 4  ;;  %v1900_v13 = vcombine.high %v339_v54, %v342_v63  ;;  %v1899_v14 = vcombine.low %v339_v54, %v342_v63 }
  0xa6   : > { %v306_v16 = vsel %vm270_vm1, %v295_v2, %v301_v11  ;;  %v304_v17 = vsel %vm268_vm0, %v300_v12, %v301_v11  ;;  %1030 = vmatprep.subr.bf16.mxu0 %v1900_v13 }
  0xa7   : > { %315 = vst [vmem:[#allocation2 + $0x80] sm:$0xf] %v306_v16  ;;  %v305_v18 = vsel %vm270_vm1, %v293_v3, %v304_v17  ;;  %v299_v19 = vpop.permute.xlu1 %298  ;;  %v297_v20 = vpop.permute.xlu0 %296  ;;  %1031 = vmatpush1.bf16.msra.mxu0 %v1899_v14  ;;  %v1885_v14 = vcombine.high %v2273_v6, %v2276_v7  ;;  %v1881_v6 = vcombine.low %v2279_v8, %v2282_v9 }
  0xa8   : > { %v303_v22 = vrot.slane %v299_v19, 4  ;;  %v302_v23 = vrot.slane %v297_v20, 4 }
  0xaa   : > { %v309_v25 = vsel %vm270_vm1, %v299_v19, %v303_v22  ;;  %v307_v26 = vsel %vm268_vm0, %v302_v23, %v303_v22  ;;  %v1882_v22 = vcombine.high %v2279_v8, %v2282_v9 }
  0xab   : > { %317 = vst [vmem:[#allocation2 + $0x8c] sm:$0xf] %v309_v25  ;;  %v308_v27 = vsel %vm270_vm1, %v297_v20, %v307_v26  ;;  %v259_v28 = vpop.permute.xlu1 %258  ;;  %v257_v29 = vpop.permute.xlu0 %256  ;;  %v2015_v20 = vld [vmem:[#allocation2 + $0xb0] ss:$12 sps:$4 sm:$0xff]  }
  0xac   : > { %v265_v31 = vrot.slane %v259_v28, 4  ;;  %v264_v32 = vrot.slane %v257_v29, 4  ;;  %v1897_v33 = vcombine.high %v305_v18, %v308_v27  ;;  %v1896_v34 = vcombine.low %v305_v18, %v308_v27 }
  0xae   : > { %v272_v36 = vsel %vm270_vm1, %v259_v28, %v265_v31  ;;  %v269_v37 = vsel %vm268_vm0, %v264_v32, %v265_v31  ;;  %1032 = vmatprep.subr.bf16.mxu0 %v1897_v33 }
  0xaf   : > { %281 = vst [vmem:[#allocation2 + $0x68] sm:$0xf] %v272_v36  ;;  %v271_v38 = vsel %vm270_vm1, %v257_v29, %v269_v37  ;;  %v263_v39 = vpop.permute.xlu1 %262  ;;  %v261_v40 = vpop.permute.xlu0 %260  ;;  %1033 = vmatpush1.bf16.msra.mxu0 %v1896_v34  ;;  %v2021_v36 = vld [vmem:[#allocation2 + $0x98] ss:$12 sps:$4 sm:$0xff]  }
  0xb0   : > { %v267_v42 = vrot.slane %v263_v39, 4  ;;  %v266_v43 = vrot.slane %v261_v40, 4 }
  0xb2   : > { %v275_v45 = vsel %vm270_vm1, %v263_v39, %v267_v42  ;;  %v273_v46 = vsel %vm268_vm0, %v266_v43, %v267_v42 }
  0xb3   : > { %283 = vst [vmem:[#allocation2 + $0x74] sm:$0xf] %v275_v45  ;;  %v274_v47 = vsel %vm270_vm1, %v261_v40, %v273_v46  ;;  %v641_v48 = vpop.permute.xlu1 %640  ;;  %v637_v49 = vpop.permute.xlu0 %636 }
  0xb4   : > { %v645_v51 = vrot.slane %v641_v48, 4  ;;  %v643_v52 = vrot.slane %v637_v49, 4  ;;  %v1894_v53 = vcombine.high %v271_v38, %v274_v47  ;;  %v1893_v54 = vcombine.low %v271_v38, %v274_v47 }
  0xb6   : > { %v651_v55 = vsel %vm544_vm2, %v641_v48, %v645_v51  ;;  %v648_v56 = vsel %vm544_vm2, %v637_v49, %v643_v52  ;;  %1034 = vmatprep.subr.bf16.mxu0 %v1894_v53 }
  0xb7   : > { %659 = vst [vmem:[#allocation2 + $0x17c] sm:$0xf] %v651_v55  ;;  %657 = vst [vmem:[#allocation2 + $0x170] sm:$0xf] %v648_v56  ;;  %v639_v57 = vpop.permute.xlu1 %638  ;;  %v635_v58 = vpop.permute.xlu0 %634  ;;  %1035 = vmatpush1.bf16.msra.mxu0 %v1893_v54  ;;  %v2026_v54 = vld [vmem:[#allocation2 + $0x80] ss:$12 sps:$4 sm:$0xff]  }
  0xb8   : > { %v644_v60 = vrot.slane %v639_v57, 4  ;;  %v642_v61 = vrot.slane %v635_v58, 4  ;;  %1036 = vmatprep.subr.bf16.mxu0 %v1891_v50 }
  0xba   : > { %v649_v63 = vsel %vm268_vm0, %v644_v60, %v645_v51  ;;  %v646_v2 = vsel %vm268_vm0, %v642_v61, %v643_v52 }
  0xbb   : > { %v650_v3 = vsel %vm544_vm2, %v639_v57, %v649_v63  ;;  %v647_v10 = vsel %vm544_vm2, %v635_v58, %v646_v2  ;;  %v607_v11 = vpop.permute.xlu1 %606  ;;  %v603_v12 = vpop.permute.xlu0 %602  ;;  %1037 = vmatpush1.bf16.msra.mxu0 %v1890_v59 }
  0xbc   : > { %v611_v1 = vrot.slane %v607_v11, 4  ;;  %v609_v13 = vrot.slane %v603_v12, 4  ;;  %1038 = vmatprep.subr.bf16.mxu0 %v1888_v62  ;;  %v1927_v33 = vcombine.high %v647_v10, %v650_v3  ;;  %v1926_v8 = vcombine.low %v647_v10, %v650_v3 }
  0xbe   : > { %v617_v15 = vsel %vm544_vm2, %v607_v11, %v611_v1  ;;  %v614_v16 = vsel %vm544_vm2, %v603_v12, %v609_v13  ;;  %v2013_v17 = vld [vmem:[#allocation2 + $0x170] ss:$12 sps:$4 sm:$0xff]  }
  0xbf   : > { %625 = vst [vmem:[#allocation2 + $0x164] sm:$0xf] %v617_v15  ;;  %623 = vst [vmem:[#allocation2 + $0x158] sm:$0xf] %v614_v16  ;;  %v605_v18 = vpop.permute.xlu1 %604  ;;  %v601_v19 = vpop.permute.xlu0 %600  ;;  %1039 = vmatpush1.bf16.msra.mxu0 %v1887_v0  ;;  %1947 = vmatprep.subr.bf16.mxu1 %v2013_v17  ;;  %v2028_v15 = vld [vmem:[#allocation2 + $0x68] ss:$12 sps:$4 sm:$0xff]  }
  0xc0   : > { %v610_v5 = vrot.slane %v605_v18, 4  ;;  %v608_v21 = vrot.slane %v601_v19, 4  ;;  %1040 = vmatprep.subr.bf16.mxu0 %v1885_v14  ;;  %1948 = vmatpush3.bf16.msra.mxu1 %v2015_v20 }
  0xc2   : > { %v615_v23 = vsel %vm268_vm0, %v610_v5, %v611_v1  ;;  %v612_v24 = vsel %vm268_vm0, %v608_v21, %v609_v13 }
  0xc3   : > { %v616_v25 = vsel %vm544_vm2, %v605_v18, %v615_v23  ;;  %v613_v26 = vsel %vm544_vm2, %v601_v19, %v612_v24  ;;  %v573_v27 = vpop.permute.xlu1 %572  ;;  %v569_v28 = vpop.permute.xlu0 %568  ;;  %1041 = vmatpush1.bf16.msra.mxu0 %v1884_v4 }
  0xc4   : > { %v577_v7 = vrot.slane %v573_v27, 4  ;;  %v575_v29 = vrot.slane %v569_v28, 4  ;;  %1042 = vmatprep.subr.bf16.mxu0 %v1882_v22  ;;  %v1924_v40 = vcombine.high %v613_v26, %v616_v25  ;;  %v1923_v47 = vcombine.low %v613_v26, %v616_v25  ;;  %v2030_v26 = vld [vmem:[#allocation2 + $0x50] ss:$12 sps:$4 sm:$0xff]  }
  0xc6   : > { %v583_v30 = vsel %vm544_vm2, %v573_v27, %v577_v7  ;;  %v580_v31 = vsel %vm544_vm2, %v569_v28, %v575_v29  ;;  %v2019_v32 = vld [vmem:[#allocation2 + $0x158] ss:$12 sps:$4 sm:$0xff]  }
  0xc7   : > { %591 = vst [vmem:[#allocation2 + $0x14c] sm:$0xf] %v583_v30  ;;  %589 = vst [vmem:[#allocation2 + $0x140] sm:$0xf] %v580_v31  ;;  %v571_v34 = vpop.permute.xlu1 %570  ;;  %v567_v35 = vpop.permute.xlu0 %566  ;;  %1043 = vmatpush1.bf16.msra.mxu0 %v1881_v6  ;;  %1949 = vmatprep.subr.bf16.mxu1 %v2019_v32 }
  0xc8   : > { %v576_v37 = vrot.slane %v571_v34, 4  ;;  %v574_v38 = vrot.slane %v567_v35, 4  ;;  %1044 = vmatprep.subr.bf16.mxu0 %v1927_v33  ;;  %1950 = vmatpush3.bf16.msra.mxu1 %v2021_v36 }
  0xca   : > { %v581_v9 = vsel %vm268_vm0, %v576_v37, %v577_v7  ;;  %v578_v39 = vsel %vm268_vm0, %v574_v38, %v575_v29 }
  0xcb   : > { %v582_v41 = vsel %vm544_vm2, %v571_v34, %v581_v9  ;;  %v579_v42 = vsel %vm544_vm2, %v567_v35, %v578_v39  ;;  %v538_v43 = vpop.permute.xlu1 %537  ;;  %v534_v44 = vpop.permute.xlu0 %533  ;;  %1045 = vmatpush2.bf16.msra.mxu0 %v1926_v8 }
  0xcc   : > { %v542_v45 = vrot.slane %v538_v43, 4  ;;  %v540_v46 = vrot.slane %v534_v44, 4  ;;  %1046 = vmatprep.subr.bf16.mxu0 %v1924_v40  ;;  %v1921_v51 = vcombine.high %v579_v42, %v582_v41  ;;  %v1920_v57 = vcombine.low %v579_v42, %v582_v41  ;;  %v2032_v40 = vld [vmem:[#allocation2 + $0x38] ss:$12 sps:$4 sm:$0xff]  }
  0xce   : > { %v549_v48 = vsel %vm544_vm2, %v538_v43, %v542_v45  ;;  %v546_v49 = vsel %vm544_vm2, %v534_v44, %v540_v46  ;;  %v2025_v50 = vld [vmem:[#allocation2 + $0x140] ss:$12 sps:$4 sm:$0xff]  }
  0xcf   : > { %557 = vst [vmem:[#allocation2 + $0x134] sm:$0xf] %v549_v48  ;;  %555 = vst [vmem:[#allocation2 + $0x128] sm:$0xf] %v546_v49  ;;  %v536_v52 = vpop.permute.xlu1 %535  ;;  %v532_v53 = vpop.permute.xlu0 %531  ;;  %1047 = vmatpush2.bf16.msra.mxu0 %v1923_v47  ;;  %1951 = vmatprep.subr.bf16.mxu1 %v2025_v50 }
  0xd0   : > { %v541_v55 = vrot.slane %v536_v52, 4  ;;  %v539_v56 = vrot.slane %v532_v53, 4  ;;  %1048 = vmatprep.subr.bf16.mxu0 %v1921_v51  ;;  %1952 = vmatpush3.bf16.msra.mxu1 %v2026_v54 }
  0xd2   : > { %v547_v58 = vsel %vm268_vm0, %v541_v55, %v542_v45  ;;  %v543_v59 = vsel %vm268_vm0, %v539_v56, %v540_v46 }
  0xd3   : > { %v548_v60 = vsel %vm544_vm2, %v536_v52, %v547_v58  ;;  %v545_v61 = vsel %vm544_vm2, %v532_v53, %v543_v59  ;;  %v504_v62 = vpop.permute.xlu1 %503  ;;  %v500_v63 = vpop.permute.xlu0 %499  ;;  %1049 = vmatpush2.bf16.msra.mxu0 %v1920_v57  ;;  %v2034_v58 = vld [vmem:[#allocation2 + $0x20] ss:$12 sps:$4 sm:$0xff]  }
  0xd4   : > { %v508_v2 = vrot.slane %v504_v62, 4  ;;  %v506_v3 = vrot.slane %v500_v63, 4  ;;  %v1918_v10 = vcombine.high %v545_v61, %v548_v60  ;;  %v1917_v11 = vcombine.low %v545_v61, %v548_v60 }
  0xd6   : > { %v514_v12 = vsel %vm407_vm3, %v504_v62, %v508_v2  ;;  %v511_v0 = vsel %vm407_vm3, %v500_v63, %v506_v3  ;;  %v2027_v1 = vld [vmem:[#allocation2 + $0x128] ss:$12 sps:$4 sm:$0xff]   ;;  %1050 = vmatprep.subr.bf16.mxu0 %v1918_v10 }
  0xd7   : > { %522 = vst [vmem:[#allocation2 + $0x11c] sm:$0xf] %v514_v12  ;;  %520 = vst [vmem:[#allocation2 + $0x110] sm:$0xf] %v511_v0  ;;  %v502_v13 = vpop.permute.xlu1 %501  ;;  %v498_v14 = vpop.permute.xlu0 %497  ;;  %1051 = vmatpush2.bf16.msra.mxu0 %v1917_v11  ;;  %1953 = vmatprep.subr.bf16.mxu1 %v2027_v1 }
  0xd8   : > { %v507_v16 = vrot.slane %v502_v13, 4  ;;  %v505_v17 = vrot.slane %v498_v14, 4  ;;  %1954 = vmatpush3.bf16.msra.mxu1 %v2028_v15  ;;  %v2037_v15 = vld [vmem:[%s2941_s1] ss:$8 sps:$4 sm:$0xff]  }
  0xda   : > { %v512_v18 = vsel %vm268_vm0, %v507_v16, %v508_v2  ;;  %v509_v19 = vsel %vm268_vm0, %v505_v17, %v506_v3  ;;  %v2040_v17 = vld [vmem:[%s2941_s1 + $0x14] ss:$8 sps:$4 sm:$0xff]  }
  0xdb   : > { %v513_v20 = vsel %vm407_vm3, %v502_v13, %v512_v18  ;;  %v510_v4 = vsel %vm407_vm3, %v498_v14, %v509_v19  ;;  %v470_v5 = vpop.permute.xlu1 %469  ;;  %v466_v21 = vpop.permute.xlu0 %465  ;;  %v2036_v14 = vld [vmem:[#allocation2 + $0x8] ss:$12 sps:$4 sm:$0xff]   ;;  %v2042_v18 = vld [vmem:[%s2941_s1 + $0x10] ss:$8 sps:$4 sm:$0xff]   ;;  %v2043_v19 = vld [vmem:[%s2941_s1 + $0x24] ss:$8 sps:$4 sm:$0xff]  }
  0xdc   : > { %v474_v22 = vrot.slane %v470_v5, 4  ;;  %v472_v23 = vrot.slane %v466_v21, 4  ;;  %v1915_v24 = vcombine.high %v510_v4, %v513_v20  ;;  %v1914_v25 = vcombine.low %v510_v4, %v513_v20  ;;  %v2045_v20 = vld [vmem:[%s2941_s1 + $0x20] ss:$8 sps:$4 sm:$0xff]   ;;  %v2046_v4 = vld [vmem:[%s2941_s1 + $0x34] ss:$8 sps:$4 sm:$0xff]  }
  0xde   : > { %v480_v27 = vsel %vm407_vm3, %v470_v5, %v474_v22  ;;  %v477_v28 = vsel %vm407_vm3, %v466_v21, %v472_v23  ;;  %v2029_v6 = vld [vmem:[#allocation2 + $0x110] ss:$12 sps:$4 sm:$0xff]   ;;  %1052 = vmatprep.subr.bf16.mxu0 %v1915_v24 }
  0xdf   : > { %488 = vst [vmem:[#allocation2 + $0x104] sm:$0xf] %v480_v27  ;;  %486 = vst [vmem:[#allocation2 + $0xf8] sm:$0xf] %v477_v28  ;;  %v468_v7 = vpop.permute.xlu1 %467  ;;  %v464_v29 = vpop.permute.xlu0 %463  ;;  %1053 = vmatpush2.bf16.msra.mxu0 %v1914_v25  ;;  %1955 = vmatprep.subr.bf16.mxu1 %v2029_v6  ;;  %v2048_v5 = vld [vmem:[%s2941_s1 + $0x30] ss:$8 sps:$4 sm:$0xff]  }
  0xe0   : > { %v473_v30 = vrot.slane %v468_v7, 4  ;;  %v471_v31 = vrot.slane %v464_v29, 4  ;;  %1956 = vmatpush3.bf16.msra.mxu1 %v2030_v26 }
  0xe2   : > { %v478_v32 = vsel %vm268_vm0, %v473_v30, %v474_v22  ;;  %v475_v33 = vsel %vm268_vm0, %v471_v31, %v472_v23 }
  0xe3   : > { %v479_v34 = vsel %vm407_vm3, %v468_v7, %v478_v32  ;;  %v476_v35 = vsel %vm407_vm3, %v464_v29, %v475_v33  ;;  %v436_v36 = vpop.permute.xlu1 %435  ;;  %v432_v37 = vpop.permute.xlu0 %431 }
  0xe4   : > { %v440_v38 = vrot.slane %v436_v36, 4  ;;  %v438_v8 = vrot.slane %v432_v37, 4  ;;  %v1912_v9 = vcombine.high %v476_v35, %v479_v34  ;;  %v1911_v39 = vcombine.low %v476_v35, %v479_v34 }
  0xe6   : > { %v446_v41 = vsel %vm407_vm3, %v436_v36, %v440_v38  ;;  %v443_v42 = vsel %vm407_vm3, %v432_v37, %v438_v8  ;;  %v2031_v43 = vld [vmem:[#allocation2 + $0xf8] ss:$12 sps:$4 sm:$0xff]   ;;  %1054 = vmatprep.subr.bf16.mxu0 %v1912_v9 }
  0xe7   : > { %454 = vst [vmem:[#allocation2 + $0xec] sm:$0xf] %v446_v41  ;;  %452 = vst [vmem:[#allocation2 + $0xe0] sm:$0xf] %v443_v42  ;;  %v434_v44 = vpop.permute.xlu1 %433  ;;  %v430_v45 = vpop.permute.xlu0 %429  ;;  %1055 = vmatpush2.bf16.msra.mxu0 %v1911_v39  ;;  %1957 = vmatprep.subr.bf16.mxu1 %v2031_v43 }
  0xe8   : > { %v439_v46 = vrot.slane %v434_v44, 4  ;;  %v437_v47 = vrot.slane %v430_v45, 4  ;;  %1958 = vmatpush3.bf16.msra.mxu1 %v2032_v40 }
  0xea   : > { %v444_v48 = vsel %vm268_vm0, %v439_v46, %v440_v38  ;;  %v441_v49 = vsel %vm268_vm0, %v437_v47, %v438_v8 }
  0xeb   : > { %v445_v50 = vsel %vm407_vm3, %v434_v44, %v444_v48  ;;  %v442_v51 = vsel %vm407_vm3, %v430_v45, %v441_v49  ;;  %v401_v52 = vpop.permute.xlu1 %400  ;;  %v397_v53 = vpop.permute.xlu0 %396  ;;  %v2502_v49 = vstv %s1335_s30 }
  0xec   : > { %v405_v54 = vrot.slane %v401_v52, 4  ;;  %v403_v55 = vrot.slane %v397_v53, 4  ;;  %v1909_v56 = vcombine.high %v442_v51, %v445_v50  ;;  %v1908_v57 = vcombine.low %v442_v51, %v445_v50 }
  0xee   : > { %v412_v59 = vsel %vm407_vm3, %v401_v52, %v405_v54  ;;  %v409_v60 = vsel %vm407_vm3, %v397_v53, %v403_v55  ;;  %v2033_v61 = vld [vmem:[#allocation2 + $0xe0] ss:$12 sps:$4 sm:$0xff]   ;;  %1056 = vmatprep.subr.bf16.mxu0 %v1909_v56  ;;  %v2506_v52 = vstv %s1937_s5 }
  0xef   : > { %420 = vst [vmem:[#allocation2 + $0xd4] sm:$0xf] %v412_v59  ;;  %418 = vst [vmem:[#allocation2 + $0xc8] sm:$0xf] %v409_v60  ;;  %v399_v62 = vpop.permute.xlu1 %398  ;;  %v395_v63 = vpop.permute.xlu0 %394  ;;  %1057 = vmatpush2.bf16.msra.mxu0 %v1908_v57  ;;  %1959 = vmatprep.subr.bf16.mxu1 %v2033_v61 }
  0xf0   : > { %v404_v2 = vrot.slane %v399_v62, 4  ;;  %v402_v3 = vrot.slane %v395_v63, 4  ;;  %1960 = vmatpush3.bf16.msra.mxu1 %v2034_v58 }
  0xf2   : > { %v410_v10 = vsel %vm268_vm0, %v404_v2, %v405_v54  ;;  %v406_v11 = vsel %vm268_vm0, %v402_v3, %v403_v55 }
  0xf3   : > { %v411_v12 = vsel %vm407_vm3, %v399_v62, %v410_v10  ;;  %v408_v0 = vsel %vm407_vm3, %v395_v63, %v406_v11 }
  0xf4   : > { %v1906_v1 = vcombine.high %v408_v0, %v411_v12  ;;  %v1905_v13 = vcombine.low %v408_v0, %v411_v12 }
  0xf6   : > { %v2035_v16 = vld [vmem:[#allocation2 + $0xc8] ss:$12 sps:$4 sm:$0xff]   ;;  %1058 = vmatprep.subr.bf16.mxu0 %v1906_v1 }
  0xf7   : > { %1059 = vmatpush2.bf16.msra.mxu0 %v1905_v13  ;;  %1961 = vmatprep.subr.bf16.mxu1 %v2035_v16 }
  0xf8   : > { %1962 = vmatpush3.bf16.msra.mxu1 %v2036_v14 }
  0xfa   : > { %1061 = vmatmul.mubr.bf16.vlgmr.msra.gmra.mxu0 %v2037_v15 }
  0xfb   : > { %1070 = vmatprep.mubr.bf16.mxu0 %v2040_v17  ;;  %1134 = vmatmul.mubr.bf16.vlgmr.msra.gmra.mxu1 %v2037_v15 }
  0xfc   : > { %1141 = vmatprep.mubr.bf16.mxu1 %v2040_v17  ;;  %v1182_v21 = vpop.permute.xlu1 %1181  ;;  %v1177_v22 = vpop.permute.xlu0 %1176 }
 0x100   : > { %v1187_v23 = vpop.permute.xlu1 %1186  ;;  %v2496_v24 = vpop.permute.xlu0 %1191 }
 0x102   : > { %1071 = vmatmul.mubr.bf16.gmra.mxu0 %v2042_v18 }
 0x103   : > { %1080 = vmatprep.mubr.bf16.mxu0 %v2043_v19  ;;  %1142 = vmatmul.mubr.bf16.gmra.mxu1 %v2042_v18 }
 0x104   : > { %1149 = vmatprep.mubr.bf16.mxu1 %v2043_v19  ;;  %v2498_v25 = vpop.permute.xlu1 %1196  ;;  %v2500_v6 = vpop.permute.xlu0 %1201 }
 0x108   : > { %v1250_v7 = vpop.permute.xlu1 %1249  ;;  %v1255_v41 = vpop.permute.xlu0 %1254 }
 0x10a   : > { %1081 = vmatmul.mubr.bf16.gmra.mxu0 %v2045_v20 }
 0x10b   : > { %1090 = vmatprep.mubr.bf16.mxu0 %v2046_v4  ;;  %1150 = vmatmul.mubr.bf16.gmra.mxu1 %v2045_v20 }
 0x10c   : > { %1157 = vmatprep.mubr.bf16.mxu1 %v2046_v4  ;;  %v1260_v42 = vpop.permute.xlu1 %1259 }
 0x110   : > { %v2514_v3 = vpop.permute.xlu1 %1206 }
 0x112   : > { %1091 = vmatmul.mubr.bf16.gmra.mxu0 %v2048_v5 }
 0x113   : > { %1158 = vmatmul.mubr.bf16.gmra.mxu1 %v2048_v5  ;;  %v1265_v5 = vpop.permute.xlu0 %1264 }
 0x1ba   : > { %v1062_v26 = vpop.f32.mrf.mxu0 }
 0x1bb   : > { %v1963_v27 = vpop.f32.mrf.mxu1  ;;  %v1214_v29 = vmul.f32 %v1177_v22, %v1062_v26 }
 0x1bc   : > { %v1064_v28 = vpop.f32.mrf.mxu0 }
 0x1bd   : > { %v1964_v30 = vpop.f32.mrf.mxu1  ;;  %v1215_v31 = vmul.f32 %v1177_v22, %v1064_v28  ;;  %v1287_v38 = vadd.f32 %v1250_v7, %v1214_v29 }
 0x1be   : > { %v1066_v32 = vpop.f32.mrf.mxu0  ;;  %v1965_v33 = vadd.f32 %v1964_v30, %v1963_v27 }
 0x1bf   : > { %v1966_v34 = vpop.f32.mrf.mxu1  ;;  %v1217_v35 = vmul.f32 %v1182_v21, %v1066_v32  ;;  %v1288_v9 = vadd.f32 %v1250_v7, %v1215_v31  ;;  %v2504_v50 = vmax.f32 %v1287_v38, 0.0 }
 0x1c0   : > { %v1068_v36 = vpop.f32.mrf.mxu0  ;;  %v1216_v37 = vmul.f32 %v1965_v33, %v1177_v22 }
 0x1c1   : > { %v1967_v8 = vpop.f32.mrf.mxu1  ;;  %v1218_v39 = vmul.f32 %v1182_v21, %v1068_v36  ;;  %v1290_v46 = vadd.f32 %v1255_v41, %v1217_v35  ;;  %v2508_v54 = vmax.f32 %v1288_v9, 0.0  ;;  %v2518_v10 = vmul.f32 %v2502_v49, %v2504_v50  ;;  %v1270_v9 = vpop.permute.xlu1 %1269 }
 0x1c2   : > { %v1072_v40 = vpop.f32.mrf.mxu0  ;;  %v1968_v43 = vadd.f32 %v1967_v8, %v1966_v34  ;;  %v1289_v44 = vadd.f32 %v1250_v7, %v1216_v37  ;;  %v2522_v11 = vmul.f32 %v2506_v52, %v2504_v50 }
 0x1c3   : > { %v1969_v45 = vpop.f32.mrf.mxu1  ;;  %v1220_v47 = vmul.f32 %v1187_v23, %v1072_v40  ;;  %2979 = vst [vmem:[#allocation6_spill] sm:$0xff] %v2508_v54  ;;  %v1291_v56 = vadd.f32 %v1255_v41, %v1218_v39  ;;  %v2512_v61 = vmax.f32 %v1290_v46, 0.0  ;;  %v2527_v13 = vmul.f32 %v2502_v49, %v2508_v54 }
 0x1c4   : > { %v1074_v48 = vpop.f32.mrf.mxu0  ;;  %v1219_v53 = vmul.f32 %v1968_v43, %v1182_v21  ;;  %v2510_v60 = vmax.f32 %v1289_v44, 0.0  ;;  %v2542_v22 = vmul.f32 %v2506_v52, %v2508_v54 }
 0x1c5   : > { %v1221_v51 = vmul.f32 %v1187_v23, %v1074_v48  ;;  %v1970_v55 = vpop.f32.mrf.mxu1  ;;  %v1293_v59 = vadd.f32 %v1260_v42, %v1220_v47  ;;  %2980 = vst [vmem:[#allocation7_spill] sm:$0xff] %v2512_v61  ;;  %v2529_v14 = vmax.f32 %v1291_v56, 0.0  ;;  %v2550_v26 = vmul.f32 %v2506_v52, %v2512_v61 }
 0x1c6   : > { %v1076_v57 = vpop.f32.mrf.mxu0  ;;  %v1971_v58 = vadd.f32 %v1970_v55, %v1969_v45  ;;  %v1292_v1 = vadd.f32 %v1255_v41, %v1219_v53  ;;  %v2538_v21 = vmul.f32 %v2502_v49, %v2510_v60  ;;  %v2554_v28 = vmul.f32 %v2506_v52, %v2510_v60 }
 0x1c7   : > { %v1972_v62 = vpop.f32.mrf.mxu1  ;;  %v1294_v63 = vadd.f32 %v1260_v42, %v1221_v51  ;;  %v1223_v0 = vmul.f32 %v2496_v24, %v1076_v57  ;;  %2981 = vst [vmem:[#allocation8_spill] sm:$0xff] %v2529_v14  ;;  %v2532_v19 = vmax.f32 %v1293_v59, 0.0  ;;  %v2563_v33 = vmul.f32 %v2502_v49, %v2529_v14  ;;  %v2597_v51 = vpop.permute.xlu0 %1211 }
 0x1c8   : > { %v1078_v2 = vpop.f32.mrf.mxu0  ;;  %v1222_v12 = vmul.f32 %v1971_v58, %v1187_v23  ;;  %v2546_v23 = vmul.f32 %v2502_v49, %v2512_v61  ;;  %v2559_v32 = vmax.f32 %v1292_v1, 0.0  ;;  %v2595_v46 = vmul.f32 %v2506_v52, %v2529_v14  ;;  %v1280_v14 = vpop.permute.xlu1 %1279 }
 0x1c9   : > { %v1973_v15 = vpop.f32.mrf.mxu1  ;;  %v1224_v16 = vmul.f32 %v2496_v24, %v1078_v2  ;;  %v2534_v4 = vmax.f32 %v1294_v63, 0.0  ;;  %v1296_v30 = vadd.f32 %v1265_v5, %v1223_v0  ;;  %2984 = vst [vmem:[#allocation11_spill] sm:$0xff] %v2563_v33  ;;  %v2568_v37 = vmul.f32 %v2502_v49, %v2532_v19 }
 0x1ca   : > { %v1082_v17 = vpop.f32.mrf.mxu0  ;;  %v1295_v18 = vadd.f32 %v1260_v42, %v1222_v12  ;;  %v1974_v20 = vadd.f32 %v1973_v15, %v1972_v62  ;;  %2983 = vst [vmem:[#allocation10_spill] sm:$0xff] %v2546_v23  ;;  %v2572_v38 = vmul.f32 %v2506_v52, %v2532_v19  ;;  %2986 = vst [vmem:[#allocation13_spill] sm:$0xff] %v2595_v46 }
 0x1cb   : > { %2982 = vst [vmem:[#allocation9_spill] sm:$0xff] %v2534_v4  ;;  %v1975_v27 = vpop.f32.mrf.mxu1  ;;  %v1297_v35 = vadd.f32 %v1265_v5, %v1224_v16  ;;  %v1226_v36 = vmul.f32 %v2498_v25, %v1082_v17  ;;  %v2576_v8 = vmul.f32 %v2502_v49, %v2534_v4  ;;  %v2580_v39 = vmul.f32 %v2506_v52, %v2534_v4 }
 0x1cc   : > { %v2556_v7 = vmax.f32 %v1295_v18, 0.0  ;;  %v1225_v29 = vmul.f32 %v1974_v20, %v2496_v24  ;;  %v1084_v31 = vpop.f32.mrf.mxu0  ;;  %v2582_v40 = vmax.f32 %v1296_v30, 0.0  ;;  %v2601_v53 = vmul.f32 %v2502_v49, %v2559_v32 }
 0x1cd   : > { %v1976_v34 = vpop.f32.mrf.mxu1  ;;  %v1227_v43 = vmul.f32 %v2498_v25, %v1084_v31  ;;  %v1299_v47 = vadd.f32 %v1270_v9, %v1226_v36  ;;  %v2605_v55 = vmul.f32 %v2506_v52, %v2559_v32  ;;  %v2608_v57 = vmax.f32 %v1297_v35, 0.0 }
 0x1ce   : > { %v1298_v24 = vadd.f32 %v1265_v5, %v1225_v29  ;;  %2985 = vst [vmem:[#allocation12_spill] sm:$0xff] %v2582_v40  ;;  %v1977_v41 = vadd.f32 %v1976_v34, %v1975_v27  ;;  %v2587_v44 = vmul.f32 %v2502_v49, %v2556_v7  ;;  %v2591_v45 = vmul.f32 %v2506_v52, %v2556_v7  ;;  %v1086_v48 = vpop.f32.mrf.mxu0 }
 0x1cf   : > { %v1978_v42 = vpop.f32.mrf.mxu1  ;;  %2987 = vst [vmem:[#allocation14_spill] sm:$0xff] %v2608_v57  ;;  %v1349_v59 = vmax.f32 %v2518_v10, %v2568_v37  ;;  %v1555_v62 = vmax.f32 %v2522_v11, %v2572_v38  ;;  %v1350_v2 = vmax.f32 %v2527_v13, %v2576_v8  ;;  %v1556_v12 = vmax.f32 %v2542_v22, %v2580_v39 }
 0x1d0   : > { %v1228_v56 = vmul.f32 %v1977_v41, %v2498_v25  ;;  %v2614_v63 = vmax.f32 %v1298_v24, 0.0  ;;  %v2622_v25 = vmul.f32 %v2502_v49, %v2582_v40  ;;  %v1300_v1 = vadd.f32 %v1270_v9, %v1227_v43  ;;  %v1088_v5 = vpop.f32.mrf.mxu0  ;;  %v1275_v41 = vpop.permute.xlu0 %1274 }
 0x1d1   : > { %v1979_v58 = vpop.f32.mrf.mxu1  ;;  %v1351_v16 = vmax.f32 %v2538_v21, %v2587_v44  ;;  %v1557_v17 = vmax.f32 %v2554_v28, %v2591_v45  ;;  %v2630_v18 = vmul.f32 %v2506_v52, %v2582_v40  ;;  %v2632_v20 = vmax.f32 %v1299_v47, 0.0 }
 0x1d2   : > { %2988 = vst [vmem:[#allocation15_spill] sm:$0xff] %v2614_v63  ;;  %2989 = vst [vmem:[#allocation16_spill] sm:$0xff] %v2622_v25  ;;  %v1301_v0 = vadd.f32 %v1270_v9, %v1228_v56  ;;  %v2636_v27 = vmul.f32 %v2502_v49, %v2608_v57  ;;  %v2640_v29 = vmul.f32 %v2506_v52, %v2608_v57  ;;  %v2656_v47 = vmax.f32 %v1300_v1, 0.0  ;;  %v1092_v57 = vpop.f32.mrf.mxu0 }
 0x1d3   : > { %v1981_v15 = vpop.f32.mrf.mxu1  ;;  %v1980_v30 = vadd.f32 %v1979_v58, %v1978_v42  ;;  %v1229_v31 = vmul.f32 %v2500_v6, %v1086_v48  ;;  %v2645_v35 = vmul.f32 %v2502_v49, %v2614_v63  ;;  %v2649_v36 = vmul.f32 %v2506_v52, %v2614_v63 }
 0x1d4   : > { %2990 = vst [vmem:[#allocation17_spill] sm:$0xff] %v2636_v27  ;;  %2991 = vst [vmem:[#allocation18_spill] sm:$0xff] %v2640_v29  ;;  %v2651_v24 = vmax.f32 %v1301_v0, 0.0  ;;  %v1352_v43 = vmax.f32 %v2546_v23, %v2622_v25  ;;  %v1230_v48 = vmul.f32 %v2500_v6, %v1088_v5  ;;  %v2663_v58 = vmul.f32 %v2502_v49, %v2632_v20 }
 0x1d5   : > { %v1982_v34 = vpop.f32.mrf.mxu1  ;;  %v1231_v42 = vmul.f32 %v1980_v30, %v2500_v6  ;;  %2992 = vst [vmem:[#allocation19_spill] sm:$0xff] %v2656_v47  ;;  %v1302_v0 = vadd.f32 %v1275_v41, %v1229_v31  ;;  %v2672_v6 = vmul.f32 %v2506_v52, %v2632_v20  ;;  %v2682_v30 = vmul.f32 %v2502_v49, %v2656_v47 }
 0x1d6   : > { %v1983_v9 = vadd.f32 %v1982_v34, %v1981_v15  ;;  %v1357_v56 = vmul.f32 %v2502_v49, %v2651_v24  ;;  %v1563_v31 = vmul.f32 %v2506_v52, %v2651_v24  ;;  %v2686_v1 = vmul.f32 %v2506_v52, %v2656_v47 }
 0x1d7   : > { %v1984_v34 = vpop.f32.mrf.mxu1  ;;  %v1304_v5 = vadd.f32 %v1275_v41, %v1231_v42  ;;  %v1303_v61 = vadd.f32 %v1275_v41, %v1230_v48  ;;  %v1232_v42 = vmul.f32 %v2514_v3, %v1092_v57  ;;  %v1354_v29 = vmax.f32 %v2601_v53, %v2645_v35  ;;  %v1094_v48 = vpop.f32.mrf.mxu0 }
 0x1d8   : > { %v1234_v15 = vmul.f32 %v1983_v9, %v2514_v3  ;;  %v2678_v9 = vmax.f32 %v1302_v0, 0.0  ;;  %2994 = vst [vmem:[#allocation21_spill] sm:$0xff] %v2686_v1  ;;  %v1361_v0 = vmax.f32 %v1349_v59, %v2663_v58  ;;  %v1567_v33 = vmax.f32 %v1555_v62, %v2672_v6 }
 0x1d9   : > { %v1985_v27 = vpop.f32.mrf.mxu1  ;;  %v2697_v4 = vmax.f32 %v1304_v5, 0.0  ;;  %v1305_v57 = vadd.f32 %v1280_v14, %v1232_v42  ;;  %v1363_v47 = vmax.f32 %v1351_v16, %v1357_v56  ;;  %v1569_v54 = vmax.f32 %v1557_v17, %v1563_v31 }
 0x1da   : > { %2993 = vst [vmem:[#allocation20_spill] sm:$0xff] %v2678_v9  ;;  %v1307_v40 = vadd.f32 %v1280_v14, %v1234_v15  ;;  %v2701_v41 = vmul.f32 %v2502_v49, %v2678_v9  ;;  %v2708_v59 = vmax.f32 %v1350_v2, %v2682_v30  ;;  %v2711_v62 = vmax.f32 %v1556_v12, %v2686_v1 }
 0x1db   : > { %2995 = vst [vmem:[#allocation22_spill] sm:$0xff] %v2697_v4  ;;  %v2713_v5 = vmax.f32 %v1303_v61, 0.0  ;;  %v1986_v25 = vadd.f32 %v1985_v27, %v1984_v34  ;;  %v2715_v63 = vmax.f32 %v1305_v57, 0.0  ;;  %v1233_v16 = vmul.f32 %v2514_v3, %v1094_v48 }
 0x1dc   : > { %v2694_v15 = vmax.f32 %v1307_v40, 0.0  ;;  %2996 = vst [vmem:[#allocation23_spill] sm:$0xff] %v2701_v41  ;;  %v2720_v17 = vmul.f32 %v2502_v49, %v2697_v4  ;;  %v2724_v2 = vmul.f32 %v2506_v52, %v2697_v4  ;;  %v2727_v12 = vmax.f32 %v1352_v43, %v2701_v41 }
 0x1dd   : > { %2997 = vst [vmem:[#allocation24_spill] sm:$0xff] %v2713_v5  ;;  %v2731_v61 = vmul.f32 %v2506_v52, %v2678_v9  ;;  %v1237_v5 = vmul.f32 %v1986_v25, %v2597_v51  ;;  %v1367_v9 = vmul.f32 %v2502_v49, %v2715_v63 }
 0x1de   : > { %v1369_v46 = vmul.f32 %v2502_v49, %v2694_v15  ;;  %v1575_v40 = vmul.f32 %v2506_v52, %v2694_v15  ;;  %2998 = vst [vmem:[#allocation25_spill] sm:$0xff] %v2727_v12 }
 0x1e0   : > { %v1375_v23 = vmax.f32 %v1363_v47, %v1369_v46  ;;  %v1581_v42 = vmax.f32 %v1569_v54, %v1575_v40 }
 0x1e2   : > { %v1381_v54 = vsub.f32 %v2538_v21, %v1375_v23  ;;  %v1417_v27 = vsub.f32 %v2587_v44, %v1375_v23  ;;  %v1453_v3 = vsub.f32 %v1357_v56, %v1375_v23  ;;  %v1489_v47 = vsub.f32 %v1369_v46, %v1375_v23  ;;  %v2742_v23 = vpop.permute.xlu0 %1284 }
 0x1e3   : > { %v1587_v34 = vsub.f32 %v2554_v28, %v1581_v42  ;;  %v1623_v57 = vsub.f32 %v2591_v45, %v1581_v42  ;;  %v1659_v48 = vsub.f32 %v1563_v31, %v1581_v42  ;;  %v1695_v1 = vsub.f32 %v1575_v40, %v1581_v42 }
 0x1e4   : > { %v1389_v4 = vmul.f32 1.442695, %v1381_v54  ;;  %v1425_v43 = vmul.f32 1.442695, %v1417_v27  ;;  %v1461_v41 = vmul.f32 1.442695, %v1453_v3  ;;  %v1573_v21 = vmul.f32 %v2506_v52, %v2715_v63  ;;  %v1096_v27 = vpop.f32.mrf.mxu0 }
 0x1e5   : > { %v1497_v12 = vmul.f32 1.442695, %v1489_v47  ;;  %v1306_v44 = vadd.f32 %v1280_v14, %v1233_v16  ;;  %v1595_v28 = vmul.f32 1.442695, %v1587_v34  ;;  %v1631_v45 = vmul.f32 1.442695, %v1623_v57 }
 0x1e6   : > { %2049 = vpow2.f32 %v1389_v4  ;;  %v1373_v46 = vmax.f32 %v1361_v0, %v1367_v9  ;;  %v1667_v25 = vmul.f32 1.442695, %v1659_v48  ;;  %v1579_v56 = vmax.f32 %v1567_v33, %v1573_v21 }
 0x1e7   : > { %2051 = vpow2.f32 %v1425_v43  ;;  %v1310_v31 = vadd.f32 %v2742_v23, %v1237_v5  ;;  %v2999_v14 = vmax.f32 %v2550_v26, %v2630_v18  ;;  %v1703_v0 = vmul.f32 1.442695, %v1695_v1  ;;  %v1098_v1 = vpop.f32.mrf.mxu0 }
 0x1e8   : > { %2053 = vpow2.f32 %v1461_v41  ;;  %v1379_v54 = vsub.f32 %v2518_v10, %v1373_v46  ;;  %v1415_v40 = vsub.f32 %v2568_v37, %v1373_v46  ;;  %v1451_v42 = vsub.f32 %v2663_v58, %v1373_v46 }
 0x1e9   : > { %v2752_v4 = vmax.f32 %v2999_v14, %v2731_v61  ;;  %2055 = vpow2.f32 %v1497_v12  ;;  %v1487_v16 = vsub.f32 %v1367_v9, %v1373_v46  ;;  %v1366_v33 = vmax.f32 %v1354_v29, %v2720_v17 }
 0x1ea   : > { %2057 = vpow2.f32 %v1595_v28  ;;  %v1385_v41 = vmul.f32 1.442695, %v1379_v54  ;;  %v1585_v10 = vsub.f32 %v2522_v11, %v1579_v56  ;;  %v1421_v37 = vmul.f32 1.442695, %v1415_v40 }
 0x1eb   : > { %2059 = vpow2.f32 %v1631_v45  ;;  %v1621_v58 = vsub.f32 %v2572_v38, %v1579_v56  ;;  %v2757_v5 = vmax.f32 %v1306_v44, 0.0  ;;  %v1457_v3 = vmul.f32 1.442695, %v1451_v42 }
 0x1ec   : > { %2061 = vpow2.f32 %v1667_v25  ;;  %v1657_v47 = vsub.f32 %v2672_v6, %v1579_v56  ;;  %v2760_v34 = vmax.f32 %v1310_v31, 0.0  ;;  %v3000_v29 = vmax.f32 %v2605_v55, %v2649_v36 }
 0x1ed   : > { %2063 = vpow2.f32 %v1703_v0  ;;  %v1493_v11 = vmul.f32 1.442695, %v1487_v16  ;;  %v1693_v12 = vsub.f32 %v1573_v21, %v1579_v56  ;;  %v1591_v57 = vmul.f32 1.442695, %v1585_v10 }
 0x1ee   : > { %v1572_v9 = vmax.f32 %v3000_v29, %v2724_v2  ;;  %2065 = vpow2.f32 %v1385_v41  ;;  %v1372_v38 = vmul.f32 %v2502_v49, %v2760_v34  ;;  %v1235_v48 = vmul.f32 %v2597_v51, %v1096_v27 }
 0x1ef   : > { %2067 = vpow2.f32 %v1421_v37  ;;  %v1627_v6 = vmul.f32 1.442695, %v1621_v58  ;;  %v2771_v43 = vmul.f32 %v2506_v52, %v2760_v34  ;;  %v1236_v44 = vmul.f32 %v2597_v51, %v1098_v1 }
 0x1f0   : > { %2069 = vpow2.f32 %v1457_v3  ;;  %v1663_v28 = vmul.f32 1.442695, %v1657_v47  ;;  %v1378_v45 = vmax.f32 %v1366_v33, %v1372_v38  ;;  %v2776_v21 = vmul.f32 %v2502_v49, %v2757_v5 }
 0x1f1   : > { %2071 = vpow2.f32 %v1493_v11  ;;  %v1699_v46 = vmul.f32 1.442695, %v1693_v12  ;;  %v2779_v25 = vmax.f32 %v1572_v9, %v2771_v43  ;;  %v2783_v56 = vmul.f32 %v2506_v52, %v2757_v5 }
 0x1f2   : > { %2073 = vpow2.f32 %v1591_v57  ;;  %v1384_v31 = vsub.f32 %v2601_v53, %v1378_v45  ;;  %v1420_v51 = vsub.f32 %v2645_v35, %v1378_v45  ;;  %v1456_v54 = vsub.f32 %v2720_v17, %v1378_v45 }
 0x1f3   : > { %v2050_v40 = vpop.eup %2049  ;;  %2075 = vpow2.f32 %v1627_v6  ;;  %v1492_v42 = vsub.f32 %v1372_v38, %v1378_v45  ;;  %v1590_v27 = vsub.f32 %v2605_v55, %v2779_v25  ;;  %v1308_v14 = vadd.f32 %v2742_v23, %v1235_v48 }
 0x1f4   : > { %v2052_v0 = vpop.eup %2051  ;;  %v1399_v16 = vmul.f32 %v2050_v40, %v2510_v60  ;;  %2077 = vpow2.f32 %v1663_v28  ;;  %v1395_v33 = vmul.f32 1.442695, %v1384_v31  ;;  %v1431_v41 = vmul.f32 1.442695, %v1420_v51 }
 0x1f5   : > { %v2054_v10 = vpop.eup %2053  ;;  %v1435_v53 = vmul.f32 %v2052_v0, %v2556_v7  ;;  %v1447_v35 = vadd.f32 %v2052_v0, %v2050_v40  ;;  %2079 = vpow2.f32 %v1699_v46  ;;  %v1467_v17 = vmul.f32 1.442695, %v1456_v54 }
 0x1f6   : > { %v2056_v37 = vpop.eup %2055  ;;  %2081 = vpow2.f32 %v1395_v33  ;;  %v1503_v58 = vmul.f32 1.442695, %v1492_v42  ;;  %v1626_v55 = vsub.f32 %v2649_v36, %v2779_v25  ;;  %v2797_v3 = vmax.f32 %v2708_v59, %v2776_v21 }
 0x1f7   : > { %v2058_v47 = vpop.eup %2057  ;;  %v1483_v1 = vadd.f32 %v2054_v10, %v1447_v35  ;;  %2083 = vpow2.f32 %v1431_v41  ;;  %v2801_v29 = vmax.f32 %v2711_v62, %v2783_v56  ;;  %v2803_v9 = vmax.f32 %v1308_v14, 0.0 }
 0x1f8   : > { %v2060_v11 = vpop.eup %2059  ;;  %v1441_v12 = vadd.f32 %v1435_v53, %v1399_v16  ;;  %v1601_v57 = vmul.f32 1.442695, %v1590_v27  ;;  %v1662_v38 = vsub.f32 %v2724_v2, %v2779_v25  ;;  %v2808_v36 = vadd.f32 %v2742_v23, %v1236_v44 }
 0x1f9   : > { %v2062_v59 = vpop.eup %2061  ;;  %v1519_v48 = vadd.f32 %v2056_v37, %v1483_v1  ;;  %v1605_v6 = vmul.f32 %v2058_v47, %v2510_v60  ;;  %v1653_v28 = vadd.f32 %v2060_v11, %v2058_v47  ;;  %2085 = vpow2.f32 %v1467_v17 }
 0x1fa   : > { %v2064_v45 = vpop.eup %2063  ;;  %v1641_v62 = vmul.f32 %v2060_v11, %v2556_v7  ;;  %2087 = vpow2.f32 %v1503_v58  ;;  %v1637_v46 = vmul.f32 1.442695, %v1626_v55  ;;  %v1698_v31 = vsub.f32 %v2771_v43, %v2779_v25 }
 0x1fb   : > { %v2066_v51 = vpop.eup %2065  ;;  %2089 = vrcp.f32 %v1519_v48  ;;  %v1689_v2 = vadd.f32 %v2062_v59, %v1653_v28  ;;  %v1380_v23 = vsub.f32 %v2527_v13, %v2797_v3  ;;  %v1416_v44 = vsub.f32 %v2576_v8, %v2797_v3 }
 0x1fc   : > { %v2068_v60 = vpop.eup %2067  ;;  %v1471_v54 = vmul.f32 %v2054_v10, %v2651_v24  ;;  %v1397_v40 = vmul.f32 %v2066_v51, %v2504_v50  ;;  %2091 = vpow2.f32 %v1601_v57  ;;  %v1673_v7 = vmul.f32 1.442695, %v1662_v38 }
 0x1fd   : > { %v2070_v42 = vpop.eup %2069  ;;  %v1507_v27 = vmul.f32 %v2056_v37, %v2694_v15  ;;  %v1725_v43 = vadd.f32 %v2064_v45, %v1689_v2  ;;  %v1433_v25 = vmul.f32 %v2068_v60, %v2532_v19  ;;  %v1445_v14 = vadd.f32 %v2068_v60, %v2066_v51 }
 0x1fe   : > { %v2072_v0 = vpop.eup %2071  ;;  %v1477_v16 = vadd.f32 %v1471_v54, %v1441_v12  ;;  %v1647_v13 = vadd.f32 %v1641_v62, %v1605_v6  ;;  %2093 = vpow2.f32 %v1637_v46  ;;  %v1709_v33 = vmul.f32 1.442695, %v1698_v31 }
 0x1ff   : > { %v2074_v8 = vpop.eup %2073  ;;  %v1677_v41 = vmul.f32 %v2062_v59, %v2651_v24  ;;  %2095 = vrcp.f32 %v1725_v43  ;;  %v1439_v10 = vadd.f32 %v1433_v25, %v1397_v40  ;;  %v1481_v53 = vadd.f32 %v2070_v42, %v1445_v14 }
 0x200   : > { %v2076_v35 = vpop.eup %2075  ;;  %v1469_v17 = vmul.f32 %v2070_v42, %v2632_v20  ;;  %2097 = vpow2.f32 %v1673_v7  ;;  %v1387_v37 = vmul.f32 1.442695, %v1380_v23  ;;  %v1452_v58 = vsub.f32 %v2682_v30, %v2797_v3 }
 0x201   : > { %v2078_v55 = vpop.eup %2077  ;;  %v1517_v47 = vadd.f32 %v2072_v0, %v1481_v53  ;;  %v1603_v1 = vmul.f32 %v2074_v8, %v2504_v50  ;;  %v1639_v11 = vmul.f32 %v2076_v35, %v2532_v19  ;;  %v1651_v12 = vadd.f32 %v2076_v35, %v2074_v8 }
 0x202   : > { %v2080_v57 = vpop.eup %2079  ;;  %v1683_v24 = vadd.f32 %v1677_v41, %v1647_v13  ;;  %2099 = vpow2.f32 %v1709_v33  ;;  %v1423_v38 = vmul.f32 1.442695, %v1416_v44  ;;  %v1488_v59 = vsub.f32 %v2776_v21, %v2797_v3 }
 0x203   : > { %v2082_v48 = vpop.eup %2081  ;;  %v1513_v6 = vadd.f32 %v1507_v27, %v1477_v16  ;;  %v1475_v28 = vadd.f32 %v1469_v17, %v1439_v10  ;;  %2101 = vrcp.f32 %v1517_v47  ;;  %v1687_v30 = vadd.f32 %v2078_v55, %v1651_v12  ;;  %v3003_v17 = vld [vmem:[#allocation22_spill] sm:$0xff] }
 0x204   : > { %v2084_v62 = vpop.eup %2083  ;;  %v1713_v46 = vmul.f32 %v2064_v45, %v2694_v15  ;;  %v1505_v50 = vmul.f32 %v2072_v0, %v2715_v63  ;;  %2103 = vpow2.f32 %v1387_v37  ;;  %v1459_v19 = vmul.f32 1.442695, %v1452_v58 }
 0x205   : > { %v1645_v31 = vadd.f32 %v1639_v11, %v1603_v1  ;;  %v1723_v51 = vadd.f32 %v2080_v57, %v1687_v30  ;;  %v1450_v2 = vadd.f32 %v2084_v62, %v2082_v48  ;;  %v1495_v23 = vmul.f32 1.442695, %v1488_v59  ;;  %v3005_v59 = vld [vmem:[#allocation10_spill] sm:$0xff]  ;;  %v3007_v30 = vld [vmem:[#allocation23_spill] sm:$0xff] }
 0x206   : > { %v2086_v44 = vpop.eup %2085  ;;  %v1719_v21 = vadd.f32 %v1713_v46, %v1683_v24  ;;  %2105 = vpow2.f32 %v1423_v38  ;;  %v1586_v3 = vsub.f32 %v2542_v22, %v2801_v29  ;;  %v1622_v60 = vsub.f32 %v2580_v39, %v2801_v29  ;;  %v3001_v22 = vld [vmem:[#allocation15_spill] sm:$0xff] }
 0x207   : > { %v2088_v54 = vpop.eup %2087  ;;  %v1511_v15 = vadd.f32 %v1505_v50, %v1475_v28  ;;  %v1675_v45 = vmul.f32 %v2078_v55, %v2632_v20  ;;  %2107 = vrcp.f32 %v1723_v51  ;;  %v1486_v40 = vadd.f32 %v2086_v44, %v1450_v2  ;;  %v3002_v20 = vld [vmem:[#allocation21_spill] sm:$0xff] }
 0x208   : > { %v2090_v7 = vpop.eup %2089  ;;  %v1402_v42 = vmul.f32 %v2082_v48, %v2559_v32  ;;  %2109 = vpow2.f32 %v1459_v19  ;;  %v1593_v27 = vmul.f32 1.442695, %v1586_v3  ;;  %v1629_v43 = vmul.f32 1.442695, %v1622_v60 }
 0x209   : > { %v2092_v25 = vpop.eup %2091  ;;  %v1531_v14 = vmul.f32 %v2090_v7, %v1513_v6  ;;  %v1681_v0 = vadd.f32 %v1675_v45, %v1645_v31  ;;  %v1522_v16 = vadd.f32 %v2088_v54, %v1486_v40  ;;  %2111 = vpow2.f32 %v1495_v23  ;;  %v3006_v6 = vld [vmem:[#allocation16_spill] sm:$0xff] }
 0x20a   : > { %v1438_v39 = vmul.f32 %v2084_v62, %v3001_v22  ;;  %2113 = vpow2.f32 %v1593_v27  ;;  %v1658_v13 = vsub.f32 %v3002_v20, %v2801_v29  ;;  %v1694_v33 = vsub.f32 %v2783_v56, %v2801_v29 }
 0x20b   : > { %v2094_v8 = vpop.eup %2093  ;;  %1537 = vst [vmem:[%s2842_s8 + $0x10] sm:$0xff] %v1531_v14  ;;  %v1711_v41 = vmul.f32 %v2080_v57, %v2715_v63  ;;  %2115 = vrcp.f32 %v1522_v16  ;;  %v1370_v10 = vmul.f32 %v2502_v49, %v2803_v9  ;;  %v2855_v53 = vmul.f32 %v2506_v52, %v2803_v9  ;;  %v3004_v63 = vld [vmem:[#allocation25_spill] sm:$0xff] }
 0x20c   : > { %v2096_v35 = vpop.eup %2095  ;;  %v1474_v37 = vmul.f32 %v2086_v44, %v3003_v17  ;;  %v1656_v58 = vadd.f32 %v2094_v8, %v2092_v25  ;;  %2117 = vpow2.f32 %v1629_v43  ;;  %v1665_v55 = vmul.f32 1.442695, %v1658_v13 }
 0x20d   : > { %v2098_v56 = vpop.eup %2097  ;;  %v1737_v29 = vmul.f32 %v2096_v35, %v1719_v21  ;;  %v1717_v47 = vadd.f32 %v1711_v41, %v1681_v0  ;;  %v1701_v1 = vmul.f32 1.442695, %v1694_v33  ;;  %v1376_v11 = vmax.f32 %v3004_v63, %v1370_v10  ;;  %v3012_v63 = vld [vmem:[#allocation17_spill] sm:$0xff] }
 0x20e   : > { %v1444_v12 = vadd.f32 %v1438_v39, %v1402_v42  ;;  %v1608_v57 = vmul.f32 %v2092_v25, %v2559_v32  ;;  %v1692_v24 = vadd.f32 %v2098_v56, %v1656_v58  ;;  %2119 = vpow2.f32 %v1665_v55  ;;  %v3008_v39 = vld [vmem:[#allocation24_spill] sm:$0xff]  ;;  %v3010_v55 = vld [vmem:[#allocation9_spill] sm:$0xff] }
 0x20f   : > { %v2100_v38 = vpop.eup %2099  ;;  %1940 = vst [vmem:[%s2842_s8 + $0x40] sm:$0xff] %v1737_v29  ;;  %v1382_v48 = vsub.f32 %v3005_v59, %v1376_v11  ;;  %v1418_v28 = vsub.f32 %v3006_v6, %v1376_v11  ;;  %v1454_v62 = vsub.f32 %v3007_v30, %v1376_v11  ;;  %v1582_v46 = vmax.f32 %v2752_v4, %v2855_v53  ;;  %v3015_v6 = vld [vmem:[#allocation18_spill] sm:$0xff] }
 0x210   : > { %v2102_v50 = vpop.eup %2101  ;;  %v1644_v19 = vmul.f32 %v2094_v8, %v3001_v22  ;;  %v1728_v31 = vadd.f32 %v2100_v38, %v1692_v24  ;;  %2121 = vpow2.f32 %v1701_v1  ;;  %v1490_v32 = vsub.f32 %v1370_v10, %v1376_v11  ;;  %v3011_v1 = vld [vmem:[#allocation11_spill] sm:$0xff] }
 0x211   : > { %v2104_v51 = vpop.eup %2103  ;;  %v1529_v2 = vmul.f32 %v2102_v50, %v1511_v15  ;;  %v1391_v23 = vmul.f32 1.442695, %v1382_v48  ;;  %v1427_v44 = vmul.f32 1.442695, %v1418_v28  ;;  %v1463_v21 = vmul.f32 1.442695, %v1454_v62 }
 0x212   : > { %v1480_v3 = vadd.f32 %v1474_v37, %v1444_v12  ;;  %v1510_v60 = vmul.f32 %v2088_v54, %v2760_v34  ;;  %2123 = vrcp.f32 %v1728_v31  ;;  %v1499_v45 = vmul.f32 1.442695, %v1490_v32  ;;  %v3014_v48 = vld [vmem:[#allocation13_spill] sm:$0xff]  ;;  %v3017_v32 = vld [vmem:[#allocation19_spill] sm:$0xff] }
 0x213   : > { %v2106_v40 = vpop.eup %2105  ;;  %1535 = vst [vmem:[%s2842_s8] sm:$0xff] %v1529_v2  ;;  %2125 = vpow2.f32 %v1391_v23  ;;  %v1588_v4 = vsub.f32 %v2550_v26, %v1582_v46  ;;  %v1624_v7 = vsub.f32 %v2630_v18, %v1582_v46  ;;  %v1660_v42 = vsub.f32 %v2731_v61, %v1582_v46 }
 0x214   : > { %v2108_v27 = vpop.eup %2107  ;;  %v1650_v43 = vadd.f32 %v1644_v19, %v1608_v57  ;;  %v1446_v15 = vadd.f32 %v2106_v40, %v2104_v51  ;;  %2127 = vpow2.f32 %v1427_v44  ;;  %v1696_v25 = vsub.f32 %v2855_v53, %v1582_v46  ;;  %v3009_v53 = vld [vmem:[#allocation6_spill] sm:$0xff] }
 0x215   : > { %v2110_v14 = vpop.eup %2109  ;;  %v1735_v54 = vmul.f32 %v2108_v27, %v1717_v47  ;;  %2129 = vpow2.f32 %v1463_v21  ;;  %v1597_v0 = vmul.f32 1.442695, %v1588_v4  ;;  %v1633_v16 = vmul.f32 1.442695, %v1624_v7 }
 0x216   : > { %v2112_v22 = vpop.eup %2111  ;;  %v1359_v26 = vmul.f32 %v2502_v49, %v3008_v39  ;;  %v1680_v18 = vmul.f32 %v2098_v56, %v3003_v17  ;;  %v1482_v20 = vadd.f32 %v2110_v14, %v1446_v15  ;;  %2131 = vpow2.f32 %v1499_v45 }
 0x217   : > { %v2114_v61 = vpop.eup %2113  ;;  %v2878_v13 = vmul.f32 %v2506_v52, %v3008_v39  ;;  %1938 = vst [vmem:[%s2842_s8 + $0x30] sm:$0xff] %v1735_v54  ;;  %v1516_v33 = vadd.f32 %v1510_v60, %v1480_v3  ;;  %2133 = vpow2.f32 %v1597_v0  ;;  %v1669_v8 = vmul.f32 1.442695, %v1660_v42 }
 0x218   : > { %v2116_v41 = vpop.eup %2115  ;;  %v1686_v10 = vadd.f32 %v1680_v18, %v1650_v43  ;;  %v1398_v35 = vmul.f32 %v2104_v51, %v3009_v53  ;;  %v1518_v37 = vadd.f32 %v2112_v22, %v1482_v20  ;;  %2135 = vpow2.f32 %v1633_v16 }
 0x219   : > { %v2118_v58 = vpop.eup %2117  ;;  %v1534_v17 = vmul.f32 %v2116_v41, %v1516_v33  ;;  %v1434_v56 = vmul.f32 %v2106_v40, %v3010_v55  ;;  %v1705_v29 = vmul.f32 1.442695, %v1696_v25  ;;  %v2884_v47 = vmax.f32 %v2808_v36, 0.0 }
 0x21a   : > { %v3013_v11 = vmax.f32 %v3011_v1, %v3012_v63  ;;  %v1716_v57 = vmul.f32 %v2100_v38, %v2760_v34  ;;  %2137 = vrcp.f32 %v1518_v37  ;;  %v1652_v24 = vadd.f32 %v2118_v58, %v2114_v61 }
 0x21b   : > { %v2120_v59 = vpop.eup %2119  ;;  %v3016_v28 = vmax.f32 %v3014_v48, %v3015_v6  ;;  %1540 = vst [vmem:[%s2842_s8 + $0x28] sm:$0xff] %v1534_v17  ;;  %2139 = vpow2.f32 %v1669_v8  ;;  %v1371_v36 = vmul.f32 %v2502_v49, %v2884_v47  ;;  %v2899_v62 = vmul.f32 %v2506_v52, %v2884_v47 }
 0x21c   : > { %v1365_v12 = vmax.f32 %v3013_v11, %v1359_v26  ;;  %v1722_v46 = vadd.f32 %v1716_v57, %v1686_v10  ;;  %v1688_v50 = vadd.f32 %v2120_v59, %v1652_v24  ;;  %v1440_v38 = vadd.f32 %v1434_v56, %v1398_v35 }
 0x21d   : > { %v1571_v30 = vmax.f32 %v3016_v28, %v2878_v13  ;;  %v2122_v34 = vpop.eup %2121  ;;  %2141 = vpow2.f32 %v1705_v29  ;;  %v1470_v51 = vmul.f32 %v2110_v14, %v3017_v32  ;;  %v1604_v2 = vmul.f32 %v2114_v61, %v3009_v53 }
 0x21e   : > { %v1377_v19 = vmax.f32 %v1365_v12, %v1371_v36  ;;  %v1640_v23 = vmul.f32 %v2118_v58, %v3010_v55  ;;  %v1724_v49 = vadd.f32 %v2122_v34, %v1688_v50  ;;  %v1506_v25 = vmul.f32 %v2112_v22, %v2757_v5  ;;  %v3018_v55 = vld [vmem:[#allocation7_spill] sm:$0xff] }
 0x21f   : > { %v1583_v31 = vmax.f32 %v1571_v30, %v2899_v62  ;;  %v2124_v44 = vpop.eup %2123  ;;  %v1476_v7 = vadd.f32 %v1470_v51, %v1440_v38  ;;  %v1676_v10 = vmul.f32 %v2120_v59, %v3017_v32  ;;  %v1712_v59 = vmul.f32 %v2122_v34, %v2757_v5  ;;  %v3020_v38 = vld [vmem:[#allocation20_spill] sm:$0xff] }
 0x220   : > { %v1383_v52 = vsub.f32 %v3011_v1, %v1377_v19  ;;  %v1419_v21 = vsub.f32 %v3012_v63, %v1377_v19  ;;  %v1455_v3 = vsub.f32 %v1359_v26, %v1377_v19  ;;  %v1491_v60 = vsub.f32 %v1371_v36, %v1377_v19  ;;  %v2126_v45 = vpop.eup %2125 }
 0x221   : > { %v1740_v40 = vmul.f32 %v2124_v44, %v1722_v46  ;;  %2143 = vrcp.f32 %v1724_v49  ;;  %v2128_v4 = vpop.eup %2127  ;;  %v1589_v43 = vsub.f32 %v3014_v48, %v1583_v31  ;;  %v1646_v16 = vadd.f32 %v1640_v23, %v1604_v2 }
 0x222   : > { %v1393_v42 = vmul.f32 1.442695, %v1383_v52  ;;  %v1429_v27 = vmul.f32 1.442695, %v1419_v21  ;;  %v2130_v15 = vpop.eup %2129  ;;  %v1448_v14 = vadd.f32 %v2128_v4, %v2126_v45  ;;  %v1465_v54 = vmul.f32 1.442695, %v1455_v3 }
 0x223   : > { %1943 = vst [vmem:[%s2842_s8 + $0x58] sm:$0xff] %v1740_v40  ;;  %v2132_v0 = vpop.eup %2131  ;;  %v1501_v26 = vmul.f32 1.442695, %v1491_v60  ;;  %v1625_v18 = vsub.f32 %v3015_v6, %v1583_v31  ;;  %v1661_v33 = vsub.f32 %v2878_v13, %v1583_v31  ;;  %v1512_v41 = vadd.f32 %v1506_v25, %v1476_v7  ;;  %v3019_v13 = vld [vmem:[#allocation12_spill] sm:$0xff] }
 0x224   : > { %2145 = vpow2.f32 %v1393_v42  ;;  %v2134_v20 = vpop.eup %2133  ;;  %v1484_v61 = vadd.f32 %v2130_v15, %v1448_v14  ;;  %v1599_v53 = vmul.f32 1.442695, %v1589_v43  ;;  %v1682_v17 = vadd.f32 %v1676_v10, %v1646_v16 }
 0x225   : > { %2147 = vpow2.f32 %v1429_v27  ;;  %v2136_v8 = vpop.eup %2135  ;;  %v1635_v37 = vmul.f32 1.442695, %v1625_v18  ;;  %v1400_v56 = vmul.f32 %v2126_v45, %v3018_v55  ;;  %v1697_v29 = vsub.f32 %v2899_v62, %v1583_v31  ;;  %v3021_v27 = vld [vmem:[#allocation8_spill] sm:$0xff] }
 0x226   : > { %v1520_v35 = vadd.f32 %v2132_v0, %v1484_v61  ;;  %v1654_v22 = vadd.f32 %v2136_v8, %v2134_v20  ;;  %2149 = vpow2.f32 %v1465_v54  ;;  %v1436_v11 = vmul.f32 %v2128_v4, %v3019_v13 }
 0x227   : > { %v2138_v58 = vpop.eup %2137  ;;  %2151 = vpow2.f32 %v1501_v26  ;;  %v1671_v12 = vmul.f32 1.442695, %v1661_v33  ;;  %v1707_v48 = vmul.f32 1.442695, %v1697_v29  ;;  %v1718_v28 = vadd.f32 %v1712_v59, %v1682_v17 }
 0x228   : > { %v2140_v1 = vpop.eup %2139  ;;  %v1530_v63 = vmul.f32 %v2138_v58, %v1512_v41  ;;  %2153 = vrcp.f32 %v1520_v35  ;;  %v1442_v30 = vadd.f32 %v1436_v11, %v1400_v56  ;;  %v1606_v62 = vmul.f32 %v2134_v20, %v3018_v55 }
 0x229   : > { %v1690_v57 = vadd.f32 %v2140_v1, %v1654_v22  ;;  %2155 = vpow2.f32 %v1599_v53  ;;  %v1642_v46 = vmul.f32 %v2136_v8, %v3019_v13  ;;  %v1472_v19 = vmul.f32 %v2130_v15, %v3020_v38  ;;  %v3022_v15 = vld [vmem:[#allocation14_spill] sm:$0xff] }
 0x22a   : > { %v2142_v24 = vpop.eup %2141  ;;  %1536 = vst [vmem:[%s2842_s8 + $0x8] sm:$0xff] %v1530_v63  ;;  %2157 = vpow2.f32 %v1635_v37  ;;  %v1508_v51 = vmul.f32 %v2132_v0, %v2803_v9  ;;  %v1678_v49 = vmul.f32 %v2140_v1, %v3020_v38 }
 0x22b   : > { %v1726_v6 = vadd.f32 %v2142_v24, %v1690_v57  ;;  %2159 = vpow2.f32 %v1671_v12  ;;  %v1478_v32 = vadd.f32 %v1472_v19, %v1442_v30  ;;  %v1648_v34 = vadd.f32 %v1642_v46, %v1606_v62 }
 0x22c   : > { %v1714_v42 = vmul.f32 %v2142_v24, %v2803_v9 }
 0x22d   : > { %2161 = vrcp.f32 %v1726_v6  ;;  %v1514_v52 = vadd.f32 %v1508_v51, %v1478_v32  ;;  %v1684_v60 = vadd.f32 %v1678_v49, %v1648_v34 }
 0x22e   : > { %v2144_v36 = vpop.eup %2143  ;;  %2163 = vpow2.f32 %v1707_v48 }
 0x22f   : > { %v1736_v50 = vmul.f32 %v2144_v36, %v1718_v28  ;;  %v1720_v0 = vadd.f32 %v1714_v42, %v1684_v60 }
 0x231   : > { %v2146_v31 = vpop.eup %2145  ;;  %1939 = vst [vmem:[%s2842_s8 + $0x38] sm:$0xff] %v1736_v50 }
 0x232   : > { %v2148_v5 = vpop.eup %2147  ;;  %v1401_v43 = vmul.f32 %v2146_v31, %v3021_v27 }
 0x233   : > { %v1449_v2 = vadd.f32 %v2148_v5, %v2146_v31  ;;  %v2150_v23 = vpop.eup %2149  ;;  %v1437_v25 = vmul.f32 %v2148_v5, %v3022_v15 }
 0x234   : > { %v2152_v44 = vpop.eup %2151  ;;  %v1473_v8 = vmul.f32 %v2150_v23, %v3008_v39 }
 0x235   : > { %v1485_v21 = vadd.f32 %v2150_v23, %v1449_v2  ;;  %v2154_v3 = vpop.eup %2153  ;;  %v1443_v61 = vadd.f32 %v1437_v25, %v1401_v43  ;;  %v1509_v53 = vmul.f32 %v2152_v44, %v2884_v47 }
 0x236   : > { %v2156_v45 = vpop.eup %2155  ;;  %v1532_v40 = vmul.f32 %v2154_v3, %v1514_v52 }
 0x237   : > { %v1521_v4 = vadd.f32 %v2152_v44, %v1485_v21  ;;  %v2158_v7 = vpop.eup %2157  ;;  %v1607_v9 = vmul.f32 %v2156_v45, %v3021_v27  ;;  %v1479_v10 = vadd.f32 %v1473_v8, %v1443_v61 }
 0x238   : > { %1538 = vst [vmem:[%s2842_s8 + $0x18] sm:$0xff] %v1532_v40  ;;  %v1655_v14 = vadd.f32 %v2158_v7, %v2156_v45  ;;  %v2160_v54 = vpop.eup %2159  ;;  %v1643_v41 = vmul.f32 %v2158_v7, %v3022_v15 }
 0x239   : > { %2165 = vrcp.f32 %v1521_v4  ;;  %v1515_v22 = vadd.f32 %v1509_v53, %v1479_v10  ;;  %v1679_v37 = vmul.f32 %v2160_v54, %v3008_v39 }
 0x23a   : > { %v2162_v16 = vpop.eup %2161  ;;  %v1691_v26 = vadd.f32 %v2160_v54, %v1655_v14  ;;  %v1649_v35 = vadd.f32 %v1643_v41, %v1607_v9 }
 0x23b   : > { %v2164_v18 = vpop.eup %2163  ;;  %v1738_v20 = vmul.f32 %v2162_v16, %v1720_v0 }
 0x23c   : > { %v1727_v33 = vadd.f32 %v2164_v18, %v1691_v26  ;;  %v1685_v55 = vadd.f32 %v1679_v37, %v1649_v35  ;;  %v1715_v56 = vmul.f32 %v2164_v18, %v2884_v47 }
 0x23d   : > { %1941 = vst [vmem:[%s2842_s8 + $0x48] sm:$0xff] %v1738_v20 }
 0x23e   : > { %2167 = vrcp.f32 %v1727_v33  ;;  %v1721_v29 = vadd.f32 %v1715_v56, %v1685_v55 }
 0x246   : > { %v2166_v58 = vpop.eup %2165 }
 0x247   : > { %v1533_v17 = vmul.f32 %v2166_v58, %v1515_v22 }
 0x249   : > { %1539 = vst [vmem:[%s2842_s8 + $0x20] sm:$0xff] %v1533_v17 }
 0x24b   : > { %v2168_v1 = vpop.eup %2167 }
 0x24c   : > { %v1739_v63 = vmul.f32 %v2168_v1, %v1721_v29 }
 0x24e   : > { %1942 = vst [vmem:[%s2842_s8 + $0x50] sm:$0xff] %v1739_v63 }
 0x24f PF: > { %s15_s15 = sadd.s32 1, %s2194_s15  }
 0x250   : > { %p12_p1 = scmp.ge.s32.totalorder %s15_s15, 4  }
 0x252   :  { %14 = sbr.rel (!%p12_p1) target bundleno = 1 (0x1), region = 76 }
 0x257   :  { %1769 = vsyncpa [#allocation4], 1 }
 0x258   :  { %1771 = vsyncpa [#allocation4 + $0x1], 1 }

// kernel: simple_cnn_forward.4
= control target key start
LH: loop header
LB: loop body
LE: loop exit
PB: predicated region body
PF: predicated region fallthrough
CT: control target
= control target key end

     0   :  { %9 = vsyncpa [#allocation4], 0  ;;  %s2380_s15 = smov 0   ;;  %s3087_s0 = inlined_call_operand.vmem [shape: bf16[2,4,32,256], index: 0, kind: input, shape index: {}]   ;;  %s3088_s1 = inlined_call_operand.vmem [shape: bf16[128,512], index: 1, kind: input, shape index: {}]   ;;  %s3089_s2 = inlined_call_operand.vmem [shape: f32[2,128,1], index: 2, kind: input, shape index: {}]   ;;  %s3090_s3 = inlined_call_operand.vmem [shape: f32[2], index: 3, kind: input, shape index: {}]   ;;  %s3091_s4 = inlined_call_operand.vmem [shape: f32[2,2,32,128], index: 4, kind: output, shape index: {}]  }
   0x1 LB: > { %s1862_s16 = sadd.s32 4294967295, %s2348_s15   ;;  %p1864_p0 = scmp.ge.s32.totalorder %s2348_s15, 1  ;;  %s2348_s15 = sphi %s2380_s15, %s15_s15  }
   0x2   : > { %p135_p1 = scmp.lt.s32.totalorder %s2348_s15, 3  ;;  %s154_s19 = sshll.u32 %s3090_s3, 4  ;;  %s155_s19 = int_to_ptr.vmem [resolvable:$true] %s154_s19 }
   0x3   : > { %p2146_p3 = scmp.eq.s32.totalorder %s1862_s16, 0  ;;  %s2323_s21 = scalar_lea.vmem %s155_s19, 16 }
   0x4   : > { %p2391_p2 = pnand %p1864_p0, %p135_p1  ;;  %p2324_p6 = scmp.ne.s32.totalorder %s155_s19, %s2323_s21 }
   0x5   : > { %p2331_p10 = scmp.lt.s32.totalorder %s155_s19, %s155_s19  ;;  %p2332_p11 = scmp.lt.s32.totalorder %s2323_s21, %s2323_s21 }
   0x6   : > { %p2142_p4 = pneg %p2391_p2 }
   0x7   : > { %p2333_p12 = por %p2332_p11, %p2331_p10 }
   0x8   : > { %p2143_p5 = pnand %p2146_p3, %p2142_p4 }
   0xa   : > { %p2325_p7 = pneg %p2143_p5 }
   0xc   : > { %p2326_p8 = pnand %p2325_p7, %p2324_p6 }
   0xe   : > { %p2327_p9 = pneg %p2326_p8 }
  0x10   : > { %p2334_p13 = pnand %p2333_p12, %p2327_p9 }
  0x12   : > { %2337 = shalt.err (!%p2334_p13)
}
  0x13   : > { %s2350_s22 = smov [#allocation3]   ;;  %175 = sbr.rel (%p2391_p2) target bundleno = 593 (0x251), region = 36 }
  0x14   : > { %2145 = dma.vmem_to_smem (!%p2143_p5), %s155_s19, 16, %s2350_s22, [#allocation4]  }
  0x18   : > { %2343 = dma.done.wait (%p2146_p3), [#allocation4], 16  }
  0x19   : > { %2345 = vsyncadd (%p2146_p3), [#allocation4], 4294967280 }
  0x1a   : > { %181 = sfence }
  0x1b   : > { %p202_p0 = scmp.lt.s32.totalorder %s1862_s16, 1  ;;  %s2351_s27 = smov 118   ;;  %v2195_v32 = vld [vmem:[%s3088_s1 + $0x4] ss:$16 sps:$4 sm:$0xff]   ;;  %v2200_v33 = vld [vmem:[%s3088_s1 + $0xc] ss:$16 sps:$4 sm:$0xff]  }
  0x1c   : > { %s2352_s28 = smov 127   ;;  %s2353_s29 = smov 119   ;;  %1115 = vmatprep.mubr.bf16.mxu0 %v2195_v32  ;;  %1212 = vmatprep.mubr.bf16.mxu1 %v2200_v33  ;;  %v2354_v34 = vmov 0   ;;  %v1278_v35 = vld [vmem:[%s3089_s2 + $0x8] sm:$0xff]  ;;  %v1277_v36 = vld [vmem:[%s3089_s2] sm:$0xff]  ;;  %v1279_v37 = vld [vmem:[%s3089_s2 + $0x10] sm:$0xff] }
  0x1d   : > { %s3104_s16 = smov (!%p202_p0, %s1862_s16), 1  ;;  %2162 = vset.pattern.permute.xlu1 %v2354_v34  ;;  %2161 = vset.pattern.permute.xlu0 %v2354_v34  ;;  %v1280_v38 = vld [vmem:[%s3089_s2 + $0x18] sm:$0xff]  ;;  %vm526_vm0 = vcmask 965632   ;;  %vm268_vm1 = vcmask 1039360   ;;  %v1281_v47 = vld [vmem:[%s3089_s2 + $0x20] sm:$0xff]  ;;  %v1282_v48 = vld [vmem:[%s3089_s2 + $0x28] sm:$0xff] }
  0x1e   : > { %s2008_s23 = sshll.u32 %s3104_s16, 7  ;;  %v1283_v51 = vld [vmem:[%s3089_s2 + $0x30] sm:$0xff]  ;;  %v1284_v52 = vld [vmem:[%s3089_s2 + $0x38] sm:$0xff]  ;;  %vm397_vm2 = vcmask 973824   ;;  %v1285_v63 = vld [vmem:[%s3089_s2 + $0x40] sm:$0xff]  ;;  %s2780_s12 = sld [smem:[#allocation3]] }
  0x1f   : > { %s2408_s26 = scalar_lea.vmem %s3087_s0, %s2008_s23  ;;  %s2783_s13 = sld [smem:[#allocation3 + $0x1]] }
  0x20   : > { %v1919_v0 = vld [vmem:[%s2408_s26 + $0x70] sm:$0xff]  ;;  %v1920_v1 = vld [vmem:[%s2408_s26 + $0x78] sm:$0xff]  ;;  %v1894_v4 = vld [vmem:[%s2408_s26 + $0x68] sm:$0xff]  ;;  %s2009_s14 = sshll.u32 %s3104_s16, 6 }
  0x21   : > { %615 = vrot.lane.b32.xlu1 %v1919_v0, %s2351_s27  ;;  %357 = vrot.lane.b32.xlu0 %v1919_v0, %s2352_s28  ;;  %v1883_v2 = vld [vmem:[%s2408_s26 + $0x70] sm:$0xf]  ;;  %v1884_v3 = vld [vmem:[%s2408_s26 + $0x78] sm:$0xf]  ;;  %s3049_s18 = scalar_lea.vmem %s3091_s4, %s2009_s14 }
  0x22   : > { %246 = vst [vmem:[#allocation2 + $0x38] sm:$0xf] %v1883_v2  ;;  %247 = vst [vmem:[#allocation2 + $0x3c] sm:$0xf] %v1884_v3  ;;  %v1893_v5 = vld [vmem:[%s2408_s26 + $0x60] sm:$0xff]  ;;  %v1892_v8 = vld [vmem:[%s2408_s26 + $0x58] sm:$0xff] }
  0x23   : > { %v1881_v6 = vld [vmem:[%s2408_s26 + $0x60] sm:$0xf]  ;;  %v1882_v7 = vld [vmem:[%s2408_s26 + $0x68] sm:$0xf]  ;;  %v1891_v9 = vld [vmem:[%s2408_s26 + $0x50] sm:$0xff] }
  0x24   : > { %244 = vst [vmem:[#allocation2 + $0x30] sm:$0xf] %v1881_v6  ;;  %245 = vst [vmem:[#allocation2 + $0x34] sm:$0xf] %v1882_v7  ;;  %v1879_v10 = vld [vmem:[%s2408_s26 + $0x50] sm:$0xf] }
  0x25   : > { %617 = vrot.lane.b32.xlu1 %v1920_v1, %s2351_s27  ;;  %359 = vrot.lane.b32.xlu0 %v1920_v1, %s2352_s28  ;;  %v1880_v11 = vld [vmem:[%s2408_s26 + $0x58] sm:$0xf]  ;;  %237 = vst [vmem:[#allocation2 + $0x28] sm:$0xf] %v1879_v10  ;;  %v1890_v12 = vld [vmem:[%s2408_s26 + $0x48] sm:$0xff] }
  0x26   : > { %238 = vst [vmem:[#allocation2 + $0x2c] sm:$0xf] %v1880_v11  ;;  %v1889_v13 = vld [vmem:[%s2408_s26 + $0x40] sm:$0xff]  ;;  %v1878_v15 = vld [vmem:[%s2408_s26 + $0x48] sm:$0xf]  ;;  %v1888_v16 = vld [vmem:[%s2408_s26 + $0x38] sm:$0xff] }
  0x27   : > { %v1877_v14 = vld [vmem:[%s2408_s26 + $0x40] sm:$0xf]  ;;  %236 = vst [vmem:[#allocation2 + $0x24] sm:$0xf] %v1878_v15  ;;  %v1887_v17 = vld [vmem:[%s2408_s26 + $0x30] sm:$0xff]  ;;  %v1886_v20 = vld [vmem:[%s2408_s26 + $0x28] sm:$0xff] }
  0x28   : > { %235 = vst [vmem:[#allocation2 + $0x20] sm:$0xf] %v1877_v14  ;;  %v1875_v18 = vld [vmem:[%s2408_s26 + $0x30] sm:$0xf]  ;;  %v1876_v19 = vld [vmem:[%s2408_s26 + $0x38] sm:$0xf] }
  0x29   : > { %488 = vrot.lane.b32.xlu1 %v1920_v1, %s2353_s29  ;;  %486 = vrot.lane.b32.xlu0 %v1919_v0, %s2353_s29  ;;  %228 = vst [vmem:[#allocation2 + $0x18] sm:$0xf] %v1875_v18  ;;  %229 = vst [vmem:[#allocation2 + $0x1c] sm:$0xf] %v1876_v19  ;;  %v1885_v21 = vld [vmem:[%s2408_s26 + $0x20] sm:$0xff]  ;;  %v251_v24 = vld [vmem:[%s2408_s26 + $0x18] sm:$0xff] }
  0x2a   : > { %v1873_v22 = vld [vmem:[%s2408_s26 + $0x20] sm:$0xf]  ;;  %v1874_v23 = vld [vmem:[%s2408_s26 + $0x28] sm:$0xf]  ;;  %v250_v25 = vld [vmem:[%s2408_s26 + $0x10] sm:$0xff] }
  0x2b   : > { %226 = vst [vmem:[#allocation2 + $0x10] sm:$0xf] %v1873_v22  ;;  %227 = vst [vmem:[#allocation2 + $0x14] sm:$0xf] %v1874_v23  ;;  %v215_v26 = vld [vmem:[%s2408_s26 + $0x10] sm:$0xf] }
  0x2c   : > { %v216_v27 = vld [vmem:[%s2408_s26 + $0x18] sm:$0xf]  ;;  %219 = vst [vmem:[#allocation2 + $0x8] sm:$0xf] %v215_v26  ;;  %v213_v28 = vld [vmem:[%s2408_s26] sm:$0xf] }
  0x2d   : > { %355 = vrot.lane.b32.xlu1 %v1894_v4, %s2352_s28  ;;  %353 = vrot.lane.b32.xlu0 %v1893_v5, %s2352_s28  ;;  %220 = vst [vmem:[#allocation2 + $0xc] sm:$0xf] %v216_v27  ;;  %v214_v29 = vld [vmem:[%s2408_s26 + $0x8] sm:$0xf]  ;;  %217 = vst [vmem:[#allocation2] sm:$0xf] %v213_v28 }
  0x2e   : > { %218 = vst [vmem:[#allocation2 + $0x4] sm:$0xf] %v214_v29  ;;  %v249_v30 = vld [vmem:[%s2408_s26 + $0x8] sm:$0xff]  ;;  %v248_v31 = vld [vmem:[%s2408_s26] sm:$0xff]  ;;  %v2166_v3 = vld [vmem:[#allocation2 + $0x38] sm:$0xff]  }
  0x2f   : > { %v1286_v0 = vld [vmem:[%s3089_s2 + $0x48] sm:$0xff]  ;;  %v1288_v11 = vld [vmem:[%s3089_s2 + $0x58] sm:$0xff]  ;;  %v1985_v19 = vld [vmem:[%s3089_s2 + $0x80] sm:$0xff] }
  0x30   : > { %v2170_v23 = vld [vmem:[#allocation2 + $0x30] sm:$0xff]  }
  0x31   : > { %613 = vrot.lane.b32.xlu1 %v1894_v4, %s2351_s27  ;;  %611 = vrot.lane.b32.xlu0 %v1893_v5, %s2351_s27 }
  0x35   : > { %484 = vrot.lane.b32.xlu1 %v1894_v4, %s2353_s29  ;;  %482 = vrot.lane.b32.xlu0 %v1893_v5, %s2353_s29  ;;  %v1287_v4 = vld [vmem:[%s3089_s2 + $0x50] sm:$0xff] }
  0x39   : > { %327 = vrot.lane.b32.xlu1 %v1892_v8, %s2352_s28  ;;  %325 = vrot.lane.b32.xlu0 %v1891_v9, %s2352_s28 }
  0x3d   : > { %585 = vrot.lane.b32.xlu1 %v1892_v8, %s2351_s27  ;;  %583 = vrot.lane.b32.xlu0 %v1891_v9, %s2351_s27 }
  0x41   : > { %456 = vrot.lane.b32.xlu1 %v1892_v8, %s2353_s29  ;;  %454 = vrot.lane.b32.xlu0 %v1891_v9, %s2353_s29 }
  0x45   : > { %323 = vrot.lane.b32.xlu1 %v1890_v12, %s2352_s28  ;;  %321 = vrot.lane.b32.xlu0 %v1889_v13, %s2352_s28 }
  0x49   : > { %581 = vrot.lane.b32.xlu1 %v1890_v12, %s2351_s27  ;;  %579 = vrot.lane.b32.xlu0 %v1889_v13, %s2351_s27 }
  0x4d   : > { %452 = vrot.lane.b32.xlu1 %v1890_v12, %s2353_s29  ;;  %450 = vrot.lane.b32.xlu0 %v1889_v13, %s2353_s29 }
  0x51   : > { %295 = vrot.lane.b32.xlu1 %v1888_v16, %s2352_s28  ;;  %293 = vrot.lane.b32.xlu0 %v1887_v17, %s2352_s28 }
  0x55   : > { %553 = vrot.lane.b32.xlu1 %v1888_v16, %s2351_s27  ;;  %551 = vrot.lane.b32.xlu0 %v1887_v17, %s2351_s27 }
  0x59   : > { %424 = vrot.lane.b32.xlu1 %v1888_v16, %s2353_s29  ;;  %422 = vrot.lane.b32.xlu0 %v1887_v17, %s2353_s29 }
  0x5d   : > { %291 = vrot.lane.b32.xlu1 %v1886_v20, %s2352_s28  ;;  %289 = vrot.lane.b32.xlu0 %v1885_v21, %s2352_s28 }
  0x61   : > { %549 = vrot.lane.b32.xlu1 %v1886_v20, %s2351_s27  ;;  %547 = vrot.lane.b32.xlu0 %v1885_v21, %s2351_s27 }
  0x65   : > { %420 = vrot.lane.b32.xlu1 %v1886_v20, %s2353_s29  ;;  %418 = vrot.lane.b32.xlu0 %v1885_v21, %s2353_s29  ;;  %v1986_v20 = vld [vmem:[%s3089_s2 + $0x88] sm:$0xff] }
  0x69   : > { %262 = vrot.lane.b32.xlu1 %v251_v24, %s2352_s28  ;;  %260 = vrot.lane.b32.xlu0 %v250_v25, %s2352_s28 }
  0x6d   : > { %520 = vrot.lane.b32.xlu1 %v251_v24, %s2351_s27  ;;  %518 = vrot.lane.b32.xlu0 %v250_v25, %s2351_s27 }
  0x71   : > { %391 = vrot.lane.b32.xlu1 %v251_v24, %s2353_s29  ;;  %389 = vrot.lane.b32.xlu0 %v250_v25, %s2353_s29  ;;  %v1987_v24 = vld [vmem:[%s3089_s2 + $0x90] sm:$0xff] }
  0x75   : > { %258 = vrot.lane.b32.xlu1 %v249_v30, %s2352_s28  ;;  %256 = vrot.lane.b32.xlu0 %v248_v31, %s2352_s28 }
  0x79   : > { %516 = vrot.lane.b32.xlu1 %v249_v30, %s2351_s27  ;;  %514 = vrot.lane.b32.xlu0 %v248_v31, %s2351_s27 }
  0x7d   : > { %387 = vrot.lane.b32.xlu1 %v249_v30, %s2353_s29  ;;  %385 = vrot.lane.b32.xlu0 %v248_v31, %s2353_s29  ;;  %v1988_v30 = vld [vmem:[%s3089_s2 + $0x98] sm:$0xff] }
  0x81   : > { %1300 = vperm.xlu1 %2162, %v1278_v35   ;;  %1295 = vperm.xlu0 %2161, %v1277_v36  }
  0x85   : > { %1305 = vperm.xlu1 %2162, %v1279_v37   ;;  %1310 = vperm.xlu0 %2161, %v1280_v38   ;;  %v1989_v38 = vld [vmem:[%s3089_s2 + $0xa0] sm:$0xff] }
  0x89   : > { %1315 = vperm.xlu1 %2162, %v1281_v47   ;;  %1320 = vperm.xlu0 %2161, %v1282_v48   ;;  %v1992_v48 = vld [vmem:[%s3089_s2 + $0xb8] sm:$0xff] }
  0x8d   : > { %1325 = vperm.xlu1 %2162, %v1283_v51   ;;  %1330 = vperm.xlu0 %2161, %v1284_v52   ;;  %v2174_v51 = vld [vmem:[#allocation2 + $0x28] sm:$0xff]  }
  0x91   : > { %1335 = vperm.xlu1 %2162, %v1285_v63   ;;  %1340 = vperm.xlu0 %2161, %v1286_v0  }
  0x93   : > { %v616_v39 = vpop.permute.xlu1 %615  ;;  %v358_v40 = vpop.permute.xlu0 %357 }
  0x94   : > { %v621_v41 = vrot.slane %v616_v39, 4  ;;  %v363_v42 = vrot.slane %v358_v40, 4 }
  0x95   : > { %1345 = vperm.xlu1 %2162, %v1287_v4   ;;  %1350 = vperm.xlu0 %2161, %v1288_v11  }
  0x96   : > { %v625_v43 = vsel %vm526_vm0, %v616_v39, %v621_v41  ;;  %v367_v44 = vsel %vm268_vm1, %v358_v40, %v363_v42  ;;  %v1990_v39 = vld [vmem:[%s3089_s2 + $0xa8] sm:$0xff]  ;;  %v1991_v42 = vld [vmem:[%s3089_s2 + $0xb0] sm:$0xff] }
  0x97   : > { %633 = vst [vmem:[#allocation2 + $0xf8] sm:$0xf] %v625_v43  ;;  %375 = vst [vmem:[#allocation2 + $0x78] sm:$0xf] %v367_v44  ;;  %v618_v45 = vpop.permute.xlu1 %617  ;;  %v360_v46 = vpop.permute.xlu0 %359 }
  0x98   : > { %v622_v49 = vrot.slane %v618_v45, 4  ;;  %v364_v50 = vrot.slane %v360_v46, 4 }
  0x99   : > { %1408 = vperm.xlu1 %2162, %v1985_v19   ;;  %1413 = vperm.xlu0 %2161, %v1986_v20  }
  0x9a   : > { %v626_v53 = vsel %vm526_vm0, %v618_v45, %v622_v49  ;;  %v368_v54 = vsel %vm268_vm1, %v360_v46, %v364_v50 }
  0x9b   : > { %634 = vst [vmem:[#allocation2 + $0xfc] sm:$0xf] %v626_v53  ;;  %376 = vst [vmem:[#allocation2 + $0x7c] sm:$0xf] %v368_v54  ;;  %v489_v55 = vpop.permute.xlu1 %488  ;;  %v487_v56 = vpop.permute.xlu0 %486 }
  0x9c   : > { %v493_v57 = vrot.slane %v489_v55, 4  ;;  %v492_v58 = vrot.slane %v487_v56, 4 }
  0x9d   : > { %1418 = vperm.xlu1 %2162, %v1987_v24   ;;  %1423 = vperm.xlu0 %2161, %v1988_v30  }
  0x9e   : > { %v497_v59 = vsel %vm397_vm2, %v489_v55, %v493_v57  ;;  %v496_v60 = vsel %vm397_vm2, %v487_v56, %v492_v58  ;;  %v1289_v57 = vld [vmem:[%s3089_s2 + $0x60] sm:$0xff]  ;;  %v1290_v58 = vld [vmem:[%s3089_s2 + $0x68] sm:$0xff] }
  0x9f   : > { %505 = vst [vmem:[#allocation2 + $0xbc] sm:$0xf] %v497_v59  ;;  %504 = vst [vmem:[#allocation2 + $0xb8] sm:$0xf] %v496_v60  ;;  %v356_v61 = vpop.permute.xlu1 %355  ;;  %v354_v62 = vpop.permute.xlu0 %353 }
  0xa0   : > { %v362_v1 = vrot.slane %v356_v61, 4  ;;  %v361_v2 = vrot.slane %v354_v62, 4 }
  0xa1   : > { %1428 = vperm.xlu1 %2162, %v1989_v38   ;;  %1433 = vperm.xlu0 %2161, %v1990_v39  }
  0xa2   : > { %v366_v5 = vsel %vm268_vm1, %v356_v61, %v362_v1  ;;  %v365_v6 = vsel %vm268_vm1, %v354_v62, %v361_v2  ;;  %v2163_v7 = vld [vmem:[#allocation2 + $0x78] sm:$0xff]   ;;  %v1291_v61 = vld [vmem:[%s3089_s2 + $0x70] sm:$0xff] }
  0xa3   : > { %374 = vst [vmem:[#allocation2 + $0x74] sm:$0xf] %v366_v5  ;;  %373 = vst [vmem:[#allocation2 + $0x70] sm:$0xf] %v365_v6  ;;  %v614_v8 = vpop.permute.xlu1 %613  ;;  %v612_v9 = vpop.permute.xlu0 %611  ;;  %v2164_v10 = vld [vmem:[#allocation2 + $0xf8] sm:$0xff]   ;;  %2010 = vmatprep.subr.bf16.mxu0 %v2163_v7  ;;  %v1993_v6 = vld [vmem:[%s3089_s2 + $0xc0] sm:$0xff] }
  0xa4   : > { %v620_v12 = vrot.slane %v614_v8, 4  ;;  %v619_v13 = vrot.slane %v612_v9, 4  ;;  %2074 = vmatprep.subr.bf16.mxu1 %v2164_v10  ;;  %2011 = vmatpush3.bf16.msra.mxu0 %v2166_v3  ;;  %v1292_v3 = vld [vmem:[%s3089_s2 + $0x78] sm:$0xff] }
  0xa5   : > { %1438 = vperm.xlu1 %2162, %v1991_v42   ;;  %1443 = vperm.xlu0 %2161, %v1992_v48  }
  0xa6   : > { %v624_v14 = vsel %vm526_vm0, %v614_v8, %v620_v12  ;;  %v623_v15 = vsel %vm526_vm0, %v612_v9, %v619_v13  ;;  %v2165_v16 = vld [vmem:[#allocation2 + $0xb8] sm:$0xff]   ;;  %v1994_v12 = vld [vmem:[%s3089_s2 + $0xc8] sm:$0xff] }
  0xa7   : > { %632 = vst [vmem:[#allocation2 + $0xf4] sm:$0xf] %v624_v14  ;;  %631 = vst [vmem:[#allocation2 + $0xf0] sm:$0xf] %v623_v15  ;;  %v485_v17 = vpop.permute.xlu1 %484  ;;  %v483_v18 = vpop.permute.xlu0 %482  ;;  %2075 = vmatpush3.bf16.msra.mxu1 %v2165_v16  ;;  %v2178_v15 = vld [vmem:[#allocation2 + $0x20] sm:$0xff]   ;;  %v1995_v16 = vld [vmem:[%s3089_s2 + $0xd0] sm:$0xff] }
  0xa8   : > { %v491_v21 = vrot.slane %v485_v17, 4  ;;  %v490_v22 = vrot.slane %v483_v18, 4 }
  0xa9   : > { %1355 = vperm.xlu1 %2162, %v1289_v57   ;;  %1360 = vperm.xlu0 %2161, %v1290_v58  }
  0xaa   : > { %v495_v25 = vsel %vm397_vm2, %v485_v17, %v491_v21  ;;  %v494_v26 = vsel %vm397_vm2, %v483_v18, %v490_v22  ;;  %v2167_v27 = vld [vmem:[#allocation2 + $0x70] sm:$0xff]   ;;  %v1996_v22 = vld [vmem:[%s3089_s2 + $0xd8] sm:$0xff] }
  0xab   : > { %503 = vst [vmem:[#allocation2 + $0xb4] sm:$0xf] %v495_v25  ;;  %502 = vst [vmem:[#allocation2 + $0xb0] sm:$0xf] %v494_v26  ;;  %v328_v28 = vpop.permute.xlu1 %327  ;;  %v326_v29 = vpop.permute.xlu0 %325  ;;  %2012 = vmatprep.subr.bf16.mxu0 %v2167_v27  ;;  %v1997_v25 = vld [vmem:[%s3089_s2 + $0xe0] sm:$0xff] }
  0xac   : > { %v332_v31 = vrot.slane %v328_v28, 4  ;;  %v331_v32 = vrot.slane %v326_v29, 4  ;;  %2013 = vmatpush3.bf16.msra.mxu0 %v2170_v23 }
  0xad   : > { %1365 = vperm.xlu1 %2162, %v1291_v61   ;;  %1370 = vperm.xlu0 %2161, %v1292_v3  }
  0xae   : > { %v336_v33 = vsel %vm268_vm1, %v328_v28, %v332_v31  ;;  %v335_v34 = vsel %vm268_vm1, %v326_v29, %v331_v32  ;;  %v2168_v35 = vld [vmem:[#allocation2 + $0xf0] sm:$0xff]   ;;  %v1998_v31 = vld [vmem:[%s3089_s2 + $0xe8] sm:$0xff] }
  0xaf   : > { %344 = vst [vmem:[#allocation2 + $0x6c] sm:$0xf] %v336_v33  ;;  %343 = vst [vmem:[#allocation2 + $0x68] sm:$0xf] %v335_v34  ;;  %v586_v36 = vpop.permute.xlu1 %585  ;;  %v584_v37 = vpop.permute.xlu0 %583  ;;  %2076 = vmatprep.subr.bf16.mxu1 %v2168_v35  ;;  %v1999_v34 = vld [vmem:[%s3089_s2 + $0xf0] sm:$0xff] }
  0xb0   : > { %v590_v40 = vrot.slane %v586_v36, 4  ;;  %v589_v41 = vrot.slane %v584_v37, 4 }
  0xb1   : > { %1448 = vperm.xlu1 %2162, %v1993_v6   ;;  %1453 = vperm.xlu0 %2161, %v1994_v12  }
  0xb2   : > { %v594_v43 = vsel %vm526_vm0, %v586_v36, %v590_v40  ;;  %v593_v44 = vsel %vm526_vm0, %v584_v37, %v589_v41  ;;  %v2169_v45 = vld [vmem:[#allocation2 + $0xb0] sm:$0xff]   ;;  %v2000_v40 = vld [vmem:[%s3089_s2 + $0xf8] sm:$0xff] }
  0xb3   : > { %602 = vst [vmem:[#allocation2 + $0xec] sm:$0xf] %v594_v43  ;;  %601 = vst [vmem:[#allocation2 + $0xe8] sm:$0xf] %v593_v44  ;;  %v457_v46 = vpop.permute.xlu1 %456  ;;  %v455_v47 = vpop.permute.xlu0 %454  ;;  %2077 = vmatpush3.bf16.msra.mxu1 %v2169_v45  ;;  %v2182_v43 = vld [vmem:[#allocation2 + $0x18] sm:$0xff]  }
  0xb4   : > { %v461_v49 = vrot.slane %v457_v46, 4  ;;  %v460_v50 = vrot.slane %v455_v47, 4 }
  0xb5   : > { %1458 = vperm.xlu1 %2162, %v1995_v16   ;;  %1463 = vperm.xlu0 %2161, %v1996_v22  }
  0xb6   : > { %v465_v52 = vsel %vm397_vm2, %v457_v46, %v461_v49  ;;  %v464_v53 = vsel %vm397_vm2, %v455_v47, %v460_v50  ;;  %v2171_v54 = vld [vmem:[#allocation2 + $0x68] sm:$0xff]  }
  0xb7   : > { %473 = vst [vmem:[#allocation2 + $0xac] sm:$0xf] %v465_v52  ;;  %472 = vst [vmem:[#allocation2 + $0xa8] sm:$0xf] %v464_v53  ;;  %v324_v55 = vpop.permute.xlu1 %323  ;;  %v322_v56 = vpop.permute.xlu0 %321  ;;  %2014 = vmatprep.subr.bf16.mxu0 %v2171_v54 }
  0xb8   : > { %v330_v59 = vrot.slane %v324_v55, 4  ;;  %v329_v60 = vrot.slane %v322_v56, 4  ;;  %2015 = vmatpush3.bf16.msra.mxu0 %v2174_v51 }
  0xb9   : > { %1468 = vperm.xlu1 %2162, %v1997_v25   ;;  %1473 = vperm.xlu0 %2161, %v1998_v31  }
  0xba   : > { %v334_v62 = vsel %vm268_vm1, %v324_v55, %v330_v59  ;;  %v333_v63 = vsel %vm268_vm1, %v322_v56, %v329_v60  ;;  %v2172_v0 = vld [vmem:[#allocation2 + $0xe8] sm:$0xff]  }
  0xbb   : > { %342 = vst [vmem:[#allocation2 + $0x64] sm:$0xf] %v334_v62  ;;  %341 = vst [vmem:[#allocation2 + $0x60] sm:$0xf] %v333_v63  ;;  %v582_v1 = vpop.permute.xlu1 %581  ;;  %v580_v2 = vpop.permute.xlu0 %579  ;;  %2078 = vmatprep.subr.bf16.mxu1 %v2172_v0 }
  0xbc   : > { %v588_v4 = vrot.slane %v582_v1, 4  ;;  %v587_v5 = vrot.slane %v580_v2, 4 }
  0xbd   : > { %1478 = vperm.xlu1 %2162, %v1999_v34   ;;  %1483 = vperm.xlu0 %2161, %v2000_v40  }
  0xbe   : > { %v592_v7 = vsel %vm526_vm0, %v582_v1, %v588_v4  ;;  %v591_v8 = vsel %vm526_vm0, %v580_v2, %v587_v5  ;;  %v2173_v9 = vld [vmem:[#allocation2 + $0xa8] sm:$0xff]   ;;  %v2186_v1 = vld [vmem:[#allocation2 + $0x10] sm:$0xff]  }
  0xbf   : > { %600 = vst [vmem:[#allocation2 + $0xe4] sm:$0xf] %v592_v7  ;;  %599 = vst [vmem:[#allocation2 + $0xe0] sm:$0xf] %v591_v8  ;;  %v453_v10 = vpop.permute.xlu1 %452  ;;  %v451_v11 = vpop.permute.xlu0 %450  ;;  %2079 = vmatpush3.bf16.msra.mxu1 %v2173_v9 }
  0xc0   : > { %v459_v13 = vrot.slane %v453_v10, 4  ;;  %v458_v14 = vrot.slane %v451_v11, 4 }
  0xc2   : > { %v463_v17 = vsel %vm397_vm2, %v453_v10, %v459_v13  ;;  %v462_v18 = vsel %vm397_vm2, %v451_v11, %v458_v14  ;;  %v2175_v19 = vld [vmem:[#allocation2 + $0x60] sm:$0xff]  }
  0xc3   : > { %471 = vst [vmem:[#allocation2 + $0xa4] sm:$0xf] %v463_v17  ;;  %470 = vst [vmem:[#allocation2 + $0xa0] sm:$0xf] %v462_v18  ;;  %v296_v20 = vpop.permute.xlu1 %295  ;;  %v294_v21 = vpop.permute.xlu0 %293  ;;  %2016 = vmatprep.subr.bf16.mxu0 %v2175_v19 }
  0xc4   : > { %v300_v23 = vrot.slane %v296_v20, 4  ;;  %v299_v24 = vrot.slane %v294_v21, 4  ;;  %2017 = vmatpush3.bf16.msra.mxu0 %v2178_v15 }
  0xc6   : > { %v304_v26 = vsel %vm268_vm1, %v296_v20, %v300_v23  ;;  %v303_v27 = vsel %vm268_vm1, %v294_v21, %v299_v24  ;;  %v2176_v28 = vld [vmem:[#allocation2 + $0xe0] sm:$0xff]   ;;  %v2190_v23 = vld [vmem:[#allocation2 + $0x8] sm:$0xff]  }
  0xc7   : > { %312 = vst [vmem:[#allocation2 + $0x5c] sm:$0xf] %v304_v26  ;;  %311 = vst [vmem:[#allocation2 + $0x58] sm:$0xf] %v303_v27  ;;  %v554_v29 = vpop.permute.xlu1 %553  ;;  %v552_v30 = vpop.permute.xlu0 %551  ;;  %2080 = vmatprep.subr.bf16.mxu1 %v2176_v28 }
  0xc8   : > { %v558_v32 = vrot.slane %v554_v29, 4  ;;  %v557_v33 = vrot.slane %v552_v30, 4 }
  0xca   : > { %v562_v35 = vsel %vm526_vm0, %v554_v29, %v558_v32  ;;  %v561_v36 = vsel %vm526_vm0, %v552_v30, %v557_v33  ;;  %v2177_v37 = vld [vmem:[#allocation2 + $0xa0] sm:$0xff]  }
  0xcb   : > { %570 = vst [vmem:[#allocation2 + $0xdc] sm:$0xf] %v562_v35  ;;  %569 = vst [vmem:[#allocation2 + $0xd8] sm:$0xf] %v561_v36  ;;  %v425_v38 = vpop.permute.xlu1 %424  ;;  %v423_v39 = vpop.permute.xlu0 %422  ;;  %2081 = vmatpush3.bf16.msra.mxu1 %v2177_v37 }
  0xcc   : > { %v429_v41 = vrot.slane %v425_v38, 4  ;;  %v428_v42 = vrot.slane %v423_v39, 4 }
  0xce   : > { %v433_v44 = vsel %vm397_vm2, %v425_v38, %v429_v41  ;;  %v432_v45 = vsel %vm397_vm2, %v423_v39, %v428_v42  ;;  %v2179_v46 = vld [vmem:[#allocation2 + $0x58] sm:$0xff]  }
  0xcf   : > { %441 = vst [vmem:[#allocation2 + $0x9c] sm:$0xf] %v433_v44  ;;  %440 = vst [vmem:[#allocation2 + $0x98] sm:$0xf] %v432_v45  ;;  %v292_v47 = vpop.permute.xlu1 %291  ;;  %v290_v48 = vpop.permute.xlu0 %289  ;;  %2018 = vmatprep.subr.bf16.mxu0 %v2179_v46  ;;  %v2192_v45 = vld [vmem:[#allocation2] sm:$0xff]  }
  0xd0   : > { %v298_v49 = vrot.slane %v292_v47, 4  ;;  %v297_v50 = vrot.slane %v290_v48, 4  ;;  %2019 = vmatpush3.bf16.msra.mxu0 %v2182_v43 }
  0xd2   : > { %v302_v51 = vsel %vm268_vm1, %v292_v47, %v298_v49  ;;  %v301_v52 = vsel %vm268_vm1, %v290_v48, %v297_v50  ;;  %v2180_v53 = vld [vmem:[#allocation2 + $0xd8] sm:$0xff]   ;;  %v2193_v49 = vld [vmem:[%s3088_s1] ss:$16 sps:$4 sm:$0xff]   ;;  %v2201_v50 = vld [vmem:[%s3088_s1 + $0x24] ss:$16 sps:$4 sm:$0xff]  }
  0xd3   : > { %310 = vst [vmem:[#allocation2 + $0x54] sm:$0xf] %v302_v51  ;;  %309 = vst [vmem:[#allocation2 + $0x50] sm:$0xf] %v301_v52  ;;  %v550_v54 = vpop.permute.xlu1 %549  ;;  %v548_v55 = vpop.permute.xlu0 %547  ;;  %2082 = vmatprep.subr.bf16.mxu1 %v2180_v53  ;;  %v2198_v53 = vld [vmem:[%s3088_s1 + $0x8] ss:$16 sps:$4 sm:$0xff]  }
  0xd4   : > { %v556_v56 = vrot.slane %v550_v54, 4  ;;  %v555_v57 = vrot.slane %v548_v55, 4 }
  0xd6   : > { %v560_v58 = vsel %vm526_vm0, %v550_v54, %v556_v56  ;;  %v559_v59 = vsel %vm526_vm0, %v548_v55, %v555_v57  ;;  %v2181_v60 = vld [vmem:[#allocation2 + $0x98] sm:$0xff]   ;;  %v2203_v54 = vld [vmem:[%s3088_s1 + $0x20] ss:$16 sps:$4 sm:$0xff]   ;;  %v2207_v56 = vld [vmem:[%s3088_s1 + $0x44] ss:$16 sps:$4 sm:$0xff]  }
  0xd7   : > { %568 = vst [vmem:[#allocation2 + $0xd4] sm:$0xf] %v560_v58  ;;  %567 = vst [vmem:[#allocation2 + $0xd0] sm:$0xf] %v559_v59  ;;  %v421_v61 = vpop.permute.xlu1 %420  ;;  %v419_v62 = vpop.permute.xlu0 %418  ;;  %2083 = vmatpush3.bf16.msra.mxu1 %v2181_v60  ;;  %v2204_v55 = vld [vmem:[%s3088_s1 + $0x2c] ss:$16 sps:$4 sm:$0xff]  }
  0xd8   : > { %v427_v63 = vrot.slane %v421_v61, 4  ;;  %v426_v0 = vrot.slane %v419_v62, 4  ;;  %v2206_v57 = vld [vmem:[%s3088_s1 + $0x28] ss:$16 sps:$4 sm:$0xff]   ;;  %v2209_v58 = vld [vmem:[%s3088_s1 + $0x40] ss:$16 sps:$4 sm:$0xff]  }
  0xd9   : > { %v2210_v59 = vld [vmem:[%s3088_s1 + $0x4c] ss:$16 sps:$4 sm:$0xff]   ;;  %v2213_v60 = vld [vmem:[%s3088_s1 + $0x64] ss:$16 sps:$4 sm:$0xff]  }
  0xda   : > { %v431_v2 = vsel %vm397_vm2, %v421_v61, %v427_v63  ;;  %v430_v3 = vsel %vm397_vm2, %v419_v62, %v426_v0  ;;  %v2183_v4 = vld [vmem:[#allocation2 + $0x50] sm:$0xff]   ;;  %v2212_v61 = vld [vmem:[%s3088_s1 + $0x48] ss:$16 sps:$4 sm:$0xff]   ;;  %v2216_v63 = vld [vmem:[%s3088_s1 + $0x6c] ss:$16 sps:$4 sm:$0xff]  }
  0xdb   : > { %439 = vst [vmem:[#allocation2 + $0x94] sm:$0xf] %v431_v2  ;;  %438 = vst [vmem:[#allocation2 + $0x90] sm:$0xf] %v430_v3  ;;  %v263_v5 = vpop.permute.xlu1 %262  ;;  %v261_v6 = vpop.permute.xlu0 %260  ;;  %2020 = vmatprep.subr.bf16.mxu0 %v2183_v4  ;;  %v2215_v62 = vld [vmem:[%s3088_s1 + $0x60] ss:$16 sps:$4 sm:$0xff]  }
  0xdc   : > { %v267_v7 = vrot.slane %v263_v5, 4  ;;  %v266_v8 = vrot.slane %v261_v6, 4  ;;  %2021 = vmatpush3.bf16.msra.mxu0 %v2186_v1  ;;  %v2219_v0 = vld [vmem:[%s3088_s1 + $0x84] ss:$16 sps:$4 sm:$0xff]   ;;  %v2218_v1 = vld [vmem:[%s3088_s1 + $0x68] ss:$16 sps:$4 sm:$0xff]  }
  0xdd   : > { %v2221_v2 = vld [vmem:[%s3088_s1 + $0x80] ss:$16 sps:$4 sm:$0xff]   ;;  %v2222_v3 = vld [vmem:[%s3088_s1 + $0x8c] ss:$16 sps:$4 sm:$0xff]   ;;  %v2225_v4 = vld [vmem:[%s3088_s1 + $0xa4] ss:$16 sps:$4 sm:$0xff]  }
  0xde   : > { %v272_v9 = vsel %vm268_vm1, %v263_v5, %v267_v7  ;;  %v271_v10 = vsel %vm268_vm1, %v261_v6, %v266_v8  ;;  %v2184_v11 = vld [vmem:[#allocation2 + $0xd0] sm:$0xff]   ;;  %v2224_v5 = vld [vmem:[%s3088_s1 + $0x88] ss:$16 sps:$4 sm:$0xff]   ;;  %v2228_v7 = vld [vmem:[%s3088_s1 + $0xac] ss:$16 sps:$4 sm:$0xff]  }
  0xdf   : > { %280 = vst [vmem:[#allocation2 + $0x4c] sm:$0xf] %v272_v9  ;;  %279 = vst [vmem:[#allocation2 + $0x48] sm:$0xf] %v271_v10  ;;  %v521_v12 = vpop.permute.xlu1 %520  ;;  %v519_v13 = vpop.permute.xlu0 %518  ;;  %2084 = vmatprep.subr.bf16.mxu1 %v2184_v11  ;;  %v2227_v6 = vld [vmem:[%s3088_s1 + $0xa0] ss:$16 sps:$4 sm:$0xff]  }
  0xe0   : > { %v525_v14 = vrot.slane %v521_v12, 4  ;;  %v524_v15 = vrot.slane %v519_v13, 4  ;;  %v2231_v8 = vld [vmem:[%s3088_s1 + $0xc4] ss:$16 sps:$4 sm:$0xff]   ;;  %v2230_v9 = vld [vmem:[%s3088_s1 + $0xa8] ss:$16 sps:$4 sm:$0xff]  }
  0xe1   : > { %v2233_v10 = vld [vmem:[%s3088_s1 + $0xc0] ss:$16 sps:$4 sm:$0xff]   ;;  %v2234_v11 = vld [vmem:[%s3088_s1 + $0xcc] ss:$16 sps:$4 sm:$0xff]  }
  0xe2   : > { %v530_v16 = vsel %vm526_vm0, %v521_v12, %v525_v14  ;;  %v529_v17 = vsel %vm526_vm0, %v519_v13, %v524_v15  ;;  %v2185_v18 = vld [vmem:[#allocation2 + $0x90] sm:$0xff]   ;;  %v2236_v13 = vld [vmem:[%s3088_s1 + $0xc8] ss:$16 sps:$4 sm:$0xff]   ;;  %v2240_v15 = vld [vmem:[%s3088_s1 + $0xec] ss:$16 sps:$4 sm:$0xff]  }
  0xe3   : > { %538 = vst [vmem:[#allocation2 + $0xcc] sm:$0xf] %v530_v16  ;;  %537 = vst [vmem:[#allocation2 + $0xc8] sm:$0xf] %v529_v17  ;;  %v392_v19 = vpop.permute.xlu1 %391  ;;  %v390_v20 = vpop.permute.xlu0 %389  ;;  %2085 = vmatpush3.bf16.msra.mxu1 %v2185_v18  ;;  %v2237_v12 = vld [vmem:[%s3088_s1 + $0xe4] ss:$16 sps:$4 sm:$0xff]  }
  0xe4   : > { %v396_v21 = vrot.slane %v392_v19, 4  ;;  %v395_v22 = vrot.slane %v390_v20, 4  ;;  %v2239_v14 = vld [vmem:[%s3088_s1 + $0xe0] ss:$16 sps:$4 sm:$0xff]   ;;  %v2242_v16 = vld [vmem:[%s3088_s1 + $0xe8] ss:$16 sps:$4 sm:$0xff]  }
  0xe6   : > { %v401_v24 = vsel %vm397_vm2, %v392_v19, %v396_v21  ;;  %v400_v25 = vsel %vm397_vm2, %v390_v20, %v395_v22  ;;  %v2187_v26 = vld [vmem:[#allocation2 + $0x48] sm:$0xff]  }
  0xe7   : > { %409 = vst [vmem:[#allocation2 + $0x8c] sm:$0xf] %v401_v24  ;;  %408 = vst [vmem:[#allocation2 + $0x88] sm:$0xf] %v400_v25  ;;  %v259_v27 = vpop.permute.xlu1 %258  ;;  %v257_v28 = vpop.permute.xlu0 %256  ;;  %2022 = vmatprep.subr.bf16.mxu0 %v2187_v26 }
  0xe8   : > { %v265_v29 = vrot.slane %v259_v27, 4  ;;  %v264_v30 = vrot.slane %v257_v28, 4  ;;  %2023 = vmatpush3.bf16.msra.mxu0 %v2190_v23 }
  0xea   : > { %v270_v31 = vsel %vm268_vm1, %v259_v27, %v265_v29  ;;  %v269_v32 = vsel %vm268_vm1, %v257_v28, %v264_v30  ;;  %v2188_v33 = vld [vmem:[#allocation2 + $0xc8] sm:$0xff]  }
  0xeb   : > { %278 = vst [vmem:[#allocation2 + $0x44] sm:$0xf] %v270_v31  ;;  %277 = vst [vmem:[#allocation2 + $0x40] sm:$0xf] %v269_v32  ;;  %v517_v34 = vpop.permute.xlu1 %516  ;;  %v515_v35 = vpop.permute.xlu0 %514  ;;  %2086 = vmatprep.subr.bf16.mxu1 %v2188_v33 }
  0xec   : > { %v523_v36 = vrot.slane %v517_v34, 4  ;;  %v522_v37 = vrot.slane %v515_v35, 4 }
  0xee   : > { %v528_v38 = vsel %vm526_vm0, %v517_v34, %v523_v36  ;;  %v527_v39 = vsel %vm526_vm0, %v515_v35, %v522_v37  ;;  %v2189_v40 = vld [vmem:[#allocation2 + $0x88] sm:$0xff]  }
  0xef   : > { %536 = vst [vmem:[#allocation2 + $0xc4] sm:$0xf] %v528_v38  ;;  %535 = vst [vmem:[#allocation2 + $0xc0] sm:$0xf] %v527_v39  ;;  %v388_v41 = vpop.permute.xlu1 %387  ;;  %v386_v42 = vpop.permute.xlu0 %385  ;;  %2087 = vmatpush3.bf16.msra.mxu1 %v2189_v40 }
  0xf0   : > { %v394_v43 = vrot.slane %v388_v41, 4  ;;  %v393_v44 = vrot.slane %v386_v42, 4 }
  0xf2   : > { %v399_v46 = vsel %vm397_vm2, %v388_v41, %v394_v43  ;;  %v398_v47 = vsel %vm397_vm2, %v386_v42, %v393_v44  ;;  %v2191_v48 = vld [vmem:[#allocation2 + $0x40] sm:$0xff]  }
  0xf3   : > { %407 = vst [vmem:[#allocation2 + $0x84] sm:$0xf] %v399_v46  ;;  %406 = vst [vmem:[#allocation2 + $0x80] sm:$0xf] %v398_v47  ;;  %2024 = vmatprep.subr.bf16.mxu0 %v2191_v48 }
  0xf4   : > { %2025 = vmatpush3.bf16.msra.mxu0 %v2192_v45 }
  0xf6   : > { %v2196_v51 = vld [vmem:[#allocation2 + $0xc0] sm:$0xff]  }
  0xf7   : > { %2088 = vmatprep.subr.bf16.mxu1 %v2196_v51  ;;  %1116 = vmatmul.mubr.bf16.vlgmr.msra.gmra.mxu0 %v2193_v49 }
  0xf8   : > { %1123 = vmatprep.mubr.bf16.mxu0 %v2201_v50 }
  0xfa   : > { %v2197_v52 = vld [vmem:[#allocation2 + $0x80] sm:$0xff]  }
  0xfb   : > { %2089 = vmatpush3.bf16.msra.mxu1 %v2197_v52 }
  0xfc   : > { %v2730_v17 = vpop.permute.xlu1 %1300  ;;  %v2732_v18 = vpop.permute.xlu0 %1295 }
  0xfe   : > { %1213 = vmatmul.mubr.bf16.vlgmr.msra.gmra.mxu1 %v2198_v53 }
  0xff   : > { %1124 = vmatmul.mubr.bf16.gmra.mxu0 %v2203_v54  ;;  %1220 = vmatprep.mubr.bf16.mxu1 %v2204_v55 }
 0x100   : > { %1131 = vmatprep.mubr.bf16.mxu0 %v2207_v56  ;;  %v2734_v19 = vpop.permute.xlu1 %1305  ;;  %v2736_v20 = vpop.permute.xlu0 %1310 }
 0x104   : > { %v2738_v21 = vpop.permute.xlu1 %1315  ;;  %v2740_v22 = vpop.permute.xlu0 %1320 }
 0x106   : > { %1221 = vmatmul.mubr.bf16.gmra.mxu1 %v2206_v57 }
 0x107   : > { %1132 = vmatmul.mubr.bf16.gmra.mxu0 %v2209_v58  ;;  %1228 = vmatprep.mubr.bf16.mxu1 %v2210_v59 }
 0x108   : > { %1139 = vmatprep.mubr.bf16.mxu0 %v2213_v60  ;;  %v2742_v23 = vpop.permute.xlu1 %1325  ;;  %v2744_v25 = vpop.permute.xlu0 %1330 }
 0x109   : > { %3093 = vst [vmem:[#allocation6_spill] sm:$0xff] %v2744_v25 }
 0x10c   : > { %v2746_v27 = vpop.permute.xlu1 %1335  ;;  %v2748_v30 = vpop.permute.xlu0 %1340 }
 0x10e   : > { %1229 = vmatmul.mubr.bf16.gmra.mxu1 %v2212_v61 }
 0x10f   : > { %1140 = vmatmul.mubr.bf16.gmra.mxu0 %v2215_v62  ;;  %1236 = vmatprep.mubr.bf16.mxu1 %v2216_v63 }
 0x110   : > { %1147 = vmatprep.mubr.bf16.mxu0 %v2219_v0  ;;  %v2750_v33 = vpop.permute.xlu1 %1345  ;;  %v2752_v38 = vpop.permute.xlu0 %1350 }
 0x111   : > { %3094 = vst [vmem:[#allocation7_spill] sm:$0xff] %v2750_v33  ;;  %3095 = vst [vmem:[#allocation8_spill] sm:$0xff] %v2752_v38 }
 0x114   : > { %v2754_v41 = vpop.permute.xlu1 %1408  ;;  %v2756_v47 = vpop.permute.xlu0 %1413 }
 0x116   : > { %1237 = vmatmul.mubr.bf16.gmra.mxu1 %v2218_v1 }
 0x117   : > { %1148 = vmatmul.mubr.bf16.gmra.mxu0 %v2221_v2  ;;  %1244 = vmatprep.mubr.bf16.mxu1 %v2222_v3 }
 0x118   : > { %1155 = vmatprep.mubr.bf16.mxu0 %v2225_v4  ;;  %v2758_v50 = vpop.permute.xlu1 %1418  ;;  %v2760_v57 = vpop.permute.xlu0 %1423 }
 0x11c   : > { %v1429_v60 = vpop.permute.xlu1 %1428  ;;  %v2766_v1 = vpop.permute.xlu0 %1433 }
 0x11e   : > { %1245 = vmatmul.mubr.bf16.gmra.mxu1 %v2224_v5 }
 0x11f   : > { %1156 = vmatmul.mubr.bf16.gmra.mxu0 %v2227_v6  ;;  %1252 = vmatprep.mubr.bf16.mxu1 %v2228_v7 }
 0x120   : > { %1163 = vmatprep.mubr.bf16.mxu0 %v2231_v8  ;;  %v2768_v4 = vpop.permute.xlu1 %1438 }
 0x121   : > { %3096 = vst [vmem:[#allocation9_spill] sm:$0xff] %v2768_v4 }
 0x126   : > { %1253 = vmatmul.mubr.bf16.gmra.mxu1 %v2230_v9 }
 0x127   : > { %1164 = vmatmul.mubr.bf16.gmra.mxu0 %v2233_v10  ;;  %1260 = vmatprep.mubr.bf16.mxu1 %v2234_v11  ;;  %v2772_v10 = vpop.permute.xlu0 %1443 }
 0x128   : > { %1171 = vmatprep.mubr.bf16.mxu0 %v2237_v12  ;;  %3097 = vst [vmem:[#allocation10_spill] sm:$0xff] %v2772_v10 }
 0x12b   : > { %v2778_v4 = vpop.permute.xlu0 %1360 }
 0x12e   : > { %1261 = vmatmul.mubr.bf16.gmra.mxu1 %v2236_v13 }
 0x12f   : > { %1172 = vmatmul.mubr.bf16.gmra.mxu0 %v2239_v14  ;;  %1268 = vmatprep.mubr.bf16.mxu1 %v2240_v15 }
 0x136   : > { %1269 = vmatmul.mubr.bf16.gmra.mxu1 %v2242_v16  ;;  %v2776_v16 = vpop.permute.xlu1 %1355 }
 0x1b7   : > { %v2026_v24 = vpop.f32.mrf.mxu0 }
 0x1b9   : > { %v2027_v26 = vpop.f32.mrf.mxu0 }
 0x1ba   : > { %v2028_v13 = vadd.f32 %v2027_v26, %v2026_v24 }
 0x1bb   : > { %v2029_v28 = vpop.f32.mrf.mxu0 }
 0x1bd   : > { %v2030_v29 = vpop.f32.mrf.mxu0 }
 0x1be   : > { %v2090_v31 = vpop.f32.mrf.mxu1 }
 0x1bf   : > { %v2032_v32 = vpop.f32.mrf.mxu0 }
 0x1c0   : > { %v2091_v34 = vpop.f32.mrf.mxu1 }
 0x1c1   : > { %v2033_v35 = vpop.f32.mrf.mxu0  ;;  %v2092_v8 = vadd.f32 %v2091_v34, %v2090_v31 }
 0x1c2   : > { %v2093_v36 = vpop.f32.mrf.mxu1  ;;  %v2034_v25 = vadd.f32 %v2033_v35, %v2032_v32  ;;  %v2787_v32 = vpop.permute.xlu1 %1365 }
 0x1c3   : > { %v2035_v37 = vpop.f32.mrf.mxu0 }
 0x1c4   : > { %v2094_v39 = vpop.f32.mrf.mxu1 }
 0x1c5   : > { %v2036_v40 = vpop.f32.mrf.mxu0  ;;  %v2095_v14 = vadd.f32 %v2094_v39, %v2093_v36 }
 0x1c6   : > { %v2096_v42 = vpop.f32.mrf.mxu1  ;;  %v2037_v43 = vadd.f32 %v2036_v40, %v2035_v37 }
 0x1c7   : > { %v2038_v44 = vpop.f32.mrf.mxu0 }
 0x1c8   : > { %v2097_v45 = vpop.f32.mrf.mxu1 }
 0x1c9   : > { %v2039_v46 = vpop.f32.mrf.mxu0  ;;  %v2098_v37 = vadd.f32 %v2097_v45, %v2096_v42 }
 0x1ca   : > { %v2099_v48 = vpop.f32.mrf.mxu1  ;;  %v2040_v40 = vadd.f32 %v2039_v46, %v2038_v44 }
 0x1cb   : > { %v2041_v49 = vpop.f32.mrf.mxu0  ;;  %v1223_v24 = vadd.f32 %v2098_v37, %v2034_v25 }
 0x1cc   : > { %v2100_v51 = vpop.f32.mrf.mxu1 }
 0x1cd   : > { %v2101_v52 = vadd.f32 %v2100_v51, %v2099_v48  ;;  %v2042_v53 = vpop.f32.mrf.mxu0  ;;  %v2031_v51 = vadd.f32 %v2030_v29, %v2029_v28 }
 0x1ce   : > { %v2102_v54 = vpop.f32.mrf.mxu1  ;;  %v2043_v31 = vadd.f32 %v2042_v53, %v2041_v49  ;;  %v1375_v53 = vmul.f32 %v2734_v19, %v1223_v24 }
 0x1cf   : > { %v1226_v55 = vadd.f32 %v2101_v52, %v2037_v43  ;;  %v2044_v56 = vpop.f32.mrf.mxu0  ;;  %v1215_v52 = vadd.f32 %v2092_v8, %v2028_v13  ;;  %v1218_v10 = vadd.f32 %v2095_v14, %v2031_v51  ;;  %v2809_v14 = vstv %s2783_s13 }
 0x1d0   : > { %v2103_v58 = vpop.f32.mrf.mxu1 }
 0x1d1   : > { %v2045_v59 = vpop.f32.mrf.mxu0  ;;  %v2104_v11 = vadd.f32 %v2103_v58, %v2102_v54  ;;  %v1373_v42 = vmul.f32 %v2732_v18, %v1215_v52  ;;  %v1374_v45 = vmul.f32 %v2730_v17, %v1218_v10 }
 0x1d2   : > { %v2105_v61 = vpop.f32.mrf.mxu1  ;;  %v2046_v46 = vadd.f32 %v2045_v59, %v2044_v56 }
 0x1d3   : > { %v2762_v62 = vpop.f32.mrf.mxu0  ;;  %v1231_v34 = vadd.f32 %v2104_v11, %v2040_v40  ;;  %v1487_v19 = vadd.f32 %v2756_v47, %v1374_v45  ;;  %v2802_v11 = vstv %s2780_s12 }
 0x1d4   : > { %v2106_v63 = vpop.f32.mrf.mxu1 }
 0x1d5   : > { %v2764_v0 = vpop.f32.mrf.mxu0  ;;  %v2107_v43 = vadd.f32 %v2106_v63, %v2105_v61  ;;  %v1486_v63 = vadd.f32 %v2754_v41, %v1373_v42  ;;  %v1488_v41 = vadd.f32 %v2758_v50, %v1375_v53 }
 0x1d6   : > { %v2108_v2 = vpop.f32.mrf.mxu1 }
 0x1d7   : > { %v2050_v3 = vpop.f32.mrf.mxu0  ;;  %v1234_v26 = vadd.f32 %v2107_v43, %v2043_v31  ;;  %v2806_v13 = vmax.f32 %v1486_v63, 0.0  ;;  %v2817_v43 = vmax.f32 %v1487_v19, 0.0  ;;  %v2820_v52 = vmax.f32 %v1488_v41, 0.0 }
 0x1d8   : > { %v2109_v5 = vpop.f32.mrf.mxu1 }
 0x1d9   : > { %v2051_v6 = vpop.f32.mrf.mxu0  ;;  %v2110_v28 = vadd.f32 %v2109_v5, %v2108_v2  ;;  %v1378_v18 = vmul.f32 %v2740_v22, %v1234_v26  ;;  %v1376_v2 = vmul.f32 %v2736_v20, %v1226_v55  ;;  %v1449_v22 = vpop.permute.xlu1 %1448  ;;  %v2857_v45 = vmul.f32 %v2802_v11, %v2820_v52 }
 0x1da   : > { %v2770_v7 = vpop.f32.mrf.mxu1  ;;  %v2052_v36 = vadd.f32 %v2051_v6, %v2050_v3  ;;  %v2797_v6 = vpop.permute.xlu0 %1370 }
 0x1db   : > { %v2053_v9 = vpop.f32.mrf.mxu0  ;;  %v1239_v3 = vadd.f32 %v2110_v28, %v2046_v46  ;;  %v1491_v20 = vadd.f32 %v2766_v1, %v1378_v18 }
 0x1dc   : > { %v2774_v12 = vpop.f32.mrf.mxu1 }
 0x1dd   : > { %v2054_v15 = vpop.f32.mrf.mxu0  ;;  %v2822_v31 = vmax.f32 %v1491_v20, 0.0 }
 0x1de   : > { %v2114_v48 = vpop.f32.mrf.mxu1  ;;  %v1454_v51 = vpop.permute.xlu0 %1453 }
 0x1df   : > { %v2056_v38 = vpop.f32.mrf.mxu0  ;;  %v2861_v46 = vmul.f32 %v2802_v11, %v2822_v31 }
 0x1e0   : > { %v2115_v33 = vpop.f32.mrf.mxu1 }
 0x1e1   : > { %v2116_v54 = vadd.f32 %v2115_v33, %v2114_v48  ;;  %v2057_v58 = vpop.f32.mrf.mxu0  ;;  %v1377_v33 = vmul.f32 %v2738_v21, %v1231_v34  ;;  %v2055_v21 = vadd.f32 %v2054_v15, %v2053_v9  ;;  %v2113_v15 = vadd.f32 %v2774_v12, %v2770_v7  ;;  %v3098_v12 = vld [vmem:[#allocation9_spill] sm:$0xff] }
 0x1e2   : > { %v2117_v39 = vpop.f32.mrf.mxu1  ;;  %v2058_v40 = vadd.f32 %v2057_v58, %v2056_v38  ;;  %v2828_v7 = vmul.f32 %v2802_v11, %v2806_v13  ;;  %v2832_v38 = vmul.f32 %v2809_v14, %v2806_v13  ;;  %v1459_v58 = vpop.permute.xlu1 %1458 }
 0x1e3   : > { %v2785_v29 = vpop.f32.mrf.mxu0  ;;  %v1247_v35 = vadd.f32 %v2116_v54, %v2052_v36  ;;  %v1490_v17 = vadd.f32 %v1429_v60, %v1377_v33  ;;  %v1379_v60 = vmul.f32 %v2742_v23, %v1239_v3  ;;  %v2049_v23 = vadd.f32 %v2764_v0, %v2762_v62 }
 0x1e4   : > { %v2118_v44 = vpop.f32.mrf.mxu1 }
 0x1e5   : > { %v2119_v25 = vadd.f32 %v2118_v44, %v2117_v39  ;;  %v2791_v49 = vpop.f32.mrf.mxu0  ;;  %v1381_v56 = vmul.f32 %v2746_v27, %v1247_v35  ;;  %v1489_v27 = vadd.f32 %v2760_v57, %v1376_v2  ;;  %v2813_v47 = vmax.f32 %v1490_v17, 0.0 }
 0x1e6   : > { %v2120_v61 = vpop.f32.mrf.mxu1  ;;  %v1492_v54 = vadd.f32 %v3098_v12, %v1379_v60  ;;  %v1242_v0 = vadd.f32 %v2113_v15, %v2049_v23  ;;  %v2849_v39 = vmul.f32 %v2802_v11, %v2817_v43  ;;  %v2853_v44 = vmul.f32 %v2809_v14, %v2817_v43 }
 0x1e7   : > { %v2062_v5 = vpop.f32.mrf.mxu0  ;;  %v1250_v8 = vadd.f32 %v2119_v25, %v2055_v21  ;;  %v1494_v37 = vadd.f32 %v1449_v22, %v1381_v56  ;;  %v2839_v24 = vmul.f32 %v2802_v11, %v2813_v47  ;;  %v2843_v62 = vmul.f32 %v2809_v14, %v2813_v47  ;;  %v3099_v25 = vld [vmem:[#allocation7_spill] sm:$0xff]  ;;  %v2874_v21 = vpop.permute.xlu0 %1463  ;;  %v3100_v56 = vld [vmem:[#allocation6_spill] sm:$0xff] }
 0x1e8   : > { %v2121_v59 = vpop.f32.mrf.mxu1  ;;  %v2872_v2 = vmax.f32 %v1492_v54, 0.0  ;;  %v1529_v60 = vmax.f32 %v2849_v39, %v2861_v46  ;;  %v2890_v15 = vmul.f32 %v2809_v14, %v2822_v31 }
 0x1e9   : > { %v2063_v10 = vpop.f32.mrf.mxu0  ;;  %v2122_v55 = vadd.f32 %v2121_v59, %v2120_v61  ;;  %v1382_v1 = vmul.f32 %v2748_v30, %v1250_v8  ;;  %v2834_v30 = vmax.f32 %v1489_v27, 0.0  ;;  %v2845_v26 = vmax.f32 %v1494_v37, 0.0  ;;  %v1469_v27 = vpop.permute.xlu1 %1468 }
 0x1ea   : > { %v2123_v9 = vpop.f32.mrf.mxu1  ;;  %v2064_v28 = vadd.f32 %v2063_v10, %v2062_v5  ;;  %v2866_v61 = vmul.f32 %v2809_v14, %v2820_v52  ;;  %v1528_v5 = vmax.f32 %v2828_v7, %v2839_v24  ;;  %v1666_v17 = vmax.f32 %v2832_v38, %v2843_v62 }
 0x1eb   : > { %v2065_v48 = vpop.f32.mrf.mxu0  ;;  %v1255_v57 = vadd.f32 %v2122_v55, %v2058_v40  ;;  %v1495_v42 = vadd.f32 %v1454_v51, %v1382_v1  ;;  %v2870_v63 = vmul.f32 %v2802_v11, %v2834_v30  ;;  %v1380_v59 = vmul.f32 %v3100_v56, %v1242_v0 }
 0x1ec   : > { %v2124_v50 = vpop.f32.mrf.mxu1  ;;  %v1532_v19 = vmul.f32 %v2802_v11, %v2845_v26  ;;  %v2894_v51 = vmul.f32 %v2802_v11, %v2872_v2 }
 0x1ed   : > { %v2066_v33 = vpop.f32.mrf.mxu0  ;;  %v1383_v53 = vmul.f32 %v3099_v25, %v1255_v57  ;;  %v2883_v10 = vmax.f32 %v1495_v42, 0.0  ;;  %v2125_v40 = vadd.f32 %v2124_v50, %v2123_v9  ;;  %v2900_v57 = vmul.f32 %v2809_v14, %v2872_v2 }
 0x1ee   : > { %v2126_v34 = vpop.f32.mrf.mxu1  ;;  %v2067_v22 = vadd.f32 %v2066_v33, %v2065_v48  ;;  %v1670_v48 = vmul.f32 %v2809_v14, %v2845_v26  ;;  %v1536_v54 = vmax.f32 %v1528_v5, %v1532_v19  ;;  %v2061_v9 = vadd.f32 %v2791_v49, %v2785_v29  ;;  %v1474_v33 = vpop.permute.xlu0 %1473 }
 0x1ef   : > { %v2068_v41 = vpop.f32.mrf.mxu0  ;;  %v1496_v37 = vadd.f32 %v1459_v58, %v1383_v53  ;;  %v2907_v58 = vmul.f32 %v2802_v11, %v2883_v10  ;;  %v1530_v56 = vmax.f32 %v2857_v45, %v2894_v51 }
 0x1f0   : > { %v2127_v36 = vpop.f32.mrf.mxu1  ;;  %v1258_v53 = vadd.f32 %v2125_v40, %v2061_v9  ;;  %v1674_v49 = vmax.f32 %v1666_v17, %v1670_v48  ;;  %v3102_v40 = vld [vmem:[#allocation8_spill] sm:$0xff] }
 0x1f1   : > { %v2128_v35 = vadd.f32 %v2127_v36, %v2126_v34  ;;  %v3101_v34 = vld [vmem:[#allocation10_spill] sm:$0xff]  ;;  %v2069_v36 = vpop.f32.mrf.mxu0  ;;  %v2916_v25 = vmax.f32 %v1496_v37, 0.0 }
 0x1f2   : > { %v2129_v18 = vpop.f32.mrf.mxu1  ;;  %v1493_v12 = vadd.f32 %v3101_v34, %v1380_v59  ;;  %v2070_v29 = vadd.f32 %v2069_v36, %v2068_v41  ;;  %v1668_v59 = vmax.f32 %v2866_v61, %v2900_v57 }
 0x1f3   : > { %v1263_v3 = vadd.f32 %v2128_v35, %v2064_v28  ;;  %v2914_v35 = vmul.f32 %v2809_v14, %v2883_v10  ;;  %v2936_v37 = vmul.f32 %v2802_v11, %v2916_v25 }
 0x1f4   : > { %v2130_v8 = vpop.f32.mrf.mxu1 }
 0x1f5   : > { %v1385_v20 = vmul.f32 %v2776_v16, %v1263_v3  ;;  %v2131_v55 = vadd.f32 %v2130_v8, %v2129_v18 }
 0x1f6   : > { %v2132_v1 = vpop.f32.mrf.mxu1 }
 0x1f7   : > { %v1498_v16 = vadd.f32 %v1469_v27, %v1385_v20  ;;  %v1266_v23 = vadd.f32 %v2131_v55, %v2067_v22  ;;  %v2928_v22 = vmax.f32 %v1493_v12, 0.0  ;;  %v1537_v55 = vmax.f32 %v1529_v60, %v2907_v58 }
 0x1f8   : > { %v2133_v50 = vpop.f32.mrf.mxu1 }
 0x1f9   : > { %v2909_v0 = vmax.f32 %v1498_v16, 0.0  ;;  %v1386_v42 = vmul.f32 %v2778_v4, %v1266_v23  ;;  %v2134_v28 = vadd.f32 %v2133_v50, %v2132_v1  ;;  %v1667_v4 = vmax.f32 %v2853_v44, %v2890_v15 }
 0x1fa   : > { %v1384_v1 = vmul.f32 %v3102_v40, %v1258_v53 }
 0x1fb   : > { %v1540_v18 = vmul.f32 %v2802_v11, %v2909_v0  ;;  %v1678_v3 = vmul.f32 %v2809_v14, %v2909_v0  ;;  %v1499_v5 = vadd.f32 %v1474_v33, %v1386_v42  ;;  %v1271_v8 = vadd.f32 %v2134_v28, %v2070_v29  ;;  %v2071_v29 = vpop.f32.mrf.mxu0 }
 0x1fc   : > { %v1675_v27 = vmax.f32 %v1667_v4, %v2914_v35 }
 0x1fd   : > { %v1544_v17 = vmax.f32 %v1536_v54, %v1540_v18  ;;  %v1682_v41 = vmax.f32 %v1674_v49, %v1678_v3  ;;  %v2930_v20 = vmax.f32 %v1499_v5, 0.0  ;;  %v2135_v54 = vpop.f32.mrf.mxu1  ;;  %v1387_v36 = vmul.f32 %v2787_v32, %v1271_v8 }
 0x1ff   : > { %v1548_v16 = vsub.f32 %v2828_v7, %v1544_v17  ;;  %v1572_v23 = vsub.f32 %v2839_v24, %v1544_v17  ;;  %v1596_v34 = vsub.f32 %v1532_v19, %v1544_v17  ;;  %v1620_v12 = vsub.f32 %v1540_v18, %v1544_v17  ;;  %v2136_v18 = vpop.f32.mrf.mxu1 }
 0x200   : > { %v1686_v9 = vsub.f32 %v2832_v38, %v1682_v41  ;;  %v1710_v50 = vsub.f32 %v2843_v62, %v1682_v41  ;;  %v1734_v60 = vsub.f32 %v1670_v48, %v1682_v41  ;;  %v1541_v53 = vmul.f32 %v2802_v11, %v2930_v20  ;;  %v1479_v62 = vpop.permute.xlu1 %1478 }
 0x201   : > { %v1552_v42 = vmul.f32 1.442695, %v1548_v16  ;;  %v1576_v28 = vmul.f32 1.442695, %v1572_v23  ;;  %v1600_v33 = vmul.f32 1.442695, %v1596_v34  ;;  %v2948_v7 = vmul.f32 %v2809_v14, %v2916_v25 }
 0x202   : > { %v1624_v24 = vmul.f32 1.442695, %v1620_v12  ;;  %v1758_v19 = vsub.f32 %v1678_v3, %v1682_v41  ;;  %v1679_v38 = vmul.f32 %v2809_v14, %v2930_v20  ;;  %v1690_v48 = vmul.f32 1.442695, %v1686_v9  ;;  %v2072_v41 = vpop.f32.mrf.mxu0 }
 0x203   : > { %2243 = vpow2.f32 %v1552_v42  ;;  %v1714_v32 = vmul.f32 1.442695, %v1710_v50  ;;  %v1545_v49 = vmax.f32 %v1537_v55, %v1541_v53  ;;  %v1738_v5 = vmul.f32 1.442695, %v1734_v60 }
 0x204   : > { %2245 = vpow2.f32 %v1576_v28  ;;  %v1683_v4 = vmax.f32 %v1675_v27, %v1679_v38  ;;  %v1500_v8 = vadd.f32 %v1479_v62, %v1387_v36  ;;  %v1762_v16 = vmul.f32 1.442695, %v1758_v19 }
 0x205   : > { %2247 = vpow2.f32 %v1600_v33  ;;  %v1549_v17 = vsub.f32 %v2849_v39, %v1545_v49  ;;  %v1573_v40 = vsub.f32 %v2861_v46, %v1545_v49  ;;  %v1597_v3 = vsub.f32 %v2907_v58, %v1545_v49 }
 0x206   : > { %2249 = vpow2.f32 %v1624_v24  ;;  %v1621_v23 = vsub.f32 %v1541_v53, %v1545_v49  ;;  %v2137_v34 = vadd.f32 %v2136_v18, %v2135_v54  ;;  %v1497_v12 = vadd.f32 %v2874_v21, %v1384_v1 }
 0x207   : > { %2251 = vpow2.f32 %v1690_v48  ;;  %v1554_v55 = vmul.f32 1.442695, %v1549_v17  ;;  %v1687_v9 = vsub.f32 %v2853_v44, %v1683_v4  ;;  %v1578_v27 = vmul.f32 1.442695, %v1573_v40 }
 0x208   : > { %2253 = vpow2.f32 %v1714_v32  ;;  %v1711_v50 = vsub.f32 %v2890_v15, %v1683_v4  ;;  %v2073_v39 = vadd.f32 %v2072_v41, %v2071_v29  ;;  %v1602_v46 = vmul.f32 1.442695, %v1597_v3 }
 0x209   : > { %2255 = vpow2.f32 %v1738_v5  ;;  %v1735_v58 = vsub.f32 %v2914_v35, %v1683_v4  ;;  %v2959_v60 = vmax.f32 %v1500_v8, 0.0  ;;  %v1626_v36 = vmul.f32 1.442695, %v1621_v23 }
 0x20a   : > { %2257 = vpow2.f32 %v1762_v16  ;;  %v1759_v54 = vsub.f32 %v1679_v38, %v1683_v4  ;;  %v1274_v42 = vadd.f32 %v2137_v34, %v2073_v39  ;;  %v1538_v44 = vmax.f32 %v1530_v56, %v2936_v37 }
 0x20b   : > { %2259 = vpow2.f32 %v1554_v55  ;;  %v1692_v21 = vmul.f32 1.442695, %v1687_v9  ;;  %v1542_v15 = vmul.f32 %v2802_v11, %v2959_v60  ;;  %v1676_v35 = vmax.f32 %v1668_v59, %v2948_v7 }
 0x20c   : > { %2261 = vpow2.f32 %v1578_v27  ;;  %v1716_v1 = vmul.f32 1.442695, %v1711_v50  ;;  %v2973_v28 = vmul.f32 %v2809_v14, %v2959_v60  ;;  %v2977_v33 = vmul.f32 %v2802_v11, %v2928_v22 }
 0x20d   : > { %2263 = vpow2.f32 %v1602_v46  ;;  %v1740_v56 = vmul.f32 1.442695, %v1735_v58  ;;  %v1546_v29 = vmax.f32 %v1538_v44, %v1542_v15  ;;  %v1764_v53 = vmul.f32 1.442695, %v1759_v54 }
 0x20e   : > { %2265 = vpow2.f32 %v1626_v36  ;;  %v2980_v24 = vmax.f32 %v1676_v35, %v2973_v28  ;;  %v1388_v59 = vmul.f32 %v2797_v6, %v1274_v42  ;;  %v2988_v32 = vmul.f32 %v2809_v14, %v2928_v22 }
 0x20f   : > { %2267 = vpow2.f32 %v1692_v21  ;;  %v1550_v19 = vsub.f32 %v2857_v45, %v1546_v29  ;;  %v1574_v38 = vsub.f32 %v2894_v51, %v1546_v29  ;;  %v1598_v62 = vsub.f32 %v2936_v37, %v1546_v29  ;;  %v1484_v51 = vpop.permute.xlu0 %1483 }
 0x210   : > { %v2244_v48 = vpop.eup %2243  ;;  %v2990_v49 = vmax.f32 %v1497_v12, 0.0  ;;  %2269 = vpow2.f32 %v1716_v1  ;;  %v1622_v18 = vsub.f32 %v1542_v15, %v1546_v29  ;;  %v1688_v45 = vsub.f32 %v2866_v61, %v2980_v24 }
 0x211   : > { %v2246_v5 = vpop.eup %2245  ;;  %2271 = vpow2.f32 %v1740_v56  ;;  %v1556_v4 = vmul.f32 1.442695, %v1550_v19  ;;  %v1580_v6 = vmul.f32 1.442695, %v1574_v38  ;;  %v2996_v37 = vmul.f32 %v2809_v14, %v2834_v30 }
 0x212   : > { %v2248_v8 = vpop.eup %2247  ;;  %v1592_v17 = vadd.f32 %v2246_v5, %v2244_v48  ;;  %2273 = vpow2.f32 %v1764_v53  ;;  %v1604_v40 = vmul.f32 1.442695, %v1598_v62  ;;  %v1628_v41 = vmul.f32 1.442695, %v1622_v18 }
 0x213   : > { %v2250_v3 = vpop.eup %2249  ;;  %2275 = vpow2.f32 %v1556_v4  ;;  %v1712_v16 = vsub.f32 %v2900_v57, %v2980_v24  ;;  %v1501_v23 = vadd.f32 %v1484_v51, %v1388_v59  ;;  %v1531_v61 = vmax.f32 %v2870_v63, %v2977_v33 }
 0x214   : > { %v2252_v34 = vpop.eup %2251  ;;  %v1616_v12 = vadd.f32 %v2248_v8, %v1592_v17  ;;  %2277 = vpow2.f32 %v1580_v6  ;;  %v1669_v9 = vmax.f32 %v2996_v37, %v2988_v32  ;;  %v3006_v27 = vmul.f32 %v2802_v11, %v2990_v49 }
 0x215   : > { %v2254_v55 = vpop.eup %2253  ;;  %v1694_v50 = vmul.f32 1.442695, %v1688_v45  ;;  %v1736_v39 = vsub.f32 %v2948_v7, %v2980_v24  ;;  %v3012_v46 = vmul.f32 %v2809_v14, %v2990_v49  ;;  %2279 = vpow2.f32 %v1604_v40 }
 0x216   : > { %v2256_v57 = vpop.eup %2255  ;;  %v1640_v58 = vadd.f32 %v2250_v3, %v1616_v12  ;;  %v1730_v36 = vadd.f32 %v2254_v55, %v2252_v34  ;;  %2281 = vpow2.f32 %v1628_v41  ;;  %v1718_v42 = vmul.f32 1.442695, %v1712_v16 }
 0x217   : > { %v2258_v54 = vpop.eup %2257  ;;  %v1760_v44 = vsub.f32 %v2973_v28, %v2980_v24  ;;  %v3016_v21 = vmax.f32 %v1501_v23, 0.0  ;;  %v1560_v35 = vmul.f32 %v2244_v48, %v2806_v13  ;;  %v1584_v7 = vmul.f32 %v2246_v5, %v2813_v47 }
 0x218   : > { %v2260_v15 = vpop.eup %2259  ;;  %2283 = vrcp.f32 %v1640_v58  ;;  %v1754_v1 = vadd.f32 %v2256_v57, %v1730_v36  ;;  %v1698_v29 = vmul.f32 %v2252_v34, %v2806_v13  ;;  %v1722_v53 = vmul.f32 %v2254_v55, %v2813_v47 }
 0x219   : > { %v2262_v56 = vpop.eup %2261  ;;  %2285 = vpow2.f32 %v1694_v50  ;;  %v1742_v59 = vmul.f32 1.442695, %v1736_v39  ;;  %v1539_v38 = vmax.f32 %v1531_v61, %v3006_v27  ;;  %v1677_v18 = vmax.f32 %v1669_v9, %v3012_v46 }
 0x21a   : > { %v2264_v19 = vpop.eup %2263  ;;  %v1778_v28 = vadd.f32 %v2258_v54, %v1754_v1  ;;  %v1593_v24 = vadd.f32 %v2262_v56, %v2260_v15  ;;  %2287 = vpow2.f32 %v1718_v42  ;;  %v1766_v48 = vmul.f32 1.442695, %v1760_v44 }
 0x21b   : > { %v2266_v62 = vpop.eup %2265  ;;  %v1543_v5 = vmul.f32 %v2802_v11, %v3016_v21  ;;  %v1588_v6 = vadd.f32 %v1584_v7, %v1560_v35  ;;  %v1608_v13 = vmul.f32 %v2248_v8, %v2845_v26  ;;  %v1632_v51 = vmul.f32 %v2250_v3, %v2909_v0 }
 0x21c   : > { %v2268_v4 = vpop.eup %2267  ;;  %2289 = vrcp.f32 %v1778_v28  ;;  %v1617_v47 = vadd.f32 %v2264_v19, %v1593_v24  ;;  %v1726_v17 = vadd.f32 %v1722_v53, %v1698_v29  ;;  %v1561_v16 = vmul.f32 %v2260_v15, %v2817_v43 }
 0x21d   : > { %v2270_v45 = vpop.eup %2269  ;;  %2291 = vpow2.f32 %v1742_v59  ;;  %v1547_v40 = vmax.f32 %v1539_v38, %v1543_v5  ;;  %v1585_v23 = vmul.f32 %v2262_v56, %v2822_v31  ;;  %v1746_v8 = vmul.f32 %v2256_v57, %v2845_v26 }
 0x21e   : > { %v2272_v41 = vpop.eup %2271  ;;  %v1641_v34 = vadd.f32 %v2266_v62, %v1617_v47  ;;  %v1731_v61 = vadd.f32 %v2270_v45, %v2268_v4  ;;  %2293 = vpow2.f32 %v1766_v48  ;;  %v1612_v9 = vadd.f32 %v1608_v13, %v1588_v6 }
 0x21f   : > { %v3030_v11 = vpop.eup %2273  ;;  %v1551_v12 = vsub.f32 %v2870_v63, %v1547_v40  ;;  %v1575_v3 = vsub.f32 %v2977_v33, %v1547_v40  ;;  %v1770_v50 = vmul.f32 %v2258_v54, %v2909_v0  ;;  %v1750_v36 = vadd.f32 %v1746_v8, %v1726_v17 }
 0x220   : > { %v2276_v55 = vpop.eup %2275  ;;  %2295 = vrcp.f32 %v1641_v34  ;;  %v1755_v39 = vadd.f32 %v2272_v41, %v1731_v61  ;;  %v1681_v15 = vmul.f32 %v2809_v14, %v3016_v21  ;;  %v1589_v26 = vadd.f32 %v1585_v23, %v1561_v16 }
 0x221   : > { %v2278_v58 = vpop.eup %2277  ;;  %v1558_v42 = vmul.f32 1.442695, %v1551_v12  ;;  %v1582_v44 = vmul.f32 1.442695, %v1575_v3  ;;  %v1699_v57 = vmul.f32 %v2268_v4, %v2817_v43  ;;  %v1723_v7 = vmul.f32 %v2270_v45, %v2822_v31 }
 0x222   : > { %v1779_v63 = vadd.f32 %v3030_v11, %v1755_v39  ;;  %v1594_v33 = vadd.f32 %v2278_v58, %v2276_v55  ;;  %v2280_v35 = vpop.eup %2279  ;;  %v1599_v0 = vsub.f32 %v3006_v27, %v1547_v40  ;;  %v1623_v54 = vsub.f32 %v1543_v5, %v1547_v40 }
 0x223   : > { %2297 = vpow2.f32 %v1558_v42  ;;  %v3043_v1 = vpop.eup %2281  ;;  %v1636_v56 = vadd.f32 %v1632_v51, %v1612_v9  ;;  %v1609_v29 = vmul.f32 %v2264_v19, %v2883_v10  ;;  %v1774_v43 = vadd.f32 %v1770_v50, %v1750_v36 }
 0x224   : > { %2299 = vrcp.f32 %v1779_v63  ;;  %v1618_v14 = vadd.f32 %v2280_v35, %v1594_v33  ;;  %v1606_v31 = vmul.f32 1.442695, %v1599_v0  ;;  %v1630_v59 = vmul.f32 1.442695, %v1623_v54 }
 0x225   : > { %v2284_v53 = vpop.eup %2283  ;;  %2301 = vpow2.f32 %v1582_v44  ;;  %v1633_v28 = vmul.f32 %v2266_v62, %v2930_v20  ;;  %v1685_v19 = vmax.f32 %v1677_v18, %v1681_v15  ;;  %v1613_v48 = vadd.f32 %v1609_v29, %v1589_v26 }
 0x226   : > { %v2286_v27 = vpop.eup %2285  ;;  %v1648_v38 = vmul.f32 %v2284_v53, %v1636_v56  ;;  %v1642_v24 = vadd.f32 %v3043_v1, %v1618_v14  ;;  %v1727_v5 = vadd.f32 %v1723_v7, %v1699_v57  ;;  %v1562_v4 = vmul.f32 %v2276_v55, %v2820_v52 }
 0x227   : > { %2303 = vpow2.f32 %v1606_v31  ;;  %v2288_v6 = vpop.eup %2287  ;;  %v1586_v13 = vmul.f32 %v2278_v58, %v2872_v2  ;;  %v1689_v47 = vsub.f32 %v2996_v37, %v1685_v19  ;;  %v1713_v45 = vsub.f32 %v2988_v32, %v1685_v19 }
 0x228   : > { %1652 = vst [vmem:[%s3049_s18] sm:$0xff] %v1648_v38  ;;  %2305 = vrcp.f32 %v1642_v24  ;;  %v1747_v62 = vmul.f32 %v2272_v41, %v2883_v10  ;;  %v1732_v17 = vadd.f32 %v2288_v6, %v2286_v27  ;;  %v1737_v18 = vsub.f32 %v3012_v46, %v1685_v19 }
 0x229   : > { %v2290_v51 = vpop.eup %2289  ;;  %2307 = vpow2.f32 %v1630_v59  ;;  %v1696_v23 = vmul.f32 1.442695, %v1689_v47  ;;  %v1720_v34 = vmul.f32 1.442695, %v1713_v45  ;;  %v1761_v61 = vsub.f32 %v1681_v15, %v1685_v19 }
 0x22a   : > { %v2292_v40 = vpop.eup %2291  ;;  %v1786_v16 = vmul.f32 %v2290_v51, %v1774_v43  ;;  %v1744_v12 = vmul.f32 1.442695, %v1737_v18  ;;  %v1637_v55 = vadd.f32 %v1633_v28, %v1613_v48  ;;  %v1751_v37 = vadd.f32 %v1747_v62, %v1727_v5 }
 0x22b   : > { %v1756_v8 = vadd.f32 %v2292_v40, %v1732_v17  ;;  %v2294_v3 = vpop.eup %2293  ;;  %v1590_v32 = vadd.f32 %v1586_v13, %v1562_v4  ;;  %2309 = vpow2.f32 %v1696_v23  ;;  %v1768_v41 = vmul.f32 1.442695, %v1761_v61 }
 0x22c   : > { %2002 = vst [vmem:[%s3049_s18 + $0x20] sm:$0xff] %v1786_v16  ;;  %2311 = vpow2.f32 %v1720_v34  ;;  %v1771_v46 = vmul.f32 %v3030_v11, %v2930_v20  ;;  %v1610_v39 = vmul.f32 %v2280_v35, %v2916_v25  ;;  %v1700_v58 = vmul.f32 %v2286_v27, %v2820_v52 }
 0x22d   : > { %v2296_v9 = vpop.eup %2295  ;;  %v1780_v10 = vadd.f32 %v2294_v3, %v1756_v8  ;;  %2313 = vpow2.f32 %v1744_v12  ;;  %v1724_v36 = vmul.f32 %v2288_v6, %v2872_v2  ;;  %v1634_v20 = vmul.f32 %v3043_v1, %v2959_v60 }
 0x22e   : > { %v1649_v50 = vmul.f32 %v2296_v9, %v1637_v55  ;;  %v1775_v44 = vadd.f32 %v1771_v46, %v1751_v37  ;;  %v1614_v15 = vadd.f32 %v1610_v39, %v1590_v32  ;;  %v1748_v2 = vmul.f32 %v2292_v40, %v2916_v25 }
 0x22f   : > { %2315 = vrcp.f32 %v1780_v10  ;;  %v1728_v11 = vadd.f32 %v1724_v36, %v1700_v58  ;;  %v1772_v43 = vmul.f32 %v2294_v3, %v2959_v60 }
 0x230   : > { %v2298_v42 = vpop.eup %2297  ;;  %1653 = vst [vmem:[%s3049_s18 + $0x8] sm:$0xff] %v1649_v50  ;;  %2317 = vpow2.f32 %v1768_v41  ;;  %v1638_v52 = vadd.f32 %v1634_v20, %v1614_v15 }
 0x231   : > { %v2300_v26 = vpop.eup %2299  ;;  %v1752_v29 = vadd.f32 %v1748_v2, %v1728_v11  ;;  %v1563_v1 = vmul.f32 %v2298_v42, %v2834_v30 }
 0x232   : > { %v2302_v57 = vpop.eup %2301  ;;  %v1787_v63 = vmul.f32 %v2300_v26, %v1775_v44 }
 0x233   : > { %v1595_v33 = vadd.f32 %v2302_v57, %v2298_v42  ;;  %v1587_v31 = vmul.f32 %v2302_v57, %v2928_v22  ;;  %v1776_v38 = vadd.f32 %v1772_v43, %v1752_v29 }
 0x234   : > { %v2304_v35 = vpop.eup %2303  ;;  %2003 = vst [vmem:[%s3049_s18 + $0x28] sm:$0xff] %v1787_v63 }
 0x235   : > { %v2306_v7 = vpop.eup %2305  ;;  %v1619_v0 = vadd.f32 %v2304_v35, %v1595_v33  ;;  %v1591_v19 = vadd.f32 %v1587_v31, %v1563_v1  ;;  %v1611_v4 = vmul.f32 %v2304_v35, %v2990_v49 }
 0x236   : > { %v2308_v54 = vpop.eup %2307  ;;  %v1650_v56 = vmul.f32 %v2306_v7, %v1638_v52 }
 0x237   : > { %v1643_v14 = vadd.f32 %v2308_v54, %v1619_v0  ;;  %v1615_v60 = vadd.f32 %v1611_v4, %v1591_v19  ;;  %v1635_v45 = vmul.f32 %v2308_v54, %v3016_v21 }
 0x238   : > { %1654 = vst [vmem:[%s3049_s18 + $0x10] sm:$0xff] %v1650_v56  ;;  %v2310_v53 = vpop.eup %2309 }
 0x239   : > { %2319 = vrcp.f32 %v1643_v14  ;;  %v2312_v59 = vpop.eup %2311  ;;  %v1701_v13 = vmul.f32 %v2310_v53, %v2834_v30  ;;  %v1639_v51 = vadd.f32 %v1635_v45, %v1615_v60 }
 0x23a   : > { %v2314_v27 = vpop.eup %2313  ;;  %v1733_v28 = vadd.f32 %v2312_v59, %v2310_v53  ;;  %v1725_v47 = vmul.f32 %v2312_v59, %v2928_v22 }
 0x23b   : > { %v1749_v40 = vmul.f32 %v2314_v27, %v2990_v49 }
 0x23c   : > { %v2316_v25 = vpop.eup %2315  ;;  %v1757_v48 = vadd.f32 %v2314_v27, %v1733_v28  ;;  %v1729_v62 = vadd.f32 %v1725_v47, %v1701_v13 }
 0x23d   : > { %v1788_v24 = vmul.f32 %v2316_v25, %v1776_v38  ;;  %v2318_v5 = vpop.eup %2317 }
 0x23e   : > { %v1781_v6 = vadd.f32 %v2318_v5, %v1757_v48  ;;  %v1753_v16 = vadd.f32 %v1749_v40, %v1729_v62  ;;  %v1773_v23 = vmul.f32 %v2318_v5, %v3016_v21 }
 0x23f   : > { %2004 = vst [vmem:[%s3049_s18 + $0x30] sm:$0xff] %v1788_v24 }
 0x240   : > { %2321 = vrcp.f32 %v1781_v6  ;;  %v1777_v34 = vadd.f32 %v1773_v23, %v1753_v16 }
 0x246   : > { %v2320_v17 = vpop.eup %2319 }
 0x247   : > { %v1651_v18 = vmul.f32 %v2320_v17, %v1639_v51 }
 0x249   : > { %1655 = vst [vmem:[%s3049_s18 + $0x18] sm:$0xff] %v1651_v18 }
 0x24d   : > { %v2322_v61 = vpop.eup %2321 }
 0x24e   : > { %v1789_v8 = vmul.f32 %v2322_v61, %v1777_v34 }
 0x250   : > { %2005 = vst [vmem:[%s3049_s18 + $0x38] sm:$0xff] %v1789_v8 }
 0x251 PF: > { %s15_s15 = sadd.s32 1, %s2348_s15  }
 0x252   : > { %p12_p1 = scmp.ge.s32.totalorder %s15_s15, 4  }
 0x254   :  { %14 = sbr.rel (!%p12_p1) target bundleno = 1 (0x1), region = 76 }
 0x259   :  { %1816 = vsyncpa [#allocation4], 1 }
 0x25a   :  { %1818 = vsyncpa [#allocation4 + $0x1], 1 }

// kernel: simple_cnn_forward.5
= control target key start
LH: loop header
LB: loop body
LE: loop exit
PB: predicated region body
PF: predicated region fallthrough
CT: control target
= control target key end

     0   :  { %v52_v28 = vlaneseq  ;;  %v7616_v36 = vmov 1983009808   ;;  %s9289_s0 = inlined_call_operand.vmem [shape: f32[2,8192], index: 0, kind: input, shape index: {}]   ;;  %s9290_s1 = inlined_call_operand.vmem [shape: bf16[8192,10], index: 1, kind: input, shape index: {}]   ;;  %s9291_s2 = inlined_call_operand.vmem [shape: f32[1,10], index: 2, kind: input, shape index: {}]   ;;  %s9292_s3 = inlined_call_operand.hbm [shape: f32[2,10], index: 3, kind: output, shape index: {}]  }
   0x1   :  { %v7066_v0 = vld [vmem:[%s9290_s1 + $0x78] sm:$0xff]   ;;  %v7070_v4 = vld [vmem:[%s9290_s1 + $0x70] sm:$0xff]   ;;  %v7074_v8 = vld [vmem:[%s9290_s1 + $0x68] sm:$0xff]   ;;  %v50_v37 = vunpack.c.l.s4 %v7616_v36 }
   0x2   :  { %v7067_v1 = vld [vmem:[%s9290_s1 + $0xf8] sm:$0xff]   ;;  %6360 = vmatprep.subr.bf16.mxu0 %v7066_v0  ;;  %v7071_v5 = vld [vmem:[%s9290_s1 + $0xf0] sm:$0xff]   ;;  %v7075_v9 = vld [vmem:[%s9290_s1 + $0xe8] sm:$0xff]   ;;  %v53_v33 = vshrl.u32 %v52_v28, 7 }
   0x3   :  { %v7068_v2 = vld [vmem:[%s9290_s1 + $0x38] sm:$0xff]   ;;  %6382 = vmatprep.subr.bf16.mxu1 %v7067_v1  ;;  %v7072_v6 = vld [vmem:[%s9290_s1 + $0x30] sm:$0xff]   ;;  %v7076_v10 = vld [vmem:[%s9290_s1 + $0x28] sm:$0xff]   ;;  %v51_v39 = vunpack.c.0.s8 %v50_v37 }
   0x4   :  { %v7069_v3 = vld [vmem:[%s9290_s1 + $0xb8] sm:$0xff]   ;;  %6361 = vmatpush3.bf16.msra.mxu0 %v7068_v2  ;;  %v7073_v7 = vld [vmem:[%s9290_s1 + $0xb0] sm:$0xff]   ;;  %v7077_v11 = vld [vmem:[%s9290_s1 + $0xa8] sm:$0xff]  }
   0x5   :  { %6383 = vmatpush3.bf16.msra.mxu1 %v7069_v3  ;;  %6362 = vmatprep.subr.bf16.mxu0 %v7070_v4  ;;  %v7078_v12 = vld [vmem:[%s9290_s1 + $0x60] sm:$0xff]   ;;  %v7082_v16 = vld [vmem:[%s9290_s1 + $0x58] sm:$0xff]   ;;  %v7086_v20 = vld [vmem:[%s9290_s1 + $0x50] sm:$0xff]   ;;  %v7743_v41 = vsub.s32 %v51_v39, %v53_v33 }
   0x6   :  { %6384 = vmatprep.subr.bf16.mxu1 %v7071_v5  ;;  %v7079_v13 = vld [vmem:[%s9290_s1 + $0xe0] sm:$0xff]   ;;  %v7083_v17 = vld [vmem:[%s9290_s1 + $0xd8] sm:$0xff]   ;;  %v7087_v21 = vld [vmem:[%s9290_s1 + $0xd0] sm:$0xff]  }
   0x7   :  { %v7080_v14 = vld [vmem:[%s9290_s1 + $0x20] sm:$0xff]   ;;  %v7084_v18 = vld [vmem:[%s9290_s1 + $0x18] sm:$0xff]   ;;  %v7088_v22 = vld [vmem:[%s9290_s1 + $0x10] sm:$0xff]  }
   0x8   :  { %6363 = vmatpush3.bf16.msra.mxu0 %v7072_v6  ;;  %v7081_v15 = vld [vmem:[%s9290_s1 + $0xa0] sm:$0xff]   ;;  %v7085_v19 = vld [vmem:[%s9290_s1 + $0x98] sm:$0xff]   ;;  %v7089_v23 = vld [vmem:[%s9290_s1 + $0x90] sm:$0xff]  }
   0x9   :  { %6385 = vmatpush3.bf16.msra.mxu1 %v7073_v7  ;;  %6364 = vmatprep.subr.bf16.mxu0 %v7074_v8  ;;  %v7090_v24 = vld [vmem:[%s9290_s1 + $0x48] sm:$0xff]   ;;  %v7094_v29 = vld [vmem:[%s9290_s1 + $0x40] sm:$0xff]   ;;  %v7099_v35 = vld [vmem:[%s9290_s1 + $0x178] sm:$0xff]  }
   0xa   :  { %6386 = vmatprep.subr.bf16.mxu1 %v7075_v9  ;;  %v7091_v25 = vld [vmem:[%s9290_s1 + $0xc8] sm:$0xff]   ;;  %v7095_v30 = vld [vmem:[%s9290_s1 + $0xc0] sm:$0xff]   ;;  %v7100_v38 = vld [vmem:[%s9290_s1 + $0x1f8] sm:$0xff]  }
   0xb   :  { %v7092_v26 = vld [vmem:[%s9290_s1 + $0x8] sm:$0xff]   ;;  %v7096_v31 = vld [vmem:[%s9290_s1] sm:$0xff]   ;;  %v7101_v46 = vld [vmem:[%s9290_s1 + $0x138] sm:$0xff]  }
   0xc   :  { %6365 = vmatpush3.bf16.msra.mxu0 %v7076_v10  ;;  %v7093_v27 = vld [vmem:[%s9290_s1 + $0x88] sm:$0xff]   ;;  %v7097_v32 = vld [vmem:[%s9290_s1 + $0x80] sm:$0xff]   ;;  %v7102_v49 = vld [vmem:[%s9290_s1 + $0x1b8] sm:$0xff]  }
   0xd   :  { %6387 = vmatpush3.bf16.msra.mxu1 %v7077_v11  ;;  %6366 = vmatprep.subr.bf16.mxu0 %v7078_v12  ;;  %v16_v34 = vld [vmem:[%s9289_s0] sm:$0xff]  ;;  %v7103_v52 = vld [vmem:[%s9290_s1 + $0x170] sm:$0xff]   ;;  %v7107_v56 = vld [vmem:[%s9290_s1 + $0x168] sm:$0xff]  }
   0xe   :  { %6388 = vmatprep.subr.bf16.mxu1 %v7079_v13  ;;  %v48_v40 = vcombine.high %v16_v34, %v16_v34  ;;  %v55_v42 = vrot.slane %v16_v34, %v7743_v41  ;;  %v7104_v53 = vld [vmem:[%s9290_s1 + $0x1f0] sm:$0xff]   ;;  %v7108_v57 = vld [vmem:[%s9290_s1 + $0x1e8] sm:$0xff]   ;;  %v7111_v60 = vld [vmem:[%s9290_s1 + $0x160] sm:$0xff]  }
   0xf   :  { %v7105_v54 = vld [vmem:[%s9290_s1 + $0x130] sm:$0xff]   ;;  %v7109_v58 = vld [vmem:[%s9290_s1 + $0x128] sm:$0xff]   ;;  %v7112_v61 = vld [vmem:[%s9290_s1 + $0x1e0] sm:$0xff]  }
  0x10   :  { %6367 = vmatpush3.bf16.msra.mxu0 %v7080_v14  ;;  %v62_v43 = vrot.slane %v48_v40, %v7743_v41  ;;  %v63_v44 = vcombine.high %v55_v42, %v55_v42  ;;  %v384_v47 = vpack.c.bf16 %v55_v42, %v55_v42  ;;  %v7106_v55 = vld [vmem:[%s9290_s1 + $0x1b0] sm:$0xff]   ;;  %v7110_v59 = vld [vmem:[%s9290_s1 + $0x1a8] sm:$0xff]   ;;  %v7113_v62 = vld [vmem:[%s9290_s1 + $0x120] sm:$0xff]  }
  0x11   :  { %6389 = vmatpush3.bf16.msra.mxu1 %v7081_v15  ;;  %6368 = vmatprep.subr.bf16.mxu0 %v7082_v16  ;;  %v7114_v63 = vld [vmem:[%s9290_s1 + $0x1a0] sm:$0xff]   ;;  %v7115_v0 = vld [vmem:[%s9290_s1 + $0x158] sm:$0xff]   ;;  %v7119_v4 = vld [vmem:[%s9290_s1 + $0x150] sm:$0xff]  }
  0x12   :  { %6390 = vmatprep.subr.bf16.mxu1 %v7083_v17  ;;  %v64_v45 = vcombine.high %v62_v43, %v62_v43  ;;  %v386_v48 = vpack.c.bf16 %v62_v43, %v62_v43  ;;  %v385_v50 = vpack.c.bf16 %v63_v44, %v63_v44  ;;  %v7116_v1 = vld [vmem:[%s9290_s1 + $0x1d8] sm:$0xff]   ;;  %v7120_v5 = vld [vmem:[%s9290_s1 + $0x1d0] sm:$0xff]   ;;  %v7123_v8 = vld [vmem:[%s9290_s1 + $0x148] sm:$0xff]  }
  0x13   :  { %v7117_v2 = vld [vmem:[%s9290_s1 + $0x118] sm:$0xff]   ;;  %v7121_v6 = vld [vmem:[%s9290_s1 + $0x110] sm:$0xff]   ;;  %v7124_v9 = vld [vmem:[%s9290_s1 + $0x1c8] sm:$0xff]  }
  0x14   :  { %6369 = vmatpush3.bf16.msra.mxu0 %v7084_v18  ;;  %v387_v51 = vpack.c.bf16 %v64_v45, %v64_v45  ;;  %4583 = vmatprep.mubr.bf16.mxu0 %v385_v50  ;;  %v7118_v3 = vld [vmem:[%s9290_s1 + $0x198] sm:$0xff]   ;;  %v7122_v7 = vld [vmem:[%s9290_s1 + $0x190] sm:$0xff]   ;;  %v17_v10 = vld [vmem:[%s9289_s0 + $0x8] sm:$0xff] }
  0x15   :  { %6391 = vmatpush3.bf16.msra.mxu1 %v7085_v19  ;;  %6370 = vmatprep.subr.bf16.mxu0 %v7086_v20  ;;  %v7125_v11 = vld [vmem:[%s9290_s1 + $0x108] sm:$0xff]   ;;  %v72_v12 = vrot.slane %v17_v10, %v7743_v41  ;;  %v65_v13 = vcombine.high %v17_v10, %v17_v10  ;;  %v7127_v15 = vld [vmem:[%s9290_s1 + $0x140] sm:$0xff]   ;;  %v7139_v33 = vld [vmem:[%s9290_s1 + $0x2b0] sm:$0xff]  }
  0x16   :  { %6392 = vmatprep.subr.bf16.mxu1 %v7087_v21  ;;  %4623 = vmatprep.mubr.bf16.mxu1 %v387_v51  ;;  %v7126_v14 = vld [vmem:[%s9290_s1 + $0x188] sm:$0xff]   ;;  %v7128_v18 = vld [vmem:[%s9290_s1 + $0x1c0] sm:$0xff]   ;;  %v7148_v43 = vld [vmem:[%s9290_s1 + $0x258] sm:$0xff]  }
  0x17   :  { %v80_v16 = vcombine.high %v72_v12, %v72_v12  ;;  %v79_v17 = vrot.slane %v65_v13, %v7743_v41  ;;  %v7129_v19 = vld [vmem:[%s9290_s1 + $0x100] sm:$0xff]   ;;  %v7140_v34 = vld [vmem:[%s9290_s1 + $0x268] sm:$0xff]   ;;  %v7149_v44 = vld [vmem:[%s9290_s1 + $0x2d8] sm:$0xff]  }
  0x18   :  { %6371 = vmatpush3.bf16.msra.mxu0 %v7088_v22  ;;  %v7130_v22 = vld [vmem:[%s9290_s1 + $0x180] sm:$0xff]   ;;  %v7142_v36 = vld [vmem:[%s9290_s1 + $0x228] sm:$0xff]   ;;  %v7150_v45 = vld [vmem:[%s9290_s1 + $0x218] sm:$0xff]  }
  0x19   :  { %6393 = vmatpush3.bf16.msra.mxu1 %v7089_v23  ;;  %6372 = vmatprep.subr.bf16.mxu0 %v7090_v24  ;;  %v389_v20 = vpack.c.bf16 %v80_v16, %v80_v16  ;;  %v81_v21 = vcombine.high %v79_v17, %v79_v17  ;;  %v7132_v24 = vld [vmem:[%s9290_s1 + $0x278] sm:$0xff]   ;;  %v390_v28 = vpack.c.bf16 %v79_v17, %v79_v17  ;;  %v7143_v37 = vld [vmem:[%s9290_s1 + $0x2a8] sm:$0xff]   ;;  %v7145_v39 = vld [vmem:[%s9290_s1 + $0x2e0] sm:$0xff]  }
  0x1a   :  { %6394 = vmatprep.subr.bf16.mxu1 %v7091_v25  ;;  %v7133_v25 = vld [vmem:[%s9290_s1 + $0x2f8] sm:$0xff]   ;;  %v7146_v40 = vld [vmem:[%s9290_s1 + $0x220] sm:$0xff]   ;;  %v7155_v50 = vld [vmem:[%s9290_s1 + $0x290] sm:$0xff]  }
  0x1b   :  { %v391_v23 = vpack.c.bf16 %v81_v21, %v81_v21  ;;  %v7147_v42 = vld [vmem:[%s9290_s1 + $0x2a0] sm:$0xff]   ;;  %v7156_v51 = vld [vmem:[%s9290_s1 + $0x248] sm:$0xff]   ;;  %v7170_v10 = vld [vmem:[%s9290_s1 + $0x3f0] sm:$0xff]  }
  0x1c   :  { %6373 = vmatpush3.bf16.msra.mxu0 %v7092_v26  ;;  %v7134_v26 = vld [vmem:[%s9290_s1 + $0x238] sm:$0xff]   ;;  %v7173_v13 = vld [vmem:[%s9290_s1 + $0x368] sm:$0xff]   ;;  %v7177_v17 = vld [vmem:[%s9290_s1 + $0x360] sm:$0xff]  }
  0x1d   :  { %6395 = vmatpush3.bf16.msra.mxu1 %v7093_v27  ;;  %6374 = vmatprep.subr.bf16.mxu0 %v7094_v29  ;;  %v388_v27 = vpack.c.bf16 %v72_v12, %v72_v12  ;;  %v7135_v29 = vld [vmem:[%s9290_s1 + $0x2b8] sm:$0xff]   ;;  %v7172_v12 = vld [vmem:[%s9290_s1 + $0x3b0] sm:$0xff]   ;;  %v7176_v16 = vld [vmem:[%s9290_s1 + $0x3a8] sm:$0xff]  }
  0x1e   :  { %6396 = vmatprep.subr.bf16.mxu1 %v7095_v30  ;;  %v7136_v30 = vld [vmem:[%s9290_s1 + $0x270] sm:$0xff]   ;;  %v7181_v21 = vld [vmem:[%s9290_s1 + $0x358] sm:$0xff]  }
  0x20   :  { %6375 = vmatpush3.bf16.msra.mxu0 %v7096_v31  ;;  %v7137_v31 = vld [vmem:[%s9290_s1 + $0x2f0] sm:$0xff]  }
  0x21   :  { %6397 = vmatpush3.bf16.msra.mxu1 %v7097_v32  ;;  %6404 = vmatprep.subr.bf16.mxu0 %v7099_v35  ;;  %v7138_v32 = vld [vmem:[%s9290_s1 + $0x230] sm:$0xff]   ;;  %v7141_v35 = vld [vmem:[%s9290_s1 + $0x2e8] sm:$0xff]  }
  0x22   :  { %6426 = vmatprep.subr.bf16.mxu1 %v7100_v38  ;;  %v7144_v38 = vld [vmem:[%s9290_s1 + $0x260] sm:$0xff]  }
  0x23   :  { %4584 = vmatmul.mubr.bf16.vlgmr.msra.gmra.mxu0 %v384_v47  ;;  %v7152_v47 = vld [vmem:[%s9290_s1 + $0x250] sm:$0xff]  }
  0x24   :  { %4624 = vmatmul.mubr.bf16.vlgmr.msra.gmra.mxu1 %v386_v48  ;;  %6405 = vmatpush3.bf16.msra.mxu0 %v7101_v46  ;;  %v7151_v46 = vld [vmem:[%s9290_s1 + $0x298] sm:$0xff]   ;;  %v7153_v48 = vld [vmem:[%s9290_s1 + $0x2d0] sm:$0xff]  }
  0x25   :  { %6427 = vmatpush3.bf16.msra.mxu1 %v7102_v49  ;;  %6406 = vmatprep.subr.bf16.mxu0 %v7103_v52  ;;  %v7154_v49 = vld [vmem:[%s9290_s1 + $0x210] sm:$0xff]   ;;  %v7157_v52 = vld [vmem:[%s9290_s1 + $0x2c8] sm:$0xff]  }
  0x26   :  { %6428 = vmatprep.subr.bf16.mxu1 %v7104_v53  ;;  %4663 = vmatprep.mubr.bf16.mxu0 %v389_v20  ;;  %v18_v53 = vld [vmem:[%s9289_s0 + $0x10] sm:$0xff]  ;;  %v7180_v20 = vld [vmem:[%s9290_s1 + $0x3a0] sm:$0xff]  }
  0x27   :  { %4703 = vmatprep.mubr.bf16.mxu1 %v391_v23  ;;  %v7183_v23 = vld [vmem:[%s9290_s1 + $0x318] sm:$0xff]  }
  0x28   :  { %6407 = vmatpush3.bf16.msra.mxu0 %v7105_v54  ;;  %v7158_v54 = vld [vmem:[%s9290_s1 + $0x208] sm:$0xff]  }
  0x29   :  { %6429 = vmatpush3.bf16.msra.mxu1 %v7106_v55  ;;  %6408 = vmatprep.subr.bf16.mxu0 %v7107_v56  ;;  %v89_v55 = vrot.slane %v18_v53, %v7743_v41  ;;  %v82_v56 = vcombine.high %v18_v53, %v18_v53  ;;  %v7203_v53 = vld [vmem:[%s9290_s1 + $0x4f0] sm:$0xff]  }
  0x2a   :  { %6430 = vmatprep.subr.bf16.mxu1 %v7108_v57  ;;  %v7159_v57 = vld [vmem:[%s9290_s1 + $0x288] sm:$0xff]  }
  0x2c   :  { %6409 = vmatpush3.bf16.msra.mxu0 %v7109_v58  ;;  %v7160_v58 = vld [vmem:[%s9290_s1 + $0x240] sm:$0xff]  }
  0x2d   :  { %6431 = vmatpush3.bf16.msra.mxu1 %v7110_v59  ;;  %6410 = vmatprep.subr.bf16.mxu0 %v7111_v60  ;;  %v97_v59 = vcombine.high %v89_v55, %v89_v55  ;;  %v96_v60 = vrot.slane %v82_v56, %v7743_v41  ;;  %v7206_v56 = vld [vmem:[%s9290_s1 + $0x468] sm:$0xff]  }
  0x2e   :  { %6432 = vmatprep.subr.bf16.mxu1 %v7112_v61  ;;  %v7161_v61 = vld [vmem:[%s9290_s1 + $0x2c0] sm:$0xff]  }
  0x30   :  { %6411 = vmatpush3.bf16.msra.mxu0 %v7113_v62  ;;  %v7162_v62 = vld [vmem:[%s9290_s1 + $0x200] sm:$0xff]  }
  0x31   :  { %6433 = vmatpush3.bf16.msra.mxu1 %v7114_v63  ;;  %6412 = vmatprep.subr.bf16.mxu0 %v7115_v0  ;;  %v393_v63 = vpack.c.bf16 %v97_v59, %v97_v59  ;;  %v98_v0 = vcombine.high %v96_v60, %v96_v60  ;;  %v7209_v59 = vld [vmem:[%s9290_s1 + $0x4a8] sm:$0xff]  }
  0x32   :  { %6434 = vmatprep.subr.bf16.mxu1 %v7116_v1  ;;  %v7163_v1 = vld [vmem:[%s9290_s1 + $0x280] sm:$0xff]  }
  0x34   :  { %6413 = vmatpush3.bf16.msra.mxu0 %v7117_v2  ;;  %v395_v2 = vpack.c.bf16 %v98_v0, %v98_v0  ;;  %v7214_v0 = vld [vmem:[%s9290_s1 + $0x458] sm:$0xff]  }
  0x35   :  { %6435 = vmatpush3.bf16.msra.mxu1 %v7118_v3  ;;  %6414 = vmatprep.subr.bf16.mxu0 %v7119_v4  ;;  %v7165_v3 = vld [vmem:[%s9290_s1 + $0x378] sm:$0xff]  }
  0x36   :  { %6436 = vmatprep.subr.bf16.mxu1 %v7120_v5  ;;  %v7166_v4 = vld [vmem:[%s9290_s1 + $0x3f8] sm:$0xff]  }
  0x37   :  { %v7167_v5 = vld [vmem:[%s9290_s1 + $0x338] sm:$0xff]  }
  0x38   :  { %6415 = vmatpush3.bf16.msra.mxu0 %v7121_v6  ;;  %v392_v6 = vpack.c.bf16 %v89_v55, %v89_v55  ;;  %v7205_v55 = vld [vmem:[%s9290_s1 + $0x4b0] sm:$0xff]  }
  0x39   :  { %6437 = vmatpush3.bf16.msra.mxu1 %v7122_v7  ;;  %6416 = vmatprep.subr.bf16.mxu0 %v7123_v8  ;;  %v394_v7 = vpack.c.bf16 %v96_v60, %v96_v60  ;;  %v7168_v8 = vld [vmem:[%s9290_s1 + $0x3b8] sm:$0xff]   ;;  %v7210_v60 = vld [vmem:[%s9290_s1 + $0x460] sm:$0xff]  }
  0x3a   :  { %6438 = vmatprep.subr.bf16.mxu1 %v7124_v9  ;;  %v7169_v9 = vld [vmem:[%s9290_s1 + $0x370] sm:$0xff]  }
  0x3c   :  { %6417 = vmatpush3.bf16.msra.mxu0 %v7125_v11  ;;  %v7171_v11 = vld [vmem:[%s9290_s1 + $0x330] sm:$0xff]  }
  0x3d   :  { %6439 = vmatpush3.bf16.msra.mxu1 %v7126_v14  ;;  %6418 = vmatprep.subr.bf16.mxu0 %v7127_v15  ;;  %v7174_v14 = vld [vmem:[%s9290_s1 + $0x3e8] sm:$0xff]  }
  0x3e   :  { %6440 = vmatprep.subr.bf16.mxu1 %v7128_v18  ;;  %v7175_v15 = vld [vmem:[%s9290_s1 + $0x328] sm:$0xff]   ;;  %v7178_v18 = vld [vmem:[%s9290_s1 + $0x3e0] sm:$0xff]  }
  0x40   :  { %6419 = vmatpush3.bf16.msra.mxu0 %v7129_v19  ;;  %v7179_v19 = vld [vmem:[%s9290_s1 + $0x320] sm:$0xff]  }
  0x41   :  { %6441 = vmatpush3.bf16.msra.mxu1 %v7130_v22  ;;  %6448 = vmatprep.subr.bf16.mxu0 %v7132_v24  ;;  %v7182_v22 = vld [vmem:[%s9290_s1 + $0x3d8] sm:$0xff]  }
  0x42   :  { %6470 = vmatprep.subr.bf16.mxu1 %v7133_v25  ;;  %v7184_v24 = vld [vmem:[%s9290_s1 + $0x398] sm:$0xff]   ;;  %v7185_v25 = vld [vmem:[%s9290_s1 + $0x350] sm:$0xff]  }
  0x43   :  { %4664 = vmatmul.mubr.bf16.vlgmr.msra.gmra.mxu0 %v388_v27  ;;  %v7187_v27 = vld [vmem:[%s9290_s1 + $0x310] sm:$0xff]  }
  0x44   :  { %4704 = vmatmul.mubr.bf16.vlgmr.msra.gmra.mxu1 %v390_v28  ;;  %6449 = vmatpush3.bf16.msra.mxu0 %v7134_v26  ;;  %v7186_v26 = vld [vmem:[%s9290_s1 + $0x3d0] sm:$0xff]  }
  0x45   :  { %6471 = vmatpush3.bf16.msra.mxu1 %v7135_v29  ;;  %6450 = vmatprep.subr.bf16.mxu0 %v7136_v30  ;;  %v7188_v28 = vld [vmem:[%s9290_s1 + $0x390] sm:$0xff]   ;;  %v7189_v29 = vld [vmem:[%s9290_s1 + $0x348] sm:$0xff]  }
  0x46   :  { %6472 = vmatprep.subr.bf16.mxu1 %v7137_v31  ;;  %4743 = vmatprep.mubr.bf16.mxu0 %v393_v63  ;;  %v7190_v30 = vld [vmem:[%s9290_s1 + $0x3c8] sm:$0xff]   ;;  %v7213_v63 = vld [vmem:[%s9290_s1 + $0x4a0] sm:$0xff]  }
  0x47   :  { %4783 = vmatprep.mubr.bf16.mxu1 %v395_v2  ;;  %v7191_v31 = vld [vmem:[%s9290_s1 + $0x308] sm:$0xff]   ;;  %v7216_v2 = vld [vmem:[%s9290_s1 + $0x418] sm:$0xff]  }
  0x48   :  { %6451 = vmatpush3.bf16.msra.mxu0 %v7138_v32  ;;  %v19_v32 = vld [vmem:[%s9289_s0 + $0x18] sm:$0xff] }
  0x49   :  { %6473 = vmatpush3.bf16.msra.mxu1 %v7139_v33  ;;  %6452 = vmatprep.subr.bf16.mxu0 %v7140_v34  ;;  %v7192_v33 = vld [vmem:[%s9290_s1 + $0x388] sm:$0xff]   ;;  %v106_v34 = vrot.slane %v19_v32, %v7743_v41 }
  0x4a   :  { %6474 = vmatprep.subr.bf16.mxu1 %v7141_v35  ;;  %v99_v35 = vcombine.high %v19_v32, %v19_v32  ;;  %v7237_v32 = vld [vmem:[%s9290_s1 + $0x530] sm:$0xff]  }
  0x4c   :  { %6453 = vmatpush3.bf16.msra.mxu0 %v7142_v36  ;;  %v7193_v36 = vld [vmem:[%s9290_s1 + $0x340] sm:$0xff]  }
  0x4d   :  { %6475 = vmatpush3.bf16.msra.mxu1 %v7143_v37  ;;  %6454 = vmatprep.subr.bf16.mxu0 %v7144_v38  ;;  %v7194_v37 = vld [vmem:[%s9290_s1 + $0x3c0] sm:$0xff]   ;;  %v114_v38 = vcombine.high %v106_v34, %v106_v34 }
  0x4e   :  { %6476 = vmatprep.subr.bf16.mxu1 %v7145_v39  ;;  %v113_v39 = vrot.slane %v99_v35, %v7743_v41  ;;  %v7240_v35 = vld [vmem:[%s9290_s1 + $0x5e8] sm:$0xff]  }
  0x50   :  { %6455 = vmatpush3.bf16.msra.mxu0 %v7146_v40  ;;  %v7195_v40 = vld [vmem:[%s9290_s1 + $0x300] sm:$0xff]  }
  0x51   :  { %6477 = vmatpush3.bf16.msra.mxu1 %v7147_v42  ;;  %6456 = vmatprep.subr.bf16.mxu0 %v7148_v43  ;;  %v7196_v42 = vld [vmem:[%s9290_s1 + $0x380] sm:$0xff]   ;;  %v397_v43 = vpack.c.bf16 %v114_v38, %v114_v38 }
  0x52   :  { %6478 = vmatprep.subr.bf16.mxu1 %v7149_v44  ;;  %v115_v44 = vcombine.high %v113_v39, %v113_v39  ;;  %v7243_v38 = vld [vmem:[%s9290_s1 + $0x560] sm:$0xff]  }
  0x54   :  { %6457 = vmatpush3.bf16.msra.mxu0 %v7150_v45  ;;  %v7198_v45 = vld [vmem:[%s9290_s1 + $0x478] sm:$0xff]  }
  0x55   :  { %6479 = vmatpush3.bf16.msra.mxu1 %v7151_v46  ;;  %6458 = vmatprep.subr.bf16.mxu0 %v7152_v47  ;;  %v399_v46 = vpack.c.bf16 %v115_v44, %v115_v44  ;;  %v7199_v47 = vld [vmem:[%s9290_s1 + $0x4f8] sm:$0xff]  }
  0x56   :  { %6480 = vmatprep.subr.bf16.mxu1 %v7153_v48  ;;  %v7200_v48 = vld [vmem:[%s9290_s1 + $0x438] sm:$0xff]  }
  0x57   :  { %v7248_v44 = vld [vmem:[%s9290_s1 + $0x5d8] sm:$0xff]  }
  0x58   :  { %6459 = vmatpush3.bf16.msra.mxu0 %v7154_v49  ;;  %v396_v49 = vpack.c.bf16 %v106_v34, %v106_v34  ;;  %v7239_v34 = vld [vmem:[%s9290_s1 + $0x568] sm:$0xff]  }
  0x59   :  { %6481 = vmatpush3.bf16.msra.mxu1 %v7155_v50  ;;  %6460 = vmatprep.subr.bf16.mxu0 %v7156_v51  ;;  %v398_v50 = vpack.c.bf16 %v113_v39, %v113_v39  ;;  %v7201_v51 = vld [vmem:[%s9290_s1 + $0x4b8] sm:$0xff]   ;;  %v7244_v39 = vld [vmem:[%s9290_s1 + $0x5e0] sm:$0xff]  }
  0x5a   :  { %6482 = vmatprep.subr.bf16.mxu1 %v7157_v52  ;;  %v7202_v52 = vld [vmem:[%s9290_s1 + $0x470] sm:$0xff]  }
  0x5c   :  { %6461 = vmatpush3.bf16.msra.mxu0 %v7158_v54  ;;  %v7204_v54 = vld [vmem:[%s9290_s1 + $0x430] sm:$0xff]  }
  0x5d   :  { %6483 = vmatpush3.bf16.msra.mxu1 %v7159_v57  ;;  %6462 = vmatprep.subr.bf16.mxu0 %v7160_v58  ;;  %v7207_v57 = vld [vmem:[%s9290_s1 + $0x4e8] sm:$0xff]  }
  0x5e   :  { %6484 = vmatprep.subr.bf16.mxu1 %v7161_v61  ;;  %v7208_v58 = vld [vmem:[%s9290_s1 + $0x428] sm:$0xff]   ;;  %v7211_v61 = vld [vmem:[%s9290_s1 + $0x4e0] sm:$0xff]  }
  0x60   :  { %6463 = vmatpush3.bf16.msra.mxu0 %v7162_v62  ;;  %v7212_v62 = vld [vmem:[%s9290_s1 + $0x420] sm:$0xff]  }
  0x61   :  { %6485 = vmatpush3.bf16.msra.mxu1 %v7163_v1  ;;  %6492 = vmatprep.subr.bf16.mxu0 %v7165_v3  ;;  %v7215_v1 = vld [vmem:[%s9290_s1 + $0x4d8] sm:$0xff]  }
  0x62   :  { %6514 = vmatprep.subr.bf16.mxu1 %v7166_v4  ;;  %v7217_v3 = vld [vmem:[%s9290_s1 + $0x498] sm:$0xff]   ;;  %v7218_v4 = vld [vmem:[%s9290_s1 + $0x450] sm:$0xff]  }
  0x63   :  { %4744 = vmatmul.mubr.bf16.vlgmr.msra.gmra.mxu0 %v392_v6  ;;  %v7220_v6 = vld [vmem:[%s9290_s1 + $0x410] sm:$0xff]  }
  0x64   :  { %4784 = vmatmul.mubr.bf16.vlgmr.msra.gmra.mxu1 %v394_v7  ;;  %6493 = vmatpush3.bf16.msra.mxu0 %v7167_v5  ;;  %v7219_v5 = vld [vmem:[%s9290_s1 + $0x4d0] sm:$0xff]  }
  0x65   :  { %6515 = vmatpush3.bf16.msra.mxu1 %v7168_v8  ;;  %6494 = vmatprep.subr.bf16.mxu0 %v7169_v9  ;;  %v7221_v7 = vld [vmem:[%s9290_s1 + $0x490] sm:$0xff]   ;;  %v7222_v8 = vld [vmem:[%s9290_s1 + $0x448] sm:$0xff]  }
  0x66   :  { %6516 = vmatprep.subr.bf16.mxu1 %v7170_v10  ;;  %4823 = vmatprep.mubr.bf16.mxu0 %v397_v43  ;;  %v7223_v9 = vld [vmem:[%s9290_s1 + $0x4c8] sm:$0xff]   ;;  %v7247_v43 = vld [vmem:[%s9290_s1 + $0x558] sm:$0xff]  }
  0x67   :  { %4863 = vmatprep.mubr.bf16.mxu1 %v399_v46  ;;  %v7224_v10 = vld [vmem:[%s9290_s1 + $0x408] sm:$0xff]   ;;  %v7250_v46 = vld [vmem:[%s9290_s1 + $0x598] sm:$0xff]  }
  0x68   :  { %6495 = vmatpush3.bf16.msra.mxu0 %v7171_v11  ;;  %v20_v11 = vld [vmem:[%s9289_s0 + $0x20] sm:$0xff] }
  0x69   :  { %6517 = vmatpush3.bf16.msra.mxu1 %v7172_v12  ;;  %6496 = vmatprep.subr.bf16.mxu0 %v7173_v13  ;;  %v7225_v12 = vld [vmem:[%s9290_s1 + $0x488] sm:$0xff]   ;;  %v123_v13 = vrot.slane %v20_v11, %v7743_v41 }
  0x6a   :  { %6518 = vmatprep.subr.bf16.mxu1 %v7174_v14  ;;  %v116_v14 = vcombine.high %v20_v11, %v20_v11  ;;  %v7270_v11 = vld [vmem:[%s9290_s1 + $0x630] sm:$0xff]  }
  0x6c   :  { %6497 = vmatpush3.bf16.msra.mxu0 %v7175_v15  ;;  %v7226_v15 = vld [vmem:[%s9290_s1 + $0x440] sm:$0xff]  }
  0x6d   :  { %6519 = vmatpush3.bf16.msra.mxu1 %v7176_v16  ;;  %6498 = vmatprep.subr.bf16.mxu0 %v7177_v17  ;;  %v7227_v16 = vld [vmem:[%s9290_s1 + $0x4c0] sm:$0xff]   ;;  %v131_v17 = vcombine.high %v123_v13, %v123_v13 }
  0x6e   :  { %6520 = vmatprep.subr.bf16.mxu1 %v7178_v18  ;;  %v130_v18 = vrot.slane %v116_v14, %v7743_v41  ;;  %v7273_v14 = vld [vmem:[%s9290_s1 + $0x6e8] sm:$0xff]  }
  0x70   :  { %6499 = vmatpush3.bf16.msra.mxu0 %v7179_v19  ;;  %v7228_v19 = vld [vmem:[%s9290_s1 + $0x400] sm:$0xff]  }
  0x71   :  { %6521 = vmatpush3.bf16.msra.mxu1 %v7180_v20  ;;  %6500 = vmatprep.subr.bf16.mxu0 %v7181_v21  ;;  %v7229_v20 = vld [vmem:[%s9290_s1 + $0x480] sm:$0xff]   ;;  %v401_v21 = vpack.c.bf16 %v131_v17, %v131_v17 }
  0x72   :  { %6522 = vmatprep.subr.bf16.mxu1 %v7182_v22  ;;  %v132_v22 = vcombine.high %v130_v18, %v130_v18  ;;  %v7276_v17 = vld [vmem:[%s9290_s1 + $0x660] sm:$0xff]  }
  0x74   :  { %6501 = vmatpush3.bf16.msra.mxu0 %v7183_v23  ;;  %v7231_v23 = vld [vmem:[%s9290_s1 + $0x578] sm:$0xff]  }
  0x75   :  { %6523 = vmatpush3.bf16.msra.mxu1 %v7184_v24  ;;  %6502 = vmatprep.subr.bf16.mxu0 %v7185_v25  ;;  %v403_v24 = vpack.c.bf16 %v132_v22, %v132_v22  ;;  %v7232_v25 = vld [vmem:[%s9290_s1 + $0x5f8] sm:$0xff]  }
  0x76   :  { %6524 = vmatprep.subr.bf16.mxu1 %v7186_v26  ;;  %v7233_v26 = vld [vmem:[%s9290_s1 + $0x538] sm:$0xff]  }
  0x77   :  { %v7281_v22 = vld [vmem:[%s9290_s1 + $0x6d8] sm:$0xff]  }
  0x78   :  { %6503 = vmatpush3.bf16.msra.mxu0 %v7187_v27  ;;  %v400_v27 = vpack.c.bf16 %v123_v13, %v123_v13  ;;  %v7272_v13 = vld [vmem:[%s9290_s1 + $0x668] sm:$0xff]  }
  0x79   :  { %6525 = vmatpush3.bf16.msra.mxu1 %v7188_v28  ;;  %6504 = vmatprep.subr.bf16.mxu0 %v7189_v29  ;;  %v402_v28 = vpack.c.bf16 %v130_v18, %v130_v18  ;;  %v7234_v29 = vld [vmem:[%s9290_s1 + $0x5b8] sm:$0xff]   ;;  %v7277_v18 = vld [vmem:[%s9290_s1 + $0x6e0] sm:$0xff]  }
  0x7a   :  { %6526 = vmatprep.subr.bf16.mxu1 %v7190_v30  ;;  %v7235_v30 = vld [vmem:[%s9290_s1 + $0x570] sm:$0xff]  }
  0x7c   :  { %6505 = vmatpush3.bf16.msra.mxu0 %v7191_v31  ;;  %v7236_v31 = vld [vmem:[%s9290_s1 + $0x5f0] sm:$0xff]  }
  0x7d   :  { %6527 = vmatpush3.bf16.msra.mxu1 %v7192_v33  ;;  %6506 = vmatprep.subr.bf16.mxu0 %v7193_v36  ;;  %v7238_v33 = vld [vmem:[%s9290_s1 + $0x5b0] sm:$0xff]   ;;  %v7241_v36 = vld [vmem:[%s9290_s1 + $0x528] sm:$0xff]  }
  0x7e   :  { %6528 = vmatprep.subr.bf16.mxu1 %v7194_v37  ;;  %v7242_v37 = vld [vmem:[%s9290_s1 + $0x5a8] sm:$0xff]  }
  0x80   :  { %6507 = vmatpush3.bf16.msra.mxu0 %v7195_v40  ;;  %v7245_v40 = vld [vmem:[%s9290_s1 + $0x520] sm:$0xff]  }
  0x81   :  { %6529 = vmatpush3.bf16.msra.mxu1 %v7196_v42  ;;  %6536 = vmatprep.subr.bf16.mxu0 %v7198_v45  ;;  %v7246_v42 = vld [vmem:[%s9290_s1 + $0x5a0] sm:$0xff]   ;;  %v7249_v45 = vld [vmem:[%s9290_s1 + $0x518] sm:$0xff]  }
  0x82   :  { %6558 = vmatprep.subr.bf16.mxu1 %v7199_v47  ;;  %v7251_v47 = vld [vmem:[%s9290_s1 + $0x550] sm:$0xff]  }
  0x83   :  { %4824 = vmatmul.mubr.bf16.vlgmr.msra.gmra.mxu0 %v396_v49  ;;  %v7253_v49 = vld [vmem:[%s9290_s1 + $0x510] sm:$0xff]  }
  0x84   :  { %4864 = vmatmul.mubr.bf16.vlgmr.msra.gmra.mxu1 %v398_v50  ;;  %6537 = vmatpush3.bf16.msra.mxu0 %v7200_v48  ;;  %v7252_v48 = vld [vmem:[%s9290_s1 + $0x5d0] sm:$0xff]  }
  0x85   :  { %6559 = vmatpush3.bf16.msra.mxu1 %v7201_v51  ;;  %6538 = vmatprep.subr.bf16.mxu0 %v7202_v52  ;;  %v7254_v50 = vld [vmem:[%s9290_s1 + $0x590] sm:$0xff]   ;;  %v7255_v51 = vld [vmem:[%s9290_s1 + $0x548] sm:$0xff]  }
  0x86   :  { %6560 = vmatprep.subr.bf16.mxu1 %v7203_v53  ;;  %4903 = vmatprep.mubr.bf16.mxu0 %v401_v21  ;;  %v7256_v52 = vld [vmem:[%s9290_s1 + $0x5c8] sm:$0xff]   ;;  %v7280_v21 = vld [vmem:[%s9290_s1 + $0x658] sm:$0xff]  }
  0x87   :  { %4943 = vmatprep.mubr.bf16.mxu1 %v403_v24  ;;  %v7257_v53 = vld [vmem:[%s9290_s1 + $0x508] sm:$0xff]   ;;  %v7283_v24 = vld [vmem:[%s9290_s1 + $0x698] sm:$0xff]  }
  0x88   :  { %6539 = vmatpush3.bf16.msra.mxu0 %v7204_v54  ;;  %v21_v54 = vld [vmem:[%s9289_s0 + $0x28] sm:$0xff] }
  0x89   :  { %6561 = vmatpush3.bf16.msra.mxu1 %v7205_v55  ;;  %6540 = vmatprep.subr.bf16.mxu0 %v7206_v56  ;;  %v7258_v55 = vld [vmem:[%s9290_s1 + $0x588] sm:$0xff]   ;;  %v140_v56 = vrot.slane %v21_v54, %v7743_v41 }
  0x8a   :  { %6562 = vmatprep.subr.bf16.mxu1 %v7207_v57  ;;  %v133_v57 = vcombine.high %v21_v54, %v21_v54  ;;  %v7303_v54 = vld [vmem:[%s9290_s1 + $0x730] sm:$0xff]  }
  0x8c   :  { %6541 = vmatpush3.bf16.msra.mxu0 %v7208_v58  ;;  %v7259_v58 = vld [vmem:[%s9290_s1 + $0x540] sm:$0xff]  }
  0x8d   :  { %6563 = vmatpush3.bf16.msra.mxu1 %v7209_v59  ;;  %6542 = vmatprep.subr.bf16.mxu0 %v7210_v60  ;;  %v7260_v59 = vld [vmem:[%s9290_s1 + $0x5c0] sm:$0xff]   ;;  %v148_v60 = vcombine.high %v140_v56, %v140_v56 }
  0x8e   :  { %6564 = vmatprep.subr.bf16.mxu1 %v7211_v61  ;;  %v147_v61 = vrot.slane %v133_v57, %v7743_v41  ;;  %v5847_v57 = vld [vmem:[%s9291_s2] ss:$0 sm:$0xff] }
  0x90   :  { %6543 = vmatpush3.bf16.msra.mxu0 %v7212_v62  ;;  %v7261_v62 = vld [vmem:[%s9290_s1 + $0x500] sm:$0xff]  }
  0x91   :  { %6565 = vmatpush3.bf16.msra.mxu1 %v7213_v63  ;;  %6544 = vmatprep.subr.bf16.mxu0 %v7214_v0  ;;  %v7262_v63 = vld [vmem:[%s9290_s1 + $0x580] sm:$0xff]   ;;  %v405_v0 = vpack.c.bf16 %v148_v60, %v148_v60 }
  0x92   :  { %6566 = vmatprep.subr.bf16.mxu1 %v7215_v1  ;;  %v149_v1 = vcombine.high %v147_v61, %v147_v61 }
  0x94   :  { %6545 = vmatpush3.bf16.msra.mxu0 %v7216_v2  ;;  %v7264_v2 = vld [vmem:[%s9290_s1 + $0x678] sm:$0xff]  }
  0x95   :  { %6567 = vmatpush3.bf16.msra.mxu1 %v7217_v3  ;;  %6546 = vmatprep.subr.bf16.mxu0 %v7218_v4  ;;  %v407_v3 = vpack.c.bf16 %v149_v1, %v149_v1  ;;  %v7265_v4 = vld [vmem:[%s9290_s1 + $0x6f8] sm:$0xff]   ;;  %v7307_v1 = vld [vmem:[%s9290_s1 + $0x728] sm:$0xff]  }
  0x96   :  { %6568 = vmatprep.subr.bf16.mxu1 %v7219_v5  ;;  %v7266_v5 = vld [vmem:[%s9290_s1 + $0x638] sm:$0xff]  }
  0x98   :  { %6547 = vmatpush3.bf16.msra.mxu0 %v7220_v6  ;;  %v404_v6 = vpack.c.bf16 %v140_v56, %v140_v56 }
  0x99   :  { %6569 = vmatpush3.bf16.msra.mxu1 %v7221_v7  ;;  %6548 = vmatprep.subr.bf16.mxu0 %v7222_v8  ;;  %v406_v7 = vpack.c.bf16 %v147_v61, %v147_v61  ;;  %v7267_v8 = vld [vmem:[%s9290_s1 + $0x6b8] sm:$0xff]  }
  0x9a   :  { %6570 = vmatprep.subr.bf16.mxu1 %v7223_v9  ;;  %v7268_v9 = vld [vmem:[%s9290_s1 + $0x670] sm:$0xff]  }
  0x9c   :  { %6549 = vmatpush3.bf16.msra.mxu0 %v7224_v10  ;;  %v7269_v10 = vld [vmem:[%s9290_s1 + $0x6f0] sm:$0xff]  }
  0x9d   :  { %6571 = vmatpush3.bf16.msra.mxu1 %v7225_v12  ;;  %6550 = vmatprep.subr.bf16.mxu0 %v7226_v15  ;;  %v7271_v12 = vld [vmem:[%s9290_s1 + $0x6b0] sm:$0xff]   ;;  %v7274_v15 = vld [vmem:[%s9290_s1 + $0x628] sm:$0xff]  }
  0x9e   :  { %6572 = vmatprep.subr.bf16.mxu1 %v7227_v16  ;;  %v7275_v16 = vld [vmem:[%s9290_s1 + $0x6a8] sm:$0xff]  }
  0xa0   :  { %6551 = vmatpush3.bf16.msra.mxu0 %v7228_v19  ;;  %v7278_v19 = vld [vmem:[%s9290_s1 + $0x620] sm:$0xff]  }
  0xa1   :  { %6573 = vmatpush3.bf16.msra.mxu1 %v7229_v20  ;;  %6580 = vmatprep.subr.bf16.mxu0 %v7231_v23  ;;  %v7279_v20 = vld [vmem:[%s9290_s1 + $0x6a0] sm:$0xff]   ;;  %v7282_v23 = vld [vmem:[%s9290_s1 + $0x618] sm:$0xff]  }
  0xa2   :  { %6602 = vmatprep.subr.bf16.mxu1 %v7232_v25  ;;  %v7284_v25 = vld [vmem:[%s9290_s1 + $0x650] sm:$0xff]  }
  0xa3   :  { %4904 = vmatmul.mubr.bf16.vlgmr.msra.gmra.mxu0 %v400_v27  ;;  %v7286_v27 = vld [vmem:[%s9290_s1 + $0x610] sm:$0xff]  }
  0xa4   :  { %4944 = vmatmul.mubr.bf16.vlgmr.msra.gmra.mxu1 %v402_v28  ;;  %6581 = vmatpush3.bf16.msra.mxu0 %v7233_v26  ;;  %v7285_v26 = vld [vmem:[%s9290_s1 + $0x6d0] sm:$0xff]  }
  0xa5   :  { %6603 = vmatpush3.bf16.msra.mxu1 %v7234_v29  ;;  %6582 = vmatprep.subr.bf16.mxu0 %v7235_v30  ;;  %v7287_v28 = vld [vmem:[%s9290_s1 + $0x690] sm:$0xff]   ;;  %v7288_v29 = vld [vmem:[%s9290_s1 + $0x648] sm:$0xff]  }
  0xa6   :  { %6604 = vmatprep.subr.bf16.mxu1 %v7236_v31  ;;  %4983 = vmatprep.mubr.bf16.mxu0 %v405_v0  ;;  %v7289_v30 = vld [vmem:[%s9290_s1 + $0x6c8] sm:$0xff]  }
  0xa7   :  { %5023 = vmatprep.mubr.bf16.mxu1 %v407_v3  ;;  %v7290_v31 = vld [vmem:[%s9290_s1 + $0x608] sm:$0xff]  }
  0xa8   :  { %6583 = vmatpush3.bf16.msra.mxu0 %v7237_v32  ;;  %v7291_v32 = vld [vmem:[%s9290_s1 + $0x688] sm:$0xff]  }
  0xa9   :  { %6605 = vmatpush3.bf16.msra.mxu1 %v7238_v33  ;;  %6584 = vmatprep.subr.bf16.mxu0 %v7239_v34  ;;  %v22_v33 = vld [vmem:[%s9289_s0 + $0x30] sm:$0xff]  ;;  %v7292_v34 = vld [vmem:[%s9290_s1 + $0x640] sm:$0xff]  }
  0xaa   :  { %6606 = vmatprep.subr.bf16.mxu1 %v7240_v35  ;;  %v157_v35 = vrot.slane %v22_v33, %v7743_v41 }
  0xac   :  { %6585 = vmatpush3.bf16.msra.mxu0 %v7241_v36  ;;  %v150_v36 = vcombine.high %v22_v33, %v22_v33  ;;  %v7328_v33 = vld [vmem:[%s9290_s1 + $0x780] sm:$0xff]  }
  0xad   :  { %6607 = vmatpush3.bf16.msra.mxu1 %v7242_v37  ;;  %6586 = vmatprep.subr.bf16.mxu0 %v7243_v38  ;;  %v7293_v37 = vld [vmem:[%s9290_s1 + $0x6c0] sm:$0xff]   ;;  %v165_v38 = vcombine.high %v157_v35, %v157_v35 }
  0xae   :  { %6608 = vmatprep.subr.bf16.mxu1 %v7244_v39  ;;  %v164_v39 = vrot.slane %v150_v36, %v7743_v41  ;;  %v7330_v36 = vld [vmem:[%s9290_s1 + $0x878] sm:$0xff]  }
  0xb0   :  { %6587 = vmatpush3.bf16.msra.mxu0 %v7245_v40  ;;  %v7294_v40 = vld [vmem:[%s9290_s1 + $0x600] sm:$0xff]  }
  0xb1   :  { %6609 = vmatpush3.bf16.msra.mxu1 %v7246_v42  ;;  %6588 = vmatprep.subr.bf16.mxu0 %v7247_v43  ;;  %v7295_v42 = vld [vmem:[%s9290_s1 + $0x680] sm:$0xff]   ;;  %v409_v43 = vpack.c.bf16 %v165_v38, %v165_v38 }
  0xb2   :  { %6610 = vmatprep.subr.bf16.mxu1 %v7248_v44  ;;  %v166_v44 = vcombine.high %v164_v39, %v164_v39 }
  0xb4   :  { %6589 = vmatpush3.bf16.msra.mxu0 %v7249_v45  ;;  %v7297_v45 = vld [vmem:[%s9290_s1 + $0x778] sm:$0xff]  }
  0xb5   :  { %6611 = vmatpush3.bf16.msra.mxu1 %v7250_v46  ;;  %6590 = vmatprep.subr.bf16.mxu0 %v7251_v47  ;;  %v7298_v46 = vld [vmem:[%s9290_s1 + $0x7f8] sm:$0xff]   ;;  %v411_v47 = vpack.c.bf16 %v166_v44, %v166_v44  ;;  %v7334_v44 = vld [vmem:[%s9290_s1 + $0x870] sm:$0xff]  }
  0xb6   :  { %6612 = vmatprep.subr.bf16.mxu1 %v7252_v48  ;;  %v7299_v48 = vld [vmem:[%s9290_s1 + $0x738] sm:$0xff]  }
  0xb8   :  { %6591 = vmatpush3.bf16.msra.mxu0 %v7253_v49  ;;  %v408_v49 = vpack.c.bf16 %v157_v35, %v157_v35 }
  0xb9   :  { %6613 = vmatpush3.bf16.msra.mxu1 %v7254_v50  ;;  %6592 = vmatprep.subr.bf16.mxu0 %v7255_v51  ;;  %v410_v50 = vpack.c.bf16 %v164_v39, %v164_v39  ;;  %v7300_v51 = vld [vmem:[%s9290_s1 + $0x7b8] sm:$0xff]  }
  0xba   :  { %6614 = vmatprep.subr.bf16.mxu1 %v7256_v52  ;;  %v7301_v52 = vld [vmem:[%s9290_s1 + $0x770] sm:$0xff]   ;;  %v7332_v39 = vld [vmem:[%s9290_s1 + $0x838] sm:$0xff]  }
  0xbc   :  { %6593 = vmatpush3.bf16.msra.mxu0 %v7257_v53  ;;  %v7302_v53 = vld [vmem:[%s9290_s1 + $0x7f0] sm:$0xff]  }
  0xbd   :  { %6615 = vmatpush3.bf16.msra.mxu1 %v7258_v55  ;;  %6594 = vmatprep.subr.bf16.mxu0 %v7259_v58  ;;  %v7304_v58 = vld [vmem:[%s9290_s1 + $0x7b0] sm:$0xff]  }
  0xbe   :  { %6616 = vmatprep.subr.bf16.mxu1 %v7260_v59  ;;  %v7305_v59 = vld [vmem:[%s9290_s1 + $0x768] sm:$0xff]  }
  0xc0   :  { %6595 = vmatpush3.bf16.msra.mxu0 %v7261_v62  ;;  %v7306_v62 = vld [vmem:[%s9290_s1 + $0x7e8] sm:$0xff]  }
  0xc1   :  { %6617 = vmatpush3.bf16.msra.mxu1 %v7262_v63  ;;  %6624 = vmatprep.subr.bf16.mxu0 %v7264_v2 }
  0xc2   :  { %6646 = vmatprep.subr.bf16.mxu1 %v7265_v4  ;;  %v7308_v4 = vld [vmem:[%s9290_s1 + $0x7a8] sm:$0xff]  }
  0xc3   :  { %4984 = vmatmul.mubr.bf16.vlgmr.msra.gmra.mxu0 %v404_v6  ;;  %v7309_v6 = vld [vmem:[%s9290_s1 + $0x760] sm:$0xff]  }
  0xc4   :  { %5024 = vmatmul.mubr.bf16.vlgmr.msra.gmra.mxu1 %v406_v7  ;;  %6625 = vmatpush3.bf16.msra.mxu0 %v7266_v5 }
  0xc5   :  { %6647 = vmatpush3.bf16.msra.mxu1 %v7267_v8  ;;  %6626 = vmatprep.subr.bf16.mxu0 %v7268_v9  ;;  %v7310_v9 = vld [vmem:[%s9290_s1 + $0x7e0] sm:$0xff]  }
  0xc6   :  { %6648 = vmatprep.subr.bf16.mxu1 %v7269_v10  ;;  %5063 = vmatprep.mubr.bf16.mxu0 %v409_v43  ;;  %v7333_v43 = vld [vmem:[%s9290_s1 + $0x8b8] sm:$0xff]  }
  0xc7   :  { %5103 = vmatprep.mubr.bf16.mxu1 %v411_v47 }
  0xc8   :  { %6627 = vmatpush3.bf16.msra.mxu0 %v7270_v11  ;;  %v7311_v11 = vld [vmem:[%s9290_s1 + $0x720] sm:$0xff]  }
  0xc9   :  { %6649 = vmatpush3.bf16.msra.mxu1 %v7271_v12  ;;  %6628 = vmatprep.subr.bf16.mxu0 %v7272_v13  ;;  %v7312_v12 = vld [vmem:[%s9290_s1 + $0x7a0] sm:$0xff]   ;;  %v7313_v13 = vld [vmem:[%s9290_s1 + $0x758] sm:$0xff]  }
  0xca   :  { %6650 = vmatprep.subr.bf16.mxu1 %v7273_v14  ;;  %v7314_v14 = vld [vmem:[%s9290_s1 + $0x7d8] sm:$0xff]  }
  0xcc   :  { %6629 = vmatpush3.bf16.msra.mxu0 %v7274_v15  ;;  %v7315_v15 = vld [vmem:[%s9290_s1 + $0x718] sm:$0xff]  }
  0xcd   :  { %6651 = vmatpush3.bf16.msra.mxu1 %v7275_v16  ;;  %6630 = vmatprep.subr.bf16.mxu0 %v7276_v17  ;;  %v7316_v16 = vld [vmem:[%s9290_s1 + $0x798] sm:$0xff]   ;;  %v7317_v17 = vld [vmem:[%s9290_s1 + $0x750] sm:$0xff]  }
  0xce   :  { %6652 = vmatprep.subr.bf16.mxu1 %v7277_v18  ;;  %v7318_v18 = vld [vmem:[%s9290_s1 + $0x7d0] sm:$0xff]  }
  0xd0   :  { %6631 = vmatpush3.bf16.msra.mxu0 %v7278_v19  ;;  %v7319_v19 = vld [vmem:[%s9290_s1 + $0x710] sm:$0xff]  }
  0xd1   :  { %6653 = vmatpush3.bf16.msra.mxu1 %v7279_v20  ;;  %6632 = vmatprep.subr.bf16.mxu0 %v7280_v21  ;;  %v7320_v20 = vld [vmem:[%s9290_s1 + $0x790] sm:$0xff]   ;;  %v7321_v21 = vld [vmem:[%s9290_s1 + $0x748] sm:$0xff]  }
  0xd2   :  { %6654 = vmatprep.subr.bf16.mxu1 %v7281_v22  ;;  %v7322_v22 = vld [vmem:[%s9290_s1 + $0x7c8] sm:$0xff]  }
  0xd4   :  { %6633 = vmatpush3.bf16.msra.mxu0 %v7282_v23  ;;  %v7323_v23 = vld [vmem:[%s9290_s1 + $0x708] sm:$0xff]  }
  0xd5   :  { %6655 = vmatpush3.bf16.msra.mxu1 %v7283_v24  ;;  %6634 = vmatprep.subr.bf16.mxu0 %v7284_v25  ;;  %v7324_v24 = vld [vmem:[%s9290_s1 + $0x788] sm:$0xff]   ;;  %v23_v25 = vld [vmem:[%s9289_s0 + $0x38] sm:$0xff] }
  0xd6   :  { %6656 = vmatprep.subr.bf16.mxu1 %v7285_v26  ;;  %v7325_v26 = vld [vmem:[%s9290_s1 + $0x740] sm:$0xff]  }
  0xd8   :  { %6635 = vmatpush3.bf16.msra.mxu0 %v7286_v27  ;;  %v174_v27 = vrot.slane %v23_v25, %v7743_v41 }
  0xd9   :  { %6657 = vmatpush3.bf16.msra.mxu1 %v7287_v28  ;;  %6636 = vmatprep.subr.bf16.mxu0 %v7288_v29  ;;  %v167_v28 = vcombine.high %v23_v25, %v23_v25  ;;  %v7326_v29 = vld [vmem:[%s9290_s1 + $0x7c0] sm:$0xff]   ;;  %v7363_v25 = vld [vmem:[%s9290_s1 + $0x978] sm:$0xff]  }
  0xda   :  { %6658 = vmatprep.subr.bf16.mxu1 %v7289_v30  ;;  %v7327_v30 = vld [vmem:[%s9290_s1 + $0x700] sm:$0xff]  }
  0xdc   :  { %6637 = vmatpush3.bf16.msra.mxu0 %v7290_v31  ;;  %v182_v31 = vcombine.high %v174_v27, %v174_v27 }
  0xdd   :  { %6659 = vmatpush3.bf16.msra.mxu1 %v7291_v32  ;;  %6638 = vmatprep.subr.bf16.mxu0 %v7292_v34  ;;  %v181_v32 = vrot.slane %v167_v28, %v7743_v41  ;;  %v7364_v28 = vld [vmem:[%s9290_s1 + $0x9f8] sm:$0xff]  }
  0xde   :  { %6660 = vmatprep.subr.bf16.mxu1 %v7293_v37  ;;  %v413_v34 = vpack.c.bf16 %v182_v31, %v182_v31  ;;  %v7331_v37 = vld [vmem:[%s9290_s1 + $0x8f8] sm:$0xff]  }
  0xdf   :  { %v183_v35 = vcombine.high %v181_v32, %v181_v32 }
  0xe0   :  { %6639 = vmatpush3.bf16.msra.mxu0 %v7294_v40  ;;  %v412_v40 = vpack.c.bf16 %v174_v27, %v174_v27 }
  0xe1   :  { %6661 = vmatpush3.bf16.msra.mxu1 %v7295_v42  ;;  %6668 = vmatprep.subr.bf16.mxu0 %v7297_v45  ;;  %v415_v38 = vpack.c.bf16 %v183_v35, %v183_v35  ;;  %v414_v42 = vpack.c.bf16 %v181_v32, %v181_v32  ;;  %v7335_v45 = vld [vmem:[%s9290_s1 + $0x8f0] sm:$0xff]  }
  0xe2   :  { %6690 = vmatprep.subr.bf16.mxu1 %v7298_v46  ;;  %v7336_v46 = vld [vmem:[%s9290_s1 + $0x830] sm:$0xff]  }
  0xe3   :  { %v6376_v55 = vpop.f32.mrf.mxu0  ;;  %5064 = vmatmul.mubr.bf16.vlgmr.msra.gmra.mxu0 %v408_v49  ;;  %v7337_v49 = vld [vmem:[%s9290_s1 + $0x8b0] sm:$0xff]  }
  0xe4   :  { %v6398_v56 = vpop.f32.mrf.mxu1  ;;  %5104 = vmatmul.mubr.bf16.vlgmr.msra.gmra.mxu1 %v410_v50  ;;  %6669 = vmatpush3.bf16.msra.mxu0 %v7299_v48  ;;  %v7338_v50 = vld [vmem:[%s9290_s1 + $0x868] sm:$0xff]   ;;  %v7368_v35 = vld [vmem:[%s9290_s1 + $0x9f0] sm:$0xff]  }
  0xe5   :  { %6691 = vmatpush3.bf16.msra.mxu1 %v7300_v51  ;;  %v6377_v60 = vpop.f32.mrf.mxu0  ;;  %6670 = vmatprep.subr.bf16.mxu0 %v7301_v52 }
  0xe6   :  { %v6399_v61 = vpop.f32.mrf.mxu1  ;;  %6692 = vmatprep.subr.bf16.mxu1 %v7302_v53  ;;  %v6378_v63 = vadd.f32 %v6377_v60, %v6376_v55  ;;  %5143 = vmatprep.mubr.bf16.mxu0 %v413_v34  ;;  %v7339_v53 = vld [vmem:[%s9290_s1 + $0x8e8] sm:$0xff]   ;;  %v7367_v34 = vld [vmem:[%s9290_s1 + $0x970] sm:$0xff]  }
  0xe7   :  { %v6400_v0 = vadd.f32 %v6399_v61, %v6398_v56  ;;  %v6379_v2 = vpop.f32.mrf.mxu0  ;;  %5183 = vmatprep.mubr.bf16.mxu1 %v415_v38  ;;  %v7340_v56 = vld [vmem:[%s9290_s1 + $0x828] sm:$0xff]   ;;  %v7342_v61 = vld [vmem:[%s9290_s1 + $0x860] sm:$0xff]  }
  0xe8   :  { %v6401_v3 = vpop.f32.mrf.mxu1  ;;  %v4586_v5 = vadd.f32 %v6378_v63, %v5847_v57  ;;  %6671 = vmatpush3.bf16.msra.mxu0 %v7303_v54  ;;  %v7344_v2 = vld [vmem:[%s9290_s1 + $0x820] sm:$0xff]  }
  0xe9   :  { %6693 = vmatpush3.bf16.msra.mxu1 %v7304_v58  ;;  %v6380_v7 = vpop.f32.mrf.mxu0  ;;  %6672 = vmatprep.subr.bf16.mxu0 %v7305_v59  ;;  %v7341_v59 = vld [vmem:[%s9290_s1 + $0x8a8] sm:$0xff]   ;;  %v7345_v3 = vld [vmem:[%s9290_s1 + $0x8a0] sm:$0xff]  }
  0xea   :  { %v6402_v8 = vpop.f32.mrf.mxu1  ;;  %6694 = vmatprep.subr.bf16.mxu1 %v7306_v62  ;;  %v8392_v10 = vadd.f32 %v6400_v0, %v4586_v5  ;;  %v7343_v0 = vld [vmem:[%s9290_s1 + $0x8e0] sm:$0xff]   ;;  %v7347_v5 = vld [vmem:[%s9290_s1 + $0x8d8] sm:$0xff]  }
  0xeb   :  { %v7349_v7 = vld [vmem:[%s9290_s1 + $0x898] sm:$0xff]   ;;  %v7350_v8 = vld [vmem:[%s9290_s1 + $0x850] sm:$0xff]  }
  0xec   :  { %6673 = vmatpush3.bf16.msra.mxu0 %v7307_v1 }
  0xed   :  { %6695 = vmatpush3.bf16.msra.mxu1 %v7308_v4  ;;  %6674 = vmatprep.subr.bf16.mxu0 %v7309_v6  ;;  %v7346_v4 = vld [vmem:[%s9290_s1 + $0x858] sm:$0xff]  }
  0xee   :  { %6696 = vmatprep.subr.bf16.mxu1 %v7310_v9  ;;  %v7348_v6 = vld [vmem:[%s9290_s1 + $0x818] sm:$0xff]   ;;  %v7351_v9 = vld [vmem:[%s9290_s1 + $0x8d0] sm:$0xff]  }
  0xf0   :  { %6675 = vmatpush3.bf16.msra.mxu0 %v7311_v11  ;;  %v7353_v11 = vld [vmem:[%s9290_s1 + $0x890] sm:$0xff]  }
  0xf1   :  { %6697 = vmatpush3.bf16.msra.mxu1 %v7312_v12  ;;  %6676 = vmatprep.subr.bf16.mxu0 %v7313_v13  ;;  %v7354_v12 = vld [vmem:[%s9290_s1 + $0x848] sm:$0xff]  }
  0xf2   :  { %6698 = vmatprep.subr.bf16.mxu1 %v7314_v14  ;;  %v7355_v13 = vld [vmem:[%s9290_s1 + $0x8c8] sm:$0xff]  }
  0xf3   :  { %v7356_v14 = vld [vmem:[%s9290_s1 + $0x808] sm:$0xff]  }
  0xf4   :  { %6677 = vmatpush3.bf16.msra.mxu0 %v7315_v15  ;;  %v7357_v15 = vld [vmem:[%s9290_s1 + $0x888] sm:$0xff]  }
  0xf5   :  { %6699 = vmatpush3.bf16.msra.mxu1 %v7316_v16  ;;  %6678 = vmatprep.subr.bf16.mxu0 %v7317_v17  ;;  %v7358_v16 = vld [vmem:[%s9290_s1 + $0x840] sm:$0xff]  }
  0xf6   :  { %6700 = vmatprep.subr.bf16.mxu1 %v7318_v18  ;;  %v24_v17 = vld [vmem:[%s9289_s0 + $0x40] sm:$0xff] }
  0xf7   :  { %v7359_v18 = vld [vmem:[%s9290_s1 + $0x8c0] sm:$0xff]  }
  0xf8   :  { %6679 = vmatpush3.bf16.msra.mxu0 %v7319_v19  ;;  %v191_v19 = vrot.slane %v24_v17, %v7743_v41 }
  0xf9   :  { %6701 = vmatpush3.bf16.msra.mxu1 %v7320_v20  ;;  %6680 = vmatprep.subr.bf16.mxu0 %v7321_v21  ;;  %v184_v20 = vcombine.high %v24_v17, %v24_v17  ;;  %v7360_v21 = vld [vmem:[%s9290_s1 + $0x800] sm:$0xff]  }
  0xfa   :  { %6702 = vmatprep.subr.bf16.mxu1 %v7322_v22  ;;  %v7361_v22 = vld [vmem:[%s9290_s1 + $0x880] sm:$0xff]   ;;  %v416_v31 = vpack.c.bf16 %v191_v19, %v191_v19 }
  0xfc   :  { %6681 = vmatpush3.bf16.msra.mxu0 %v7323_v23  ;;  %v199_v23 = vcombine.high %v191_v19, %v191_v19  ;;  %v7397_v19 = vld [vmem:[%s9290_s1 + $0xaf8] sm:$0xff]  }
  0xfd   :  { %6703 = vmatpush3.bf16.msra.mxu1 %v7324_v24  ;;  %6682 = vmatprep.subr.bf16.mxu0 %v7325_v26  ;;  %v198_v24 = vrot.slane %v184_v20, %v7743_v41  ;;  %v7398_v20 = vld [vmem:[%s9290_s1 + $0xa38] sm:$0xff]  }
  0xfe   :  { %6704 = vmatprep.subr.bf16.mxu1 %v7326_v29  ;;  %v417_v26 = vpack.c.bf16 %v199_v23, %v199_v23  ;;  %v7365_v29 = vld [vmem:[%s9290_s1 + $0x938] sm:$0xff]  }
  0xff   :  { %v200_v27 = vcombine.high %v198_v24, %v198_v24  ;;  %v418_v32 = vpack.c.bf16 %v198_v24, %v198_v24  ;;  %v7399_v24 = vld [vmem:[%s9290_s1 + $0xab8] sm:$0xff]  }
 0x100   :  { %6683 = vmatpush3.bf16.msra.mxu0 %v7327_v30 }
 0x101   :  { %6705 = vmatpush3.bf16.msra.mxu1 %v7328_v33  ;;  %6712 = vmatprep.subr.bf16.mxu0 %v7330_v36  ;;  %v419_v30 = vpack.c.bf16 %v200_v27, %v200_v27  ;;  %v7366_v33 = vld [vmem:[%s9290_s1 + $0x9b8] sm:$0xff]   ;;  %v7369_v36 = vld [vmem:[%s9290_s1 + $0x930] sm:$0xff]  }
 0x102   :  { %6734 = vmatprep.subr.bf16.mxu1 %v7331_v37  ;;  %v7402_v27 = vld [vmem:[%s9290_s1 + $0xa30] sm:$0xff]  }
 0x103   :  { %v6420_v47 = vpop.f32.mrf.mxu0  ;;  %5144 = vmatmul.mubr.bf16.vlgmr.msra.gmra.mxu0 %v412_v40  ;;  %v7371_v40 = vld [vmem:[%s9290_s1 + $0x968] sm:$0xff]  }
 0x104   :  { %v6442_v48 = vpop.f32.mrf.mxu1  ;;  %5184 = vmatmul.mubr.bf16.vlgmr.msra.gmra.mxu1 %v414_v42  ;;  %6713 = vmatpush3.bf16.msra.mxu0 %v7332_v39  ;;  %v7370_v39 = vld [vmem:[%s9290_s1 + $0x9b0] sm:$0xff]  }
 0x105   :  { %6735 = vmatpush3.bf16.msra.mxu1 %v7333_v43  ;;  %v6421_v51 = vpop.f32.mrf.mxu0  ;;  %6714 = vmatprep.subr.bf16.mxu0 %v7334_v44  ;;  %v7372_v44 = vld [vmem:[%s9290_s1 + $0x9e8] sm:$0xff]  }
 0x106   :  { %v6443_v52 = vpop.f32.mrf.mxu1  ;;  %6736 = vmatprep.subr.bf16.mxu1 %v7335_v45  ;;  %v6422_v54 = vadd.f32 %v6421_v51, %v6420_v47  ;;  %5223 = vmatprep.mubr.bf16.mxu0 %v417_v26  ;;  %v7373_v47 = vld [vmem:[%s9290_s1 + $0x928] sm:$0xff]   ;;  %v7401_v26 = vld [vmem:[%s9290_s1 + $0xaf0] sm:$0xff]  }
 0x107   :  { %v6444_v55 = vadd.f32 %v6443_v52, %v6442_v48  ;;  %v6423_v57 = vpop.f32.mrf.mxu0  ;;  %5263 = vmatprep.mubr.bf16.mxu1 %v419_v30  ;;  %v7375_v52 = vld [vmem:[%s9290_s1 + $0x960] sm:$0xff]   ;;  %v7403_v30 = vld [vmem:[%s9290_s1 + $0xab0] sm:$0xff]  }
 0x108   :  { %v6445_v58 = vpop.f32.mrf.mxu1  ;;  %v4666_v60 = vadd.f32 %v6422_v54, %v8392_v10  ;;  %6715 = vmatpush3.bf16.msra.mxu0 %v7336_v46  ;;  %v7352_v10 = vld [vmem:[%s9290_s1 + $0x810] sm:$0xff]   ;;  %v7377_v57 = vld [vmem:[%s9290_s1 + $0x920] sm:$0xff]  }
 0x109   :  { %6737 = vmatpush3.bf16.msra.mxu1 %v7337_v49  ;;  %v6424_v62 = vpop.f32.mrf.mxu0  ;;  %6716 = vmatprep.subr.bf16.mxu0 %v7338_v50  ;;  %v7374_v50 = vld [vmem:[%s9290_s1 + $0x9a8] sm:$0xff]   ;;  %v7378_v58 = vld [vmem:[%s9290_s1 + $0x9a0] sm:$0xff]  }
 0x10a   :  { %v6446_v63 = vpop.f32.mrf.mxu1  ;;  %6738 = vmatprep.subr.bf16.mxu1 %v7339_v53  ;;  %v8496_v1 = vadd.f32 %v6444_v55, %v4666_v60  ;;  %v7376_v55 = vld [vmem:[%s9290_s1 + $0x9e0] sm:$0xff]   ;;  %v7380_v60 = vld [vmem:[%s9290_s1 + $0x9d8] sm:$0xff]  }
 0x10b   :  { %v7382_v62 = vld [vmem:[%s9290_s1 + $0x998] sm:$0xff]   ;;  %v7383_v63 = vld [vmem:[%s9290_s1 + $0x950] sm:$0xff]  }
 0x10c   :  { %6717 = vmatpush3.bf16.msra.mxu0 %v7340_v56 }
 0x10d   :  { %6739 = vmatpush3.bf16.msra.mxu1 %v7341_v59  ;;  %6718 = vmatprep.subr.bf16.mxu0 %v7342_v61  ;;  %v7379_v59 = vld [vmem:[%s9290_s1 + $0x958] sm:$0xff]  }
 0x10e   :  { %6740 = vmatprep.subr.bf16.mxu1 %v7343_v0  ;;  %v7381_v61 = vld [vmem:[%s9290_s1 + $0x918] sm:$0xff]   ;;  %v7384_v0 = vld [vmem:[%s9290_s1 + $0x9d0] sm:$0xff]  }
 0x110   :  { %6719 = vmatpush3.bf16.msra.mxu0 %v7344_v2  ;;  %v7386_v2 = vld [vmem:[%s9290_s1 + $0x990] sm:$0xff]  }
 0x111   :  { %6741 = vmatpush3.bf16.msra.mxu1 %v7345_v3  ;;  %6720 = vmatprep.subr.bf16.mxu0 %v7346_v4  ;;  %v7387_v3 = vld [vmem:[%s9290_s1 + $0x948] sm:$0xff]  }
 0x112   :  { %6742 = vmatprep.subr.bf16.mxu1 %v7347_v5  ;;  %v7388_v4 = vld [vmem:[%s9290_s1 + $0x9c8] sm:$0xff]  }
 0x113   :  { %v7389_v5 = vld [vmem:[%s9290_s1 + $0x908] sm:$0xff]  }
 0x114   :  { %6721 = vmatpush3.bf16.msra.mxu0 %v7348_v6  ;;  %v7390_v6 = vld [vmem:[%s9290_s1 + $0x988] sm:$0xff]  }
 0x115   :  { %6743 = vmatpush3.bf16.msra.mxu1 %v7349_v7  ;;  %6722 = vmatprep.subr.bf16.mxu0 %v7350_v8  ;;  %v7391_v7 = vld [vmem:[%s9290_s1 + $0x940] sm:$0xff]   ;;  %v25_v8 = vld [vmem:[%s9289_s0 + $0x48] sm:$0xff] }
 0x116   :  { %6744 = vmatprep.subr.bf16.mxu1 %v7351_v9  ;;  %v7392_v9 = vld [vmem:[%s9290_s1 + $0x9c0] sm:$0xff]  }
 0x118   :  { %6723 = vmatpush3.bf16.msra.mxu0 %v7352_v10  ;;  %v208_v10 = vrot.slane %v25_v8, %v7743_v41 }
 0x119   :  { %6745 = vmatpush3.bf16.msra.mxu1 %v7353_v11  ;;  %6724 = vmatprep.subr.bf16.mxu0 %v7354_v12  ;;  %v201_v11 = vcombine.high %v25_v8, %v25_v8  ;;  %v7393_v12 = vld [vmem:[%s9290_s1 + $0x900] sm:$0xff]  }
 0x11a   :  { %6746 = vmatprep.subr.bf16.mxu1 %v7355_v13  ;;  %v7394_v13 = vld [vmem:[%s9290_s1 + $0x980] sm:$0xff]  }
 0x11c   :  { %6725 = vmatpush3.bf16.msra.mxu0 %v7356_v14  ;;  %v216_v14 = vcombine.high %v208_v10, %v208_v10 }
 0x11d   :  { %6747 = vmatpush3.bf16.msra.mxu1 %v7357_v15  ;;  %6726 = vmatprep.subr.bf16.mxu0 %v7358_v16  ;;  %v215_v15 = vrot.slane %v201_v11, %v7743_v41  ;;  %v7396_v16 = vld [vmem:[%s9290_s1 + $0xa78] sm:$0xff]  }
 0x11e   :  { %6748 = vmatprep.subr.bf16.mxu1 %v7359_v18  ;;  %v421_v17 = vpack.c.bf16 %v216_v14, %v216_v14  ;;  %v7431_v11 = vld [vmem:[%s9290_s1 + $0xb38] sm:$0xff]  }
 0x11f   :  { %v217_v18 = vcombine.high %v215_v15, %v215_v15  ;;  %v422_v23 = vpack.c.bf16 %v215_v15, %v215_v15  ;;  %v7432_v15 = vld [vmem:[%s9290_s1 + $0xbb8] sm:$0xff]  }
 0x120   :  { %6727 = vmatpush3.bf16.msra.mxu0 %v7360_v21 }
 0x121   :  { %6749 = vmatpush3.bf16.msra.mxu1 %v7361_v22  ;;  %6756 = vmatprep.subr.bf16.mxu0 %v7363_v25  ;;  %v423_v21 = vpack.c.bf16 %v217_v18, %v217_v18  ;;  %v420_v22 = vpack.c.bf16 %v208_v10, %v208_v10  ;;  %v7400_v25 = vld [vmem:[%s9290_s1 + $0xa70] sm:$0xff]   ;;  %v7430_v10 = vld [vmem:[%s9290_s1 + $0xbf8] sm:$0xff]  }
 0x122   :  { %6778 = vmatprep.subr.bf16.mxu1 %v7364_v28  ;;  %v7435_v18 = vld [vmem:[%s9290_s1 + $0xb30] sm:$0xff]  }
 0x123   :  { %v6464_v37 = vpop.f32.mrf.mxu0  ;;  %5224 = vmatmul.mubr.bf16.vlgmr.msra.gmra.mxu0 %v416_v31  ;;  %v7404_v31 = vld [vmem:[%s9290_s1 + $0xa68] sm:$0xff]  }
 0x124   :  { %v6486_v38 = vpop.f32.mrf.mxu1  ;;  %5264 = vmatmul.mubr.bf16.vlgmr.msra.gmra.mxu1 %v418_v32  ;;  %6757 = vmatpush3.bf16.msra.mxu0 %v7365_v29 }
 0x125   :  { %6779 = vmatpush3.bf16.msra.mxu1 %v7366_v33  ;;  %v6465_v42 = vpop.f32.mrf.mxu0  ;;  %6758 = vmatprep.subr.bf16.mxu0 %v7367_v34  ;;  %v7405_v34 = vld [vmem:[%s9290_s1 + $0xae8] sm:$0xff]  }
 0x126   :  { %v6487_v43 = vpop.f32.mrf.mxu1  ;;  %6780 = vmatprep.subr.bf16.mxu1 %v7368_v35  ;;  %v6466_v45 = vadd.f32 %v6465_v42, %v6464_v37  ;;  %5303 = vmatprep.mubr.bf16.mxu0 %v421_v17  ;;  %v7406_v37 = vld [vmem:[%s9290_s1 + $0xa28] sm:$0xff]   ;;  %v7434_v17 = vld [vmem:[%s9290_s1 + $0xbf0] sm:$0xff]  }
 0x127   :  { %v6488_v46 = vadd.f32 %v6487_v43, %v6486_v38  ;;  %v6467_v48 = vpop.f32.mrf.mxu0  ;;  %5343 = vmatprep.mubr.bf16.mxu1 %v423_v21  ;;  %v7408_v43 = vld [vmem:[%s9290_s1 + $0xa60] sm:$0xff]   ;;  %v7436_v21 = vld [vmem:[%s9290_s1 + $0xbb0] sm:$0xff]  }
 0x128   :  { %v6489_v49 = vpop.f32.mrf.mxu1  ;;  %v4746_v51 = vadd.f32 %v6466_v45, %v8496_v1  ;;  %6759 = vmatpush3.bf16.msra.mxu0 %v7369_v36  ;;  %v7385_v1 = vld [vmem:[%s9290_s1 + $0x910] sm:$0xff]   ;;  %v7410_v48 = vld [vmem:[%s9290_s1 + $0xa20] sm:$0xff]  }
 0x129   :  { %6781 = vmatpush3.bf16.msra.mxu1 %v7370_v39  ;;  %v6468_v53 = vpop.f32.mrf.mxu0  ;;  %6760 = vmatprep.subr.bf16.mxu0 %v7371_v40  ;;  %v7407_v40 = vld [vmem:[%s9290_s1 + $0xaa8] sm:$0xff]   ;;  %v7411_v49 = vld [vmem:[%s9290_s1 + $0xaa0] sm:$0xff]  }
 0x12a   :  { %v6490_v54 = vpop.f32.mrf.mxu1  ;;  %6782 = vmatprep.subr.bf16.mxu1 %v7372_v44  ;;  %v8600_v56 = vadd.f32 %v6488_v46, %v4746_v51  ;;  %v7409_v46 = vld [vmem:[%s9290_s1 + $0xae0] sm:$0xff]   ;;  %v7413_v51 = vld [vmem:[%s9290_s1 + $0xad8] sm:$0xff]  }
 0x12b   :  { %v7415_v53 = vld [vmem:[%s9290_s1 + $0xa98] sm:$0xff]   ;;  %v7416_v54 = vld [vmem:[%s9290_s1 + $0xa50] sm:$0xff]  }
 0x12c   :  { %6761 = vmatpush3.bf16.msra.mxu0 %v7373_v47 }
 0x12d   :  { %6783 = vmatpush3.bf16.msra.mxu1 %v7374_v50  ;;  %6762 = vmatprep.subr.bf16.mxu0 %v7375_v52  ;;  %v7412_v50 = vld [vmem:[%s9290_s1 + $0xa58] sm:$0xff]  }
 0x12e   :  { %6784 = vmatprep.subr.bf16.mxu1 %v7376_v55  ;;  %v7414_v52 = vld [vmem:[%s9290_s1 + $0xa18] sm:$0xff]   ;;  %v7417_v55 = vld [vmem:[%s9290_s1 + $0xad0] sm:$0xff]  }
 0x130   :  { %6763 = vmatpush3.bf16.msra.mxu0 %v7377_v57  ;;  %v7419_v57 = vld [vmem:[%s9290_s1 + $0xa90] sm:$0xff]  }
 0x131   :  { %6785 = vmatpush3.bf16.msra.mxu1 %v7378_v58  ;;  %6764 = vmatprep.subr.bf16.mxu0 %v7379_v59  ;;  %v7420_v58 = vld [vmem:[%s9290_s1 + $0xa48] sm:$0xff]  }
 0x132   :  { %6786 = vmatprep.subr.bf16.mxu1 %v7380_v60  ;;  %v7421_v59 = vld [vmem:[%s9290_s1 + $0xac8] sm:$0xff]  }
 0x133   :  { %v7422_v60 = vld [vmem:[%s9290_s1 + $0xa08] sm:$0xff]  }
 0x134   :  { %6765 = vmatpush3.bf16.msra.mxu0 %v7381_v61  ;;  %v7423_v61 = vld [vmem:[%s9290_s1 + $0xa88] sm:$0xff]  }
 0x135   :  { %6787 = vmatpush3.bf16.msra.mxu1 %v7382_v62  ;;  %6766 = vmatprep.subr.bf16.mxu0 %v7383_v63  ;;  %v7424_v62 = vld [vmem:[%s9290_s1 + $0xa40] sm:$0xff]   ;;  %v26_v63 = vld [vmem:[%s9289_s0 + $0x50] sm:$0xff] }
 0x136   :  { %6788 = vmatprep.subr.bf16.mxu1 %v7384_v0  ;;  %v7425_v0 = vld [vmem:[%s9290_s1 + $0xac0] sm:$0xff]  }
 0x138   :  { %6767 = vmatpush3.bf16.msra.mxu0 %v7385_v1  ;;  %v225_v1 = vrot.slane %v26_v63, %v7743_v41 }
 0x139   :  { %6789 = vmatpush3.bf16.msra.mxu1 %v7386_v2  ;;  %6768 = vmatprep.subr.bf16.mxu0 %v7387_v3  ;;  %v218_v2 = vcombine.high %v26_v63, %v26_v63  ;;  %v7426_v3 = vld [vmem:[%s9290_s1 + $0xa00] sm:$0xff]   ;;  %v7463_v63 = vld [vmem:[%s9290_s1 + $0xcf8] sm:$0xff]  }
 0x13a   :  { %6790 = vmatprep.subr.bf16.mxu1 %v7388_v4  ;;  %v7427_v4 = vld [vmem:[%s9290_s1 + $0xa80] sm:$0xff]  }
 0x13c   :  { %6769 = vmatpush3.bf16.msra.mxu0 %v7389_v5  ;;  %v233_v5 = vcombine.high %v225_v1, %v225_v1 }
 0x13d   :  { %6791 = vmatpush3.bf16.msra.mxu1 %v7390_v6  ;;  %6770 = vmatprep.subr.bf16.mxu0 %v7391_v7  ;;  %v232_v6 = vrot.slane %v218_v2, %v7743_v41  ;;  %v7429_v7 = vld [vmem:[%s9290_s1 + $0xb78] sm:$0xff]  }
 0x13e   :  { %6792 = vmatprep.subr.bf16.mxu1 %v7392_v9  ;;  %v425_v8 = vpack.c.bf16 %v233_v5, %v233_v5  ;;  %v7464_v2 = vld [vmem:[%s9290_s1 + $0xc38] sm:$0xff]  }
 0x13f   :  { %v234_v9 = vcombine.high %v232_v6, %v232_v6  ;;  %v426_v14 = vpack.c.bf16 %v232_v6, %v232_v6  ;;  %v7465_v5 = vld [vmem:[%s9290_s1 + $0xcb8] sm:$0xff]  }
 0x140   :  { %6771 = vmatpush3.bf16.msra.mxu0 %v7393_v12 }
 0x141   :  { %6793 = vmatpush3.bf16.msra.mxu1 %v7394_v13  ;;  %6800 = vmatprep.subr.bf16.mxu0 %v7396_v16  ;;  %v427_v12 = vpack.c.bf16 %v234_v9, %v234_v9  ;;  %v424_v13 = vpack.c.bf16 %v225_v1, %v225_v1  ;;  %v7433_v16 = vld [vmem:[%s9290_s1 + $0xb70] sm:$0xff]  }
 0x142   :  { %6822 = vmatprep.subr.bf16.mxu1 %v7397_v19  ;;  %v7468_v9 = vld [vmem:[%s9290_s1 + $0xc30] sm:$0xff]  }
 0x143   :  { %v6508_v28 = vpop.f32.mrf.mxu0  ;;  %5304 = vmatmul.mubr.bf16.vlgmr.msra.gmra.mxu0 %v420_v22  ;;  %v7437_v22 = vld [vmem:[%s9290_s1 + $0xb68] sm:$0xff]  }
 0x144   :  { %v6530_v29 = vpop.f32.mrf.mxu1  ;;  %5344 = vmatmul.mubr.bf16.vlgmr.msra.gmra.mxu1 %v422_v23  ;;  %6801 = vmatpush3.bf16.msra.mxu0 %v7398_v20 }
 0x145   :  { %6823 = vmatpush3.bf16.msra.mxu1 %v7399_v24  ;;  %v6509_v32 = vpop.f32.mrf.mxu0  ;;  %6802 = vmatprep.subr.bf16.mxu0 %v7400_v25  ;;  %v7438_v25 = vld [vmem:[%s9290_s1 + $0xbe8] sm:$0xff]  }
 0x146   :  { %v6531_v33 = vpop.f32.mrf.mxu1  ;;  %6824 = vmatprep.subr.bf16.mxu1 %v7401_v26  ;;  %v6510_v35 = vadd.f32 %v6509_v32, %v6508_v28  ;;  %5383 = vmatprep.mubr.bf16.mxu0 %v425_v8  ;;  %v7439_v28 = vld [vmem:[%s9290_s1 + $0xb28] sm:$0xff]   ;;  %v7467_v8 = vld [vmem:[%s9290_s1 + $0xcf0] sm:$0xff]  }
 0x147   :  { %v6532_v36 = vadd.f32 %v6531_v33, %v6530_v29  ;;  %v6511_v38 = vpop.f32.mrf.mxu0  ;;  %5423 = vmatprep.mubr.bf16.mxu1 %v427_v12  ;;  %v7441_v33 = vld [vmem:[%s9290_s1 + $0xb60] sm:$0xff]   ;;  %v7469_v12 = vld [vmem:[%s9290_s1 + $0xcb0] sm:$0xff]  }
 0x148   :  { %v6533_v39 = vpop.f32.mrf.mxu1  ;;  %v4826_v42 = vadd.f32 %v6510_v35, %v8600_v56  ;;  %6803 = vmatpush3.bf16.msra.mxu0 %v7402_v27  ;;  %v7418_v56 = vld [vmem:[%s9290_s1 + $0xa10] sm:$0xff]   ;;  %v7443_v38 = vld [vmem:[%s9290_s1 + $0xb20] sm:$0xff]  }
 0x149   :  { %6825 = vmatpush3.bf16.msra.mxu1 %v7403_v30  ;;  %v6512_v44 = vpop.f32.mrf.mxu0  ;;  %6804 = vmatprep.subr.bf16.mxu0 %v7404_v31  ;;  %v7440_v31 = vld [vmem:[%s9290_s1 + $0xba8] sm:$0xff]   ;;  %v7444_v39 = vld [vmem:[%s9290_s1 + $0xba0] sm:$0xff]  }
 0x14a   :  { %v6534_v45 = vpop.f32.mrf.mxu1  ;;  %6826 = vmatprep.subr.bf16.mxu1 %v7405_v34  ;;  %v8704_v47 = vadd.f32 %v6532_v36, %v4826_v42  ;;  %v7442_v36 = vld [vmem:[%s9290_s1 + $0xbe0] sm:$0xff]   ;;  %v7446_v42 = vld [vmem:[%s9290_s1 + $0xbd8] sm:$0xff]  }
 0x14b   :  { %v7448_v44 = vld [vmem:[%s9290_s1 + $0xb98] sm:$0xff]   ;;  %v7449_v45 = vld [vmem:[%s9290_s1 + $0xb50] sm:$0xff]  }
 0x14c   :  { %6805 = vmatpush3.bf16.msra.mxu0 %v7406_v37 }
 0x14d   :  { %6827 = vmatpush3.bf16.msra.mxu1 %v7407_v40  ;;  %6806 = vmatprep.subr.bf16.mxu0 %v7408_v43  ;;  %v7445_v40 = vld [vmem:[%s9290_s1 + $0xb58] sm:$0xff]  }
 0x14e   :  { %6828 = vmatprep.subr.bf16.mxu1 %v7409_v46  ;;  %v7447_v43 = vld [vmem:[%s9290_s1 + $0xb18] sm:$0xff]   ;;  %v7450_v46 = vld [vmem:[%s9290_s1 + $0xbd0] sm:$0xff]  }
 0x150   :  { %6807 = vmatpush3.bf16.msra.mxu0 %v7410_v48  ;;  %v7452_v48 = vld [vmem:[%s9290_s1 + $0xb90] sm:$0xff]  }
 0x151   :  { %6829 = vmatpush3.bf16.msra.mxu1 %v7411_v49  ;;  %6808 = vmatprep.subr.bf16.mxu0 %v7412_v50  ;;  %v7453_v49 = vld [vmem:[%s9290_s1 + $0xb48] sm:$0xff]  }
 0x152   :  { %6830 = vmatprep.subr.bf16.mxu1 %v7413_v51  ;;  %v7454_v50 = vld [vmem:[%s9290_s1 + $0xbc8] sm:$0xff]  }
 0x153   :  { %v7455_v51 = vld [vmem:[%s9290_s1 + $0xb08] sm:$0xff]  }
 0x154   :  { %6809 = vmatpush3.bf16.msra.mxu0 %v7414_v52  ;;  %v7456_v52 = vld [vmem:[%s9290_s1 + $0xb88] sm:$0xff]  }
 0x155   :  { %6831 = vmatpush3.bf16.msra.mxu1 %v7415_v53  ;;  %6810 = vmatprep.subr.bf16.mxu0 %v7416_v54  ;;  %v7457_v53 = vld [vmem:[%s9290_s1 + $0xb40] sm:$0xff]  }
 0x156   :  { %6832 = vmatprep.subr.bf16.mxu1 %v7417_v55  ;;  %v7458_v54 = vld [vmem:[%s9290_s1 + $0xbc0] sm:$0xff]   ;;  %v27_v55 = vld [vmem:[%s9289_s0 + $0x58] sm:$0xff] }
 0x158   :  { %6811 = vmatpush3.bf16.msra.mxu0 %v7418_v56  ;;  %v7459_v56 = vld [vmem:[%s9290_s1 + $0xb00] sm:$0xff]  }
 0x159   :  { %6833 = vmatpush3.bf16.msra.mxu1 %v7419_v57  ;;  %6812 = vmatprep.subr.bf16.mxu0 %v7420_v58  ;;  %v242_v57 = vrot.slane %v27_v55, %v7743_v41  ;;  %v235_v58 = vcombine.high %v27_v55, %v27_v55 }
 0x15a   :  { %6834 = vmatprep.subr.bf16.mxu1 %v7421_v59  ;;  %v7460_v59 = vld [vmem:[%s9290_s1 + $0xb80] sm:$0xff]  }
 0x15c   :  { %6813 = vmatpush3.bf16.msra.mxu0 %v7422_v60  ;;  %v250_v60 = vcombine.high %v242_v57, %v242_v57 }
 0x15d   :  { %6835 = vmatpush3.bf16.msra.mxu1 %v7423_v61  ;;  %6814 = vmatprep.subr.bf16.mxu0 %v7424_v62  ;;  %v249_v61 = vrot.slane %v235_v58, %v7743_v41  ;;  %v7462_v62 = vld [vmem:[%s9290_s1 + $0xc78] sm:$0xff]  }
 0x15e   :  { %6836 = vmatprep.subr.bf16.mxu1 %v7425_v0  ;;  %v429_v0 = vpack.c.bf16 %v250_v60, %v250_v60  ;;  %v7498_v60 = vld [vmem:[%s9290_s1 + $0xdb8] sm:$0xff]  }
 0x15f   :  { %v251_v1 = vcombine.high %v249_v61, %v249_v61 }
 0x160   :  { %6815 = vmatpush3.bf16.msra.mxu0 %v7426_v3  ;;  %v428_v3 = vpack.c.bf16 %v242_v57, %v242_v57  ;;  %v7497_v57 = vld [vmem:[%s9290_s1 + $0xd38] sm:$0xff]  }
 0x161   :  { %6837 = vmatpush3.bf16.msra.mxu1 %v7427_v4  ;;  %6844 = vmatprep.subr.bf16.mxu0 %v7429_v7  ;;  %v430_v4 = vpack.c.bf16 %v249_v61, %v249_v61  ;;  %v431_v6 = vpack.c.bf16 %v251_v1, %v251_v1  ;;  %v7466_v7 = vld [vmem:[%s9290_s1 + $0xc70] sm:$0xff]  }
 0x162   :  { %6866 = vmatprep.subr.bf16.mxu1 %v7430_v10 }
 0x163   :  { %v6552_v19 = vpop.f32.mrf.mxu0  ;;  %5384 = vmatmul.mubr.bf16.vlgmr.msra.gmra.mxu0 %v424_v13  ;;  %v7470_v13 = vld [vmem:[%s9290_s1 + $0xc68] sm:$0xff]  }
 0x164   :  { %v6574_v20 = vpop.f32.mrf.mxu1  ;;  %5424 = vmatmul.mubr.bf16.vlgmr.msra.gmra.mxu1 %v426_v14  ;;  %6845 = vmatpush3.bf16.msra.mxu0 %v7431_v11 }
 0x165   :  { %6867 = vmatpush3.bf16.msra.mxu1 %v7432_v15  ;;  %v6553_v23 = vpop.f32.mrf.mxu0  ;;  %6846 = vmatprep.subr.bf16.mxu0 %v7433_v16  ;;  %v7471_v16 = vld [vmem:[%s9290_s1 + $0xce8] sm:$0xff]  }
 0x166   :  { %v6575_v24 = vpop.f32.mrf.mxu1  ;;  %6868 = vmatprep.subr.bf16.mxu1 %v7434_v17  ;;  %v6554_v26 = vadd.f32 %v6553_v23, %v6552_v19  ;;  %5463 = vmatprep.mubr.bf16.mxu0 %v429_v0  ;;  %v7472_v19 = vld [vmem:[%s9290_s1 + $0xc28] sm:$0xff]   ;;  %v7501_v0 = vld [vmem:[%s9290_s1 + $0xd30] sm:$0xff]  }
 0x167   :  { %v6576_v27 = vadd.f32 %v6575_v24, %v6574_v20  ;;  %v6555_v29 = vpop.f32.mrf.mxu0  ;;  %5503 = vmatprep.mubr.bf16.mxu1 %v431_v6  ;;  %v7474_v24 = vld [vmem:[%s9290_s1 + $0xc60] sm:$0xff]  }
 0x168   :  { %v6577_v30 = vpop.f32.mrf.mxu1  ;;  %v4906_v32 = vadd.f32 %v6554_v26, %v8704_v47  ;;  %6847 = vmatpush3.bf16.msra.mxu0 %v7435_v18  ;;  %v7451_v47 = vld [vmem:[%s9290_s1 + $0xb10] sm:$0xff]   ;;  %v7476_v29 = vld [vmem:[%s9290_s1 + $0xc20] sm:$0xff]  }
 0x169   :  { %6869 = vmatpush3.bf16.msra.mxu1 %v7436_v21  ;;  %v6556_v34 = vpop.f32.mrf.mxu0  ;;  %6848 = vmatprep.subr.bf16.mxu0 %v7437_v22  ;;  %v7473_v22 = vld [vmem:[%s9290_s1 + $0xca8] sm:$0xff]   ;;  %v7477_v30 = vld [vmem:[%s9290_s1 + $0xca0] sm:$0xff]  }
 0x16a   :  { %v6578_v35 = vpop.f32.mrf.mxu1  ;;  %6870 = vmatprep.subr.bf16.mxu1 %v7438_v25  ;;  %v8808_v37 = vadd.f32 %v6576_v27, %v4906_v32  ;;  %v7475_v27 = vld [vmem:[%s9290_s1 + $0xce0] sm:$0xff]   ;;  %v7479_v32 = vld [vmem:[%s9290_s1 + $0xcd8] sm:$0xff]  }
 0x16b   :  { %v7481_v34 = vld [vmem:[%s9290_s1 + $0xc98] sm:$0xff]   ;;  %v7482_v35 = vld [vmem:[%s9290_s1 + $0xc50] sm:$0xff]  }
 0x16c   :  { %6849 = vmatpush3.bf16.msra.mxu0 %v7439_v28 }
 0x16d   :  { %6871 = vmatpush3.bf16.msra.mxu1 %v7440_v31  ;;  %6850 = vmatprep.subr.bf16.mxu0 %v7441_v33  ;;  %v7478_v31 = vld [vmem:[%s9290_s1 + $0xc58] sm:$0xff]  }
 0x16e   :  { %6872 = vmatprep.subr.bf16.mxu1 %v7442_v36  ;;  %v7480_v33 = vld [vmem:[%s9290_s1 + $0xc18] sm:$0xff]   ;;  %v7483_v36 = vld [vmem:[%s9290_s1 + $0xcd0] sm:$0xff]  }
 0x170   :  { %6851 = vmatpush3.bf16.msra.mxu0 %v7443_v38  ;;  %v7485_v38 = vld [vmem:[%s9290_s1 + $0xc90] sm:$0xff]  }
 0x171   :  { %6873 = vmatpush3.bf16.msra.mxu1 %v7444_v39  ;;  %6852 = vmatprep.subr.bf16.mxu0 %v7445_v40  ;;  %v7486_v39 = vld [vmem:[%s9290_s1 + $0xc48] sm:$0xff]  }
 0x172   :  { %6874 = vmatprep.subr.bf16.mxu1 %v7446_v42  ;;  %v7487_v40 = vld [vmem:[%s9290_s1 + $0xcc8] sm:$0xff]  }
 0x173   :  { %v7488_v42 = vld [vmem:[%s9290_s1 + $0xc08] sm:$0xff]  }
 0x174   :  { %6853 = vmatpush3.bf16.msra.mxu0 %v7447_v43  ;;  %v7489_v43 = vld [vmem:[%s9290_s1 + $0xc88] sm:$0xff]  }
 0x175   :  { %6875 = vmatpush3.bf16.msra.mxu1 %v7448_v44  ;;  %6854 = vmatprep.subr.bf16.mxu0 %v7449_v45  ;;  %v7490_v44 = vld [vmem:[%s9290_s1 + $0xc40] sm:$0xff]  }
 0x176   :  { %6876 = vmatprep.subr.bf16.mxu1 %v7450_v46  ;;  %v7491_v45 = vld [vmem:[%s9290_s1 + $0xcc0] sm:$0xff]  }
 0x177   :  { %v28_v46 = vld [vmem:[%s9289_s0 + $0x60] sm:$0xff] }
 0x178   :  { %6855 = vmatpush3.bf16.msra.mxu0 %v7451_v47  ;;  %v7492_v47 = vld [vmem:[%s9290_s1 + $0xc00] sm:$0xff]  }
 0x179   :  { %6877 = vmatpush3.bf16.msra.mxu1 %v7452_v48  ;;  %6856 = vmatprep.subr.bf16.mxu0 %v7453_v49  ;;  %v259_v48 = vrot.slane %v28_v46, %v7743_v41  ;;  %v252_v49 = vcombine.high %v28_v46, %v28_v46 }
 0x17a   :  { %6878 = vmatprep.subr.bf16.mxu1 %v7454_v50  ;;  %v7493_v50 = vld [vmem:[%s9290_s1 + $0xc80] sm:$0xff]  }
 0x17b   :  { %v432_v58 = vpack.c.bf16 %v259_v48, %v259_v48 }
 0x17c   :  { %6857 = vmatpush3.bf16.msra.mxu0 %v7455_v51  ;;  %v267_v51 = vcombine.high %v259_v48, %v259_v48  ;;  %v7530_v48 = vld [vmem:[%s9290_s1 + $0xe38] sm:$0xff]  }
 0x17d   :  { %6879 = vmatpush3.bf16.msra.mxu1 %v7456_v52  ;;  %6858 = vmatprep.subr.bf16.mxu0 %v7457_v53  ;;  %v266_v52 = vrot.slane %v252_v49, %v7743_v41  ;;  %v7495_v53 = vld [vmem:[%s9290_s1 + $0xd78] sm:$0xff]  }
 0x17e   :  { %6880 = vmatprep.subr.bf16.mxu1 %v7458_v54  ;;  %v7496_v54 = vld [vmem:[%s9290_s1 + $0xdf8] sm:$0xff]   ;;  %v433_v55 = vpack.c.bf16 %v267_v51, %v267_v51 }
 0x17f   :  { %v7531_v51 = vld [vmem:[%s9290_s1 + $0xeb8] sm:$0xff]  }
 0x180   :  { %6859 = vmatpush3.bf16.msra.mxu0 %v7459_v56  ;;  %v268_v56 = vcombine.high %v266_v52, %v266_v52 }
 0x181   :  { %6881 = vmatpush3.bf16.msra.mxu1 %v7460_v59  ;;  %6888 = vmatprep.subr.bf16.mxu0 %v7462_v62  ;;  %v434_v59 = vpack.c.bf16 %v266_v52, %v266_v52  ;;  %v7499_v62 = vld [vmem:[%s9290_s1 + $0xd70] sm:$0xff]  }
 0x182   :  { %6910 = vmatprep.subr.bf16.mxu1 %v7463_v63  ;;  %v435_v61 = vpack.c.bf16 %v268_v56, %v268_v56  ;;  %v7500_v63 = vld [vmem:[%s9290_s1 + $0xdf0] sm:$0xff]  }
 0x183   :  { %v6596_v10 = vpop.f32.mrf.mxu0  ;;  %5464 = vmatmul.mubr.bf16.vlgmr.msra.gmra.mxu0 %v428_v3  ;;  %v7502_v3 = vld [vmem:[%s9290_s1 + $0xdb0] sm:$0xff]  }
 0x184   :  { %v6618_v11 = vpop.f32.mrf.mxu1  ;;  %5504 = vmatmul.mubr.bf16.vlgmr.msra.gmra.mxu1 %v430_v4  ;;  %6889 = vmatpush3.bf16.msra.mxu0 %v7464_v2  ;;  %v7503_v4 = vld [vmem:[%s9290_s1 + $0xd68] sm:$0xff]  }
 0x185   :  { %6911 = vmatpush3.bf16.msra.mxu1 %v7465_v5  ;;  %v6597_v14 = vpop.f32.mrf.mxu0  ;;  %6890 = vmatprep.subr.bf16.mxu0 %v7466_v7  ;;  %v7504_v7 = vld [vmem:[%s9290_s1 + $0xde8] sm:$0xff]  }
 0x186   :  { %v6619_v15 = vpop.f32.mrf.mxu1  ;;  %6912 = vmatprep.subr.bf16.mxu1 %v7467_v8  ;;  %v6598_v17 = vadd.f32 %v6597_v14, %v6596_v10  ;;  %5543 = vmatprep.mubr.bf16.mxu0 %v433_v55  ;;  %v7505_v10 = vld [vmem:[%s9290_s1 + $0xd28] sm:$0xff]   ;;  %v7534_v55 = vld [vmem:[%s9290_s1 + $0xe30] sm:$0xff]  }
 0x187   :  { %v6620_v18 = vadd.f32 %v6619_v15, %v6618_v11  ;;  %v6599_v20 = vpop.f32.mrf.mxu0  ;;  %5583 = vmatprep.mubr.bf16.mxu1 %v435_v61  ;;  %v7507_v15 = vld [vmem:[%s9290_s1 + $0xd60] sm:$0xff]  }
 0x188   :  { %v6621_v21 = vpop.f32.mrf.mxu1  ;;  %v4986_v23 = vadd.f32 %v6598_v17, %v8808_v37  ;;  %6891 = vmatpush3.bf16.msra.mxu0 %v7468_v9  ;;  %v7484_v37 = vld [vmem:[%s9290_s1 + $0xc10] sm:$0xff]   ;;  %v7509_v20 = vld [vmem:[%s9290_s1 + $0xd20] sm:$0xff]  }
 0x189   :  { %6913 = vmatpush3.bf16.msra.mxu1 %v7469_v12  ;;  %v6600_v25 = vpop.f32.mrf.mxu0  ;;  %6892 = vmatprep.subr.bf16.mxu0 %v7470_v13  ;;  %v7506_v13 = vld [vmem:[%s9290_s1 + $0xda8] sm:$0xff]   ;;  %v7510_v21 = vld [vmem:[%s9290_s1 + $0xda0] sm:$0xff]  }
 0x18a   :  { %v6622_v26 = vpop.f32.mrf.mxu1  ;;  %6914 = vmatprep.subr.bf16.mxu1 %v7471_v16  ;;  %v8912_v28 = vadd.f32 %v6620_v18, %v4986_v23  ;;  %v7508_v18 = vld [vmem:[%s9290_s1 + $0xde0] sm:$0xff]   ;;  %v7512_v23 = vld [vmem:[%s9290_s1 + $0xdd8] sm:$0xff]  }
 0x18b   :  { %v7514_v25 = vld [vmem:[%s9290_s1 + $0xd98] sm:$0xff]   ;;  %v7515_v26 = vld [vmem:[%s9290_s1 + $0xd50] sm:$0xff]  }
 0x18c   :  { %6893 = vmatpush3.bf16.msra.mxu0 %v7472_v19 }
 0x18d   :  { %6915 = vmatpush3.bf16.msra.mxu1 %v7473_v22  ;;  %6894 = vmatprep.subr.bf16.mxu0 %v7474_v24  ;;  %v7511_v22 = vld [vmem:[%s9290_s1 + $0xd58] sm:$0xff]  }
 0x18e   :  { %6916 = vmatprep.subr.bf16.mxu1 %v7475_v27  ;;  %v7513_v24 = vld [vmem:[%s9290_s1 + $0xd18] sm:$0xff]   ;;  %v7516_v27 = vld [vmem:[%s9290_s1 + $0xdd0] sm:$0xff]  }
 0x190   :  { %6895 = vmatpush3.bf16.msra.mxu0 %v7476_v29  ;;  %v7518_v29 = vld [vmem:[%s9290_s1 + $0xd90] sm:$0xff]  }
 0x191   :  { %6917 = vmatpush3.bf16.msra.mxu1 %v7477_v30  ;;  %6896 = vmatprep.subr.bf16.mxu0 %v7478_v31  ;;  %v7519_v30 = vld [vmem:[%s9290_s1 + $0xd48] sm:$0xff]  }
 0x192   :  { %6918 = vmatprep.subr.bf16.mxu1 %v7479_v32  ;;  %v7520_v31 = vld [vmem:[%s9290_s1 + $0xdc8] sm:$0xff]  }
 0x193   :  { %v7521_v32 = vld [vmem:[%s9290_s1 + $0xd08] sm:$0xff]  }
 0x194   :  { %6897 = vmatpush3.bf16.msra.mxu0 %v7480_v33  ;;  %v7522_v33 = vld [vmem:[%s9290_s1 + $0xd88] sm:$0xff]  }
 0x195   :  { %6919 = vmatpush3.bf16.msra.mxu1 %v7481_v34  ;;  %6898 = vmatprep.subr.bf16.mxu0 %v7482_v35  ;;  %v7523_v34 = vld [vmem:[%s9290_s1 + $0xd40] sm:$0xff]  }
 0x196   :  { %6920 = vmatprep.subr.bf16.mxu1 %v7483_v36  ;;  %v7524_v35 = vld [vmem:[%s9290_s1 + $0xdc0] sm:$0xff]   ;;  %v29_v36 = vld [vmem:[%s9289_s0 + $0x68] sm:$0xff] }
 0x198   :  { %6899 = vmatpush3.bf16.msra.mxu0 %v7484_v37  ;;  %v7525_v37 = vld [vmem:[%s9290_s1 + $0xd00] sm:$0xff]  }
 0x199   :  { %6921 = vmatpush3.bf16.msra.mxu1 %v7485_v38  ;;  %6900 = vmatprep.subr.bf16.mxu0 %v7486_v39  ;;  %v276_v38 = vrot.slane %v29_v36, %v7743_v41  ;;  %v269_v39 = vcombine.high %v29_v36, %v29_v36 }
 0x19a   :  { %6922 = vmatprep.subr.bf16.mxu1 %v7487_v40  ;;  %v7526_v40 = vld [vmem:[%s9290_s1 + $0xd80] sm:$0xff]  }
 0x19b   :  { %v436_v49 = vpack.c.bf16 %v276_v38, %v276_v38 }
 0x19c   :  { %6901 = vmatpush3.bf16.msra.mxu0 %v7488_v42  ;;  %v284_v42 = vcombine.high %v276_v38, %v276_v38 }
 0x19d   :  { %6923 = vmatpush3.bf16.msra.mxu1 %v7489_v43  ;;  %6902 = vmatprep.subr.bf16.mxu0 %v7490_v44  ;;  %v283_v43 = vrot.slane %v269_v39, %v7743_v41  ;;  %v7528_v44 = vld [vmem:[%s9290_s1 + $0xe78] sm:$0xff]  }
 0x19e   :  { %6924 = vmatprep.subr.bf16.mxu1 %v7491_v45  ;;  %v7529_v45 = vld [vmem:[%s9290_s1 + $0xef8] sm:$0xff]   ;;  %v437_v46 = vpack.c.bf16 %v284_v42, %v284_v42 }
 0x19f   :  { %v7563_v39 = vld [vmem:[%s9290_s1 + $0xf38] sm:$0xff]  }
 0x1a0   :  { %6903 = vmatpush3.bf16.msra.mxu0 %v7492_v47  ;;  %v285_v47 = vcombine.high %v283_v43, %v283_v43  ;;  %v7564_v42 = vld [vmem:[%s9290_s1 + $0xfb8] sm:$0xff]  }
 0x1a1   :  { %6925 = vmatpush3.bf16.msra.mxu1 %v7493_v50  ;;  %6932 = vmatprep.subr.bf16.mxu0 %v7495_v53  ;;  %v438_v50 = vpack.c.bf16 %v283_v43, %v283_v43  ;;  %v7532_v53 = vld [vmem:[%s9290_s1 + $0xe70] sm:$0xff]  }
 0x1a2   :  { %6954 = vmatprep.subr.bf16.mxu1 %v7496_v54  ;;  %v439_v52 = vpack.c.bf16 %v285_v47, %v285_v47  ;;  %v7533_v54 = vld [vmem:[%s9290_s1 + $0xef0] sm:$0xff]  }
 0x1a3   :  { %v6640_v1 = vpop.f32.mrf.mxu0  ;;  %5544 = vmatmul.mubr.bf16.vlgmr.msra.gmra.mxu0 %v432_v58  ;;  %v7535_v58 = vld [vmem:[%s9290_s1 + $0xeb0] sm:$0xff]  }
 0x1a4   :  { %v6662_v2 = vpop.f32.mrf.mxu1  ;;  %5584 = vmatmul.mubr.bf16.vlgmr.msra.gmra.mxu1 %v434_v59  ;;  %6933 = vmatpush3.bf16.msra.mxu0 %v7497_v57  ;;  %v7536_v59 = vld [vmem:[%s9290_s1 + $0xe68] sm:$0xff]  }
 0x1a5   :  { %6955 = vmatpush3.bf16.msra.mxu1 %v7498_v60  ;;  %v6641_v5 = vpop.f32.mrf.mxu0  ;;  %6934 = vmatprep.subr.bf16.mxu0 %v7499_v62  ;;  %v7537_v62 = vld [vmem:[%s9290_s1 + $0xee8] sm:$0xff]  }
 0x1a6   :  { %v6663_v6 = vpop.f32.mrf.mxu1  ;;  %6956 = vmatprep.subr.bf16.mxu1 %v7500_v63  ;;  %v6642_v8 = vadd.f32 %v6641_v5, %v6640_v1  ;;  %5623 = vmatprep.mubr.bf16.mxu0 %v437_v46  ;;  %v7538_v1 = vld [vmem:[%s9290_s1 + $0xe28] sm:$0xff]  }
 0x1a7   :  { %v6664_v9 = vadd.f32 %v6663_v6, %v6662_v2  ;;  %v6643_v11 = vpop.f32.mrf.mxu0  ;;  %5663 = vmatprep.mubr.bf16.mxu1 %v439_v52  ;;  %v7540_v6 = vld [vmem:[%s9290_s1 + $0xe60] sm:$0xff]   ;;  %v7569_v52 = vld [vmem:[%s9290_s1 + $0xf68] sm:$0xff]  }
 0x1a8   :  { %v6665_v12 = vpop.f32.mrf.mxu1  ;;  %v5066_v14 = vadd.f32 %v6642_v8, %v8912_v28  ;;  %6935 = vmatpush3.bf16.msra.mxu0 %v7501_v0  ;;  %v7517_v28 = vld [vmem:[%s9290_s1 + $0xd10] sm:$0xff]   ;;  %v7542_v11 = vld [vmem:[%s9290_s1 + $0xe20] sm:$0xff]  }
 0x1a9   :  { %6957 = vmatpush3.bf16.msra.mxu1 %v7502_v3  ;;  %v6644_v16 = vpop.f32.mrf.mxu0  ;;  %6936 = vmatprep.subr.bf16.mxu0 %v7503_v4  ;;  %v7539_v4 = vld [vmem:[%s9290_s1 + $0xea8] sm:$0xff]   ;;  %v7543_v12 = vld [vmem:[%s9290_s1 + $0xea0] sm:$0xff]  }
 0x1aa   :  { %v6666_v17 = vpop.f32.mrf.mxu1  ;;  %6958 = vmatprep.subr.bf16.mxu1 %v7504_v7  ;;  %v9016_v19 = vadd.f32 %v6664_v9, %v5066_v14  ;;  %v7541_v9 = vld [vmem:[%s9290_s1 + $0xee0] sm:$0xff]   ;;  %v7545_v14 = vld [vmem:[%s9290_s1 + $0xed8] sm:$0xff]  }
 0x1ab   :  { %v7547_v16 = vld [vmem:[%s9290_s1 + $0xe98] sm:$0xff]   ;;  %v7548_v17 = vld [vmem:[%s9290_s1 + $0xe50] sm:$0xff]  }
 0x1ac   :  { %6937 = vmatpush3.bf16.msra.mxu0 %v7505_v10 }
 0x1ad   :  { %6959 = vmatpush3.bf16.msra.mxu1 %v7506_v13  ;;  %6938 = vmatprep.subr.bf16.mxu0 %v7507_v15  ;;  %v7544_v13 = vld [vmem:[%s9290_s1 + $0xe58] sm:$0xff]  }
 0x1ae   :  { %6960 = vmatprep.subr.bf16.mxu1 %v7508_v18  ;;  %v7546_v15 = vld [vmem:[%s9290_s1 + $0xe18] sm:$0xff]   ;;  %v7549_v18 = vld [vmem:[%s9290_s1 + $0xed0] sm:$0xff]  }
 0x1b0   :  { %6939 = vmatpush3.bf16.msra.mxu0 %v7509_v20  ;;  %v7551_v20 = vld [vmem:[%s9290_s1 + $0xe90] sm:$0xff]  }
 0x1b1   :  { %6961 = vmatpush3.bf16.msra.mxu1 %v7510_v21  ;;  %6940 = vmatprep.subr.bf16.mxu0 %v7511_v22  ;;  %v7552_v21 = vld [vmem:[%s9290_s1 + $0xe48] sm:$0xff]  }
 0x1b2   :  { %6962 = vmatprep.subr.bf16.mxu1 %v7512_v23  ;;  %v7553_v22 = vld [vmem:[%s9290_s1 + $0xec8] sm:$0xff]  }
 0x1b3   :  { %v7554_v23 = vld [vmem:[%s9290_s1 + $0xe08] sm:$0xff]  }
 0x1b4   :  { %6941 = vmatpush3.bf16.msra.mxu0 %v7513_v24  ;;  %v7555_v24 = vld [vmem:[%s9290_s1 + $0xe88] sm:$0xff]  }
 0x1b5   :  { %6963 = vmatpush3.bf16.msra.mxu1 %v7514_v25  ;;  %6942 = vmatprep.subr.bf16.mxu0 %v7515_v26  ;;  %v7556_v25 = vld [vmem:[%s9290_s1 + $0xe40] sm:$0xff]  }
 0x1b6   :  { %6964 = vmatprep.subr.bf16.mxu1 %v7516_v27  ;;  %v7557_v26 = vld [vmem:[%s9290_s1 + $0xec0] sm:$0xff]   ;;  %v30_v27 = vld [vmem:[%s9289_s0 + $0x70] sm:$0xff] }
 0x1b8   :  { %6943 = vmatpush3.bf16.msra.mxu0 %v7517_v28  ;;  %v7558_v28 = vld [vmem:[%s9290_s1 + $0xe00] sm:$0xff]  }
 0x1b9   :  { %6965 = vmatpush3.bf16.msra.mxu1 %v7518_v29  ;;  %6944 = vmatprep.subr.bf16.mxu0 %v7519_v30  ;;  %v293_v29 = vrot.slane %v30_v27, %v7743_v41  ;;  %v286_v30 = vcombine.high %v30_v27, %v30_v27 }
 0x1ba   :  { %6966 = vmatprep.subr.bf16.mxu1 %v7520_v31  ;;  %v7559_v31 = vld [vmem:[%s9290_s1 + $0xe80] sm:$0xff]  }
 0x1bb   :  { %v440_v38 = vpack.c.bf16 %v293_v29, %v293_v29 }
 0x1bc   :  { %6945 = vmatpush3.bf16.msra.mxu0 %v7521_v32  ;;  %v301_v32 = vcombine.high %v293_v29, %v293_v29 }
 0x1bd   :  { %6967 = vmatpush3.bf16.msra.mxu1 %v7522_v33  ;;  %6946 = vmatprep.subr.bf16.mxu0 %v7523_v34  ;;  %v300_v33 = vrot.slane %v286_v30, %v7743_v41  ;;  %v7561_v34 = vld [vmem:[%s9290_s1 + $0xf78] sm:$0xff]  }
 0x1be   :  { %6968 = vmatprep.subr.bf16.mxu1 %v7524_v35  ;;  %v7562_v35 = vld [vmem:[%s9290_s1 + $0xff8] sm:$0xff]   ;;  %v441_v36 = vpack.c.bf16 %v301_v32, %v301_v32 }
 0x1c0   :  { %6947 = vmatpush3.bf16.msra.mxu0 %v7525_v37  ;;  %v302_v37 = vcombine.high %v300_v33, %v300_v33 }
 0x1c1   :  { %6969 = vmatpush3.bf16.msra.mxu1 %v7526_v40  ;;  %6976 = vmatprep.subr.bf16.mxu0 %v7528_v44  ;;  %v442_v40 = vpack.c.bf16 %v300_v33, %v300_v33  ;;  %v7565_v44 = vld [vmem:[%s9290_s1 + $0xf70] sm:$0xff]  }
 0x1c2   :  { %6998 = vmatprep.subr.bf16.mxu1 %v7529_v45  ;;  %v443_v43 = vpack.c.bf16 %v302_v37, %v302_v37  ;;  %v7566_v45 = vld [vmem:[%s9290_s1 + $0xff0] sm:$0xff]  }
 0x1c3   :  { %v6684_v56 = vpop.f32.mrf.mxu0  ;;  %5624 = vmatmul.mubr.bf16.vlgmr.msra.gmra.mxu0 %v436_v49  ;;  %v7568_v49 = vld [vmem:[%s9290_s1 + $0xfb0] sm:$0xff]  }
 0x1c4   :  { %v6706_v57 = vpop.f32.mrf.mxu1  ;;  %5664 = vmatmul.mubr.bf16.vlgmr.msra.gmra.mxu1 %v438_v50  ;;  %6977 = vmatpush3.bf16.msra.mxu0 %v7530_v48  ;;  %v7567_v48 = vld [vmem:[%s9290_s1 + $0xf30] sm:$0xff]  }
 0x1c5   :  { %6999 = vmatpush3.bf16.msra.mxu1 %v7531_v51  ;;  %v6685_v60 = vpop.f32.mrf.mxu0  ;;  %6978 = vmatprep.subr.bf16.mxu0 %v7532_v53 }
 0x1c6   :  { %v6707_v61 = vpop.f32.mrf.mxu1  ;;  %7000 = vmatprep.subr.bf16.mxu1 %v7533_v54  ;;  %v6686_v63 = vadd.f32 %v6685_v60, %v6684_v56  ;;  %5703 = vmatprep.mubr.bf16.mxu0 %v441_v36  ;;  %v7572_v60 = vld [vmem:[%s9290_s1 + $0xfa8] sm:$0xff]  }
 0x1c7   :  { %v6708_v0 = vadd.f32 %v6707_v61, %v6706_v57  ;;  %v6687_v2 = vpop.f32.mrf.mxu0  ;;  %5743 = vmatprep.mubr.bf16.mxu1 %v443_v43 }
 0x1c8   :  { %v6709_v3 = vpop.f32.mrf.mxu1  ;;  %v5146_v5 = vadd.f32 %v6686_v63, %v9016_v19  ;;  %6979 = vmatpush3.bf16.msra.mxu0 %v7534_v55  ;;  %v7550_v19 = vld [vmem:[%s9290_s1 + $0xe10] sm:$0xff]   ;;  %v7570_v55 = vld [vmem:[%s9290_s1 + $0xfe8] sm:$0xff]   ;;  %v7573_v63 = vld [vmem:[%s9290_s1 + $0xf60] sm:$0xff]  }
 0x1c9   :  { %7001 = vmatpush3.bf16.msra.mxu1 %v7535_v58  ;;  %v6688_v7 = vpop.f32.mrf.mxu0  ;;  %6980 = vmatprep.subr.bf16.mxu0 %v7536_v59  ;;  %v7571_v58 = vld [vmem:[%s9290_s1 + $0xf28] sm:$0xff]   ;;  %v7575_v2 = vld [vmem:[%s9290_s1 + $0xf20] sm:$0xff]  }
 0x1ca   :  { %v6710_v8 = vpop.f32.mrf.mxu1  ;;  %7002 = vmatprep.subr.bf16.mxu1 %v7537_v62  ;;  %v9120_v10 = vadd.f32 %v6708_v0, %v5146_v5  ;;  %v7576_v3 = vld [vmem:[%s9290_s1 + $0xfa0] sm:$0xff]   ;;  %v7578_v5 = vld [vmem:[%s9290_s1 + $0xfd8] sm:$0xff]  }
 0x1cb   :  { %v7580_v7 = vld [vmem:[%s9290_s1 + $0xf98] sm:$0xff]   ;;  %v7581_v8 = vld [vmem:[%s9290_s1 + $0xf50] sm:$0xff]  }
 0x1cc   :  { %6981 = vmatpush3.bf16.msra.mxu0 %v7538_v1  ;;  %v7574_v1 = vld [vmem:[%s9290_s1 + $0xfe0] sm:$0xff]  }
 0x1cd   :  { %7003 = vmatpush3.bf16.msra.mxu1 %v7539_v4  ;;  %6982 = vmatprep.subr.bf16.mxu0 %v7540_v6  ;;  %v7577_v4 = vld [vmem:[%s9290_s1 + $0xf58] sm:$0xff]  }
 0x1ce   :  { %7004 = vmatprep.subr.bf16.mxu1 %v7541_v9  ;;  %v7579_v6 = vld [vmem:[%s9290_s1 + $0xf18] sm:$0xff]   ;;  %v7582_v9 = vld [vmem:[%s9290_s1 + $0xfd0] sm:$0xff]  }
 0x1d0   :  { %6983 = vmatpush3.bf16.msra.mxu0 %v7542_v11  ;;  %v7584_v11 = vld [vmem:[%s9290_s1 + $0xf90] sm:$0xff]  }
 0x1d1   :  { %7005 = vmatpush3.bf16.msra.mxu1 %v7543_v12  ;;  %6984 = vmatprep.subr.bf16.mxu0 %v7544_v13  ;;  %v7585_v12 = vld [vmem:[%s9290_s1 + $0xf48] sm:$0xff]  }
 0x1d2   :  { %7006 = vmatprep.subr.bf16.mxu1 %v7545_v14  ;;  %v7586_v13 = vld [vmem:[%s9290_s1 + $0xfc8] sm:$0xff]  }
 0x1d3   :  { %v7587_v14 = vld [vmem:[%s9290_s1 + $0xf08] sm:$0xff]  }
 0x1d4   :  { %6985 = vmatpush3.bf16.msra.mxu0 %v7546_v15  ;;  %v7588_v15 = vld [vmem:[%s9290_s1 + $0xf88] sm:$0xff]  }
 0x1d5   :  { %7007 = vmatpush3.bf16.msra.mxu1 %v7547_v16  ;;  %6986 = vmatprep.subr.bf16.mxu0 %v7548_v17  ;;  %v7589_v16 = vld [vmem:[%s9290_s1 + $0xf40] sm:$0xff]  }
 0x1d6   :  { %7008 = vmatprep.subr.bf16.mxu1 %v7549_v18  ;;  %v7590_v17 = vld [vmem:[%s9290_s1 + $0xfc0] sm:$0xff]   ;;  %v31_v18 = vld [vmem:[%s9289_s0 + $0x78] sm:$0xff] }
 0x1d8   :  { %6987 = vmatpush3.bf16.msra.mxu0 %v7550_v19 }
 0x1d9   :  { %7009 = vmatpush3.bf16.msra.mxu1 %v7551_v20  ;;  %6988 = vmatprep.subr.bf16.mxu0 %v7552_v21 }
 0x1da   :  { %7010 = vmatprep.subr.bf16.mxu1 %v7553_v22 }
 0x1dc   :  { %6989 = vmatpush3.bf16.msra.mxu0 %v7554_v23 }
 0x1dd   :  { %7011 = vmatpush3.bf16.msra.mxu1 %v7555_v24  ;;  %6990 = vmatprep.subr.bf16.mxu0 %v7556_v25 }
 0x1de   :  { %7012 = vmatprep.subr.bf16.mxu1 %v7557_v26 }
 0x1e0   :  { %6991 = vmatpush3.bf16.msra.mxu0 %v7558_v28 }
 0x1e1   :  { %7013 = vmatpush3.bf16.msra.mxu1 %v7559_v31  ;;  %7020 = vmatprep.subr.bf16.mxu0 %v7561_v34 }
 0x1e2   :  { %7042 = vmatprep.subr.bf16.mxu1 %v7562_v35 }
 0x1e3   :  { %v6728_v46 = vpop.f32.mrf.mxu0  ;;  %5704 = vmatmul.mubr.bf16.vlgmr.msra.gmra.mxu0 %v440_v38 }
 0x1e4   :  { %v6750_v47 = vpop.f32.mrf.mxu1  ;;  %5744 = vmatmul.mubr.bf16.vlgmr.msra.gmra.mxu1 %v442_v40  ;;  %7021 = vmatpush3.bf16.msra.mxu0 %v7563_v39 }
 0x1e5   :  { %7043 = vmatpush3.bf16.msra.mxu1 %v7564_v42  ;;  %v6729_v50 = vpop.f32.mrf.mxu0  ;;  %7022 = vmatprep.subr.bf16.mxu0 %v7565_v44 }
 0x1e6   :  { %v6751_v51 = vpop.f32.mrf.mxu1  ;;  %v6730_v53 = vadd.f32 %v6729_v50, %v6728_v46  ;;  %7044 = vmatprep.subr.bf16.mxu1 %v7566_v45 }
 0x1e7   :  { %v6752_v54 = vadd.f32 %v6751_v51, %v6750_v47  ;;  %v6731_v56 = vpop.f32.mrf.mxu0 }
 0x1e8   :  { %v6753_v57 = vpop.f32.mrf.mxu1  ;;  %v5226_v59 = vadd.f32 %v6730_v53, %v9120_v10  ;;  %7023 = vmatpush3.bf16.msra.mxu0 %v7567_v48  ;;  %v7583_v10 = vld [vmem:[%s9290_s1 + $0xf10] sm:$0xff]  }
 0x1e9   :  { %7045 = vmatpush3.bf16.msra.mxu1 %v7568_v49  ;;  %v6732_v61 = vpop.f32.mrf.mxu0  ;;  %7024 = vmatprep.subr.bf16.mxu0 %v7569_v52 }
 0x1ea   :  { %v6754_v62 = vpop.f32.mrf.mxu1  ;;  %v9221_v0 = vadd.f32 %v6752_v54, %v5226_v59  ;;  %7046 = vmatprep.subr.bf16.mxu1 %v7570_v55 }
 0x1ec   :  { %7025 = vmatpush3.bf16.msra.mxu0 %v7571_v58 }
 0x1ed   :  { %7047 = vmatpush3.bf16.msra.mxu1 %v7572_v60  ;;  %7026 = vmatprep.subr.bf16.mxu0 %v7573_v63 }
 0x1ee   :  { %7048 = vmatprep.subr.bf16.mxu1 %v7574_v1 }
 0x1f0   :  { %7027 = vmatpush3.bf16.msra.mxu0 %v7575_v2 }
 0x1f1   :  { %7049 = vmatpush3.bf16.msra.mxu1 %v7576_v3  ;;  %7028 = vmatprep.subr.bf16.mxu0 %v7577_v4 }
 0x1f2   :  { %7050 = vmatprep.subr.bf16.mxu1 %v7578_v5 }
 0x1f4   :  { %7029 = vmatpush3.bf16.msra.mxu0 %v7579_v6 }
 0x1f5   :  { %7051 = vmatpush3.bf16.msra.mxu1 %v7580_v7  ;;  %7030 = vmatprep.subr.bf16.mxu0 %v7581_v8 }
 0x1f6   :  { %7052 = vmatprep.subr.bf16.mxu1 %v7582_v9 }
 0x1f8   :  { %7031 = vmatpush3.bf16.msra.mxu0 %v7583_v10 }
 0x1f9   :  { %7053 = vmatpush3.bf16.msra.mxu1 %v7584_v11  ;;  %7032 = vmatprep.subr.bf16.mxu0 %v7585_v12 }
 0x1fa   :  { %7054 = vmatprep.subr.bf16.mxu1 %v7586_v13 }
 0x1fb   :  { %8 = vsyncpa [#allocation3], 0  ;;  %v310_v19 = vrot.slane %v31_v18, %v7743_v41  ;;  %v303_v20 = vcombine.high %v31_v18, %v31_v18  ;;  %v7591_v21 = vld [vmem:[%s9290_s1 + $0xf00] sm:$0xff]   ;;  %s7617_s0 = smov [#allocation2]   ;;  %vm5831_vm0 = vcmask 74752  }
 0x1fc   :  { %7033 = vmatpush3.bf16.msra.mxu0 %v7587_v14  ;;  %v7592_v22 = vld [vmem:[%s9290_s1 + $0xf80] sm:$0xff]   ;;  %s5839_s1 = sshll.u32 %s7617_s0, 4  ;;  %s5840_s1 = int_to_ptr.vmem [resolvable:$true] %s5839_s1 }
 0x1fd   :  { %7055 = vmatpush3.bf16.msra.mxu1 %v7588_v15  ;;  %7034 = vmatprep.subr.bf16.mxu0 %v7589_v16  ;;  %v318_v23 = vcombine.high %v310_v19, %v310_v19  ;;  %v317_v24 = vrot.slane %v303_v20, %v7743_v41  ;;  %v444_v27 = vpack.c.bf16 %v310_v19, %v310_v19  ;;  %s7594_s23 = scalar_lea.vmem %s5840_s1, 32  ;;  %p7599_p1 = scmp.lt.s32.totalorder %s5840_s1, %s5840_s1 }
 0x1fe   :  { %7056 = vmatprep.subr.bf16.mxu1 %v7590_v17  ;;  %p7595_p0 = scmp.ne.s32.totalorder %s5840_s1, %s7594_s23  ;;  %p7600_p2 = scmp.lt.s32.totalorder %s7594_s23, %s7594_s23 }
 0x1ff   :  { %v445_v25 = vpack.c.bf16 %v318_v23, %v318_v23  ;;  %v319_v26 = vcombine.high %v317_v24, %v317_v24  ;;  %v446_v28 = vpack.c.bf16 %v317_v24, %v317_v24 }
 0x200   :  { %7035 = vmatpush3.bf16.msra.mxu0 %v7591_v21  ;;  %p7601_p3 = por %p7600_p2, %p7599_p1 }
 0x201   :  { %7057 = vmatpush3.bf16.msra.mxu1 %v7592_v22  ;;  %5783 = vmatprep.mubr.bf16.mxu0 %v445_v25  ;;  %v447_v29 = vpack.c.bf16 %v319_v26, %v319_v26 }
 0x202   :  { %p7602_p4 = pnand %p7601_p3, %p7595_p0 }
 0x203   :  { %5823 = vmatprep.mubr.bf16.mxu1 %v447_v29  ;;  %v6772_v30 = vpop.f32.mrf.mxu0  ;;  %5784 = vmatmul.mubr.bf16.vlgmr.msra.gmra.mxu0 %v444_v27 }
 0x204   :  { %v6794_v31 = vpop.f32.mrf.mxu1  ;;  %5824 = vmatmul.mubr.bf16.vlgmr.msra.gmra.mxu1 %v446_v28 }
 0x205   :  { %v6773_v32 = vpop.f32.mrf.mxu0 }
 0x206   :  { %v6795_v33 = vpop.f32.mrf.mxu1  ;;  %v6774_v34 = vadd.f32 %v6773_v32, %v6772_v30 }
 0x207   :  { %v6796_v35 = vadd.f32 %v6795_v33, %v6794_v31  ;;  %v6775_v36 = vpop.f32.mrf.mxu0 }
 0x208   :  { %v6797_v41 = vpop.f32.mrf.mxu1  ;;  %v5306_v37 = vadd.f32 %v6774_v34, %v9221_v0 }
 0x209   :  { %v6776_v38 = vpop.f32.mrf.mxu0 }
 0x20a   :  { %v6798_v39 = vpop.f32.mrf.mxu1  ;;  %v5346_v40 = vadd.f32 %v6796_v35, %v5306_v37 }
 0x223   :  { %v6816_v42 = vpop.f32.mrf.mxu0 }
 0x224   :  { %v6838_v43 = vpop.f32.mrf.mxu1 }
 0x225   :  { %v6817_v44 = vpop.f32.mrf.mxu0 }
 0x226   :  { %v6839_v45 = vpop.f32.mrf.mxu1  ;;  %v6818_v46 = vadd.f32 %v6817_v44, %v6816_v42 }
 0x227   :  { %v6840_v47 = vadd.f32 %v6839_v45, %v6838_v43  ;;  %v6819_v48 = vpop.f32.mrf.mxu0 }
 0x228   :  { %v6841_v49 = vpop.f32.mrf.mxu1  ;;  %v5386_v50 = vadd.f32 %v6818_v46, %v5346_v40 }
 0x229   :  { %v6820_v51 = vpop.f32.mrf.mxu0 }
 0x22a   :  { %v6842_v52 = vpop.f32.mrf.mxu1  ;;  %v5426_v53 = vadd.f32 %v6840_v47, %v5386_v50 }
 0x243   :  { %v6860_v54 = vpop.f32.mrf.mxu0 }
 0x244   :  { %v6882_v55 = vpop.f32.mrf.mxu1 }
 0x245   :  { %v6861_v56 = vpop.f32.mrf.mxu0 }
 0x246   :  { %v6883_v57 = vpop.f32.mrf.mxu1  ;;  %v6862_v58 = vadd.f32 %v6861_v56, %v6860_v54 }
 0x247   :  { %v6884_v59 = vadd.f32 %v6883_v57, %v6882_v55  ;;  %v6863_v60 = vpop.f32.mrf.mxu0 }
 0x248   :  { %v6885_v61 = vpop.f32.mrf.mxu1  ;;  %v5466_v62 = vadd.f32 %v6862_v58, %v5426_v53 }
 0x249   :  { %v6864_v63 = vpop.f32.mrf.mxu0 }
 0x24a   :  { %v6886_v0 = vpop.f32.mrf.mxu1  ;;  %v5506_v1 = vadd.f32 %v6884_v59, %v5466_v62 }
 0x263   :  { %v6904_v2 = vpop.f32.mrf.mxu0 }
 0x264   :  { %v6926_v3 = vpop.f32.mrf.mxu1 }
 0x265   :  { %v6905_v4 = vpop.f32.mrf.mxu0 }
 0x266   :  { %v6927_v5 = vpop.f32.mrf.mxu1  ;;  %v6906_v6 = vadd.f32 %v6905_v4, %v6904_v2 }
 0x267   :  { %v6928_v7 = vadd.f32 %v6927_v5, %v6926_v3  ;;  %v6907_v8 = vpop.f32.mrf.mxu0 }
 0x268   :  { %v6929_v9 = vpop.f32.mrf.mxu1  ;;  %v5546_v10 = vadd.f32 %v6906_v6, %v5506_v1 }
 0x269   :  { %v6908_v11 = vpop.f32.mrf.mxu0 }
 0x26a   :  { %v6930_v12 = vpop.f32.mrf.mxu1  ;;  %v5586_v13 = vadd.f32 %v6928_v7, %v5546_v10 }
 0x283   :  { %v6948_v14 = vpop.f32.mrf.mxu0 }
 0x284   :  { %v6970_v15 = vpop.f32.mrf.mxu1 }
 0x285   :  { %v6949_v16 = vpop.f32.mrf.mxu0 }
 0x286   :  { %v6971_v17 = vpop.f32.mrf.mxu1  ;;  %v6950_v30 = vadd.f32 %v6949_v16, %v6948_v14 }
 0x287   :  { %v6951_v18 = vpop.f32.mrf.mxu0  ;;  %v6972_v32 = vadd.f32 %v6971_v17, %v6970_v15 }
 0x288   :  { %v6973_v19 = vpop.f32.mrf.mxu1  ;;  %v5626_v31 = vadd.f32 %v6950_v30, %v5586_v13 }
 0x289   :  { %v6952_v20 = vpop.f32.mrf.mxu0 }
 0x28a   :  { %v6974_v21 = vpop.f32.mrf.mxu1  ;;  %v5666_v34 = vadd.f32 %v6972_v32, %v5626_v31 }
 0x2a3   :  { %v6992_v22 = vpop.f32.mrf.mxu0 }
 0x2a4   :  { %v7014_v23 = vpop.f32.mrf.mxu1 }
 0x2a5   :  { %v6993_v24 = vpop.f32.mrf.mxu0 }
 0x2a6   :  { %v7015_v25 = vpop.f32.mrf.mxu1  ;;  %v6994_v33 = vadd.f32 %v6993_v24, %v6992_v22 }
 0x2a7   :  { %v6995_v26 = vpop.f32.mrf.mxu0  ;;  %v7016_v36 = vadd.f32 %v7015_v25, %v7014_v23 }
 0x2a8   :  { %v7017_v27 = vpop.f32.mrf.mxu1  ;;  %v5706_v35 = vadd.f32 %v6994_v33, %v5666_v34 }
 0x2a9   :  { %v6996_v28 = vpop.f32.mrf.mxu0 }
 0x2aa   :  { %v7018_v29 = vpop.f32.mrf.mxu1  ;;  %v5746_v39 = vadd.f32 %v7016_v36, %v5706_v35 }
 0x2c3   :  { %v7036_v41 = vpop.f32.mrf.mxu0 }
 0x2c4   :  { %v7058_v37 = vpop.f32.mrf.mxu1 }
 0x2c5   :  { %v7037_v38 = vpop.f32.mrf.mxu0 }
 0x2c6   :  { %v7038_v40 = vadd.f32 %v7037_v38, %v7036_v41  ;;  %v7059_v42 = vpop.f32.mrf.mxu1 }
 0x2c7   :  { %v7039_v43 = vpop.f32.mrf.mxu0  ;;  %v7060_v45 = vadd.f32 %v7059_v42, %v7058_v37 }
 0x2c8   :  { %v5786_v44 = vadd.f32 %v7038_v40, %v5746_v39  ;;  %v7061_v46 = vpop.f32.mrf.mxu1 }
 0x2c9   :  { %v7040_v47 = vpop.f32.mrf.mxu0 }
 0x2ca   :  { %v5826_v48 = vadd.f32 %v7060_v45, %v5786_v44  ;;  %v7062_v49 = vpop.f32.mrf.mxu1 }
 0x2cc   :  { %5832 = vst.msk [vmem:[#allocation2] sm:$0x3] %vm5831_vm0, %v5826_v48 }
 0x2cd   :  { %7605 = shalt.err (!%p7602_p4)
}
 0x2ce   :  { %5842 = dma.vmem_to_hbm [thread:$0]  %s5840_s1, 32, %s9292_s3, [#allocation3]  }
 0x2cf   :  { %7614 = dma.done.wait [#allocation3], 32  }
 0x2d0   :  { %7615 = vsyncadd [#allocation3], 4294967264 }
 0x2d1   :  { %5846 = vsyncpa [#allocation3], 1 }

</bundles_post_ra>
